<compile_context>
chip_gen: v7x
topology: tpu7x:2x2x1
jax: 0.10.0
libtpu: 0.0.40
codegen_flags: <defaults>
</compile_context>

<pallas_src>
import functools

import jax
import jax.numpy as jnp
from jax.experimental import pallas as pl
from jax.experimental.pallas import tpu as pltpu

EPS = 1e-5

# Rows-per-block for the pipelined grid.  Kept small here so the toy test
# shapes exercise the multi-step stats-accumulation path; for real shapes
# pick the largest tile that double-buffers within VMEM (>=512 rows on
# v5e/v6e's 128 MiB, roughly half that on v7x's 64 MiB).
ROW_TILE = 64


def _round_up(x, m):
    return ((x + m - 1) // m) * m


def _grid_rows(rows):
    """Row tile (multiple of 16, bf16-friendly) and padded row count."""
    tr = min(ROW_TILE, _round_up(rows, 16))
    return tr, _round_up(rows, tr)


# ----------------------------------------------------------------------------
# Kernels
# ----------------------------------------------------------------------------
def conv_stats_kernel(x_ref, w_ref, y_ref, stats_ref):
    """One big-K matmul tile + per-channel sum / sum-of-squares accumulation.

    x_ref: (TR, Kc) bf16, w_ref: (Kc, Ceff) bf16 (resident across grid),
    y_ref: (TR, Ceff) f32 (tiled), stats_ref: (2, Ceff) f32 (resident acc).
    """
    acc = jnp.dot(x_ref[...], w_ref[...], preferred_element_type=jnp.float32)
    y_ref[...] = acc

    @pl.when(pl.program_id(0) == 0)
    def _init():
        stats_ref[...] = jnp.zeros_like(stats_ref)

    part = jnp.concatenate(
        [jnp.sum(acc, axis=0, keepdims=True),
         jnp.sum(acc * acc, axis=0, keepdims=True)], axis=0)
    stats_ref[...] += part


def conv_bias_act_kernel(x_ref, w_ref, b_ref, y_ref, *, act):
    """Matmul + bias + activation (used only for the no-BN final upsampler)."""
    acc = jnp.dot(x_ref[...], w_ref[...], preferred_element_type=jnp.float32)
    acc = acc + b_ref[...]
    if act == "relu":
        acc = jnp.maximum(acc, 0.0)
    elif act == "sigmoid":
        acc = jax.nn.sigmoid(acc)
    y_ref[...] = acc


def bn_act_kernel(y_ref, scale_ref, shift_ref, o_ref, *, act):
    """y * scale + shift, then activation (scale/shift fold mean/var/gamma/beta)."""
    y = y_ref[...] * scale_ref[...] + shift_ref[...]
    if act == "relu":
        y = jnp.maximum(y, 0.0)
    elif act == "sigmoid":
        y = jax.nn.sigmoid(y)
    o_ref[...] = y


# ----------------------------------------------------------------------------
# pallas_call wrappers
# ----------------------------------------------------------------------------
def _pallas_conv(x2d, w2d, *, tr, bias=None, act="none", collect_stats=False):
    """x2d: (padded_rows, Kc) bf16, w2d: (Kc, Ceff) bf16."""
    pr, kc = x2d.shape
    ceff = w2d.shape[1]
    grid = (pr // tr,)
    x_spec = pl.BlockSpec((tr, kc), lambda i: (i, 0))
    w_spec = pl.BlockSpec((kc, ceff), lambda i: (0, 0))      # stays resident
    y_spec = pl.BlockSpec((tr, ceff), lambda i: (i, 0))
    cost = pl.CostEstimate(
        flops=2 * pr * kc * ceff,
        transcendentals=pr * ceff if act == "sigmoid" else 0,
        bytes_accessed=pr * kc * 2 + kc * ceff * 2 + pr * ceff * 4)

    if collect_stats:
        y, stats = pl.pallas_call(
            conv_stats_kernel,
            out_shape=(jax.ShapeDtypeStruct((pr, ceff), jnp.float32),
                       jax.ShapeDtypeStruct((2, ceff), jnp.float32)),
            grid=grid,
            in_specs=[x_spec, w_spec],
            out_specs=(y_spec, pl.BlockSpec((2, ceff), lambda i: (0, 0))),
            compiler_params=pltpu.CompilerParams(
                dimension_semantics=("arbitrary",)),   # stats accumulator axis
            cost_estimate=cost,
        )(x2d, w2d)
        return y, stats

    kern = functools.partial(conv_bias_act_kernel, act=act)
    y = pl.pallas_call(
        kern,
        out_shape=jax.ShapeDtypeStruct((pr, ceff), jnp.float32),
        grid=grid,
        in_specs=[x_spec, w_spec, pl.BlockSpec((1, ceff), lambda i: (0, 0))],
        out_specs=y_spec,
        compiler_params=pltpu.CompilerParams(
            dimension_semantics=("parallel",)),
        cost_estimate=cost,
    )(x2d, w2d, bias)
    return y, None


def _pallas_bn_act(y_padded, scale, shift, *, tr, act):
    pr, ceff = y_padded.shape
    kern = functools.partial(bn_act_kernel, act=act)
    return pl.pallas_call(
        kern,
        out_shape=jax.ShapeDtypeStruct((pr, ceff), jnp.float32),
        grid=(pr // tr,),
        in_specs=[pl.BlockSpec((tr, ceff), lambda i: (i, 0)),
                  pl.BlockSpec((1, ceff), lambda i: (0, 0)),
                  pl.BlockSpec((1, ceff), lambda i: (0, 0))],
        out_specs=pl.BlockSpec((tr, ceff), lambda i: (i, 0)),
        compiler_params=pltpu.CompilerParams(
            dimension_semantics=("parallel",)),
    )(y_padded, scale, shift)


# TODO(synk): the (2, C)-sized BN scale/shift finalization below is plain-JAX
# scalar glue (sum over tap groups, rsqrt) rather than a dedicated Pallas call.
def _bn_scale_shift(stats, count, gamma, beta, group):
    """stats: (2, group*Cout) [sum, sumsq]; returns (1, group*Cout) scale/shift."""
    cout = gamma.shape[0]
    s = stats.reshape(2, group, cout).sum(axis=1)          # (2, Cout)
    mean = s[0] / count
    var = s[1] / count - mean * mean
    inv = jax.lax.rsqrt(var + EPS)
    scale = gamma * inv
    shift = beta - mean * scale
    return (jnp.tile(scale, (group,))[None, :],
            jnp.tile(shift, (group,))[None, :])


# ----------------------------------------------------------------------------
# Layer wrappers (layout glue + kernel calls)
# ----------------------------------------------------------------------------
def _fold_conv_weight(Wt, w_out, pad):
    """(K, K, Cin, Cout) -> banded dense (K*Wp*Cin, W*Cout) folding the W taps."""
    K, _, cin, cout = Wt.shape
    wp = w_out + 2 * pad
    wi = jnp.arange(wp)[:, None]
    wo = jnp.arange(w_out)[None, :]
    kw = wi - wo                                   # (Wp, W)
    valid = (kw >= 0) & (kw < K)
    wg = Wt[:, jnp.clip(kw, 0, K - 1)]             # (K, Wp, W, Cin, Cout)
    wg = jnp.where(valid[None, :, :, None, None], wg, 0.0)
    return jnp.transpose(wg, (0, 1, 3, 2, 4)).reshape(K * wp * cin, w_out * cout)


def conv_same_bn_relu(x_nhwc, Wt, gamma, beta):
    """Stride-1 'same' KxK conv + BatchNorm(train) + ReLU.  Wt: (K,K,Cin,Cout)."""
    n, h, w, cin = x_nhwc.shape
    K, cout = Wt.shape[0], Wt.shape[-1]
    pad = (K - 1) // 2
    wp = w + 2 * pad
    # glue: only K row-shifted copies (W taps are folded into the weight)
    xp = jnp.pad(x_nhwc, ((0, 0), (pad, pad), (pad, pad), (0, 0)))
    xk = jnp.stack([xp[:, kh:kh + h, :, :] for kh in range(K)], axis=2)
    x2d = xk.reshape(n * h, K * wp * cin).astype(jnp.bfloat16)
    w2d = _fold_conv_weight(Wt, w, pad).astype(jnp.bfloat16)

    rows = n * h
    tr, pr = _grid_rows(rows)
    x2d = jnp.pad(x2d, ((0, pr - rows), (0, 0)))
    y, stats = _pallas_conv(x2d, w2d, tr=tr, collect_stats=True)
    scale, shift = _bn_scale_shift(stats, n * h * w, gamma, beta, group=w)
    ya = _pallas_bn_act(y, scale, shift, tr=tr, act="relu")
    return ya[:rows].reshape(n, h, w, cout)


def downsample2x2_bn_relu(x_nhwc, Wt, gamma, beta):
    """2x2 stride-2 conv (no pad) + BatchNorm + ReLU.  Wt: (2,2,Cin,Cout)."""
    n, h, w, cin = x_nhwc.shape
    cout = Wt.shape[-1]
    ho, wo = h // 2, w // 2
    rows = n * ho * wo
    taps = [x_nhwc[:, kh::2, kw::2, :].reshape(rows, cin)
            for kh in range(2) for kw in range(2)]
    x2d = jnp.concatenate(taps, axis=1).astype(jnp.bfloat16)       # (rows, 4*Cin)
    w2d = Wt.reshape(4 * cin, cout).astype(jnp.bfloat16)

    tr, pr = _grid_rows(rows)
    x2d = jnp.pad(x2d, ((0, pr - rows), (0, 0)))
    y, stats = _pallas_conv(x2d, w2d, tr=tr, collect_stats=True)
    scale, shift = _bn_scale_shift(stats, rows, gamma, beta, group=1)
    ya = _pallas_bn_act(y, scale, shift, tr=tr, act="relu")
    return ya[:rows].reshape(n, ho, wo, cout)


def upsample2x2(x_nhwc, Wt, bias, gamma, beta, *, apply_bn, act):
    """ConvTranspose2d 2x2 stride 2.  Wt: (Cin,2,2,Cout).  Output (N,2H,2W,Cout)."""
    n, h, w, cin = x_nhwc.shape
    cout = Wt.shape[-1]
    rows = n * h * w
    x2d = x_nhwc.reshape(rows, cin).astype(jnp.bfloat16)
    w2d = Wt.reshape(cin, 4 * cout).astype(jnp.bfloat16)   # col = (kh*2+kw)*Cout + co

    tr, pr = _grid_rows(rows)
    x2d = jnp.pad(x2d, ((0, pr - rows), (0, 0)))
    if apply_bn:
        y, stats = _pallas_conv(x2d, w2d, tr=tr, collect_stats=True)
        scale, shift = _bn_scale_shift(stats, rows * 4, gamma, beta, group=4)
        y = _pallas_bn_act(y, scale, shift, tr=tr, act=act)
    else:
        b4 = jnp.tile(bias, (4,))[None, :]                  # (1, 4*Cout)
        y, _ = _pallas_conv(x2d, w2d, tr=tr, bias=b4, act=act, collect_stats=False)
    # tap -> spatial interleave: out[n, 2i+kh, 2j+kw, c] = y[n, i, j, kh, kw, c]
    y = y[:rows].reshape(n, h, w, 2, 2, cout).transpose(0, 1, 3, 2, 4, 5)
    return y.reshape(n, 2 * h, 2 * w, cout)


# ----------------------------------------------------------------------------
# Parameters (deterministic, synthetic; BN at init: gamma=1, beta=0)
# ----------------------------------------------------------------------------
def make_block_params(key, cin, cout, *, decoder):
    ks = (5, 5, 3, 3, 3)
    keys = jax.random.split(key, 7)
    convs, c_in = [], cin
    for i, k in enumerate(ks):
        s = 1.0 / float(c_in * k * k) ** 0.5
        Wt = jax.random.uniform(keys[i], (k, k, c_in, cout), jnp.float32, -s, s)
        # conv biases omitted: every stride-1 conv here is followed by BN,
        # which absorbs a per-channel bias exactly.
        convs.append({"w": Wt,
                      "gamma": jnp.ones((cout,), jnp.float32),
                      "beta": jnp.zeros((cout,), jnp.float32)})
        c_in = cout
    s = 1.0 / float(cout * 4) ** 0.5
    if decoder:   # ConvTranspose2d weight, our layout (Cin, kh, kw, Cout)
        Wr = jax.random.uniform(keys[5], (cout, 2, 2, cout), jnp.float32, -s, s)
    else:         # Conv2d 2x2/s2 weight, our layout (kh, kw, Cin, Cout)
        Wr = jax.random.uniform(keys[5], (2, 2, cout, cout), jnp.float32, -s, s)
    br = jax.random.uniform(keys[6], (cout,), jnp.float32, -s, s)
    resample = {"w": Wr, "b": br,
                "gamma": jnp.ones((cout,), jnp.float32),
                "beta": jnp.zeros((cout,), jnp.float32)}
    return {"convs": convs, "resample": resample}


# ----------------------------------------------------------------------------
# Blocks / full model forward
# ----------------------------------------------------------------------------
def encoder_block(x, p):
    for cp in p["convs"]:
        x = conv_same_bn_relu(x, cp["w"], cp["gamma"], cp["beta"])
    r = p["resample"]
    return downsample2x2_bn_relu(x, r["w"], r["gamma"], r["beta"])


def decoder_block(x, p, apply_bn_last, last_act):
    for cp in p["convs"]:
        x = conv_same_bn_relu(x, cp["w"], cp["gamma"], cp["beta"])
    r = p["resample"]
    return upsample2x2(x, r["w"], r["b"], r["gamma"], r["beta"],
                       apply_bn=apply_bn_last, act=last_act)


def autoencoder_forward(x_nchw, params):
    x = jnp.transpose(x_nchw, (0, 2, 3, 1))          # NCHW -> NHWC
    for p in params["encoder"]:
        x = encoder_block(x, p)
    dec_cfg = [(True, "relu"), (True, "relu"), (False, "sigmoid")]
    for p, (bn_last, act) in zip(params["decoder"], dec_cfg):
        x = decoder_block(x, p, bn_last, act)
    return jnp.transpose(x, (0, 3, 1, 2))            # NHWC -> NCHW


# ----------------------------------------------------------------------------
if __name__ == "__main__":
    key = jax.random.PRNGKey(0)
    kx, kp = jax.random.split(key)

    enc_sizes = [(3, 16), (16, 8), (8, 4)]
    dec_sizes = [(4, 8), (8, 16), (16, 3)]
    pkeys = jax.random.split(kp, 6)
    params = {
        "encoder": [make_block_params(pkeys[i], ci, co, decoder=False)
                    for i, (ci, co) in enumerate(enc_sizes)],
        "decoder": [make_block_params(pkeys[3 + i], ci, co, decoder=True)
                    for i, (ci, co) in enumerate(dec_sizes)],
    }

    # input: NCHW, spatial divisible by 8 (three stride-2 down/up stages)
    x = jax.random.normal(kx, (2, 3, 16, 16), jnp.float32)

    fwd = jax.jit(lambda inp: autoencoder_forward(inp, params))
    out = fwd(x)
    jax.block_until_ready(out)

    assert out.shape == (2, 3, 16, 16), out.shape
    assert bool(jnp.all(jnp.isfinite(out)))
    assert bool(jnp.all(out >= 0.0)) and bool(jnp.all(out <= 1.0))  # sigmoid output
    print("KERNEL_OK")
</pallas_src>

<mosaic_0001>
module attributes {stable_mosaic.version = 11 : i64} {
  func.func @conv_stats_kernel(%arg0: i32, %arg1: memref<32x300xbf16, #tpu.memory_space<vmem>>, %arg2: memref<300x256xbf16, #tpu.memory_space<vmem>>, %arg3: memref<32x256xf32, #tpu.memory_space<vmem>>, %arg4: memref<2x256xf32, #tpu.memory_space<vmem>>) attributes {dimension_semantics = [#tpu.dimension_semantics<arbitrary>], iteration_bounds = array<i64: 1>, scalar_prefetch = 0 : i64, scratch_operands = 0 : i64, tpu.core_type = #tpu.core_type<tc>, window_params = [{transform_indices = @transform_0, window_bounds = array<i64: 32, 300>}, {pipeline_mode = #tpu.pipeline_mode<synchronous>, transform_indices = @transform_1, window_bounds = array<i64: 300, 256>}, {transform_indices = @transform_2, window_bounds = array<i64: 32, 256>}, {pipeline_mode = #tpu.pipeline_mode<synchronous>, transform_indices = @transform_3, window_bounds = array<i64: 2, 256>}]} {
    %c0 = arith.constant 0 : index
    %c0_0 = arith.constant 0 : index
    %0 = vector.load %arg1[%c0, %c0_0] : memref<32x300xbf16, #tpu.memory_space<vmem>>, vector<32x300xbf16>
    %c0_1 = arith.constant 0 : index
    %c0_2 = arith.constant 0 : index
    %1 = vector.load %arg2[%c0_1, %c0_2] : memref<300x256xbf16, #tpu.memory_space<vmem>>, vector<300x256xbf16>
    %cst = arith.constant dense<0.000000e+00> : vector<32x256xf32>
    %2 = tpu.matmul %0, %1, %cst {dimension_numbers = #tpu.dot_dimension_numbers<[1], [0], [0], [1], [0, 0, 1, 1], [], []>} : vector<32x300xbf16>, vector<300x256xbf16>, vector<32x256xf32> -> vector<32x256xf32>
    %c0_3 = arith.constant 0 : index
    %c0_4 = arith.constant 0 : index
    %3 = vector.load %arg3[%c0_3, %c0_4] : memref<32x256xf32, #tpu.memory_space<vmem>>, vector<32x256xf32>
    tpu.vector_store %arg3[%c0_3, %c0_4], %2 {strides = array<i32>} : memref<32x256xf32, #tpu.memory_space<vmem>>, vector<32x256xf32>,
    %c0_i32 = arith.constant 0 : i32
    %4 = arith.cmpi eq, %arg0, %c0_i32 : i32
    %5 = arith.extui %4 : i1 to i32
    %c0_i32_5 = arith.constant 0 : i32
    %6 = arith.cmpi ne, %5, %c0_i32_5 : i32
    scf.if %6 {
      %cst_12 = arith.constant 0.000000e+00 : f32
      %16 = vector.broadcast %cst_12 : f32 to vector<2x256xf32>
      %c0_13 = arith.constant 0 : index
      %c0_14 = arith.constant 0 : index
      %17 = vector.load %arg4[%c0_13, %c0_14] : memref<2x256xf32, #tpu.memory_space<vmem>>, vector<2x256xf32>
      tpu.vector_store %arg4[%c0_13, %c0_14], %16 {strides = array<i32>} : memref<2x256xf32, #tpu.memory_space<vmem>>, vector<2x256xf32>,
    } else {
    }
    %cst_6 = arith.constant dense<0.000000e+00> : vector<256xf32>
    %7 = vector.multi_reduction <add>, %2, %cst_6 [0] : vector<32x256xf32> to vector<256xf32>
    %8 = vector.shape_cast %7 : vector<256xf32> to vector<1x256xf32>
    %9 = arith.mulf %2, %2 : vector<32x256xf32>
    %cst_7 = arith.constant dense<0.000000e+00> : vector<256xf32>
    %10 = vector.multi_reduction <add>, %9, %cst_7 [0] : vector<32x256xf32> to vector<256xf32>
    %11 = vector.shape_cast %10 : vector<256xf32> to vector<1x256xf32>
    %12 = tpu.concatenate %8, %11 in 0 : vector<1x256xf32>, vector<1x256xf32> -> vector<2x256xf32>
    %c0_8 = arith.constant 0 : index
    %c0_9 = arith.constant 0 : index
    %13 = vector.load %arg4[%c0_8, %c0_9] : memref<2x256xf32, #tpu.memory_space<vmem>>, vector<2x256xf32>
    %14 = arith.addf %13, %12 : vector<2x256xf32>
    %c0_10 = arith.constant 0 : index
    %c0_11 = arith.constant 0 : index
    %15 = vector.load %arg4[%c0_10, %c0_11] : memref<2x256xf32, #tpu.memory_space<vmem>>, vector<2x256xf32>
    tpu.vector_store %arg4[%c0_10, %c0_11], %14 {strides = array<i32>} : memref<2x256xf32, #tpu.memory_space<vmem>>, vector<2x256xf32>,
    return
  }
  func.func @transform_0(%arg0: i32) -> (i32, i32) {
    %c0_i32 = arith.constant 0 : i32
    %c0_i32_0 = arith.constant 0 : i32
    return %arg0, %c0_i32 : i32, i32
  }
  func.func @transform_1(%arg0: i32) -> (i32, i32) {
    %c0_i32 = arith.constant 0 : i32
    %c0_i32_0 = arith.constant 0 : i32
    %c0_i32_1 = arith.constant 0 : i32
    return %c0_i32, %c0_i32_0 : i32, i32
  }
  func.func @transform_2(%arg0: i32) -> (i32, i32) {
    %c0_i32 = arith.constant 0 : i32
    %c0_i32_0 = arith.constant 0 : i32
    return %arg0, %c0_i32 : i32, i32
  }
  func.func @transform_3(%arg0: i32) -> (i32, i32) {
    %c0_i32 = arith.constant 0 : i32
    %c0_i32_0 = arith.constant 0 : i32
    %c0_i32_1 = arith.constant 0 : i32
    return %c0_i32, %c0_i32_0 : i32, i32
  }
}

module attributes {stable_mosaic.version = 11 : i64} {
  func.func @bn_act_kernel(%arg0: i32, %arg1: memref<32x256xf32, #tpu.memory_space<vmem>>, %arg2: memref<1x256xf32, #tpu.memory_space<vmem>>, %arg3: memref<1x256xf32, #tpu.memory_space<vmem>>, %arg4: memref<32x256xf32, #tpu.memory_space<vmem>>) attributes {dimension_semantics = [#tpu.dimension_semantics<parallel>], iteration_bounds = array<i64: 1>, scalar_prefetch = 0 : i64, scratch_operands = 0 : i64, tpu.core_type = #tpu.core_type<tc>, window_params = [{transform_indices = @transform_0, window_bounds = array<i64: 32, 256>}, {pipeline_mode = #tpu.pipeline_mode<synchronous>, transform_indices = @transform_1, window_bounds = array<i64: 1, 256>}, {pipeline_mode = #tpu.pipeline_mode<synchronous>, transform_indices = @transform_2, window_bounds = array<i64: 1, 256>}, {transform_indices = @transform_3, window_bounds = array<i64: 32, 256>}]} {
    %c0 = arith.constant 0 : index
    %c0_0 = arith.constant 0 : index
    %0 = vector.load %arg1[%c0, %c0_0] : memref<32x256xf32, #tpu.memory_space<vmem>>, vector<32x256xf32>
    %c0_1 = arith.constant 0 : index
    %c0_2 = arith.constant 0 : index
    %1 = vector.load %arg2[%c0_1, %c0_2] : memref<1x256xf32, #tpu.memory_space<vmem>>, vector<1x256xf32>
    %2 = vector.broadcast %1 : vector<1x256xf32> to vector<32x256xf32>
    %3 = arith.mulf %0, %2 : vector<32x256xf32>
    %c0_3 = arith.constant 0 : index
    %c0_4 = arith.constant 0 : index
    %4 = vector.load %arg3[%c0_3, %c0_4] : memref<1x256xf32, #tpu.memory_space<vmem>>, vector<1x256xf32>
    %5 = vector.broadcast %4 : vector<1x256xf32> to vector<32x256xf32>
    %6 = arith.addf %3, %5 : vector<32x256xf32>
    %cst = arith.constant 0.000000e+00 : f32
    %7 = vector.broadcast %cst : f32 to vector<32x256xf32>
    %8 = arith.maximumf %6, %7 : vector<32x256xf32>
    %c0_5 = arith.constant 0 : index
    %c0_6 = arith.constant 0 : index
    %9 = vector.load %arg4[%c0_5, %c0_6] : memref<32x256xf32, #tpu.memory_space<vmem>>, vector<32x256xf32>
    tpu.vector_store %arg4[%c0_5, %c0_6], %8 {strides = array<i32>} : memref<32x256xf32, #tpu.memory_space<vmem>>, vector<32x256xf32>,
    return
  }
  func.func @transform_0(%arg0: i32) -> (i32, i32) {
    %c0_i32 = arith.constant 0 : i32
    %c0_i32_0 = arith.constant 0 : i32
    return %arg0, %c0_i32 : i32, i32
  }
  func.func @transform_1(%arg0: i32) -> (i32, i32) {
    %c0_i32 = arith.constant 0 : i32
    %c0_i32_0 = arith.constant 0 : i32
    %c0_i32_1 = arith.constant 0 : i32
    return %c0_i32, %c0_i32_0 : i32, i32
  }
  func.func @transform_2(%arg0: i32) -> (i32, i32) {
    %c0_i32 = arith.constant 0 : i32
    %c0_i32_0 = arith.constant 0 : i32
    %c0_i32_1 = arith.constant 0 : i32
    return %c0_i32, %c0_i32_0 : i32, i32
  }
  func.func @transform_3(%arg0: i32) -> (i32, i32) {
    %c0_i32 = arith.constant 0 : i32
    %c0_i32_0 = arith.constant 0 : i32
    return %arg0, %c0_i32 : i32, i32
  }
}

module attributes {stable_mosaic.version = 11 : i64} {
  func.func @conv_stats_kernel(%arg0: i32, %arg1: memref<32x1600xbf16, #tpu.memory_space<vmem>>, %arg2: memref<1600x256xbf16, #tpu.memory_space<vmem>>, %arg3: memref<32x256xf32, #tpu.memory_space<vmem>>, %arg4: memref<2x256xf32, #tpu.memory_space<vmem>>) attributes {dimension_semantics = [#tpu.dimension_semantics<arbitrary>], iteration_bounds = array<i64: 1>, scalar_prefetch = 0 : i64, scratch_operands = 0 : i64, tpu.core_type = #tpu.core_type<tc>, window_params = [{transform_indices = @transform_0, window_bounds = array<i64: 32, 1600>}, {pipeline_mode = #tpu.pipeline_mode<synchronous>, transform_indices = @transform_1, window_bounds = array<i64: 1600, 256>}, {transform_indices = @transform_2, window_bounds = array<i64: 32, 256>}, {pipeline_mode = #tpu.pipeline_mode<synchronous>, transform_indices = @transform_3, window_bounds = array<i64: 2, 256>}]} {
    %c0 = arith.constant 0 : index
    %c0_0 = arith.constant 0 : index
    %0 = vector.load %arg1[%c0, %c0_0] : memref<32x1600xbf16, #tpu.memory_space<vmem>>, vector<32x1600xbf16>
    %c0_1 = arith.constant 0 : index
    %c0_2 = arith.constant 0 : index
    %1 = vector.load %arg2[%c0_1, %c0_2] : memref<1600x256xbf16, #tpu.memory_space<vmem>>, vector<1600x256xbf16>
    %cst = arith.constant dense<0.000000e+00> : vector<32x256xf32>
    %2 = tpu.matmul %0, %1, %cst {dimension_numbers = #tpu.dot_dimension_numbers<[1], [0], [0], [1], [0, 0, 1, 1], [], []>} : vector<32x1600xbf16>, vector<1600x256xbf16>, vector<32x256xf32> -> vector<32x256xf32>
    %c0_3 = arith.constant 0 : index
    %c0_4 = arith.constant 0 : index
    %3 = vector.load %arg3[%c0_3, %c0_4] : memref<32x256xf32, #tpu.memory_space<vmem>>, vector<32x256xf32>
    tpu.vector_store %arg3[%c0_3, %c0_4], %2 {strides = array<i32>} : memref<32x256xf32, #tpu.memory_space<vmem>>, vector<32x256xf32>,
    %c0_i32 = arith.constant 0 : i32
    %4 = arith.cmpi eq, %arg0, %c0_i32 : i32
    %5 = arith.extui %4 : i1 to i32
    %c0_i32_5 = arith.constant 0 : i32
    %6 = arith.cmpi ne, %5, %c0_i32_5 : i32
    scf.if %6 {
      %cst_12 = arith.constant 0.000000e+00 : f32
      %16 = vector.broadcast %cst_12 : f32 to vector<2x256xf32>
      %c0_13 = arith.constant 0 : index
      %c0_14 = arith.constant 0 : index
      %17 = vector.load %arg4[%c0_13, %c0_14] : memref<2x256xf32, #tpu.memory_space<vmem>>, vector<2x256xf32>
      tpu.vector_store %arg4[%c0_13, %c0_14], %16 {strides = array<i32>} : memref<2x256xf32, #tpu.memory_space<vmem>>, vector<2x256xf32>,
    } else {
    }
    %cst_6 = arith.constant dense<0.000000e+00> : vector<256xf32>
    %7 = vector.multi_reduction <add>, %2, %cst_6 [0] : vector<32x256xf32> to vector<256xf32>
    %8 = vector.shape_cast %7 : vector<256xf32> to vector<1x256xf32>
    %9 = arith.mulf %2, %2 : vector<32x256xf32>
    %cst_7 = arith.constant dense<0.000000e+00> : vector<256xf32>
    %10 = vector.multi_reduction <add>, %9, %cst_7 [0] : vector<32x256xf32> to vector<256xf32>
    %11 = vector.shape_cast %10 : vector<256xf32> to vector<1x256xf32>
    %12 = tpu.concatenate %8, %11 in 0 : vector<1x256xf32>, vector<1x256xf32> -> vector<2x256xf32>
    %c0_8 = arith.constant 0 : index
    %c0_9 = arith.constant 0 : index
    %13 = vector.load %arg4[%c0_8, %c0_9] : memref<2x256xf32, #tpu.memory_space<vmem>>, vector<2x256xf32>
    %14 = arith.addf %13, %12 : vector<2x256xf32>
    %c0_10 = arith.constant 0 : index
    %c0_11 = arith.constant 0 : index
    %15 = vector.load %arg4[%c0_10, %c0_11] : memref<2x256xf32, #tpu.memory_space<vmem>>, vector<2x256xf32>
    tpu.vector_store %arg4[%c0_10, %c0_11], %14 {strides = array<i32>} : memref<2x256xf32, #tpu.memory_space<vmem>>, vector<2x256xf32>,
    return
  }
  func.func @transform_0(%arg0: i32) -> (i32, i32) {
    %c0_i32 = arith.constant 0 : i32
    %c0_i32_0 = arith.constant 0 : i32
    return %arg0, %c0_i32 : i32, i32
  }
  func.func @transform_1(%arg0: i32) -> (i32, i32) {
    %c0_i32 = arith.constant 0 : i32
    %c0_i32_0 = arith.constant 0 : i32
    %c0_i32_1 = arith.constant 0 : i32
    return %c0_i32, %c0_i32_0 : i32, i32
  }
  func.func @transform_2(%arg0: i32) -> (i32, i32) {
    %c0_i32 = arith.constant 0 : i32
    %c0_i32_0 = arith.constant 0 : i32
    return %arg0, %c0_i32 : i32, i32
  }
  func.func @transform_3(%arg0: i32) -> (i32, i32) {
    %c0_i32 = arith.constant 0 : i32
    %c0_i32_0 = arith.constant 0 : i32
    %c0_i32_1 = arith.constant 0 : i32
    return %c0_i32, %c0_i32_0 : i32, i32
  }
}

module attributes {stable_mosaic.version = 11 : i64} {
  func.func @conv_stats_kernel(%arg0: i32, %arg1: memref<32x864xbf16, #tpu.memory_space<vmem>>, %arg2: memref<864x256xbf16, #tpu.memory_space<vmem>>, %arg3: memref<32x256xf32, #tpu.memory_space<vmem>>, %arg4: memref<2x256xf32, #tpu.memory_space<vmem>>) attributes {dimension_semantics = [#tpu.dimension_semantics<arbitrary>], iteration_bounds = array<i64: 1>, scalar_prefetch = 0 : i64, scratch_operands = 0 : i64, tpu.core_type = #tpu.core_type<tc>, window_params = [{transform_indices = @transform_0, window_bounds = array<i64: 32, 864>}, {pipeline_mode = #tpu.pipeline_mode<synchronous>, transform_indices = @transform_1, window_bounds = array<i64: 864, 256>}, {transform_indices = @transform_2, window_bounds = array<i64: 32, 256>}, {pipeline_mode = #tpu.pipeline_mode<synchronous>, transform_indices = @transform_3, window_bounds = array<i64: 2, 256>}]} {
    %c0 = arith.constant 0 : index
    %c0_0 = arith.constant 0 : index
    %0 = vector.load %arg1[%c0, %c0_0] : memref<32x864xbf16, #tpu.memory_space<vmem>>, vector<32x864xbf16>
    %c0_1 = arith.constant 0 : index
    %c0_2 = arith.constant 0 : index
    %1 = vector.load %arg2[%c0_1, %c0_2] : memref<864x256xbf16, #tpu.memory_space<vmem>>, vector<864x256xbf16>
    %cst = arith.constant dense<0.000000e+00> : vector<32x256xf32>
    %2 = tpu.matmul %0, %1, %cst {dimension_numbers = #tpu.dot_dimension_numbers<[1], [0], [0], [1], [0, 0, 1, 1], [], []>} : vector<32x864xbf16>, vector<864x256xbf16>, vector<32x256xf32> -> vector<32x256xf32>
    %c0_3 = arith.constant 0 : index
    %c0_4 = arith.constant 0 : index
    %3 = vector.load %arg3[%c0_3, %c0_4] : memref<32x256xf32, #tpu.memory_space<vmem>>, vector<32x256xf32>
    tpu.vector_store %arg3[%c0_3, %c0_4], %2 {strides = array<i32>} : memref<32x256xf32, #tpu.memory_space<vmem>>, vector<32x256xf32>,
    %c0_i32 = arith.constant 0 : i32
    %4 = arith.cmpi eq, %arg0, %c0_i32 : i32
    %5 = arith.extui %4 : i1 to i32
    %c0_i32_5 = arith.constant 0 : i32
    %6 = arith.cmpi ne, %5, %c0_i32_5 : i32
    scf.if %6 {
      %cst_12 = arith.constant 0.000000e+00 : f32
      %16 = vector.broadcast %cst_12 : f32 to vector<2x256xf32>
      %c0_13 = arith.constant 0 : index
      %c0_14 = arith.constant 0 : index
      %17 = vector.load %arg4[%c0_13, %c0_14] : memref<2x256xf32, #tpu.memory_space<vmem>>, vector<2x256xf32>
      tpu.vector_store %arg4[%c0_13, %c0_14], %16 {strides = array<i32>} : memref<2x256xf32, #tpu.memory_space<vmem>>, vector<2x256xf32>,
    } else {
    }
    %cst_6 = arith.constant dense<0.000000e+00> : vector<256xf32>
    %7 = vector.multi_reduction <add>, %2, %cst_6 [0] : vector<32x256xf32> to vector<256xf32>
    %8 = vector.shape_cast %7 : vector<256xf32> to vector<1x256xf32>
    %9 = arith.mulf %2, %2 : vector<32x256xf32>
    %cst_7 = arith.constant dense<0.000000e+00> : vector<256xf32>
    %10 = vector.multi_reduction <add>, %9, %cst_7 [0] : vector<32x256xf32> to vector<256xf32>
    %11 = vector.shape_cast %10 : vector<256xf32> to vector<1x256xf32>
    %12 = tpu.concatenate %8, %11 in 0 : vector<1x256xf32>, vector<1x256xf32> -> vector<2x256xf32>
    %c0_8 = arith.constant 0 : index
    %c0_9 = arith.constant 0 : index
    %13 = vector.load %arg4[%c0_8, %c0_9] : memref<2x256xf32, #tpu.memory_space<vmem>>, vector<2x256xf32>
    %14 = arith.addf %13, %12 : vector<2x256xf32>
    %c0_10 = arith.constant 0 : index
    %c0_11 = arith.constant 0 : index
    %15 = vector.load %arg4[%c0_10, %c0_11] : memref<2x256xf32, #tpu.memory_space<vmem>>, vector<2x256xf32>
    tpu.vector_store %arg4[%c0_10, %c0_11], %14 {strides = array<i32>} : memref<2x256xf32, #tpu.memory_space<vmem>>, vector<2x256xf32>,
    return
  }
  func.func @transform_0(%arg0: i32) -> (i32, i32) {
    %c0_i32 = arith.constant 0 : i32
    %c0_i32_0 = arith.constant 0 : i32
    return %arg0, %c0_i32 : i32, i32
  }
  func.func @transform_1(%arg0: i32) -> (i32, i32) {
    %c0_i32 = arith.constant 0 : i32
    %c0_i32_0 = arith.constant 0 : i32
    %c0_i32_1 = arith.constant 0 : i32
    return %c0_i32, %c0_i32_0 : i32, i32
  }
  func.func @transform_2(%arg0: i32) -> (i32, i32) {
    %c0_i32 = arith.constant 0 : i32
    %c0_i32_0 = arith.constant 0 : i32
    return %arg0, %c0_i32 : i32, i32
  }
  func.func @transform_3(%arg0: i32) -> (i32, i32) {
    %c0_i32 = arith.constant 0 : i32
    %c0_i32_0 = arith.constant 0 : i32
    %c0_i32_1 = arith.constant 0 : i32
    return %c0_i32, %c0_i32_0 : i32, i32
  }
}

module attributes {stable_mosaic.version = 11 : i64} {
  func.func @conv_stats_kernel(%arg0: i32, %arg1: memref<64x64xbf16, #tpu.memory_space<vmem>>, %arg2: memref<64x16xbf16, #tpu.memory_space<vmem>>, %arg3: memref<64x16xf32, #tpu.memory_space<vmem>>, %arg4: memref<2x16xf32, #tpu.memory_space<vmem>>) attributes {dimension_semantics = [#tpu.dimension_semantics<arbitrary>], iteration_bounds = array<i64: 2>, scalar_prefetch = 0 : i64, scratch_operands = 0 : i64, tpu.core_type = #tpu.core_type<tc>, window_params = [{transform_indices = @transform_0, window_bounds = array<i64: 64, 64>}, {pipeline_mode = #tpu.pipeline_mode<synchronous>, transform_indices = @transform_1, window_bounds = array<i64: 64, 16>}, {transform_indices = @transform_2, window_bounds = array<i64: 64, 16>}, {pipeline_mode = #tpu.pipeline_mode<synchronous>, transform_indices = @transform_3, window_bounds = array<i64: 2, 16>}]} {
    %c0 = arith.constant 0 : index
    %c0_0 = arith.constant 0 : index
    %0 = vector.load %arg1[%c0, %c0_0] : memref<64x64xbf16, #tpu.memory_space<vmem>>, vector<64x64xbf16>
    %c0_1 = arith.constant 0 : index
    %c0_2 = arith.constant 0 : index
    %1 = vector.load %arg2[%c0_1, %c0_2] : memref<64x16xbf16, #tpu.memory_space<vmem>>, vector<64x16xbf16>
    %cst = arith.constant dense<0.000000e+00> : vector<64x16xf32>
    %2 = tpu.matmul %0, %1, %cst {dimension_numbers = #tpu.dot_dimension_numbers<[1], [0], [0], [1], [0, 0, 1, 1], [], []>} : vector<64x64xbf16>, vector<64x16xbf16>, vector<64x16xf32> -> vector<64x16xf32>
    %c0_3 = arith.constant 0 : index
    %c0_4 = arith.constant 0 : index
    %3 = vector.load %arg3[%c0_3, %c0_4] : memref<64x16xf32, #tpu.memory_space<vmem>>, vector<64x16xf32>
    tpu.vector_store %arg3[%c0_3, %c0_4], %2 {strides = array<i32>} : memref<64x16xf32, #tpu.memory_space<vmem>>, vector<64x16xf32>,
    %c0_i32 = arith.constant 0 : i32
    %4 = arith.cmpi eq, %arg0, %c0_i32 : i32
    %5 = arith.extui %4 : i1 to i32
    %c0_i32_5 = arith.constant 0 : i32
    %6 = arith.cmpi ne, %5, %c0_i32_5 : i32
    scf.if %6 {
      %cst_12 = arith.constant 0.000000e+00 : f32
      %16 = vector.broadcast %cst_12 : f32 to vector<2x16xf32>
      %c0_13 = arith.constant 0 : index
      %c0_14 = arith.constant 0 : index
      %17 = vector.load %arg4[%c0_13, %c0_14] : memref<2x16xf32, #tpu.memory_space<vmem>>, vector<2x16xf32>
      tpu.vector_store %arg4[%c0_13, %c0_14], %16 {strides = array<i32>} : memref<2x16xf32, #tpu.memory_space<vmem>>, vector<2x16xf32>,
    } else {
    }
    %cst_6 = arith.constant dense<0.000000e+00> : vector<16xf32>
    %7 = vector.multi_reduction <add>, %2, %cst_6 [0] : vector<64x16xf32> to vector<16xf32>
    %8 = vector.shape_cast %7 : vector<16xf32> to vector<1x16xf32>
    %9 = arith.mulf %2, %2 : vector<64x16xf32>
    %cst_7 = arith.constant dense<0.000000e+00> : vector<16xf32>
    %10 = vector.multi_reduction <add>, %9, %cst_7 [0] : vector<64x16xf32> to vector<16xf32>
    %11 = vector.shape_cast %10 : vector<16xf32> to vector<1x16xf32>
    %12 = tpu.concatenate %8, %11 in 0 : vector<1x16xf32>, vector<1x16xf32> -> vector<2x16xf32>
    %c0_8 = arith.constant 0 : index
    %c0_9 = arith.constant 0 : index
    %13 = vector.load %arg4[%c0_8, %c0_9] : memref<2x16xf32, #tpu.memory_space<vmem>>, vector<2x16xf32>
    %14 = arith.addf %13, %12 : vector<2x16xf32>
    %c0_10 = arith.constant 0 : index
    %c0_11 = arith.constant 0 : index
    %15 = vector.load %arg4[%c0_10, %c0_11] : memref<2x16xf32, #tpu.memory_space<vmem>>, vector<2x16xf32>
    tpu.vector_store %arg4[%c0_10, %c0_11], %14 {strides = array<i32>} : memref<2x16xf32, #tpu.memory_space<vmem>>, vector<2x16xf32>,
    return
  }
  func.func @transform_0(%arg0: i32) -> (i32, i32) {
    %c0_i32 = arith.constant 0 : i32
    %c0_i32_0 = arith.constant 0 : i32
    return %arg0, %c0_i32 : i32, i32
  }
  func.func @transform_1(%arg0: i32) -> (i32, i32) {
    %c0_i32 = arith.constant 0 : i32
    %c0_i32_0 = arith.constant 0 : i32
    %c0_i32_1 = arith.constant 0 : i32
    return %c0_i32, %c0_i32_0 : i32, i32
  }
  func.func @transform_2(%arg0: i32) -> (i32, i32) {
    %c0_i32 = arith.constant 0 : i32
    %c0_i32_0 = arith.constant 0 : i32
    return %arg0, %c0_i32 : i32, i32
  }
  func.func @transform_3(%arg0: i32) -> (i32, i32) {
    %c0_i32 = arith.constant 0 : i32
    %c0_i32_0 = arith.constant 0 : i32
    %c0_i32_1 = arith.constant 0 : i32
    return %c0_i32, %c0_i32_0 : i32, i32
  }
}

module attributes {stable_mosaic.version = 11 : i64} {
  func.func @bn_act_kernel(%arg0: i32, %arg1: memref<64x16xf32, #tpu.memory_space<vmem>>, %arg2: memref<1x16xf32, #tpu.memory_space<vmem>>, %arg3: memref<1x16xf32, #tpu.memory_space<vmem>>, %arg4: memref<64x16xf32, #tpu.memory_space<vmem>>) attributes {dimension_semantics = [#tpu.dimension_semantics<parallel>], iteration_bounds = array<i64: 2>, scalar_prefetch = 0 : i64, scratch_operands = 0 : i64, tpu.core_type = #tpu.core_type<tc>, window_params = [{transform_indices = @transform_0, window_bounds = array<i64: 64, 16>}, {pipeline_mode = #tpu.pipeline_mode<synchronous>, transform_indices = @transform_1, window_bounds = array<i64: 1, 16>}, {pipeline_mode = #tpu.pipeline_mode<synchronous>, transform_indices = @transform_2, window_bounds = array<i64: 1, 16>}, {transform_indices = @transform_3, window_bounds = array<i64: 64, 16>}]} {
    %c0 = arith.constant 0 : index
    %c0_0 = arith.constant 0 : index
    %0 = vector.load %arg1[%c0, %c0_0] : memref<64x16xf32, #tpu.memory_space<vmem>>, vector<64x16xf32>
    %c0_1 = arith.constant 0 : index
    %c0_2 = arith.constant 0 : index
    %1 = vector.load %arg2[%c0_1, %c0_2] : memref<1x16xf32, #tpu.memory_space<vmem>>, vector<1x16xf32>
    %2 = vector.broadcast %1 : vector<1x16xf32> to vector<64x16xf32>
    %3 = arith.mulf %0, %2 : vector<64x16xf32>
    %c0_3 = arith.constant 0 : index
    %c0_4 = arith.constant 0 : index
    %4 = vector.load %arg3[%c0_3, %c0_4] : memref<1x16xf32, #tpu.memory_space<vmem>>, vector<1x16xf32>
    %5 = vector.broadcast %4 : vector<1x16xf32> to vector<64x16xf32>
    %6 = arith.addf %3, %5 : vector<64x16xf32>
    %cst = arith.constant 0.000000e+00 : f32
    %7 = vector.broadcast %cst : f32 to vector<64x16xf32>
    %8 = arith.maximumf %6, %7 : vector<64x16xf32>
    %c0_5 = arith.constant 0 : index
    %c0_6 = arith.constant 0 : index
    %9 = vector.load %arg4[%c0_5, %c0_6] : memref<64x16xf32, #tpu.memory_space<vmem>>, vector<64x16xf32>
    tpu.vector_store %arg4[%c0_5, %c0_6], %8 {strides = array<i32>} : memref<64x16xf32, #tpu.memory_space<vmem>>, vector<64x16xf32>,
    return
  }
  func.func @transform_0(%arg0: i32) -> (i32, i32) {
    %c0_i32 = arith.constant 0 : i32
    %c0_i32_0 = arith.constant 0 : i32
    return %arg0, %c0_i32 : i32, i32
  }
  func.func @transform_1(%arg0: i32) -> (i32, i32) {
    %c0_i32 = arith.constant 0 : i32
    %c0_i32_0 = arith.constant 0 : i32
    %c0_i32_1 = arith.constant 0 : i32
    return %c0_i32, %c0_i32_0 : i32, i32
  }
  func.func @transform_2(%arg0: i32) -> (i32, i32) {
    %c0_i32 = arith.constant 0 : i32
    %c0_i32_0 = arith.constant 0 : i32
    %c0_i32_1 = arith.constant 0 : i32
    return %c0_i32, %c0_i32_0 : i32, i32
  }
  func.func @transform_3(%arg0: i32) -> (i32, i32) {
    %c0_i32 = arith.constant 0 : i32
    %c0_i32_0 = arith.constant 0 : i32
    return %arg0, %c0_i32 : i32, i32
  }
}

module attributes {stable_mosaic.version = 11 : i64} {
  func.func @conv_stats_kernel(%arg0: i32, %arg1: memref<16x960xbf16, #tpu.memory_space<vmem>>, %arg2: memref<960x64xbf16, #tpu.memory_space<vmem>>, %arg3: memref<16x64xf32, #tpu.memory_space<vmem>>, %arg4: memref<2x64xf32, #tpu.memory_space<vmem>>) attributes {dimension_semantics = [#tpu.dimension_semantics<arbitrary>], iteration_bounds = array<i64: 1>, scalar_prefetch = 0 : i64, scratch_operands = 0 : i64, tpu.core_type = #tpu.core_type<tc>, window_params = [{transform_indices = @transform_0, window_bounds = array<i64: 16, 960>}, {pipeline_mode = #tpu.pipeline_mode<synchronous>, transform_indices = @transform_1, window_bounds = array<i64: 960, 64>}, {transform_indices = @transform_2, window_bounds = array<i64: 16, 64>}, {pipeline_mode = #tpu.pipeline_mode<synchronous>, transform_indices = @transform_3, window_bounds = array<i64: 2, 64>}]} {
    %c0 = arith.constant 0 : index
    %c0_0 = arith.constant 0 : index
    %0 = vector.load %arg1[%c0, %c0_0] : memref<16x960xbf16, #tpu.memory_space<vmem>>, vector<16x960xbf16>
    %c0_1 = arith.constant 0 : index
    %c0_2 = arith.constant 0 : index
    %1 = vector.load %arg2[%c0_1, %c0_2] : memref<960x64xbf16, #tpu.memory_space<vmem>>, vector<960x64xbf16>
    %cst = arith.constant dense<0.000000e+00> : vector<16x64xf32>
    %2 = tpu.matmul %0, %1, %cst {dimension_numbers = #tpu.dot_dimension_numbers<[1], [0], [0], [1], [0, 0, 1, 1], [], []>} : vector<16x960xbf16>, vector<960x64xbf16>, vector<16x64xf32> -> vector<16x64xf32>
    %c0_3 = arith.constant 0 : index
    %c0_4 = arith.constant 0 : index
    %3 = vector.load %arg3[%c0_3, %c0_4] : memref<16x64xf32, #tpu.memory_space<vmem>>, vector<16x64xf32>
    tpu.vector_store %arg3[%c0_3, %c0_4], %2 {strides = array<i32>} : memref<16x64xf32, #tpu.memory_space<vmem>>, vector<16x64xf32>,
    %c0_i32 = arith.constant 0 : i32
    %4 = arith.cmpi eq, %arg0, %c0_i32 : i32
    %5 = arith.extui %4 : i1 to i32
    %c0_i32_5 = arith.constant 0 : i32
    %6 = arith.cmpi ne, %5, %c0_i32_5 : i32
    scf.if %6 {
      %cst_12 = arith.constant 0.000000e+00 : f32
      %16 = vector.broadcast %cst_12 : f32 to vector<2x64xf32>
      %c0_13 = arith.constant 0 : index
      %c0_14 = arith.constant 0 : index
      %17 = vector.load %arg4[%c0_13, %c0_14] : memref<2x64xf32, #tpu.memory_space<vmem>>, vector<2x64xf32>
      tpu.vector_store %arg4[%c0_13, %c0_14], %16 {strides = array<i32>} : memref<2x64xf32, #tpu.memory_space<vmem>>, vector<2x64xf32>,
    } else {
    }
    %cst_6 = arith.constant dense<0.000000e+00> : vector<64xf32>
    %7 = vector.multi_reduction <add>, %2, %cst_6 [0] : vector<16x64xf32> to vector<64xf32>
    %8 = vector.shape_cast %7 : vector<64xf32> to vector<1x64xf32>
    %9 = arith.mulf %2, %2 : vector<16x64xf32>
    %cst_7 = arith.constant dense<0.000000e+00> : vector<64xf32>
    %10 = vector.multi_reduction <add>, %9, %cst_7 [0] : vector<16x64xf32> to vector<64xf32>
    %11 = vector.shape_cast %10 : vector<64xf32> to vector<1x64xf32>
    %12 = tpu.concatenate %8, %11 in 0 : vector<1x64xf32>, vector<1x64xf32> -> vector<2x64xf32>
    %c0_8 = arith.constant 0 : index
    %c0_9 = arith.constant 0 : index
    %13 = vector.load %arg4[%c0_8, %c0_9] : memref<2x64xf32, #tpu.memory_space<vmem>>, vector<2x64xf32>
    %14 = arith.addf %13, %12 : vector<2x64xf32>
    %c0_10 = arith.constant 0 : index
    %c0_11 = arith.constant 0 : index
    %15 = vector.load %arg4[%c0_10, %c0_11] : memref<2x64xf32, #tpu.memory_space<vmem>>, vector<2x64xf32>
    tpu.vector_store %arg4[%c0_10, %c0_11], %14 {strides = array<i32>} : memref<2x64xf32, #tpu.memory_space<vmem>>, vector<2x64xf32>,
    return
  }
  func.func @transform_0(%arg0: i32) -> (i32, i32) {
    %c0_i32 = arith.constant 0 : i32
    %c0_i32_0 = arith.constant 0 : i32
    return %arg0, %c0_i32 : i32, i32
  }
  func.func @transform_1(%arg0: i32) -> (i32, i32) {
    %c0_i32 = arith.constant 0 : i32
    %c0_i32_0 = arith.constant 0 : i32
    %c0_i32_1 = arith.constant 0 : i32
    return %c0_i32, %c0_i32_0 : i32, i32
  }
  func.func @transform_2(%arg0: i32) -> (i32, i32) {
    %c0_i32 = arith.constant 0 : i32
    %c0_i32_0 = arith.constant 0 : i32
    return %arg0, %c0_i32 : i32, i32
  }
  func.func @transform_3(%arg0: i32) -> (i32, i32) {
    %c0_i32 = arith.constant 0 : i32
    %c0_i32_0 = arith.constant 0 : i32
    %c0_i32_1 = arith.constant 0 : i32
    return %c0_i32, %c0_i32_0 : i32, i32
  }
}

module attributes {stable_mosaic.version = 11 : i64} {
  func.func @bn_act_kernel(%arg0: i32, %arg1: memref<16x64xf32, #tpu.memory_space<vmem>>, %arg2: memref<1x64xf32, #tpu.memory_space<vmem>>, %arg3: memref<1x64xf32, #tpu.memory_space<vmem>>, %arg4: memref<16x64xf32, #tpu.memory_space<vmem>>) attributes {dimension_semantics = [#tpu.dimension_semantics<parallel>], iteration_bounds = array<i64: 1>, scalar_prefetch = 0 : i64, scratch_operands = 0 : i64, tpu.core_type = #tpu.core_type<tc>, window_params = [{transform_indices = @transform_0, window_bounds = array<i64: 16, 64>}, {pipeline_mode = #tpu.pipeline_mode<synchronous>, transform_indices = @transform_1, window_bounds = array<i64: 1, 64>}, {pipeline_mode = #tpu.pipeline_mode<synchronous>, transform_indices = @transform_2, window_bounds = array<i64: 1, 64>}, {transform_indices = @transform_3, window_bounds = array<i64: 16, 64>}]} {
    %c0 = arith.constant 0 : index
    %c0_0 = arith.constant 0 : index
    %0 = vector.load %arg1[%c0, %c0_0] : memref<16x64xf32, #tpu.memory_space<vmem>>, vector<16x64xf32>
    %c0_1 = arith.constant 0 : index
    %c0_2 = arith.constant 0 : index
    %1 = vector.load %arg2[%c0_1, %c0_2] : memref<1x64xf32, #tpu.memory_space<vmem>>, vector<1x64xf32>
    %2 = vector.broadcast %1 : vector<1x64xf32> to vector<16x64xf32>
    %3 = arith.mulf %0, %2 : vector<16x64xf32>
    %c0_3 = arith.constant 0 : index
    %c0_4 = arith.constant 0 : index
    %4 = vector.load %arg3[%c0_3, %c0_4] : memref<1x64xf32, #tpu.memory_space<vmem>>, vector<1x64xf32>
    %5 = vector.broadcast %4 : vector<1x64xf32> to vector<16x64xf32>
    %6 = arith.addf %3, %5 : vector<16x64xf32>
    %cst = arith.constant 0.000000e+00 : f32
    %7 = vector.broadcast %cst : f32 to vector<16x64xf32>
    %8 = arith.maximumf %6, %7 : vector<16x64xf32>
    %c0_5 = arith.constant 0 : index
    %c0_6 = arith.constant 0 : index
    %9 = vector.load %arg4[%c0_5, %c0_6] : memref<16x64xf32, #tpu.memory_space<vmem>>, vector<16x64xf32>
    tpu.vector_store %arg4[%c0_5, %c0_6], %8 {strides = array<i32>} : memref<16x64xf32, #tpu.memory_space<vmem>>, vector<16x64xf32>,
    return
  }
  func.func @transform_0(%arg0: i32) -> (i32, i32) {
    %c0_i32 = arith.constant 0 : i32
    %c0_i32_0 = arith.constant 0 : i32
    return %arg0, %c0_i32 : i32, i32
  }
  func.func @transform_1(%arg0: i32) -> (i32, i32) {
    %c0_i32 = arith.constant 0 : i32
    %c0_i32_0 = arith.constant 0 : i32
    %c0_i32_1 = arith.constant 0 : i32
    return %c0_i32, %c0_i32_0 : i32, i32
  }
  func.func @transform_2(%arg0: i32) -> (i32, i32) {
    %c0_i32 = arith.constant 0 : i32
    %c0_i32_0 = arith.constant 0 : i32
    %c0_i32_1 = arith.constant 0 : i32
    return %c0_i32, %c0_i32_0 : i32, i32
  }
  func.func @transform_3(%arg0: i32) -> (i32, i32) {
    %c0_i32 = arith.constant 0 : i32
    %c0_i32_0 = arith.constant 0 : i32
    return %arg0, %c0_i32 : i32, i32
  }
}

module attributes {stable_mosaic.version = 11 : i64} {
  func.func @conv_stats_kernel(%arg0: i32, %arg1: memref<16x480xbf16, #tpu.memory_space<vmem>>, %arg2: memref<480x64xbf16, #tpu.memory_space<vmem>>, %arg3: memref<16x64xf32, #tpu.memory_space<vmem>>, %arg4: memref<2x64xf32, #tpu.memory_space<vmem>>) attributes {dimension_semantics = [#tpu.dimension_semantics<arbitrary>], iteration_bounds = array<i64: 1>, scalar_prefetch = 0 : i64, scratch_operands = 0 : i64, tpu.core_type = #tpu.core_type<tc>, window_params = [{transform_indices = @transform_0, window_bounds = array<i64: 16, 480>}, {pipeline_mode = #tpu.pipeline_mode<synchronous>, transform_indices = @transform_1, window_bounds = array<i64: 480, 64>}, {transform_indices = @transform_2, window_bounds = array<i64: 16, 64>}, {pipeline_mode = #tpu.pipeline_mode<synchronous>, transform_indices = @transform_3, window_bounds = array<i64: 2, 64>}]} {
    %c0 = arith.constant 0 : index
    %c0_0 = arith.constant 0 : index
    %0 = vector.load %arg1[%c0, %c0_0] : memref<16x480xbf16, #tpu.memory_space<vmem>>, vector<16x480xbf16>
    %c0_1 = arith.constant 0 : index
    %c0_2 = arith.constant 0 : index
    %1 = vector.load %arg2[%c0_1, %c0_2] : memref<480x64xbf16, #tpu.memory_space<vmem>>, vector<480x64xbf16>
    %cst = arith.constant dense<0.000000e+00> : vector<16x64xf32>
    %2 = tpu.matmul %0, %1, %cst {dimension_numbers = #tpu.dot_dimension_numbers<[1], [0], [0], [1], [0, 0, 1, 1], [], []>} : vector<16x480xbf16>, vector<480x64xbf16>, vector<16x64xf32> -> vector<16x64xf32>
    %c0_3 = arith.constant 0 : index
    %c0_4 = arith.constant 0 : index
    %3 = vector.load %arg3[%c0_3, %c0_4] : memref<16x64xf32, #tpu.memory_space<vmem>>, vector<16x64xf32>
    tpu.vector_store %arg3[%c0_3, %c0_4], %2 {strides = array<i32>} : memref<16x64xf32, #tpu.memory_space<vmem>>, vector<16x64xf32>,
    %c0_i32 = arith.constant 0 : i32
    %4 = arith.cmpi eq, %arg0, %c0_i32 : i32
    %5 = arith.extui %4 : i1 to i32
    %c0_i32_5 = arith.constant 0 : i32
    %6 = arith.cmpi ne, %5, %c0_i32_5 : i32
    scf.if %6 {
      %cst_12 = arith.constant 0.000000e+00 : f32
      %16 = vector.broadcast %cst_12 : f32 to vector<2x64xf32>
      %c0_13 = arith.constant 0 : index
      %c0_14 = arith.constant 0 : index
      %17 = vector.load %arg4[%c0_13, %c0_14] : memref<2x64xf32, #tpu.memory_space<vmem>>, vector<2x64xf32>
      tpu.vector_store %arg4[%c0_13, %c0_14], %16 {strides = array<i32>} : memref<2x64xf32, #tpu.memory_space<vmem>>, vector<2x64xf32>,
    } else {
    }
    %cst_6 = arith.constant dense<0.000000e+00> : vector<64xf32>
    %7 = vector.multi_reduction <add>, %2, %cst_6 [0] : vector<16x64xf32> to vector<64xf32>
    %8 = vector.shape_cast %7 : vector<64xf32> to vector<1x64xf32>
    %9 = arith.mulf %2, %2 : vector<16x64xf32>
    %cst_7 = arith.constant dense<0.000000e+00> : vector<64xf32>
    %10 = vector.multi_reduction <add>, %9, %cst_7 [0] : vector<16x64xf32> to vector<64xf32>
    %11 = vector.shape_cast %10 : vector<64xf32> to vector<1x64xf32>
    %12 = tpu.concatenate %8, %11 in 0 : vector<1x64xf32>, vector<1x64xf32> -> vector<2x64xf32>
    %c0_8 = arith.constant 0 : index
    %c0_9 = arith.constant 0 : index
    %13 = vector.load %arg4[%c0_8, %c0_9] : memref<2x64xf32, #tpu.memory_space<vmem>>, vector<2x64xf32>
    %14 = arith.addf %13, %12 : vector<2x64xf32>
    %c0_10 = arith.constant 0 : index
    %c0_11 = arith.constant 0 : index
    %15 = vector.load %arg4[%c0_10, %c0_11] : memref<2x64xf32, #tpu.memory_space<vmem>>, vector<2x64xf32>
    tpu.vector_store %arg4[%c0_10, %c0_11], %14 {strides = array<i32>} : memref<2x64xf32, #tpu.memory_space<vmem>>, vector<2x64xf32>,
    return
  }
  func.func @transform_0(%arg0: i32) -> (i32, i32) {
    %c0_i32 = arith.constant 0 : i32
    %c0_i32_0 = arith.constant 0 : i32
    return %arg0, %c0_i32 : i32, i32
  }
  func.func @transform_1(%arg0: i32) -> (i32, i32) {
    %c0_i32 = arith.constant 0 : i32
    %c0_i32_0 = arith.constant 0 : i32
    %c0_i32_1 = arith.constant 0 : i32
    return %c0_i32, %c0_i32_0 : i32, i32
  }
  func.func @transform_2(%arg0: i32) -> (i32, i32) {
    %c0_i32 = arith.constant 0 : i32
    %c0_i32_0 = arith.constant 0 : i32
    return %arg0, %c0_i32 : i32, i32
  }
  func.func @transform_3(%arg0: i32) -> (i32, i32) {
    %c0_i32 = arith.constant 0 : i32
    %c0_i32_0 = arith.constant 0 : i32
    %c0_i32_1 = arith.constant 0 : i32
    return %c0_i32, %c0_i32_0 : i32, i32
  }
}

module attributes {stable_mosaic.version = 11 : i64} {
  func.func @conv_stats_kernel(%arg0: i32, %arg1: memref<16x240xbf16, #tpu.memory_space<vmem>>, %arg2: memref<240x64xbf16, #tpu.memory_space<vmem>>, %arg3: memref<16x64xf32, #tpu.memory_space<vmem>>, %arg4: memref<2x64xf32, #tpu.memory_space<vmem>>) attributes {dimension_semantics = [#tpu.dimension_semantics<arbitrary>], iteration_bounds = array<i64: 1>, scalar_prefetch = 0 : i64, scratch_operands = 0 : i64, tpu.core_type = #tpu.core_type<tc>, window_params = [{transform_indices = @transform_0, window_bounds = array<i64: 16, 240>}, {pipeline_mode = #tpu.pipeline_mode<synchronous>, transform_indices = @transform_1, window_bounds = array<i64: 240, 64>}, {transform_indices = @transform_2, window_bounds = array<i64: 16, 64>}, {pipeline_mode = #tpu.pipeline_mode<synchronous>, transform_indices = @transform_3, window_bounds = array<i64: 2, 64>}]} {
    %c0 = arith.constant 0 : index
    %c0_0 = arith.constant 0 : index
    %0 = vector.load %arg1[%c0, %c0_0] : memref<16x240xbf16, #tpu.memory_space<vmem>>, vector<16x240xbf16>
    %c0_1 = arith.constant 0 : index
    %c0_2 = arith.constant 0 : index
    %1 = vector.load %arg2[%c0_1, %c0_2] : memref<240x64xbf16, #tpu.memory_space<vmem>>, vector<240x64xbf16>
    %cst = arith.constant dense<0.000000e+00> : vector<16x64xf32>
    %2 = tpu.matmul %0, %1, %cst {dimension_numbers = #tpu.dot_dimension_numbers<[1], [0], [0], [1], [0, 0, 1, 1], [], []>} : vector<16x240xbf16>, vector<240x64xbf16>, vector<16x64xf32> -> vector<16x64xf32>
    %c0_3 = arith.constant 0 : index
    %c0_4 = arith.constant 0 : index
    %3 = vector.load %arg3[%c0_3, %c0_4] : memref<16x64xf32, #tpu.memory_space<vmem>>, vector<16x64xf32>
    tpu.vector_store %arg3[%c0_3, %c0_4], %2 {strides = array<i32>} : memref<16x64xf32, #tpu.memory_space<vmem>>, vector<16x64xf32>,
    %c0_i32 = arith.constant 0 : i32
    %4 = arith.cmpi eq, %arg0, %c0_i32 : i32
    %5 = arith.extui %4 : i1 to i32
    %c0_i32_5 = arith.constant 0 : i32
    %6 = arith.cmpi ne, %5, %c0_i32_5 : i32
    scf.if %6 {
      %cst_12 = arith.constant 0.000000e+00 : f32
      %16 = vector.broadcast %cst_12 : f32 to vector<2x64xf32>
      %c0_13 = arith.constant 0 : index
      %c0_14 = arith.constant 0 : index
      %17 = vector.load %arg4[%c0_13, %c0_14] : memref<2x64xf32, #tpu.memory_space<vmem>>, vector<2x64xf32>
      tpu.vector_store %arg4[%c0_13, %c0_14], %16 {strides = array<i32>} : memref<2x64xf32, #tpu.memory_space<vmem>>, vector<2x64xf32>,
    } else {
    }
    %cst_6 = arith.constant dense<0.000000e+00> : vector<64xf32>
    %7 = vector.multi_reduction <add>, %2, %cst_6 [0] : vector<16x64xf32> to vector<64xf32>
    %8 = vector.shape_cast %7 : vector<64xf32> to vector<1x64xf32>
    %9 = arith.mulf %2, %2 : vector<16x64xf32>
    %cst_7 = arith.constant dense<0.000000e+00> : vector<64xf32>
    %10 = vector.multi_reduction <add>, %9, %cst_7 [0] : vector<16x64xf32> to vector<64xf32>
    %11 = vector.shape_cast %10 : vector<64xf32> to vector<1x64xf32>
    %12 = tpu.concatenate %8, %11 in 0 : vector<1x64xf32>, vector<1x64xf32> -> vector<2x64xf32>
    %c0_8 = arith.constant 0 : index
    %c0_9 = arith.constant 0 : index
    %13 = vector.load %arg4[%c0_8, %c0_9] : memref<2x64xf32, #tpu.memory_space<vmem>>, vector<2x64xf32>
    %14 = arith.addf %13, %12 : vector<2x64xf32>
    %c0_10 = arith.constant 0 : index
    %c0_11 = arith.constant 0 : index
    %15 = vector.load %arg4[%c0_10, %c0_11] : memref<2x64xf32, #tpu.memory_space<vmem>>, vector<2x64xf32>
    tpu.vector_store %arg4[%c0_10, %c0_11], %14 {strides = array<i32>} : memref<2x64xf32, #tpu.memory_space<vmem>>, vector<2x64xf32>,
    return
  }
  func.func @transform_0(%arg0: i32) -> (i32, i32) {
    %c0_i32 = arith.constant 0 : i32
    %c0_i32_0 = arith.constant 0 : i32
    return %arg0, %c0_i32 : i32, i32
  }
  func.func @transform_1(%arg0: i32) -> (i32, i32) {
    %c0_i32 = arith.constant 0 : i32
    %c0_i32_0 = arith.constant 0 : i32
    %c0_i32_1 = arith.constant 0 : i32
    return %c0_i32, %c0_i32_0 : i32, i32
  }
  func.func @transform_2(%arg0: i32) -> (i32, i32) {
    %c0_i32 = arith.constant 0 : i32
    %c0_i32_0 = arith.constant 0 : i32
    return %arg0, %c0_i32 : i32, i32
  }
  func.func @transform_3(%arg0: i32) -> (i32, i32) {
    %c0_i32 = arith.constant 0 : i32
    %c0_i32_0 = arith.constant 0 : i32
    %c0_i32_1 = arith.constant 0 : i32
    return %c0_i32, %c0_i32_0 : i32, i32
  }
}

module attributes {stable_mosaic.version = 11 : i64} {
  func.func @conv_stats_kernel(%arg0: i32, %arg1: memref<32x32xbf16, #tpu.memory_space<vmem>>, %arg2: memref<32x8xbf16, #tpu.memory_space<vmem>>, %arg3: memref<32x8xf32, #tpu.memory_space<vmem>>, %arg4: memref<2x8xf32, #tpu.memory_space<vmem>>) attributes {dimension_semantics = [#tpu.dimension_semantics<arbitrary>], iteration_bounds = array<i64: 1>, scalar_prefetch = 0 : i64, scratch_operands = 0 : i64, tpu.core_type = #tpu.core_type<tc>, window_params = [{transform_indices = @transform_0, window_bounds = array<i64: 32, 32>}, {pipeline_mode = #tpu.pipeline_mode<synchronous>, transform_indices = @transform_1, window_bounds = array<i64: 32, 8>}, {transform_indices = @transform_2, window_bounds = array<i64: 32, 8>}, {pipeline_mode = #tpu.pipeline_mode<synchronous>, transform_indices = @transform_3, window_bounds = array<i64: 2, 8>}]} {
    %c0 = arith.constant 0 : index
    %c0_0 = arith.constant 0 : index
    %0 = vector.load %arg1[%c0, %c0_0] : memref<32x32xbf16, #tpu.memory_space<vmem>>, vector<32x32xbf16>
    %c0_1 = arith.constant 0 : index
    %c0_2 = arith.constant 0 : index
    %1 = vector.load %arg2[%c0_1, %c0_2] : memref<32x8xbf16, #tpu.memory_space<vmem>>, vector<32x8xbf16>
    %cst = arith.constant dense<0.000000e+00> : vector<32x8xf32>
    %2 = tpu.matmul %0, %1, %cst {dimension_numbers = #tpu.dot_dimension_numbers<[1], [0], [0], [1], [0, 0, 1, 1], [], []>} : vector<32x32xbf16>, vector<32x8xbf16>, vector<32x8xf32> -> vector<32x8xf32>
    %c0_3 = arith.constant 0 : index
    %c0_4 = arith.constant 0 : index
    %3 = vector.load %arg3[%c0_3, %c0_4] : memref<32x8xf32, #tpu.memory_space<vmem>>, vector<32x8xf32>
    tpu.vector_store %arg3[%c0_3, %c0_4], %2 {strides = array<i32>} : memref<32x8xf32, #tpu.memory_space<vmem>>, vector<32x8xf32>,
    %c0_i32 = arith.constant 0 : i32
    %4 = arith.cmpi eq, %arg0, %c0_i32 : i32
    %5 = arith.extui %4 : i1 to i32
    %c0_i32_5 = arith.constant 0 : i32
    %6 = arith.cmpi ne, %5, %c0_i32_5 : i32
    scf.if %6 {
      %cst_12 = arith.constant 0.000000e+00 : f32
      %16 = vector.broadcast %cst_12 : f32 to vector<2x8xf32>
      %c0_13 = arith.constant 0 : index
      %c0_14 = arith.constant 0 : index
      %17 = vector.load %arg4[%c0_13, %c0_14] : memref<2x8xf32, #tpu.memory_space<vmem>>, vector<2x8xf32>
      tpu.vector_store %arg4[%c0_13, %c0_14], %16 {strides = array<i32>} : memref<2x8xf32, #tpu.memory_space<vmem>>, vector<2x8xf32>,
    } else {
    }
    %cst_6 = arith.constant dense<0.000000e+00> : vector<8xf32>
    %7 = vector.multi_reduction <add>, %2, %cst_6 [0] : vector<32x8xf32> to vector<8xf32>
    %8 = vector.shape_cast %7 : vector<8xf32> to vector<1x8xf32>
    %9 = arith.mulf %2, %2 : vector<32x8xf32>
    %cst_7 = arith.constant dense<0.000000e+00> : vector<8xf32>
    %10 = vector.multi_reduction <add>, %9, %cst_7 [0] : vector<32x8xf32> to vector<8xf32>
    %11 = vector.shape_cast %10 : vector<8xf32> to vector<1x8xf32>
    %12 = tpu.concatenate %8, %11 in 0 : vector<1x8xf32>, vector<1x8xf32> -> vector<2x8xf32>
    %c0_8 = arith.constant 0 : index
    %c0_9 = arith.constant 0 : index
    %13 = vector.load %arg4[%c0_8, %c0_9] : memref<2x8xf32, #tpu.memory_space<vmem>>, vector<2x8xf32>
    %14 = arith.addf %13, %12 : vector<2x8xf32>
    %c0_10 = arith.constant 0 : index
    %c0_11 = arith.constant 0 : index
    %15 = vector.load %arg4[%c0_10, %c0_11] : memref<2x8xf32, #tpu.memory_space<vmem>>, vector<2x8xf32>
    tpu.vector_store %arg4[%c0_10, %c0_11], %14 {strides = array<i32>} : memref<2x8xf32, #tpu.memory_space<vmem>>, vector<2x8xf32>,
    return
  }
  func.func @transform_0(%arg0: i32) -> (i32, i32) {
    %c0_i32 = arith.constant 0 : i32
    %c0_i32_0 = arith.constant 0 : i32
    return %arg0, %c0_i32 : i32, i32
  }
  func.func @transform_1(%arg0: i32) -> (i32, i32) {
    %c0_i32 = arith.constant 0 : i32
    %c0_i32_0 = arith.constant 0 : i32
    %c0_i32_1 = arith.constant 0 : i32
    return %c0_i32, %c0_i32_0 : i32, i32
  }
  func.func @transform_2(%arg0: i32) -> (i32, i32) {
    %c0_i32 = arith.constant 0 : i32
    %c0_i32_0 = arith.constant 0 : i32
    return %arg0, %c0_i32 : i32, i32
  }
  func.func @transform_3(%arg0: i32) -> (i32, i32) {
    %c0_i32 = arith.constant 0 : i32
    %c0_i32_0 = arith.constant 0 : i32
    %c0_i32_1 = arith.constant 0 : i32
    return %c0_i32, %c0_i32_0 : i32, i32
  }
}

module attributes {stable_mosaic.version = 11 : i64} {
  func.func @bn_act_kernel(%arg0: i32, %arg1: memref<32x8xf32, #tpu.memory_space<vmem>>, %arg2: memref<1x8xf32, #tpu.memory_space<vmem>>, %arg3: memref<1x8xf32, #tpu.memory_space<vmem>>, %arg4: memref<32x8xf32, #tpu.memory_space<vmem>>) attributes {dimension_semantics = [#tpu.dimension_semantics<parallel>], iteration_bounds = array<i64: 1>, scalar_prefetch = 0 : i64, scratch_operands = 0 : i64, tpu.core_type = #tpu.core_type<tc>, window_params = [{transform_indices = @transform_0, window_bounds = array<i64: 32, 8>}, {pipeline_mode = #tpu.pipeline_mode<synchronous>, transform_indices = @transform_1, window_bounds = array<i64: 1, 8>}, {pipeline_mode = #tpu.pipeline_mode<synchronous>, transform_indices = @transform_2, window_bounds = array<i64: 1, 8>}, {transform_indices = @transform_3, window_bounds = array<i64: 32, 8>}]} {
    %c0 = arith.constant 0 : index
    %c0_0 = arith.constant 0 : index
    %0 = vector.load %arg1[%c0, %c0_0] : memref<32x8xf32, #tpu.memory_space<vmem>>, vector<32x8xf32>
    %c0_1 = arith.constant 0 : index
    %c0_2 = arith.constant 0 : index
    %1 = vector.load %arg2[%c0_1, %c0_2] : memref<1x8xf32, #tpu.memory_space<vmem>>, vector<1x8xf32>
    %2 = vector.broadcast %1 : vector<1x8xf32> to vector<32x8xf32>
    %3 = arith.mulf %0, %2 : vector<32x8xf32>
    %c0_3 = arith.constant 0 : index
    %c0_4 = arith.constant 0 : index
    %4 = vector.load %arg3[%c0_3, %c0_4] : memref<1x8xf32, #tpu.memory_space<vmem>>, vector<1x8xf32>
    %5 = vector.broadcast %4 : vector<1x8xf32> to vector<32x8xf32>
    %6 = arith.addf %3, %5 : vector<32x8xf32>
    %cst = arith.constant 0.000000e+00 : f32
    %7 = vector.broadcast %cst : f32 to vector<32x8xf32>
    %8 = arith.maximumf %6, %7 : vector<32x8xf32>
    %c0_5 = arith.constant 0 : index
    %c0_6 = arith.constant 0 : index
    %9 = vector.load %arg4[%c0_5, %c0_6] : memref<32x8xf32, #tpu.memory_space<vmem>>, vector<32x8xf32>
    tpu.vector_store %arg4[%c0_5, %c0_6], %8 {strides = array<i32>} : memref<32x8xf32, #tpu.memory_space<vmem>>, vector<32x8xf32>,
    return
  }
  func.func @transform_0(%arg0: i32) -> (i32, i32) {
    %c0_i32 = arith.constant 0 : i32
    %c0_i32_0 = arith.constant 0 : i32
    return %arg0, %c0_i32 : i32, i32
  }
  func.func @transform_1(%arg0: i32) -> (i32, i32) {
    %c0_i32 = arith.constant 0 : i32
    %c0_i32_0 = arith.constant 0 : i32
    %c0_i32_1 = arith.constant 0 : i32
    return %c0_i32, %c0_i32_0 : i32, i32
  }
  func.func @transform_2(%arg0: i32) -> (i32, i32) {
    %c0_i32 = arith.constant 0 : i32
    %c0_i32_0 = arith.constant 0 : i32
    %c0_i32_1 = arith.constant 0 : i32
    return %c0_i32, %c0_i32_0 : i32, i32
  }
  func.func @transform_3(%arg0: i32) -> (i32, i32) {
    %c0_i32 = arith.constant 0 : i32
    %c0_i32_0 = arith.constant 0 : i32
    return %arg0, %c0_i32 : i32, i32
  }
}

module attributes {stable_mosaic.version = 11 : i64} {
  func.func @conv_stats_kernel(%arg0: i32, %arg1: memref<16x320xbf16, #tpu.memory_space<vmem>>, %arg2: memref<320x16xbf16, #tpu.memory_space<vmem>>, %arg3: memref<16x16xf32, #tpu.memory_space<vmem>>, %arg4: memref<2x16xf32, #tpu.memory_space<vmem>>) attributes {dimension_semantics = [#tpu.dimension_semantics<arbitrary>], iteration_bounds = array<i64: 1>, scalar_prefetch = 0 : i64, scratch_operands = 0 : i64, tpu.core_type = #tpu.core_type<tc>, window_params = [{transform_indices = @transform_0, window_bounds = array<i64: 16, 320>}, {pipeline_mode = #tpu.pipeline_mode<synchronous>, transform_indices = @transform_1, window_bounds = array<i64: 320, 16>}, {transform_indices = @transform_2, window_bounds = array<i64: 16, 16>}, {pipeline_mode = #tpu.pipeline_mode<synchronous>, transform_indices = @transform_3, window_bounds = array<i64: 2, 16>}]} {
    %c0 = arith.constant 0 : index
    %c0_0 = arith.constant 0 : index
    %0 = vector.load %arg1[%c0, %c0_0] : memref<16x320xbf16, #tpu.memory_space<vmem>>, vector<16x320xbf16>
    %c0_1 = arith.constant 0 : index
    %c0_2 = arith.constant 0 : index
    %1 = vector.load %arg2[%c0_1, %c0_2] : memref<320x16xbf16, #tpu.memory_space<vmem>>, vector<320x16xbf16>
    %cst = arith.constant dense<0.000000e+00> : vector<16x16xf32>
    %2 = tpu.matmul %0, %1, %cst {dimension_numbers = #tpu.dot_dimension_numbers<[1], [0], [0], [1], [0, 0, 1, 1], [], []>} : vector<16x320xbf16>, vector<320x16xbf16>, vector<16x16xf32> -> vector<16x16xf32>
    %c0_3 = arith.constant 0 : index
    %c0_4 = arith.constant 0 : index
    %3 = vector.load %arg3[%c0_3, %c0_4] : memref<16x16xf32, #tpu.memory_space<vmem>>, vector<16x16xf32>
    tpu.vector_store %arg3[%c0_3, %c0_4], %2 {strides = array<i32>} : memref<16x16xf32, #tpu.memory_space<vmem>>, vector<16x16xf32>,
    %c0_i32 = arith.constant 0 : i32
    %4 = arith.cmpi eq, %arg0, %c0_i32 : i32
    %5 = arith.extui %4 : i1 to i32
    %c0_i32_5 = arith.constant 0 : i32
    %6 = arith.cmpi ne, %5, %c0_i32_5 : i32
    scf.if %6 {
      %cst_12 = arith.constant 0.000000e+00 : f32
      %16 = vector.broadcast %cst_12 : f32 to vector<2x16xf32>
      %c0_13 = arith.constant 0 : index
      %c0_14 = arith.constant 0 : index
      %17 = vector.load %arg4[%c0_13, %c0_14] : memref<2x16xf32, #tpu.memory_space<vmem>>, vector<2x16xf32>
      tpu.vector_store %arg4[%c0_13, %c0_14], %16 {strides = array<i32>} : memref<2x16xf32, #tpu.memory_space<vmem>>, vector<2x16xf32>,
    } else {
    }
    %cst_6 = arith.constant dense<0.000000e+00> : vector<16xf32>
    %7 = vector.multi_reduction <add>, %2, %cst_6 [0] : vector<16x16xf32> to vector<16xf32>
    %8 = vector.shape_cast %7 : vector<16xf32> to vector<1x16xf32>
    %9 = arith.mulf %2, %2 : vector<16x16xf32>
    %cst_7 = arith.constant dense<0.000000e+00> : vector<16xf32>
    %10 = vector.multi_reduction <add>, %9, %cst_7 [0] : vector<16x16xf32> to vector<16xf32>
    %11 = vector.shape_cast %10 : vector<16xf32> to vector<1x16xf32>
    %12 = tpu.concatenate %8, %11 in 0 : vector<1x16xf32>, vector<1x16xf32> -> vector<2x16xf32>
    %c0_8 = arith.constant 0 : index
    %c0_9 = arith.constant 0 : index
    %13 = vector.load %arg4[%c0_8, %c0_9] : memref<2x16xf32, #tpu.memory_space<vmem>>, vector<2x16xf32>
    %14 = arith.addf %13, %12 : vector<2x16xf32>
    %c0_10 = arith.constant 0 : index
    %c0_11 = arith.constant 0 : index
    %15 = vector.load %arg4[%c0_10, %c0_11] : memref<2x16xf32, #tpu.memory_space<vmem>>, vector<2x16xf32>
    tpu.vector_store %arg4[%c0_10, %c0_11], %14 {strides = array<i32>} : memref<2x16xf32, #tpu.memory_space<vmem>>, vector<2x16xf32>,
    return
  }
  func.func @transform_0(%arg0: i32) -> (i32, i32) {
    %c0_i32 = arith.constant 0 : i32
    %c0_i32_0 = arith.constant 0 : i32
    return %arg0, %c0_i32 : i32, i32
  }
  func.func @transform_1(%arg0: i32) -> (i32, i32) {
    %c0_i32 = arith.constant 0 : i32
    %c0_i32_0 = arith.constant 0 : i32
    %c0_i32_1 = arith.constant 0 : i32
    return %c0_i32, %c0_i32_0 : i32, i32
  }
  func.func @transform_2(%arg0: i32) -> (i32, i32) {
    %c0_i32 = arith.constant 0 : i32
    %c0_i32_0 = arith.constant 0 : i32
    return %arg0, %c0_i32 : i32, i32
  }
  func.func @transform_3(%arg0: i32) -> (i32, i32) {
    %c0_i32 = arith.constant 0 : i32
    %c0_i32_0 = arith.constant 0 : i32
    %c0_i32_1 = arith.constant 0 : i32
    return %c0_i32, %c0_i32_0 : i32, i32
  }
}

module attributes {stable_mosaic.version = 11 : i64} {
  func.func @bn_act_kernel(%arg0: i32, %arg1: memref<16x16xf32, #tpu.memory_space<vmem>>, %arg2: memref<1x16xf32, #tpu.memory_space<vmem>>, %arg3: memref<1x16xf32, #tpu.memory_space<vmem>>, %arg4: memref<16x16xf32, #tpu.memory_space<vmem>>) attributes {dimension_semantics = [#tpu.dimension_semantics<parallel>], iteration_bounds = array<i64: 1>, scalar_prefetch = 0 : i64, scratch_operands = 0 : i64, tpu.core_type = #tpu.core_type<tc>, window_params = [{transform_indices = @transform_0, window_bounds = array<i64: 16, 16>}, {pipeline_mode = #tpu.pipeline_mode<synchronous>, transform_indices = @transform_1, window_bounds = array<i64: 1, 16>}, {pipeline_mode = #tpu.pipeline_mode<synchronous>, transform_indices = @transform_2, window_bounds = array<i64: 1, 16>}, {transform_indices = @transform_3, window_bounds = array<i64: 16, 16>}]} {
    %c0 = arith.constant 0 : index
    %c0_0 = arith.constant 0 : index
    %0 = vector.load %arg1[%c0, %c0_0] : memref<16x16xf32, #tpu.memory_space<vmem>>, vector<16x16xf32>
    %c0_1 = arith.constant 0 : index
    %c0_2 = arith.constant 0 : index
    %1 = vector.load %arg2[%c0_1, %c0_2] : memref<1x16xf32, #tpu.memory_space<vmem>>, vector<1x16xf32>
    %2 = vector.broadcast %1 : vector<1x16xf32> to vector<16x16xf32>
    %3 = arith.mulf %0, %2 : vector<16x16xf32>
    %c0_3 = arith.constant 0 : index
    %c0_4 = arith.constant 0 : index
    %4 = vector.load %arg3[%c0_3, %c0_4] : memref<1x16xf32, #tpu.memory_space<vmem>>, vector<1x16xf32>
    %5 = vector.broadcast %4 : vector<1x16xf32> to vector<16x16xf32>
    %6 = arith.addf %3, %5 : vector<16x16xf32>
    %cst = arith.constant 0.000000e+00 : f32
    %7 = vector.broadcast %cst : f32 to vector<16x16xf32>
    %8 = arith.maximumf %6, %7 : vector<16x16xf32>
    %c0_5 = arith.constant 0 : index
    %c0_6 = arith.constant 0 : index
    %9 = vector.load %arg4[%c0_5, %c0_6] : memref<16x16xf32, #tpu.memory_space<vmem>>, vector<16x16xf32>
    tpu.vector_store %arg4[%c0_5, %c0_6], %8 {strides = array<i32>} : memref<16x16xf32, #tpu.memory_space<vmem>>, vector<16x16xf32>,
    return
  }
  func.func @transform_0(%arg0: i32) -> (i32, i32) {
    %c0_i32 = arith.constant 0 : i32
    %c0_i32_0 = arith.constant 0 : i32
    return %arg0, %c0_i32 : i32, i32
  }
  func.func @transform_1(%arg0: i32) -> (i32, i32) {
    %c0_i32 = arith.constant 0 : i32
    %c0_i32_0 = arith.constant 0 : i32
    %c0_i32_1 = arith.constant 0 : i32
    return %c0_i32, %c0_i32_0 : i32, i32
  }
  func.func @transform_2(%arg0: i32) -> (i32, i32) {
    %c0_i32 = arith.constant 0 : i32
    %c0_i32_0 = arith.constant 0 : i32
    %c0_i32_1 = arith.constant 0 : i32
    return %c0_i32, %c0_i32_0 : i32, i32
  }
  func.func @transform_3(%arg0: i32) -> (i32, i32) {
    %c0_i32 = arith.constant 0 : i32
    %c0_i32_0 = arith.constant 0 : i32
    return %arg0, %c0_i32 : i32, i32
  }
}

module attributes {stable_mosaic.version = 11 : i64} {
  func.func @conv_stats_kernel(%arg0: i32, %arg1: memref<16x160xbf16, #tpu.memory_space<vmem>>, %arg2: memref<160x16xbf16, #tpu.memory_space<vmem>>, %arg3: memref<16x16xf32, #tpu.memory_space<vmem>>, %arg4: memref<2x16xf32, #tpu.memory_space<vmem>>) attributes {dimension_semantics = [#tpu.dimension_semantics<arbitrary>], iteration_bounds = array<i64: 1>, scalar_prefetch = 0 : i64, scratch_operands = 0 : i64, tpu.core_type = #tpu.core_type<tc>, window_params = [{transform_indices = @transform_0, window_bounds = array<i64: 16, 160>}, {pipeline_mode = #tpu.pipeline_mode<synchronous>, transform_indices = @transform_1, window_bounds = array<i64: 160, 16>}, {transform_indices = @transform_2, window_bounds = array<i64: 16, 16>}, {pipeline_mode = #tpu.pipeline_mode<synchronous>, transform_indices = @transform_3, window_bounds = array<i64: 2, 16>}]} {
    %c0 = arith.constant 0 : index
    %c0_0 = arith.constant 0 : index
    %0 = vector.load %arg1[%c0, %c0_0] : memref<16x160xbf16, #tpu.memory_space<vmem>>, vector<16x160xbf16>
    %c0_1 = arith.constant 0 : index
    %c0_2 = arith.constant 0 : index
    %1 = vector.load %arg2[%c0_1, %c0_2] : memref<160x16xbf16, #tpu.memory_space<vmem>>, vector<160x16xbf16>
    %cst = arith.constant dense<0.000000e+00> : vector<16x16xf32>
    %2 = tpu.matmul %0, %1, %cst {dimension_numbers = #tpu.dot_dimension_numbers<[1], [0], [0], [1], [0, 0, 1, 1], [], []>} : vector<16x160xbf16>, vector<160x16xbf16>, vector<16x16xf32> -> vector<16x16xf32>
    %c0_3 = arith.constant 0 : index
    %c0_4 = arith.constant 0 : index
    %3 = vector.load %arg3[%c0_3, %c0_4] : memref<16x16xf32, #tpu.memory_space<vmem>>, vector<16x16xf32>
    tpu.vector_store %arg3[%c0_3, %c0_4], %2 {strides = array<i32>} : memref<16x16xf32, #tpu.memory_space<vmem>>, vector<16x16xf32>,
    %c0_i32 = arith.constant 0 : i32
    %4 = arith.cmpi eq, %arg0, %c0_i32 : i32
    %5 = arith.extui %4 : i1 to i32
    %c0_i32_5 = arith.constant 0 : i32
    %6 = arith.cmpi ne, %5, %c0_i32_5 : i32
    scf.if %6 {
      %cst_12 = arith.constant 0.000000e+00 : f32
      %16 = vector.broadcast %cst_12 : f32 to vector<2x16xf32>
      %c0_13 = arith.constant 0 : index
      %c0_14 = arith.constant 0 : index
      %17 = vector.load %arg4[%c0_13, %c0_14] : memref<2x16xf32, #tpu.memory_space<vmem>>, vector<2x16xf32>
      tpu.vector_store %arg4[%c0_13, %c0_14], %16 {strides = array<i32>} : memref<2x16xf32, #tpu.memory_space<vmem>>, vector<2x16xf32>,
    } else {
    }
    %cst_6 = arith.constant dense<0.000000e+00> : vector<16xf32>
    %7 = vector.multi_reduction <add>, %2, %cst_6 [0] : vector<16x16xf32> to vector<16xf32>
    %8 = vector.shape_cast %7 : vector<16xf32> to vector<1x16xf32>
    %9 = arith.mulf %2, %2 : vector<16x16xf32>
    %cst_7 = arith.constant dense<0.000000e+00> : vector<16xf32>
    %10 = vector.multi_reduction <add>, %9, %cst_7 [0] : vector<16x16xf32> to vector<16xf32>
    %11 = vector.shape_cast %10 : vector<16xf32> to vector<1x16xf32>
    %12 = tpu.concatenate %8, %11 in 0 : vector<1x16xf32>, vector<1x16xf32> -> vector<2x16xf32>
    %c0_8 = arith.constant 0 : index
    %c0_9 = arith.constant 0 : index
    %13 = vector.load %arg4[%c0_8, %c0_9] : memref<2x16xf32, #tpu.memory_space<vmem>>, vector<2x16xf32>
    %14 = arith.addf %13, %12 : vector<2x16xf32>
    %c0_10 = arith.constant 0 : index
    %c0_11 = arith.constant 0 : index
    %15 = vector.load %arg4[%c0_10, %c0_11] : memref<2x16xf32, #tpu.memory_space<vmem>>, vector<2x16xf32>
    tpu.vector_store %arg4[%c0_10, %c0_11], %14 {strides = array<i32>} : memref<2x16xf32, #tpu.memory_space<vmem>>, vector<2x16xf32>,
    return
  }
  func.func @transform_0(%arg0: i32) -> (i32, i32) {
    %c0_i32 = arith.constant 0 : i32
    %c0_i32_0 = arith.constant 0 : i32
    return %arg0, %c0_i32 : i32, i32
  }
  func.func @transform_1(%arg0: i32) -> (i32, i32) {
    %c0_i32 = arith.constant 0 : i32
    %c0_i32_0 = arith.constant 0 : i32
    %c0_i32_1 = arith.constant 0 : i32
    return %c0_i32, %c0_i32_0 : i32, i32
  }
  func.func @transform_2(%arg0: i32) -> (i32, i32) {
    %c0_i32 = arith.constant 0 : i32
    %c0_i32_0 = arith.constant 0 : i32
    return %arg0, %c0_i32 : i32, i32
  }
  func.func @transform_3(%arg0: i32) -> (i32, i32) {
    %c0_i32 = arith.constant 0 : i32
    %c0_i32_0 = arith.constant 0 : i32
    %c0_i32_1 = arith.constant 0 : i32
    return %c0_i32, %c0_i32_0 : i32, i32
  }
}

module attributes {stable_mosaic.version = 11 : i64} {
  func.func @conv_stats_kernel(%arg0: i32, %arg1: memref<16x72xbf16, #tpu.memory_space<vmem>>, %arg2: memref<72x16xbf16, #tpu.memory_space<vmem>>, %arg3: memref<16x16xf32, #tpu.memory_space<vmem>>, %arg4: memref<2x16xf32, #tpu.memory_space<vmem>>) attributes {dimension_semantics = [#tpu.dimension_semantics<arbitrary>], iteration_bounds = array<i64: 1>, scalar_prefetch = 0 : i64, scratch_operands = 0 : i64, tpu.core_type = #tpu.core_type<tc>, window_params = [{transform_indices = @transform_0, window_bounds = array<i64: 16, 72>}, {pipeline_mode = #tpu.pipeline_mode<synchronous>, transform_indices = @transform_1, window_bounds = array<i64: 72, 16>}, {transform_indices = @transform_2, window_bounds = array<i64: 16, 16>}, {pipeline_mode = #tpu.pipeline_mode<synchronous>, transform_indices = @transform_3, window_bounds = array<i64: 2, 16>}]} {
    %c0 = arith.constant 0 : index
    %c0_0 = arith.constant 0 : index
    %0 = vector.load %arg1[%c0, %c0_0] : memref<16x72xbf16, #tpu.memory_space<vmem>>, vector<16x72xbf16>
    %c0_1 = arith.constant 0 : index
    %c0_2 = arith.constant 0 : index
    %1 = vector.load %arg2[%c0_1, %c0_2] : memref<72x16xbf16, #tpu.memory_space<vmem>>, vector<72x16xbf16>
    %cst = arith.constant dense<0.000000e+00> : vector<16x16xf32>
    %2 = tpu.matmul %0, %1, %cst {dimension_numbers = #tpu.dot_dimension_numbers<[1], [0], [0], [1], [0, 0, 1, 1], [], []>} : vector<16x72xbf16>, vector<72x16xbf16>, vector<16x16xf32> -> vector<16x16xf32>
    %c0_3 = arith.constant 0 : index
    %c0_4 = arith.constant 0 : index
    %3 = vector.load %arg3[%c0_3, %c0_4] : memref<16x16xf32, #tpu.memory_space<vmem>>, vector<16x16xf32>
    tpu.vector_store %arg3[%c0_3, %c0_4], %2 {strides = array<i32>} : memref<16x16xf32, #tpu.memory_space<vmem>>, vector<16x16xf32>,
    %c0_i32 = arith.constant 0 : i32
    %4 = arith.cmpi eq, %arg0, %c0_i32 : i32
    %5 = arith.extui %4 : i1 to i32
    %c0_i32_5 = arith.constant 0 : i32
    %6 = arith.cmpi ne, %5, %c0_i32_5 : i32
    scf.if %6 {
      %cst_12 = arith.constant 0.000000e+00 : f32
      %16 = vector.broadcast %cst_12 : f32 to vector<2x16xf32>
      %c0_13 = arith.constant 0 : index
      %c0_14 = arith.constant 0 : index
      %17 = vector.load %arg4[%c0_13, %c0_14] : memref<2x16xf32, #tpu.memory_space<vmem>>, vector<2x16xf32>
      tpu.vector_store %arg4[%c0_13, %c0_14], %16 {strides = array<i32>} : memref<2x16xf32, #tpu.memory_space<vmem>>, vector<2x16xf32>,
    } else {
    }
    %cst_6 = arith.constant dense<0.000000e+00> : vector<16xf32>
    %7 = vector.multi_reduction <add>, %2, %cst_6 [0] : vector<16x16xf32> to vector<16xf32>
    %8 = vector.shape_cast %7 : vector<16xf32> to vector<1x16xf32>
    %9 = arith.mulf %2, %2 : vector<16x16xf32>
    %cst_7 = arith.constant dense<0.000000e+00> : vector<16xf32>
    %10 = vector.multi_reduction <add>, %9, %cst_7 [0] : vector<16x16xf32> to vector<16xf32>
    %11 = vector.shape_cast %10 : vector<16xf32> to vector<1x16xf32>
    %12 = tpu.concatenate %8, %11 in 0 : vector<1x16xf32>, vector<1x16xf32> -> vector<2x16xf32>
    %c0_8 = arith.constant 0 : index
    %c0_9 = arith.constant 0 : index
    %13 = vector.load %arg4[%c0_8, %c0_9] : memref<2x16xf32, #tpu.memory_space<vmem>>, vector<2x16xf32>
    %14 = arith.addf %13, %12 : vector<2x16xf32>
    %c0_10 = arith.constant 0 : index
    %c0_11 = arith.constant 0 : index
    %15 = vector.load %arg4[%c0_10, %c0_11] : memref<2x16xf32, #tpu.memory_space<vmem>>, vector<2x16xf32>
    tpu.vector_store %arg4[%c0_10, %c0_11], %14 {strides = array<i32>} : memref<2x16xf32, #tpu.memory_space<vmem>>, vector<2x16xf32>,
    return
  }
  func.func @transform_0(%arg0: i32) -> (i32, i32) {
    %c0_i32 = arith.constant 0 : i32
    %c0_i32_0 = arith.constant 0 : i32
    return %arg0, %c0_i32 : i32, i32
  }
  func.func @transform_1(%arg0: i32) -> (i32, i32) {
    %c0_i32 = arith.constant 0 : i32
    %c0_i32_0 = arith.constant 0 : i32
    %c0_i32_1 = arith.constant 0 : i32
    return %c0_i32, %c0_i32_0 : i32, i32
  }
  func.func @transform_2(%arg0: i32) -> (i32, i32) {
    %c0_i32 = arith.constant 0 : i32
    %c0_i32_0 = arith.constant 0 : i32
    return %arg0, %c0_i32 : i32, i32
  }
  func.func @transform_3(%arg0: i32) -> (i32, i32) {
    %c0_i32 = arith.constant 0 : i32
    %c0_i32_0 = arith.constant 0 : i32
    %c0_i32_1 = arith.constant 0 : i32
    return %c0_i32, %c0_i32_0 : i32, i32
  }
}

module attributes {stable_mosaic.version = 11 : i64} {
  func.func @conv_stats_kernel(%arg0: i32, %arg1: memref<16x16xbf16, #tpu.memory_space<vmem>>, %arg2: memref<16x4xbf16, #tpu.memory_space<vmem>>, %arg3: memref<16x4xf32, #tpu.memory_space<vmem>>, %arg4: memref<2x4xf32, #tpu.memory_space<vmem>>) attributes {dimension_semantics = [#tpu.dimension_semantics<arbitrary>], iteration_bounds = array<i64: 1>, scalar_prefetch = 0 : i64, scratch_operands = 0 : i64, tpu.core_type = #tpu.core_type<tc>, window_params = [{transform_indices = @transform_0, window_bounds = array<i64: 16, 16>}, {pipeline_mode = #tpu.pipeline_mode<synchronous>, transform_indices = @transform_1, window_bounds = array<i64: 16, 4>}, {transform_indices = @transform_2, window_bounds = array<i64: 16, 4>}, {pipeline_mode = #tpu.pipeline_mode<synchronous>, transform_indices = @transform_3, window_bounds = array<i64: 2, 4>}]} {
    %c0 = arith.constant 0 : index
    %c0_0 = arith.constant 0 : index
    %0 = vector.load %arg1[%c0, %c0_0] : memref<16x16xbf16, #tpu.memory_space<vmem>>, vector<16x16xbf16>
    %c0_1 = arith.constant 0 : index
    %c0_2 = arith.constant 0 : index
    %1 = vector.load %arg2[%c0_1, %c0_2] : memref<16x4xbf16, #tpu.memory_space<vmem>>, vector<16x4xbf16>
    %cst = arith.constant dense<0.000000e+00> : vector<16x4xf32>
    %2 = tpu.matmul %0, %1, %cst {dimension_numbers = #tpu.dot_dimension_numbers<[1], [0], [0], [1], [0, 0, 1, 1], [], []>} : vector<16x16xbf16>, vector<16x4xbf16>, vector<16x4xf32> -> vector<16x4xf32>
    %c0_3 = arith.constant 0 : index
    %c0_4 = arith.constant 0 : index
    %3 = vector.load %arg3[%c0_3, %c0_4] : memref<16x4xf32, #tpu.memory_space<vmem>>, vector<16x4xf32>
    tpu.vector_store %arg3[%c0_3, %c0_4], %2 {strides = array<i32>} : memref<16x4xf32, #tpu.memory_space<vmem>>, vector<16x4xf32>,
    %c0_i32 = arith.constant 0 : i32
    %4 = arith.cmpi eq, %arg0, %c0_i32 : i32
    %5 = arith.extui %4 : i1 to i32
    %c0_i32_5 = arith.constant 0 : i32
    %6 = arith.cmpi ne, %5, %c0_i32_5 : i32
    scf.if %6 {
      %cst_12 = arith.constant 0.000000e+00 : f32
      %16 = vector.broadcast %cst_12 : f32 to vector<2x4xf32>
      %c0_13 = arith.constant 0 : index
      %c0_14 = arith.constant 0 : index
      %17 = vector.load %arg4[%c0_13, %c0_14] : memref<2x4xf32, #tpu.memory_space<vmem>>, vector<2x4xf32>
      tpu.vector_store %arg4[%c0_13, %c0_14], %16 {strides = array<i32>} : memref<2x4xf32, #tpu.memory_space<vmem>>, vector<2x4xf32>,
    } else {
    }
    %cst_6 = arith.constant dense<0.000000e+00> : vector<4xf32>
    %7 = vector.multi_reduction <add>, %2, %cst_6 [0] : vector<16x4xf32> to vector<4xf32>
    %8 = vector.shape_cast %7 : vector<4xf32> to vector<1x4xf32>
    %9 = arith.mulf %2, %2 : vector<16x4xf32>
    %cst_7 = arith.constant dense<0.000000e+00> : vector<4xf32>
    %10 = vector.multi_reduction <add>, %9, %cst_7 [0] : vector<16x4xf32> to vector<4xf32>
    %11 = vector.shape_cast %10 : vector<4xf32> to vector<1x4xf32>
    %12 = tpu.concatenate %8, %11 in 0 : vector<1x4xf32>, vector<1x4xf32> -> vector<2x4xf32>
    %c0_8 = arith.constant 0 : index
    %c0_9 = arith.constant 0 : index
    %13 = vector.load %arg4[%c0_8, %c0_9] : memref<2x4xf32, #tpu.memory_space<vmem>>, vector<2x4xf32>
    %14 = arith.addf %13, %12 : vector<2x4xf32>
    %c0_10 = arith.constant 0 : index
    %c0_11 = arith.constant 0 : index
    %15 = vector.load %arg4[%c0_10, %c0_11] : memref<2x4xf32, #tpu.memory_space<vmem>>, vector<2x4xf32>
    tpu.vector_store %arg4[%c0_10, %c0_11], %14 {strides = array<i32>} : memref<2x4xf32, #tpu.memory_space<vmem>>, vector<2x4xf32>,
    return
  }
  func.func @transform_0(%arg0: i32) -> (i32, i32) {
    %c0_i32 = arith.constant 0 : i32
    %c0_i32_0 = arith.constant 0 : i32
    return %arg0, %c0_i32 : i32, i32
  }
  func.func @transform_1(%arg0: i32) -> (i32, i32) {
    %c0_i32 = arith.constant 0 : i32
    %c0_i32_0 = arith.constant 0 : i32
    %c0_i32_1 = arith.constant 0 : i32
    return %c0_i32, %c0_i32_0 : i32, i32
  }
  func.func @transform_2(%arg0: i32) -> (i32, i32) {
    %c0_i32 = arith.constant 0 : i32
    %c0_i32_0 = arith.constant 0 : i32
    return %arg0, %c0_i32 : i32, i32
  }
  func.func @transform_3(%arg0: i32) -> (i32, i32) {
    %c0_i32 = arith.constant 0 : i32
    %c0_i32_0 = arith.constant 0 : i32
    %c0_i32_1 = arith.constant 0 : i32
    return %c0_i32, %c0_i32_0 : i32, i32
  }
}

module attributes {stable_mosaic.version = 11 : i64} {
  func.func @bn_act_kernel(%arg0: i32, %arg1: memref<16x4xf32, #tpu.memory_space<vmem>>, %arg2: memref<1x4xf32, #tpu.memory_space<vmem>>, %arg3: memref<1x4xf32, #tpu.memory_space<vmem>>, %arg4: memref<16x4xf32, #tpu.memory_space<vmem>>) attributes {dimension_semantics = [#tpu.dimension_semantics<parallel>], iteration_bounds = array<i64: 1>, scalar_prefetch = 0 : i64, scratch_operands = 0 : i64, tpu.core_type = #tpu.core_type<tc>, window_params = [{transform_indices = @transform_0, window_bounds = array<i64: 16, 4>}, {pipeline_mode = #tpu.pipeline_mode<synchronous>, transform_indices = @transform_1, window_bounds = array<i64: 1, 4>}, {pipeline_mode = #tpu.pipeline_mode<synchronous>, transform_indices = @transform_2, window_bounds = array<i64: 1, 4>}, {transform_indices = @transform_3, window_bounds = array<i64: 16, 4>}]} {
    %c0 = arith.constant 0 : index
    %c0_0 = arith.constant 0 : index
    %0 = vector.load %arg1[%c0, %c0_0] : memref<16x4xf32, #tpu.memory_space<vmem>>, vector<16x4xf32>
    %c0_1 = arith.constant 0 : index
    %c0_2 = arith.constant 0 : index
    %1 = vector.load %arg2[%c0_1, %c0_2] : memref<1x4xf32, #tpu.memory_space<vmem>>, vector<1x4xf32>
    %2 = vector.broadcast %1 : vector<1x4xf32> to vector<16x4xf32>
    %3 = arith.mulf %0, %2 : vector<16x4xf32>
    %c0_3 = arith.constant 0 : index
    %c0_4 = arith.constant 0 : index
    %4 = vector.load %arg3[%c0_3, %c0_4] : memref<1x4xf32, #tpu.memory_space<vmem>>, vector<1x4xf32>
    %5 = vector.broadcast %4 : vector<1x4xf32> to vector<16x4xf32>
    %6 = arith.addf %3, %5 : vector<16x4xf32>
    %cst = arith.constant 0.000000e+00 : f32
    %7 = vector.broadcast %cst : f32 to vector<16x4xf32>
    %8 = arith.maximumf %6, %7 : vector<16x4xf32>
    %c0_5 = arith.constant 0 : index
    %c0_6 = arith.constant 0 : index
    %9 = vector.load %arg4[%c0_5, %c0_6] : memref<16x4xf32, #tpu.memory_space<vmem>>, vector<16x4xf32>
    tpu.vector_store %arg4[%c0_5, %c0_6], %8 {strides = array<i32>} : memref<16x4xf32, #tpu.memory_space<vmem>>, vector<16x4xf32>,
    return
  }
  func.func @transform_0(%arg0: i32) -> (i32, i32) {
    %c0_i32 = arith.constant 0 : i32
    %c0_i32_0 = arith.constant 0 : i32
    return %arg0, %c0_i32 : i32, i32
  }
  func.func @transform_1(%arg0: i32) -> (i32, i32) {
    %c0_i32 = arith.constant 0 : i32
    %c0_i32_0 = arith.constant 0 : i32
    %c0_i32_1 = arith.constant 0 : i32
    return %c0_i32, %c0_i32_0 : i32, i32
  }
  func.func @transform_2(%arg0: i32) -> (i32, i32) {
    %c0_i32 = arith.constant 0 : i32
    %c0_i32_0 = arith.constant 0 : i32
    %c0_i32_1 = arith.constant 0 : i32
    return %c0_i32, %c0_i32_0 : i32, i32
  }
  func.func @transform_3(%arg0: i32) -> (i32, i32) {
    %c0_i32 = arith.constant 0 : i32
    %c0_i32_0 = arith.constant 0 : i32
    return %arg0, %c0_i32 : i32, i32
  }
}

module attributes {stable_mosaic.version = 11 : i64} {
  func.func @conv_stats_kernel(%arg0: i32, %arg1: memref<16x120xbf16, #tpu.memory_space<vmem>>, %arg2: memref<120x16xbf16, #tpu.memory_space<vmem>>, %arg3: memref<16x16xf32, #tpu.memory_space<vmem>>, %arg4: memref<2x16xf32, #tpu.memory_space<vmem>>) attributes {dimension_semantics = [#tpu.dimension_semantics<arbitrary>], iteration_bounds = array<i64: 1>, scalar_prefetch = 0 : i64, scratch_operands = 0 : i64, tpu.core_type = #tpu.core_type<tc>, window_params = [{transform_indices = @transform_0, window_bounds = array<i64: 16, 120>}, {pipeline_mode = #tpu.pipeline_mode<synchronous>, transform_indices = @transform_1, window_bounds = array<i64: 120, 16>}, {transform_indices = @transform_2, window_bounds = array<i64: 16, 16>}, {pipeline_mode = #tpu.pipeline_mode<synchronous>, transform_indices = @transform_3, window_bounds = array<i64: 2, 16>}]} {
    %c0 = arith.constant 0 : index
    %c0_0 = arith.constant 0 : index
    %0 = vector.load %arg1[%c0, %c0_0] : memref<16x120xbf16, #tpu.memory_space<vmem>>, vector<16x120xbf16>
    %c0_1 = arith.constant 0 : index
    %c0_2 = arith.constant 0 : index
    %1 = vector.load %arg2[%c0_1, %c0_2] : memref<120x16xbf16, #tpu.memory_space<vmem>>, vector<120x16xbf16>
    %cst = arith.constant dense<0.000000e+00> : vector<16x16xf32>
    %2 = tpu.matmul %0, %1, %cst {dimension_numbers = #tpu.dot_dimension_numbers<[1], [0], [0], [1], [0, 0, 1, 1], [], []>} : vector<16x120xbf16>, vector<120x16xbf16>, vector<16x16xf32> -> vector<16x16xf32>
    %c0_3 = arith.constant 0 : index
    %c0_4 = arith.constant 0 : index
    %3 = vector.load %arg3[%c0_3, %c0_4] : memref<16x16xf32, #tpu.memory_space<vmem>>, vector<16x16xf32>
    tpu.vector_store %arg3[%c0_3, %c0_4], %2 {strides = array<i32>} : memref<16x16xf32, #tpu.memory_space<vmem>>, vector<16x16xf32>,
    %c0_i32 = arith.constant 0 : i32
    %4 = arith.cmpi eq, %arg0, %c0_i32 : i32
    %5 = arith.extui %4 : i1 to i32
    %c0_i32_5 = arith.constant 0 : i32
    %6 = arith.cmpi ne, %5, %c0_i32_5 : i32
    scf.if %6 {
      %cst_12 = arith.constant 0.000000e+00 : f32
      %16 = vector.broadcast %cst_12 : f32 to vector<2x16xf32>
      %c0_13 = arith.constant 0 : index
      %c0_14 = arith.constant 0 : index
      %17 = vector.load %arg4[%c0_13, %c0_14] : memref<2x16xf32, #tpu.memory_space<vmem>>, vector<2x16xf32>
      tpu.vector_store %arg4[%c0_13, %c0_14], %16 {strides = array<i32>} : memref<2x16xf32, #tpu.memory_space<vmem>>, vector<2x16xf32>,
    } else {
    }
    %cst_6 = arith.constant dense<0.000000e+00> : vector<16xf32>
    %7 = vector.multi_reduction <add>, %2, %cst_6 [0] : vector<16x16xf32> to vector<16xf32>
    %8 = vector.shape_cast %7 : vector<16xf32> to vector<1x16xf32>
    %9 = arith.mulf %2, %2 : vector<16x16xf32>
    %cst_7 = arith.constant dense<0.000000e+00> : vector<16xf32>
    %10 = vector.multi_reduction <add>, %9, %cst_7 [0] : vector<16x16xf32> to vector<16xf32>
    %11 = vector.shape_cast %10 : vector<16xf32> to vector<1x16xf32>
    %12 = tpu.concatenate %8, %11 in 0 : vector<1x16xf32>, vector<1x16xf32> -> vector<2x16xf32>
    %c0_8 = arith.constant 0 : index
    %c0_9 = arith.constant 0 : index
    %13 = vector.load %arg4[%c0_8, %c0_9] : memref<2x16xf32, #tpu.memory_space<vmem>>, vector<2x16xf32>
    %14 = arith.addf %13, %12 : vector<2x16xf32>
    %c0_10 = arith.constant 0 : index
    %c0_11 = arith.constant 0 : index
    %15 = vector.load %arg4[%c0_10, %c0_11] : memref<2x16xf32, #tpu.memory_space<vmem>>, vector<2x16xf32>
    tpu.vector_store %arg4[%c0_10, %c0_11], %14 {strides = array<i32>} : memref<2x16xf32, #tpu.memory_space<vmem>>, vector<2x16xf32>,
    return
  }
  func.func @transform_0(%arg0: i32) -> (i32, i32) {
    %c0_i32 = arith.constant 0 : i32
    %c0_i32_0 = arith.constant 0 : i32
    return %arg0, %c0_i32 : i32, i32
  }
  func.func @transform_1(%arg0: i32) -> (i32, i32) {
    %c0_i32 = arith.constant 0 : i32
    %c0_i32_0 = arith.constant 0 : i32
    %c0_i32_1 = arith.constant 0 : i32
    return %c0_i32, %c0_i32_0 : i32, i32
  }
  func.func @transform_2(%arg0: i32) -> (i32, i32) {
    %c0_i32 = arith.constant 0 : i32
    %c0_i32_0 = arith.constant 0 : i32
    return %arg0, %c0_i32 : i32, i32
  }
  func.func @transform_3(%arg0: i32) -> (i32, i32) {
    %c0_i32 = arith.constant 0 : i32
    %c0_i32_0 = arith.constant 0 : i32
    %c0_i32_1 = arith.constant 0 : i32
    return %c0_i32, %c0_i32_0 : i32, i32
  }
}

module attributes {stable_mosaic.version = 11 : i64} {
  func.func @conv_stats_kernel(%arg0: i32, %arg1: memref<16x240xbf16, #tpu.memory_space<vmem>>, %arg2: memref<240x16xbf16, #tpu.memory_space<vmem>>, %arg3: memref<16x16xf32, #tpu.memory_space<vmem>>, %arg4: memref<2x16xf32, #tpu.memory_space<vmem>>) attributes {dimension_semantics = [#tpu.dimension_semantics<arbitrary>], iteration_bounds = array<i64: 1>, scalar_prefetch = 0 : i64, scratch_operands = 0 : i64, tpu.core_type = #tpu.core_type<tc>, window_params = [{transform_indices = @transform_0, window_bounds = array<i64: 16, 240>}, {pipeline_mode = #tpu.pipeline_mode<synchronous>, transform_indices = @transform_1, window_bounds = array<i64: 240, 16>}, {transform_indices = @transform_2, window_bounds = array<i64: 16, 16>}, {pipeline_mode = #tpu.pipeline_mode<synchronous>, transform_indices = @transform_3, window_bounds = array<i64: 2, 16>}]} {
    %c0 = arith.constant 0 : index
    %c0_0 = arith.constant 0 : index
    %0 = vector.load %arg1[%c0, %c0_0] : memref<16x240xbf16, #tpu.memory_space<vmem>>, vector<16x240xbf16>
    %c0_1 = arith.constant 0 : index
    %c0_2 = arith.constant 0 : index
    %1 = vector.load %arg2[%c0_1, %c0_2] : memref<240x16xbf16, #tpu.memory_space<vmem>>, vector<240x16xbf16>
    %cst = arith.constant dense<0.000000e+00> : vector<16x16xf32>
    %2 = tpu.matmul %0, %1, %cst {dimension_numbers = #tpu.dot_dimension_numbers<[1], [0], [0], [1], [0, 0, 1, 1], [], []>} : vector<16x240xbf16>, vector<240x16xbf16>, vector<16x16xf32> -> vector<16x16xf32>
    %c0_3 = arith.constant 0 : index
    %c0_4 = arith.constant 0 : index
    %3 = vector.load %arg3[%c0_3, %c0_4] : memref<16x16xf32, #tpu.memory_space<vmem>>, vector<16x16xf32>
    tpu.vector_store %arg3[%c0_3, %c0_4], %2 {strides = array<i32>} : memref<16x16xf32, #tpu.memory_space<vmem>>, vector<16x16xf32>,
    %c0_i32 = arith.constant 0 : i32
    %4 = arith.cmpi eq, %arg0, %c0_i32 : i32
    %5 = arith.extui %4 : i1 to i32
    %c0_i32_5 = arith.constant 0 : i32
    %6 = arith.cmpi ne, %5, %c0_i32_5 : i32
    scf.if %6 {
      %cst_12 = arith.constant 0.000000e+00 : f32
      %16 = vector.broadcast %cst_12 : f32 to vector<2x16xf32>
      %c0_13 = arith.constant 0 : index
      %c0_14 = arith.constant 0 : index
      %17 = vector.load %arg4[%c0_13, %c0_14] : memref<2x16xf32, #tpu.memory_space<vmem>>, vector<2x16xf32>
      tpu.vector_store %arg4[%c0_13, %c0_14], %16 {strides = array<i32>} : memref<2x16xf32, #tpu.memory_space<vmem>>, vector<2x16xf32>,
    } else {
    }
    %cst_6 = arith.constant dense<0.000000e+00> : vector<16xf32>
    %7 = vector.multi_reduction <add>, %2, %cst_6 [0] : vector<16x16xf32> to vector<16xf32>
    %8 = vector.shape_cast %7 : vector<16xf32> to vector<1x16xf32>
    %9 = arith.mulf %2, %2 : vector<16x16xf32>
    %cst_7 = arith.constant dense<0.000000e+00> : vector<16xf32>
    %10 = vector.multi_reduction <add>, %9, %cst_7 [0] : vector<16x16xf32> to vector<16xf32>
    %11 = vector.shape_cast %10 : vector<16xf32> to vector<1x16xf32>
    %12 = tpu.concatenate %8, %11 in 0 : vector<1x16xf32>, vector<1x16xf32> -> vector<2x16xf32>
    %c0_8 = arith.constant 0 : index
    %c0_9 = arith.constant 0 : index
    %13 = vector.load %arg4[%c0_8, %c0_9] : memref<2x16xf32, #tpu.memory_space<vmem>>, vector<2x16xf32>
    %14 = arith.addf %13, %12 : vector<2x16xf32>
    %c0_10 = arith.constant 0 : index
    %c0_11 = arith.constant 0 : index
    %15 = vector.load %arg4[%c0_10, %c0_11] : memref<2x16xf32, #tpu.memory_space<vmem>>, vector<2x16xf32>
    tpu.vector_store %arg4[%c0_10, %c0_11], %14 {strides = array<i32>} : memref<2x16xf32, #tpu.memory_space<vmem>>, vector<2x16xf32>,
    return
  }
  func.func @transform_0(%arg0: i32) -> (i32, i32) {
    %c0_i32 = arith.constant 0 : i32
    %c0_i32_0 = arith.constant 0 : i32
    return %arg0, %c0_i32 : i32, i32
  }
  func.func @transform_1(%arg0: i32) -> (i32, i32) {
    %c0_i32 = arith.constant 0 : i32
    %c0_i32_0 = arith.constant 0 : i32
    %c0_i32_1 = arith.constant 0 : i32
    return %c0_i32, %c0_i32_0 : i32, i32
  }
  func.func @transform_2(%arg0: i32) -> (i32, i32) {
    %c0_i32 = arith.constant 0 : i32
    %c0_i32_0 = arith.constant 0 : i32
    return %arg0, %c0_i32 : i32, i32
  }
  func.func @transform_3(%arg0: i32) -> (i32, i32) {
    %c0_i32 = arith.constant 0 : i32
    %c0_i32_0 = arith.constant 0 : i32
    %c0_i32_1 = arith.constant 0 : i32
    return %c0_i32, %c0_i32_0 : i32, i32
  }
}

module attributes {stable_mosaic.version = 11 : i64} {
  func.func @bn_act_kernel(%arg0: i32, %arg1: memref<16x32xf32, #tpu.memory_space<vmem>>, %arg2: memref<1x32xf32, #tpu.memory_space<vmem>>, %arg3: memref<1x32xf32, #tpu.memory_space<vmem>>, %arg4: memref<16x32xf32, #tpu.memory_space<vmem>>) attributes {dimension_semantics = [#tpu.dimension_semantics<parallel>], iteration_bounds = array<i64: 1>, scalar_prefetch = 0 : i64, scratch_operands = 0 : i64, tpu.core_type = #tpu.core_type<tc>, window_params = [{transform_indices = @transform_0, window_bounds = array<i64: 16, 32>}, {pipeline_mode = #tpu.pipeline_mode<synchronous>, transform_indices = @transform_1, window_bounds = array<i64: 1, 32>}, {pipeline_mode = #tpu.pipeline_mode<synchronous>, transform_indices = @transform_2, window_bounds = array<i64: 1, 32>}, {transform_indices = @transform_3, window_bounds = array<i64: 16, 32>}]} {
    %c0 = arith.constant 0 : index
    %c0_0 = arith.constant 0 : index
    %0 = vector.load %arg1[%c0, %c0_0] : memref<16x32xf32, #tpu.memory_space<vmem>>, vector<16x32xf32>
    %c0_1 = arith.constant 0 : index
    %c0_2 = arith.constant 0 : index
    %1 = vector.load %arg2[%c0_1, %c0_2] : memref<1x32xf32, #tpu.memory_space<vmem>>, vector<1x32xf32>
    %2 = vector.broadcast %1 : vector<1x32xf32> to vector<16x32xf32>
    %3 = arith.mulf %0, %2 : vector<16x32xf32>
    %c0_3 = arith.constant 0 : index
    %c0_4 = arith.constant 0 : index
    %4 = vector.load %arg3[%c0_3, %c0_4] : memref<1x32xf32, #tpu.memory_space<vmem>>, vector<1x32xf32>
    %5 = vector.broadcast %4 : vector<1x32xf32> to vector<16x32xf32>
    %6 = arith.addf %3, %5 : vector<16x32xf32>
    %cst = arith.constant 0.000000e+00 : f32
    %7 = vector.broadcast %cst : f32 to vector<16x32xf32>
    %8 = arith.maximumf %6, %7 : vector<16x32xf32>
    %c0_5 = arith.constant 0 : index
    %c0_6 = arith.constant 0 : index
    %9 = vector.load %arg4[%c0_5, %c0_6] : memref<16x32xf32, #tpu.memory_space<vmem>>, vector<16x32xf32>
    tpu.vector_store %arg4[%c0_5, %c0_6], %8 {strides = array<i32>} : memref<16x32xf32, #tpu.memory_space<vmem>>, vector<16x32xf32>,
    return
  }
  func.func @transform_0(%arg0: i32) -> (i32, i32) {
    %c0_i32 = arith.constant 0 : i32
    %c0_i32_0 = arith.constant 0 : i32
    return %arg0, %c0_i32 : i32, i32
  }
  func.func @transform_1(%arg0: i32) -> (i32, i32) {
    %c0_i32 = arith.constant 0 : i32
    %c0_i32_0 = arith.constant 0 : i32
    %c0_i32_1 = arith.constant 0 : i32
    return %c0_i32, %c0_i32_0 : i32, i32
  }
  func.func @transform_2(%arg0: i32) -> (i32, i32) {
    %c0_i32 = arith.constant 0 : i32
    %c0_i32_0 = arith.constant 0 : i32
    %c0_i32_1 = arith.constant 0 : i32
    return %c0_i32, %c0_i32_0 : i32, i32
  }
  func.func @transform_3(%arg0: i32) -> (i32, i32) {
    %c0_i32 = arith.constant 0 : i32
    %c0_i32_0 = arith.constant 0 : i32
    return %arg0, %c0_i32 : i32, i32
  }
}

module attributes {stable_mosaic.version = 11 : i64} {
  func.func @conv_stats_kernel(%arg0: i32, %arg1: memref<16x8xbf16, #tpu.memory_space<vmem>>, %arg2: memref<8x32xbf16, #tpu.memory_space<vmem>>, %arg3: memref<16x32xf32, #tpu.memory_space<vmem>>, %arg4: memref<2x32xf32, #tpu.memory_space<vmem>>) attributes {dimension_semantics = [#tpu.dimension_semantics<arbitrary>], iteration_bounds = array<i64: 1>, scalar_prefetch = 0 : i64, scratch_operands = 0 : i64, tpu.core_type = #tpu.core_type<tc>, window_params = [{transform_indices = @transform_0, window_bounds = array<i64: 16, 8>}, {pipeline_mode = #tpu.pipeline_mode<synchronous>, transform_indices = @transform_1, window_bounds = array<i64: 8, 32>}, {transform_indices = @transform_2, window_bounds = array<i64: 16, 32>}, {pipeline_mode = #tpu.pipeline_mode<synchronous>, transform_indices = @transform_3, window_bounds = array<i64: 2, 32>}]} {
    %c0 = arith.constant 0 : index
    %c0_0 = arith.constant 0 : index
    %0 = vector.load %arg1[%c0, %c0_0] : memref<16x8xbf16, #tpu.memory_space<vmem>>, vector<16x8xbf16>
    %c0_1 = arith.constant 0 : index
    %c0_2 = arith.constant 0 : index
    %1 = vector.load %arg2[%c0_1, %c0_2] : memref<8x32xbf16, #tpu.memory_space<vmem>>, vector<8x32xbf16>
    %cst = arith.constant dense<0.000000e+00> : vector<16x32xf32>
    %2 = tpu.matmul %0, %1, %cst {dimension_numbers = #tpu.dot_dimension_numbers<[1], [0], [0], [1], [0, 0, 1, 1], [], []>} : vector<16x8xbf16>, vector<8x32xbf16>, vector<16x32xf32> -> vector<16x32xf32>
    %c0_3 = arith.constant 0 : index
    %c0_4 = arith.constant 0 : index
    %3 = vector.load %arg3[%c0_3, %c0_4] : memref<16x32xf32, #tpu.memory_space<vmem>>, vector<16x32xf32>
    tpu.vector_store %arg3[%c0_3, %c0_4], %2 {strides = array<i32>} : memref<16x32xf32, #tpu.memory_space<vmem>>, vector<16x32xf32>,
    %c0_i32 = arith.constant 0 : i32
    %4 = arith.cmpi eq, %arg0, %c0_i32 : i32
    %5 = arith.extui %4 : i1 to i32
    %c0_i32_5 = arith.constant 0 : i32
    %6 = arith.cmpi ne, %5, %c0_i32_5 : i32
    scf.if %6 {
      %cst_12 = arith.constant 0.000000e+00 : f32
      %16 = vector.broadcast %cst_12 : f32 to vector<2x32xf32>
      %c0_13 = arith.constant 0 : index
      %c0_14 = arith.constant 0 : index
      %17 = vector.load %arg4[%c0_13, %c0_14] : memref<2x32xf32, #tpu.memory_space<vmem>>, vector<2x32xf32>
      tpu.vector_store %arg4[%c0_13, %c0_14], %16 {strides = array<i32>} : memref<2x32xf32, #tpu.memory_space<vmem>>, vector<2x32xf32>,
    } else {
    }
    %cst_6 = arith.constant dense<0.000000e+00> : vector<32xf32>
    %7 = vector.multi_reduction <add>, %2, %cst_6 [0] : vector<16x32xf32> to vector<32xf32>
    %8 = vector.shape_cast %7 : vector<32xf32> to vector<1x32xf32>
    %9 = arith.mulf %2, %2 : vector<16x32xf32>
    %cst_7 = arith.constant dense<0.000000e+00> : vector<32xf32>
    %10 = vector.multi_reduction <add>, %9, %cst_7 [0] : vector<16x32xf32> to vector<32xf32>
    %11 = vector.shape_cast %10 : vector<32xf32> to vector<1x32xf32>
    %12 = tpu.concatenate %8, %11 in 0 : vector<1x32xf32>, vector<1x32xf32> -> vector<2x32xf32>
    %c0_8 = arith.constant 0 : index
    %c0_9 = arith.constant 0 : index
    %13 = vector.load %arg4[%c0_8, %c0_9] : memref<2x32xf32, #tpu.memory_space<vmem>>, vector<2x32xf32>
    %14 = arith.addf %13, %12 : vector<2x32xf32>
    %c0_10 = arith.constant 0 : index
    %c0_11 = arith.constant 0 : index
    %15 = vector.load %arg4[%c0_10, %c0_11] : memref<2x32xf32, #tpu.memory_space<vmem>>, vector<2x32xf32>
    tpu.vector_store %arg4[%c0_10, %c0_11], %14 {strides = array<i32>} : memref<2x32xf32, #tpu.memory_space<vmem>>, vector<2x32xf32>,
    return
  }
  func.func @transform_0(%arg0: i32) -> (i32, i32) {
    %c0_i32 = arith.constant 0 : i32
    %c0_i32_0 = arith.constant 0 : i32
    return %arg0, %c0_i32 : i32, i32
  }
  func.func @transform_1(%arg0: i32) -> (i32, i32) {
    %c0_i32 = arith.constant 0 : i32
    %c0_i32_0 = arith.constant 0 : i32
    %c0_i32_1 = arith.constant 0 : i32
    return %c0_i32, %c0_i32_0 : i32, i32
  }
  func.func @transform_2(%arg0: i32) -> (i32, i32) {
    %c0_i32 = arith.constant 0 : i32
    %c0_i32_0 = arith.constant 0 : i32
    return %arg0, %c0_i32 : i32, i32
  }
  func.func @transform_3(%arg0: i32) -> (i32, i32) {
    %c0_i32 = arith.constant 0 : i32
    %c0_i32_0 = arith.constant 0 : i32
    %c0_i32_1 = arith.constant 0 : i32
    return %c0_i32, %c0_i32_0 : i32, i32
  }
}

module attributes {stable_mosaic.version = 11 : i64} {
  func.func @conv_stats_kernel(%arg0: i32, %arg1: memref<16x96xbf16, #tpu.memory_space<vmem>>, %arg2: memref<96x16xbf16, #tpu.memory_space<vmem>>, %arg3: memref<16x16xf32, #tpu.memory_space<vmem>>, %arg4: memref<2x16xf32, #tpu.memory_space<vmem>>) attributes {dimension_semantics = [#tpu.dimension_semantics<arbitrary>], iteration_bounds = array<i64: 1>, scalar_prefetch = 0 : i64, scratch_operands = 0 : i64, tpu.core_type = #tpu.core_type<tc>, window_params = [{transform_indices = @transform_0, window_bounds = array<i64: 16, 96>}, {pipeline_mode = #tpu.pipeline_mode<synchronous>, transform_indices = @transform_1, window_bounds = array<i64: 96, 16>}, {transform_indices = @transform_2, window_bounds = array<i64: 16, 16>}, {pipeline_mode = #tpu.pipeline_mode<synchronous>, transform_indices = @transform_3, window_bounds = array<i64: 2, 16>}]} {
    %c0 = arith.constant 0 : index
    %c0_0 = arith.constant 0 : index
    %0 = vector.load %arg1[%c0, %c0_0] : memref<16x96xbf16, #tpu.memory_space<vmem>>, vector<16x96xbf16>
    %c0_1 = arith.constant 0 : index
    %c0_2 = arith.constant 0 : index
    %1 = vector.load %arg2[%c0_1, %c0_2] : memref<96x16xbf16, #tpu.memory_space<vmem>>, vector<96x16xbf16>
    %cst = arith.constant dense<0.000000e+00> : vector<16x16xf32>
    %2 = tpu.matmul %0, %1, %cst {dimension_numbers = #tpu.dot_dimension_numbers<[1], [0], [0], [1], [0, 0, 1, 1], [], []>} : vector<16x96xbf16>, vector<96x16xbf16>, vector<16x16xf32> -> vector<16x16xf32>
    %c0_3 = arith.constant 0 : index
    %c0_4 = arith.constant 0 : index
    %3 = vector.load %arg3[%c0_3, %c0_4] : memref<16x16xf32, #tpu.memory_space<vmem>>, vector<16x16xf32>
    tpu.vector_store %arg3[%c0_3, %c0_4], %2 {strides = array<i32>} : memref<16x16xf32, #tpu.memory_space<vmem>>, vector<16x16xf32>,
    %c0_i32 = arith.constant 0 : i32
    %4 = arith.cmpi eq, %arg0, %c0_i32 : i32
    %5 = arith.extui %4 : i1 to i32
    %c0_i32_5 = arith.constant 0 : i32
    %6 = arith.cmpi ne, %5, %c0_i32_5 : i32
    scf.if %6 {
      %cst_12 = arith.constant 0.000000e+00 : f32
      %16 = vector.broadcast %cst_12 : f32 to vector<2x16xf32>
      %c0_13 = arith.constant 0 : index
      %c0_14 = arith.constant 0 : index
      %17 = vector.load %arg4[%c0_13, %c0_14] : memref<2x16xf32, #tpu.memory_space<vmem>>, vector<2x16xf32>
      tpu.vector_store %arg4[%c0_13, %c0_14], %16 {strides = array<i32>} : memref<2x16xf32, #tpu.memory_space<vmem>>, vector<2x16xf32>,
    } else {
    }
    %cst_6 = arith.constant dense<0.000000e+00> : vector<16xf32>
    %7 = vector.multi_reduction <add>, %2, %cst_6 [0] : vector<16x16xf32> to vector<16xf32>
    %8 = vector.shape_cast %7 : vector<16xf32> to vector<1x16xf32>
    %9 = arith.mulf %2, %2 : vector<16x16xf32>
    %cst_7 = arith.constant dense<0.000000e+00> : vector<16xf32>
    %10 = vector.multi_reduction <add>, %9, %cst_7 [0] : vector<16x16xf32> to vector<16xf32>
    %11 = vector.shape_cast %10 : vector<16xf32> to vector<1x16xf32>
    %12 = tpu.concatenate %8, %11 in 0 : vector<1x16xf32>, vector<1x16xf32> -> vector<2x16xf32>
    %c0_8 = arith.constant 0 : index
    %c0_9 = arith.constant 0 : index
    %13 = vector.load %arg4[%c0_8, %c0_9] : memref<2x16xf32, #tpu.memory_space<vmem>>, vector<2x16xf32>
    %14 = arith.addf %13, %12 : vector<2x16xf32>
    %c0_10 = arith.constant 0 : index
    %c0_11 = arith.constant 0 : index
    %15 = vector.load %arg4[%c0_10, %c0_11] : memref<2x16xf32, #tpu.memory_space<vmem>>, vector<2x16xf32>
    tpu.vector_store %arg4[%c0_10, %c0_11], %14 {strides = array<i32>} : memref<2x16xf32, #tpu.memory_space<vmem>>, vector<2x16xf32>,
    return
  }
  func.func @transform_0(%arg0: i32) -> (i32, i32) {
    %c0_i32 = arith.constant 0 : i32
    %c0_i32_0 = arith.constant 0 : i32
    return %arg0, %c0_i32 : i32, i32
  }
  func.func @transform_1(%arg0: i32) -> (i32, i32) {
    %c0_i32 = arith.constant 0 : i32
    %c0_i32_0 = arith.constant 0 : i32
    %c0_i32_1 = arith.constant 0 : i32
    return %c0_i32, %c0_i32_0 : i32, i32
  }
  func.func @transform_2(%arg0: i32) -> (i32, i32) {
    %c0_i32 = arith.constant 0 : i32
    %c0_i32_0 = arith.constant 0 : i32
    return %arg0, %c0_i32 : i32, i32
  }
  func.func @transform_3(%arg0: i32) -> (i32, i32) {
    %c0_i32 = arith.constant 0 : i32
    %c0_i32_0 = arith.constant 0 : i32
    %c0_i32_1 = arith.constant 0 : i32
    return %c0_i32, %c0_i32_0 : i32, i32
  }
}

module attributes {stable_mosaic.version = 11 : i64} {
  func.func @conv_stats_kernel(%arg0: i32, %arg1: memref<16x320xbf16, #tpu.memory_space<vmem>>, %arg2: memref<320x64xbf16, #tpu.memory_space<vmem>>, %arg3: memref<16x64xf32, #tpu.memory_space<vmem>>, %arg4: memref<2x64xf32, #tpu.memory_space<vmem>>) attributes {dimension_semantics = [#tpu.dimension_semantics<arbitrary>], iteration_bounds = array<i64: 1>, scalar_prefetch = 0 : i64, scratch_operands = 0 : i64, tpu.core_type = #tpu.core_type<tc>, window_params = [{transform_indices = @transform_0, window_bounds = array<i64: 16, 320>}, {pipeline_mode = #tpu.pipeline_mode<synchronous>, transform_indices = @transform_1, window_bounds = array<i64: 320, 64>}, {transform_indices = @transform_2, window_bounds = array<i64: 16, 64>}, {pipeline_mode = #tpu.pipeline_mode<synchronous>, transform_indices = @transform_3, window_bounds = array<i64: 2, 64>}]} {
    %c0 = arith.constant 0 : index
    %c0_0 = arith.constant 0 : index
    %0 = vector.load %arg1[%c0, %c0_0] : memref<16x320xbf16, #tpu.memory_space<vmem>>, vector<16x320xbf16>
    %c0_1 = arith.constant 0 : index
    %c0_2 = arith.constant 0 : index
    %1 = vector.load %arg2[%c0_1, %c0_2] : memref<320x64xbf16, #tpu.memory_space<vmem>>, vector<320x64xbf16>
    %cst = arith.constant dense<0.000000e+00> : vector<16x64xf32>
    %2 = tpu.matmul %0, %1, %cst {dimension_numbers = #tpu.dot_dimension_numbers<[1], [0], [0], [1], [0, 0, 1, 1], [], []>} : vector<16x320xbf16>, vector<320x64xbf16>, vector<16x64xf32> -> vector<16x64xf32>
    %c0_3 = arith.constant 0 : index
    %c0_4 = arith.constant 0 : index
    %3 = vector.load %arg3[%c0_3, %c0_4] : memref<16x64xf32, #tpu.memory_space<vmem>>, vector<16x64xf32>
    tpu.vector_store %arg3[%c0_3, %c0_4], %2 {strides = array<i32>} : memref<16x64xf32, #tpu.memory_space<vmem>>, vector<16x64xf32>,
    %c0_i32 = arith.constant 0 : i32
    %4 = arith.cmpi eq, %arg0, %c0_i32 : i32
    %5 = arith.extui %4 : i1 to i32
    %c0_i32_5 = arith.constant 0 : i32
    %6 = arith.cmpi ne, %5, %c0_i32_5 : i32
    scf.if %6 {
      %cst_12 = arith.constant 0.000000e+00 : f32
      %16 = vector.broadcast %cst_12 : f32 to vector<2x64xf32>
      %c0_13 = arith.constant 0 : index
      %c0_14 = arith.constant 0 : index
      %17 = vector.load %arg4[%c0_13, %c0_14] : memref<2x64xf32, #tpu.memory_space<vmem>>, vector<2x64xf32>
      tpu.vector_store %arg4[%c0_13, %c0_14], %16 {strides = array<i32>} : memref<2x64xf32, #tpu.memory_space<vmem>>, vector<2x64xf32>,
    } else {
    }
    %cst_6 = arith.constant dense<0.000000e+00> : vector<64xf32>
    %7 = vector.multi_reduction <add>, %2, %cst_6 [0] : vector<16x64xf32> to vector<64xf32>
    %8 = vector.shape_cast %7 : vector<64xf32> to vector<1x64xf32>
    %9 = arith.mulf %2, %2 : vector<16x64xf32>
    %cst_7 = arith.constant dense<0.000000e+00> : vector<64xf32>
    %10 = vector.multi_reduction <add>, %9, %cst_7 [0] : vector<16x64xf32> to vector<64xf32>
    %11 = vector.shape_cast %10 : vector<64xf32> to vector<1x64xf32>
    %12 = tpu.concatenate %8, %11 in 0 : vector<1x64xf32>, vector<1x64xf32> -> vector<2x64xf32>
    %c0_8 = arith.constant 0 : index
    %c0_9 = arith.constant 0 : index
    %13 = vector.load %arg4[%c0_8, %c0_9] : memref<2x64xf32, #tpu.memory_space<vmem>>, vector<2x64xf32>
    %14 = arith.addf %13, %12 : vector<2x64xf32>
    %c0_10 = arith.constant 0 : index
    %c0_11 = arith.constant 0 : index
    %15 = vector.load %arg4[%c0_10, %c0_11] : memref<2x64xf32, #tpu.memory_space<vmem>>, vector<2x64xf32>
    tpu.vector_store %arg4[%c0_10, %c0_11], %14 {strides = array<i32>} : memref<2x64xf32, #tpu.memory_space<vmem>>, vector<2x64xf32>,
    return
  }
  func.func @transform_0(%arg0: i32) -> (i32, i32) {
    %c0_i32 = arith.constant 0 : i32
    %c0_i32_0 = arith.constant 0 : i32
    return %arg0, %c0_i32 : i32, i32
  }
  func.func @transform_1(%arg0: i32) -> (i32, i32) {
    %c0_i32 = arith.constant 0 : i32
    %c0_i32_0 = arith.constant 0 : i32
    %c0_i32_1 = arith.constant 0 : i32
    return %c0_i32, %c0_i32_0 : i32, i32
  }
  func.func @transform_2(%arg0: i32) -> (i32, i32) {
    %c0_i32 = arith.constant 0 : i32
    %c0_i32_0 = arith.constant 0 : i32
    return %arg0, %c0_i32 : i32, i32
  }
  func.func @transform_3(%arg0: i32) -> (i32, i32) {
    %c0_i32 = arith.constant 0 : i32
    %c0_i32_0 = arith.constant 0 : i32
    %c0_i32_1 = arith.constant 0 : i32
    return %c0_i32, %c0_i32_0 : i32, i32
  }
}

module attributes {stable_mosaic.version = 11 : i64} {
  func.func @conv_stats_kernel(%arg0: i32, %arg1: memref<16x640xbf16, #tpu.memory_space<vmem>>, %arg2: memref<640x64xbf16, #tpu.memory_space<vmem>>, %arg3: memref<16x64xf32, #tpu.memory_space<vmem>>, %arg4: memref<2x64xf32, #tpu.memory_space<vmem>>) attributes {dimension_semantics = [#tpu.dimension_semantics<arbitrary>], iteration_bounds = array<i64: 1>, scalar_prefetch = 0 : i64, scratch_operands = 0 : i64, tpu.core_type = #tpu.core_type<tc>, window_params = [{transform_indices = @transform_0, window_bounds = array<i64: 16, 640>}, {pipeline_mode = #tpu.pipeline_mode<synchronous>, transform_indices = @transform_1, window_bounds = array<i64: 640, 64>}, {transform_indices = @transform_2, window_bounds = array<i64: 16, 64>}, {pipeline_mode = #tpu.pipeline_mode<synchronous>, transform_indices = @transform_3, window_bounds = array<i64: 2, 64>}]} {
    %c0 = arith.constant 0 : index
    %c0_0 = arith.constant 0 : index
    %0 = vector.load %arg1[%c0, %c0_0] : memref<16x640xbf16, #tpu.memory_space<vmem>>, vector<16x640xbf16>
    %c0_1 = arith.constant 0 : index
    %c0_2 = arith.constant 0 : index
    %1 = vector.load %arg2[%c0_1, %c0_2] : memref<640x64xbf16, #tpu.memory_space<vmem>>, vector<640x64xbf16>
    %cst = arith.constant dense<0.000000e+00> : vector<16x64xf32>
    %2 = tpu.matmul %0, %1, %cst {dimension_numbers = #tpu.dot_dimension_numbers<[1], [0], [0], [1], [0, 0, 1, 1], [], []>} : vector<16x640xbf16>, vector<640x64xbf16>, vector<16x64xf32> -> vector<16x64xf32>
    %c0_3 = arith.constant 0 : index
    %c0_4 = arith.constant 0 : index
    %3 = vector.load %arg3[%c0_3, %c0_4] : memref<16x64xf32, #tpu.memory_space<vmem>>, vector<16x64xf32>
    tpu.vector_store %arg3[%c0_3, %c0_4], %2 {strides = array<i32>} : memref<16x64xf32, #tpu.memory_space<vmem>>, vector<16x64xf32>,
    %c0_i32 = arith.constant 0 : i32
    %4 = arith.cmpi eq, %arg0, %c0_i32 : i32
    %5 = arith.extui %4 : i1 to i32
    %c0_i32_5 = arith.constant 0 : i32
    %6 = arith.cmpi ne, %5, %c0_i32_5 : i32
    scf.if %6 {
      %cst_12 = arith.constant 0.000000e+00 : f32
      %16 = vector.broadcast %cst_12 : f32 to vector<2x64xf32>
      %c0_13 = arith.constant 0 : index
      %c0_14 = arith.constant 0 : index
      %17 = vector.load %arg4[%c0_13, %c0_14] : memref<2x64xf32, #tpu.memory_space<vmem>>, vector<2x64xf32>
      tpu.vector_store %arg4[%c0_13, %c0_14], %16 {strides = array<i32>} : memref<2x64xf32, #tpu.memory_space<vmem>>, vector<2x64xf32>,
    } else {
    }
    %cst_6 = arith.constant dense<0.000000e+00> : vector<64xf32>
    %7 = vector.multi_reduction <add>, %2, %cst_6 [0] : vector<16x64xf32> to vector<64xf32>
    %8 = vector.shape_cast %7 : vector<64xf32> to vector<1x64xf32>
    %9 = arith.mulf %2, %2 : vector<16x64xf32>
    %cst_7 = arith.constant dense<0.000000e+00> : vector<64xf32>
    %10 = vector.multi_reduction <add>, %9, %cst_7 [0] : vector<16x64xf32> to vector<64xf32>
    %11 = vector.shape_cast %10 : vector<64xf32> to vector<1x64xf32>
    %12 = tpu.concatenate %8, %11 in 0 : vector<1x64xf32>, vector<1x64xf32> -> vector<2x64xf32>
    %c0_8 = arith.constant 0 : index
    %c0_9 = arith.constant 0 : index
    %13 = vector.load %arg4[%c0_8, %c0_9] : memref<2x64xf32, #tpu.memory_space<vmem>>, vector<2x64xf32>
    %14 = arith.addf %13, %12 : vector<2x64xf32>
    %c0_10 = arith.constant 0 : index
    %c0_11 = arith.constant 0 : index
    %15 = vector.load %arg4[%c0_10, %c0_11] : memref<2x64xf32, #tpu.memory_space<vmem>>, vector<2x64xf32>
    tpu.vector_store %arg4[%c0_10, %c0_11], %14 {strides = array<i32>} : memref<2x64xf32, #tpu.memory_space<vmem>>, vector<2x64xf32>,
    return
  }
  func.func @transform_0(%arg0: i32) -> (i32, i32) {
    %c0_i32 = arith.constant 0 : i32
    %c0_i32_0 = arith.constant 0 : i32
    return %arg0, %c0_i32 : i32, i32
  }
  func.func @transform_1(%arg0: i32) -> (i32, i32) {
    %c0_i32 = arith.constant 0 : i32
    %c0_i32_0 = arith.constant 0 : i32
    %c0_i32_1 = arith.constant 0 : i32
    return %c0_i32, %c0_i32_0 : i32, i32
  }
  func.func @transform_2(%arg0: i32) -> (i32, i32) {
    %c0_i32 = arith.constant 0 : i32
    %c0_i32_0 = arith.constant 0 : i32
    return %arg0, %c0_i32 : i32, i32
  }
  func.func @transform_3(%arg0: i32) -> (i32, i32) {
    %c0_i32 = arith.constant 0 : i32
    %c0_i32_0 = arith.constant 0 : i32
    %c0_i32_1 = arith.constant 0 : i32
    return %c0_i32, %c0_i32_0 : i32, i32
  }
}

module attributes {stable_mosaic.version = 11 : i64} {
  func.func @conv_stats_kernel(%arg0: i32, %arg1: memref<16x288xbf16, #tpu.memory_space<vmem>>, %arg2: memref<288x64xbf16, #tpu.memory_space<vmem>>, %arg3: memref<16x64xf32, #tpu.memory_space<vmem>>, %arg4: memref<2x64xf32, #tpu.memory_space<vmem>>) attributes {dimension_semantics = [#tpu.dimension_semantics<arbitrary>], iteration_bounds = array<i64: 1>, scalar_prefetch = 0 : i64, scratch_operands = 0 : i64, tpu.core_type = #tpu.core_type<tc>, window_params = [{transform_indices = @transform_0, window_bounds = array<i64: 16, 288>}, {pipeline_mode = #tpu.pipeline_mode<synchronous>, transform_indices = @transform_1, window_bounds = array<i64: 288, 64>}, {transform_indices = @transform_2, window_bounds = array<i64: 16, 64>}, {pipeline_mode = #tpu.pipeline_mode<synchronous>, transform_indices = @transform_3, window_bounds = array<i64: 2, 64>}]} {
    %c0 = arith.constant 0 : index
    %c0_0 = arith.constant 0 : index
    %0 = vector.load %arg1[%c0, %c0_0] : memref<16x288xbf16, #tpu.memory_space<vmem>>, vector<16x288xbf16>
    %c0_1 = arith.constant 0 : index
    %c0_2 = arith.constant 0 : index
    %1 = vector.load %arg2[%c0_1, %c0_2] : memref<288x64xbf16, #tpu.memory_space<vmem>>, vector<288x64xbf16>
    %cst = arith.constant dense<0.000000e+00> : vector<16x64xf32>
    %2 = tpu.matmul %0, %1, %cst {dimension_numbers = #tpu.dot_dimension_numbers<[1], [0], [0], [1], [0, 0, 1, 1], [], []>} : vector<16x288xbf16>, vector<288x64xbf16>, vector<16x64xf32> -> vector<16x64xf32>
    %c0_3 = arith.constant 0 : index
    %c0_4 = arith.constant 0 : index
    %3 = vector.load %arg3[%c0_3, %c0_4] : memref<16x64xf32, #tpu.memory_space<vmem>>, vector<16x64xf32>
    tpu.vector_store %arg3[%c0_3, %c0_4], %2 {strides = array<i32>} : memref<16x64xf32, #tpu.memory_space<vmem>>, vector<16x64xf32>,
    %c0_i32 = arith.constant 0 : i32
    %4 = arith.cmpi eq, %arg0, %c0_i32 : i32
    %5 = arith.extui %4 : i1 to i32
    %c0_i32_5 = arith.constant 0 : i32
    %6 = arith.cmpi ne, %5, %c0_i32_5 : i32
    scf.if %6 {
      %cst_12 = arith.constant 0.000000e+00 : f32
      %16 = vector.broadcast %cst_12 : f32 to vector<2x64xf32>
      %c0_13 = arith.constant 0 : index
      %c0_14 = arith.constant 0 : index
      %17 = vector.load %arg4[%c0_13, %c0_14] : memref<2x64xf32, #tpu.memory_space<vmem>>, vector<2x64xf32>
      tpu.vector_store %arg4[%c0_13, %c0_14], %16 {strides = array<i32>} : memref<2x64xf32, #tpu.memory_space<vmem>>, vector<2x64xf32>,
    } else {
    }
    %cst_6 = arith.constant dense<0.000000e+00> : vector<64xf32>
    %7 = vector.multi_reduction <add>, %2, %cst_6 [0] : vector<16x64xf32> to vector<64xf32>
    %8 = vector.shape_cast %7 : vector<64xf32> to vector<1x64xf32>
    %9 = arith.mulf %2, %2 : vector<16x64xf32>
    %cst_7 = arith.constant dense<0.000000e+00> : vector<64xf32>
    %10 = vector.multi_reduction <add>, %9, %cst_7 [0] : vector<16x64xf32> to vector<64xf32>
    %11 = vector.shape_cast %10 : vector<64xf32> to vector<1x64xf32>
    %12 = tpu.concatenate %8, %11 in 0 : vector<1x64xf32>, vector<1x64xf32> -> vector<2x64xf32>
    %c0_8 = arith.constant 0 : index
    %c0_9 = arith.constant 0 : index
    %13 = vector.load %arg4[%c0_8, %c0_9] : memref<2x64xf32, #tpu.memory_space<vmem>>, vector<2x64xf32>
    %14 = arith.addf %13, %12 : vector<2x64xf32>
    %c0_10 = arith.constant 0 : index
    %c0_11 = arith.constant 0 : index
    %15 = vector.load %arg4[%c0_10, %c0_11] : memref<2x64xf32, #tpu.memory_space<vmem>>, vector<2x64xf32>
    tpu.vector_store %arg4[%c0_10, %c0_11], %14 {strides = array<i32>} : memref<2x64xf32, #tpu.memory_space<vmem>>, vector<2x64xf32>,
    return
  }
  func.func @transform_0(%arg0: i32) -> (i32, i32) {
    %c0_i32 = arith.constant 0 : i32
    %c0_i32_0 = arith.constant 0 : i32
    return %arg0, %c0_i32 : i32, i32
  }
  func.func @transform_1(%arg0: i32) -> (i32, i32) {
    %c0_i32 = arith.constant 0 : i32
    %c0_i32_0 = arith.constant 0 : i32
    %c0_i32_1 = arith.constant 0 : i32
    return %c0_i32, %c0_i32_0 : i32, i32
  }
  func.func @transform_2(%arg0: i32) -> (i32, i32) {
    %c0_i32 = arith.constant 0 : i32
    %c0_i32_0 = arith.constant 0 : i32
    return %arg0, %c0_i32 : i32, i32
  }
  func.func @transform_3(%arg0: i32) -> (i32, i32) {
    %c0_i32 = arith.constant 0 : i32
    %c0_i32_0 = arith.constant 0 : i32
    %c0_i32_1 = arith.constant 0 : i32
    return %c0_i32, %c0_i32_0 : i32, i32
  }
}

module attributes {stable_mosaic.version = 11 : i64} {
  func.func @conv_stats_kernel(%arg0: i32, %arg1: memref<32x16xbf16, #tpu.memory_space<vmem>>, %arg2: memref<16x64xbf16, #tpu.memory_space<vmem>>, %arg3: memref<32x64xf32, #tpu.memory_space<vmem>>, %arg4: memref<2x64xf32, #tpu.memory_space<vmem>>) attributes {dimension_semantics = [#tpu.dimension_semantics<arbitrary>], iteration_bounds = array<i64: 1>, scalar_prefetch = 0 : i64, scratch_operands = 0 : i64, tpu.core_type = #tpu.core_type<tc>, window_params = [{transform_indices = @transform_0, window_bounds = array<i64: 32, 16>}, {pipeline_mode = #tpu.pipeline_mode<synchronous>, transform_indices = @transform_1, window_bounds = array<i64: 16, 64>}, {transform_indices = @transform_2, window_bounds = array<i64: 32, 64>}, {pipeline_mode = #tpu.pipeline_mode<synchronous>, transform_indices = @transform_3, window_bounds = array<i64: 2, 64>}]} {
    %c0 = arith.constant 0 : index
    %c0_0 = arith.constant 0 : index
    %0 = vector.load %arg1[%c0, %c0_0] : memref<32x16xbf16, #tpu.memory_space<vmem>>, vector<32x16xbf16>
    %c0_1 = arith.constant 0 : index
    %c0_2 = arith.constant 0 : index
    %1 = vector.load %arg2[%c0_1, %c0_2] : memref<16x64xbf16, #tpu.memory_space<vmem>>, vector<16x64xbf16>
    %cst = arith.constant dense<0.000000e+00> : vector<32x64xf32>
    %2 = tpu.matmul %0, %1, %cst {dimension_numbers = #tpu.dot_dimension_numbers<[1], [0], [0], [1], [0, 0, 1, 1], [], []>} : vector<32x16xbf16>, vector<16x64xbf16>, vector<32x64xf32> -> vector<32x64xf32>
    %c0_3 = arith.constant 0 : index
    %c0_4 = arith.constant 0 : index
    %3 = vector.load %arg3[%c0_3, %c0_4] : memref<32x64xf32, #tpu.memory_space<vmem>>, vector<32x64xf32>
    tpu.vector_store %arg3[%c0_3, %c0_4], %2 {strides = array<i32>} : memref<32x64xf32, #tpu.memory_space<vmem>>, vector<32x64xf32>,
    %c0_i32 = arith.constant 0 : i32
    %4 = arith.cmpi eq, %arg0, %c0_i32 : i32
    %5 = arith.extui %4 : i1 to i32
    %c0_i32_5 = arith.constant 0 : i32
    %6 = arith.cmpi ne, %5, %c0_i32_5 : i32
    scf.if %6 {
      %cst_12 = arith.constant 0.000000e+00 : f32
      %16 = vector.broadcast %cst_12 : f32 to vector<2x64xf32>
      %c0_13 = arith.constant 0 : index
      %c0_14 = arith.constant 0 : index
      %17 = vector.load %arg4[%c0_13, %c0_14] : memref<2x64xf32, #tpu.memory_space<vmem>>, vector<2x64xf32>
      tpu.vector_store %arg4[%c0_13, %c0_14], %16 {strides = array<i32>} : memref<2x64xf32, #tpu.memory_space<vmem>>, vector<2x64xf32>,
    } else {
    }
    %cst_6 = arith.constant dense<0.000000e+00> : vector<64xf32>
    %7 = vector.multi_reduction <add>, %2, %cst_6 [0] : vector<32x64xf32> to vector<64xf32>
    %8 = vector.shape_cast %7 : vector<64xf32> to vector<1x64xf32>
    %9 = arith.mulf %2, %2 : vector<32x64xf32>
    %cst_7 = arith.constant dense<0.000000e+00> : vector<64xf32>
    %10 = vector.multi_reduction <add>, %9, %cst_7 [0] : vector<32x64xf32> to vector<64xf32>
    %11 = vector.shape_cast %10 : vector<64xf32> to vector<1x64xf32>
    %12 = tpu.concatenate %8, %11 in 0 : vector<1x64xf32>, vector<1x64xf32> -> vector<2x64xf32>
    %c0_8 = arith.constant 0 : index
    %c0_9 = arith.constant 0 : index
    %13 = vector.load %arg4[%c0_8, %c0_9] : memref<2x64xf32, #tpu.memory_space<vmem>>, vector<2x64xf32>
    %14 = arith.addf %13, %12 : vector<2x64xf32>
    %c0_10 = arith.constant 0 : index
    %c0_11 = arith.constant 0 : index
    %15 = vector.load %arg4[%c0_10, %c0_11] : memref<2x64xf32, #tpu.memory_space<vmem>>, vector<2x64xf32>
    tpu.vector_store %arg4[%c0_10, %c0_11], %14 {strides = array<i32>} : memref<2x64xf32, #tpu.memory_space<vmem>>, vector<2x64xf32>,
    return
  }
  func.func @transform_0(%arg0: i32) -> (i32, i32) {
    %c0_i32 = arith.constant 0 : i32
    %c0_i32_0 = arith.constant 0 : i32
    return %arg0, %c0_i32 : i32, i32
  }
  func.func @transform_1(%arg0: i32) -> (i32, i32) {
    %c0_i32 = arith.constant 0 : i32
    %c0_i32_0 = arith.constant 0 : i32
    %c0_i32_1 = arith.constant 0 : i32
    return %c0_i32, %c0_i32_0 : i32, i32
  }
  func.func @transform_2(%arg0: i32) -> (i32, i32) {
    %c0_i32 = arith.constant 0 : i32
    %c0_i32_0 = arith.constant 0 : i32
    return %arg0, %c0_i32 : i32, i32
  }
  func.func @transform_3(%arg0: i32) -> (i32, i32) {
    %c0_i32 = arith.constant 0 : i32
    %c0_i32_0 = arith.constant 0 : i32
    %c0_i32_1 = arith.constant 0 : i32
    return %c0_i32, %c0_i32_0 : i32, i32
  }
}

module attributes {stable_mosaic.version = 11 : i64} {
  func.func @bn_act_kernel(%arg0: i32, %arg1: memref<32x64xf32, #tpu.memory_space<vmem>>, %arg2: memref<1x64xf32, #tpu.memory_space<vmem>>, %arg3: memref<1x64xf32, #tpu.memory_space<vmem>>, %arg4: memref<32x64xf32, #tpu.memory_space<vmem>>) attributes {dimension_semantics = [#tpu.dimension_semantics<parallel>], iteration_bounds = array<i64: 1>, scalar_prefetch = 0 : i64, scratch_operands = 0 : i64, tpu.core_type = #tpu.core_type<tc>, window_params = [{transform_indices = @transform_0, window_bounds = array<i64: 32, 64>}, {pipeline_mode = #tpu.pipeline_mode<synchronous>, transform_indices = @transform_1, window_bounds = array<i64: 1, 64>}, {pipeline_mode = #tpu.pipeline_mode<synchronous>, transform_indices = @transform_2, window_bounds = array<i64: 1, 64>}, {transform_indices = @transform_3, window_bounds = array<i64: 32, 64>}]} {
    %c0 = arith.constant 0 : index
    %c0_0 = arith.constant 0 : index
    %0 = vector.load %arg1[%c0, %c0_0] : memref<32x64xf32, #tpu.memory_space<vmem>>, vector<32x64xf32>
    %c0_1 = arith.constant 0 : index
    %c0_2 = arith.constant 0 : index
    %1 = vector.load %arg2[%c0_1, %c0_2] : memref<1x64xf32, #tpu.memory_space<vmem>>, vector<1x64xf32>
    %2 = vector.broadcast %1 : vector<1x64xf32> to vector<32x64xf32>
    %3 = arith.mulf %0, %2 : vector<32x64xf32>
    %c0_3 = arith.constant 0 : index
    %c0_4 = arith.constant 0 : index
    %4 = vector.load %arg3[%c0_3, %c0_4] : memref<1x64xf32, #tpu.memory_space<vmem>>, vector<1x64xf32>
    %5 = vector.broadcast %4 : vector<1x64xf32> to vector<32x64xf32>
    %6 = arith.addf %3, %5 : vector<32x64xf32>
    %cst = arith.constant 0.000000e+00 : f32
    %7 = vector.broadcast %cst : f32 to vector<32x64xf32>
    %8 = arith.maximumf %6, %7 : vector<32x64xf32>
    %c0_5 = arith.constant 0 : index
    %c0_6 = arith.constant 0 : index
    %9 = vector.load %arg4[%c0_5, %c0_6] : memref<32x64xf32, #tpu.memory_space<vmem>>, vector<32x64xf32>
    tpu.vector_store %arg4[%c0_5, %c0_6], %8 {strides = array<i32>} : memref<32x64xf32, #tpu.memory_space<vmem>>, vector<32x64xf32>,
    return
  }
  func.func @transform_0(%arg0: i32) -> (i32, i32) {
    %c0_i32 = arith.constant 0 : i32
    %c0_i32_0 = arith.constant 0 : i32
    return %arg0, %c0_i32 : i32, i32
  }
  func.func @transform_1(%arg0: i32) -> (i32, i32) {
    %c0_i32 = arith.constant 0 : i32
    %c0_i32_0 = arith.constant 0 : i32
    %c0_i32_1 = arith.constant 0 : i32
    return %c0_i32, %c0_i32_0 : i32, i32
  }
  func.func @transform_2(%arg0: i32) -> (i32, i32) {
    %c0_i32 = arith.constant 0 : i32
    %c0_i32_0 = arith.constant 0 : i32
    %c0_i32_1 = arith.constant 0 : i32
    return %c0_i32, %c0_i32_0 : i32, i32
  }
  func.func @transform_3(%arg0: i32) -> (i32, i32) {
    %c0_i32 = arith.constant 0 : i32
    %c0_i32_0 = arith.constant 0 : i32
    return %arg0, %c0_i32 : i32, i32
  }
}

module attributes {stable_mosaic.version = 11 : i64} {
  func.func @conv_stats_kernel(%arg0: i32, %arg1: memref<16x960xbf16, #tpu.memory_space<vmem>>, %arg2: memref<960x24xbf16, #tpu.memory_space<vmem>>, %arg3: memref<16x24xf32, #tpu.memory_space<vmem>>, %arg4: memref<2x24xf32, #tpu.memory_space<vmem>>) attributes {dimension_semantics = [#tpu.dimension_semantics<arbitrary>], iteration_bounds = array<i64: 1>, scalar_prefetch = 0 : i64, scratch_operands = 0 : i64, tpu.core_type = #tpu.core_type<tc>, window_params = [{transform_indices = @transform_0, window_bounds = array<i64: 16, 960>}, {pipeline_mode = #tpu.pipeline_mode<synchronous>, transform_indices = @transform_1, window_bounds = array<i64: 960, 24>}, {transform_indices = @transform_2, window_bounds = array<i64: 16, 24>}, {pipeline_mode = #tpu.pipeline_mode<synchronous>, transform_indices = @transform_3, window_bounds = array<i64: 2, 24>}]} {
    %c0 = arith.constant 0 : index
    %c0_0 = arith.constant 0 : index
    %0 = vector.load %arg1[%c0, %c0_0] : memref<16x960xbf16, #tpu.memory_space<vmem>>, vector<16x960xbf16>
    %c0_1 = arith.constant 0 : index
    %c0_2 = arith.constant 0 : index
    %1 = vector.load %arg2[%c0_1, %c0_2] : memref<960x24xbf16, #tpu.memory_space<vmem>>, vector<960x24xbf16>
    %cst = arith.constant dense<0.000000e+00> : vector<16x24xf32>
    %2 = tpu.matmul %0, %1, %cst {dimension_numbers = #tpu.dot_dimension_numbers<[1], [0], [0], [1], [0, 0, 1, 1], [], []>} : vector<16x960xbf16>, vector<960x24xbf16>, vector<16x24xf32> -> vector<16x24xf32>
    %c0_3 = arith.constant 0 : index
    %c0_4 = arith.constant 0 : index
    %3 = vector.load %arg3[%c0_3, %c0_4] : memref<16x24xf32, #tpu.memory_space<vmem>>, vector<16x24xf32>
    tpu.vector_store %arg3[%c0_3, %c0_4], %2 {strides = array<i32>} : memref<16x24xf32, #tpu.memory_space<vmem>>, vector<16x24xf32>,
    %c0_i32 = arith.constant 0 : i32
    %4 = arith.cmpi eq, %arg0, %c0_i32 : i32
    %5 = arith.extui %4 : i1 to i32
    %c0_i32_5 = arith.constant 0 : i32
    %6 = arith.cmpi ne, %5, %c0_i32_5 : i32
    scf.if %6 {
      %cst_12 = arith.constant 0.000000e+00 : f32
      %16 = vector.broadcast %cst_12 : f32 to vector<2x24xf32>
      %c0_13 = arith.constant 0 : index
      %c0_14 = arith.constant 0 : index
      %17 = vector.load %arg4[%c0_13, %c0_14] : memref<2x24xf32, #tpu.memory_space<vmem>>, vector<2x24xf32>
      tpu.vector_store %arg4[%c0_13, %c0_14], %16 {strides = array<i32>} : memref<2x24xf32, #tpu.memory_space<vmem>>, vector<2x24xf32>,
    } else {
    }
    %cst_6 = arith.constant dense<0.000000e+00> : vector<24xf32>
    %7 = vector.multi_reduction <add>, %2, %cst_6 [0] : vector<16x24xf32> to vector<24xf32>
    %8 = vector.shape_cast %7 : vector<24xf32> to vector<1x24xf32>
    %9 = arith.mulf %2, %2 : vector<16x24xf32>
    %cst_7 = arith.constant dense<0.000000e+00> : vector<24xf32>
    %10 = vector.multi_reduction <add>, %9, %cst_7 [0] : vector<16x24xf32> to vector<24xf32>
    %11 = vector.shape_cast %10 : vector<24xf32> to vector<1x24xf32>
    %12 = tpu.concatenate %8, %11 in 0 : vector<1x24xf32>, vector<1x24xf32> -> vector<2x24xf32>
    %c0_8 = arith.constant 0 : index
    %c0_9 = arith.constant 0 : index
    %13 = vector.load %arg4[%c0_8, %c0_9] : memref<2x24xf32, #tpu.memory_space<vmem>>, vector<2x24xf32>
    %14 = arith.addf %13, %12 : vector<2x24xf32>
    %c0_10 = arith.constant 0 : index
    %c0_11 = arith.constant 0 : index
    %15 = vector.load %arg4[%c0_10, %c0_11] : memref<2x24xf32, #tpu.memory_space<vmem>>, vector<2x24xf32>
    tpu.vector_store %arg4[%c0_10, %c0_11], %14 {strides = array<i32>} : memref<2x24xf32, #tpu.memory_space<vmem>>, vector<2x24xf32>,
    return
  }
  func.func @transform_0(%arg0: i32) -> (i32, i32) {
    %c0_i32 = arith.constant 0 : i32
    %c0_i32_0 = arith.constant 0 : i32
    return %arg0, %c0_i32 : i32, i32
  }
  func.func @transform_1(%arg0: i32) -> (i32, i32) {
    %c0_i32 = arith.constant 0 : i32
    %c0_i32_0 = arith.constant 0 : i32
    %c0_i32_1 = arith.constant 0 : i32
    return %c0_i32, %c0_i32_0 : i32, i32
  }
  func.func @transform_2(%arg0: i32) -> (i32, i32) {
    %c0_i32 = arith.constant 0 : i32
    %c0_i32_0 = arith.constant 0 : i32
    return %arg0, %c0_i32 : i32, i32
  }
  func.func @transform_3(%arg0: i32) -> (i32, i32) {
    %c0_i32 = arith.constant 0 : i32
    %c0_i32_0 = arith.constant 0 : i32
    %c0_i32_1 = arith.constant 0 : i32
    return %c0_i32, %c0_i32_0 : i32, i32
  }
}

module attributes {stable_mosaic.version = 11 : i64} {
  func.func @bn_act_kernel(%arg0: i32, %arg1: memref<16x24xf32, #tpu.memory_space<vmem>>, %arg2: memref<1x24xf32, #tpu.memory_space<vmem>>, %arg3: memref<1x24xf32, #tpu.memory_space<vmem>>, %arg4: memref<16x24xf32, #tpu.memory_space<vmem>>) attributes {dimension_semantics = [#tpu.dimension_semantics<parallel>], iteration_bounds = array<i64: 1>, scalar_prefetch = 0 : i64, scratch_operands = 0 : i64, tpu.core_type = #tpu.core_type<tc>, window_params = [{transform_indices = @transform_0, window_bounds = array<i64: 16, 24>}, {pipeline_mode = #tpu.pipeline_mode<synchronous>, transform_indices = @transform_1, window_bounds = array<i64: 1, 24>}, {pipeline_mode = #tpu.pipeline_mode<synchronous>, transform_indices = @transform_2, window_bounds = array<i64: 1, 24>}, {transform_indices = @transform_3, window_bounds = array<i64: 16, 24>}]} {
    %c0 = arith.constant 0 : index
    %c0_0 = arith.constant 0 : index
    %0 = vector.load %arg1[%c0, %c0_0] : memref<16x24xf32, #tpu.memory_space<vmem>>, vector<16x24xf32>
    %c0_1 = arith.constant 0 : index
    %c0_2 = arith.constant 0 : index
    %1 = vector.load %arg2[%c0_1, %c0_2] : memref<1x24xf32, #tpu.memory_space<vmem>>, vector<1x24xf32>
    %2 = vector.broadcast %1 : vector<1x24xf32> to vector<16x24xf32>
    %3 = arith.mulf %0, %2 : vector<16x24xf32>
    %c0_3 = arith.constant 0 : index
    %c0_4 = arith.constant 0 : index
    %4 = vector.load %arg3[%c0_3, %c0_4] : memref<1x24xf32, #tpu.memory_space<vmem>>, vector<1x24xf32>
    %5 = vector.broadcast %4 : vector<1x24xf32> to vector<16x24xf32>
    %6 = arith.addf %3, %5 : vector<16x24xf32>
    %cst = arith.constant 0.000000e+00 : f32
    %7 = vector.broadcast %cst : f32 to vector<16x24xf32>
    %8 = arith.maximumf %6, %7 : vector<16x24xf32>
    %c0_5 = arith.constant 0 : index
    %c0_6 = arith.constant 0 : index
    %9 = vector.load %arg4[%c0_5, %c0_6] : memref<16x24xf32, #tpu.memory_space<vmem>>, vector<16x24xf32>
    tpu.vector_store %arg4[%c0_5, %c0_6], %8 {strides = array<i32>} : memref<16x24xf32, #tpu.memory_space<vmem>>, vector<16x24xf32>,
    return
  }
  func.func @transform_0(%arg0: i32) -> (i32, i32) {
    %c0_i32 = arith.constant 0 : i32
    %c0_i32_0 = arith.constant 0 : i32
    return %arg0, %c0_i32 : i32, i32
  }
  func.func @transform_1(%arg0: i32) -> (i32, i32) {
    %c0_i32 = arith.constant 0 : i32
    %c0_i32_0 = arith.constant 0 : i32
    %c0_i32_1 = arith.constant 0 : i32
    return %c0_i32, %c0_i32_0 : i32, i32
  }
  func.func @transform_2(%arg0: i32) -> (i32, i32) {
    %c0_i32 = arith.constant 0 : i32
    %c0_i32_0 = arith.constant 0 : i32
    %c0_i32_1 = arith.constant 0 : i32
    return %c0_i32, %c0_i32_0 : i32, i32
  }
  func.func @transform_3(%arg0: i32) -> (i32, i32) {
    %c0_i32 = arith.constant 0 : i32
    %c0_i32_0 = arith.constant 0 : i32
    return %arg0, %c0_i32 : i32, i32
  }
}

module attributes {stable_mosaic.version = 11 : i64} {
  func.func @conv_stats_kernel(%arg0: i32, %arg1: memref<16x180xbf16, #tpu.memory_space<vmem>>, %arg2: memref<180x24xbf16, #tpu.memory_space<vmem>>, %arg3: memref<16x24xf32, #tpu.memory_space<vmem>>, %arg4: memref<2x24xf32, #tpu.memory_space<vmem>>) attributes {dimension_semantics = [#tpu.dimension_semantics<arbitrary>], iteration_bounds = array<i64: 1>, scalar_prefetch = 0 : i64, scratch_operands = 0 : i64, tpu.core_type = #tpu.core_type<tc>, window_params = [{transform_indices = @transform_0, window_bounds = array<i64: 16, 180>}, {pipeline_mode = #tpu.pipeline_mode<synchronous>, transform_indices = @transform_1, window_bounds = array<i64: 180, 24>}, {transform_indices = @transform_2, window_bounds = array<i64: 16, 24>}, {pipeline_mode = #tpu.pipeline_mode<synchronous>, transform_indices = @transform_3, window_bounds = array<i64: 2, 24>}]} {
    %c0 = arith.constant 0 : index
    %c0_0 = arith.constant 0 : index
    %0 = vector.load %arg1[%c0, %c0_0] : memref<16x180xbf16, #tpu.memory_space<vmem>>, vector<16x180xbf16>
    %c0_1 = arith.constant 0 : index
    %c0_2 = arith.constant 0 : index
    %1 = vector.load %arg2[%c0_1, %c0_2] : memref<180x24xbf16, #tpu.memory_space<vmem>>, vector<180x24xbf16>
    %cst = arith.constant dense<0.000000e+00> : vector<16x24xf32>
    %2 = tpu.matmul %0, %1, %cst {dimension_numbers = #tpu.dot_dimension_numbers<[1], [0], [0], [1], [0, 0, 1, 1], [], []>} : vector<16x180xbf16>, vector<180x24xbf16>, vector<16x24xf32> -> vector<16x24xf32>
    %c0_3 = arith.constant 0 : index
    %c0_4 = arith.constant 0 : index
    %3 = vector.load %arg3[%c0_3, %c0_4] : memref<16x24xf32, #tpu.memory_space<vmem>>, vector<16x24xf32>
    tpu.vector_store %arg3[%c0_3, %c0_4], %2 {strides = array<i32>} : memref<16x24xf32, #tpu.memory_space<vmem>>, vector<16x24xf32>,
    %c0_i32 = arith.constant 0 : i32
    %4 = arith.cmpi eq, %arg0, %c0_i32 : i32
    %5 = arith.extui %4 : i1 to i32
    %c0_i32_5 = arith.constant 0 : i32
    %6 = arith.cmpi ne, %5, %c0_i32_5 : i32
    scf.if %6 {
      %cst_12 = arith.constant 0.000000e+00 : f32
      %16 = vector.broadcast %cst_12 : f32 to vector<2x24xf32>
      %c0_13 = arith.constant 0 : index
      %c0_14 = arith.constant 0 : index
      %17 = vector.load %arg4[%c0_13, %c0_14] : memref<2x24xf32, #tpu.memory_space<vmem>>, vector<2x24xf32>
      tpu.vector_store %arg4[%c0_13, %c0_14], %16 {strides = array<i32>} : memref<2x24xf32, #tpu.memory_space<vmem>>, vector<2x24xf32>,
    } else {
    }
    %cst_6 = arith.constant dense<0.000000e+00> : vector<24xf32>
    %7 = vector.multi_reduction <add>, %2, %cst_6 [0] : vector<16x24xf32> to vector<24xf32>
    %8 = vector.shape_cast %7 : vector<24xf32> to vector<1x24xf32>
    %9 = arith.mulf %2, %2 : vector<16x24xf32>
    %cst_7 = arith.constant dense<0.000000e+00> : vector<24xf32>
    %10 = vector.multi_reduction <add>, %9, %cst_7 [0] : vector<16x24xf32> to vector<24xf32>
    %11 = vector.shape_cast %10 : vector<24xf32> to vector<1x24xf32>
    %12 = tpu.concatenate %8, %11 in 0 : vector<1x24xf32>, vector<1x24xf32> -> vector<2x24xf32>
    %c0_8 = arith.constant 0 : index
    %c0_9 = arith.constant 0 : index
    %13 = vector.load %arg4[%c0_8, %c0_9] : memref<2x24xf32, #tpu.memory_space<vmem>>, vector<2x24xf32>
    %14 = arith.addf %13, %12 : vector<2x24xf32>
    %c0_10 = arith.constant 0 : index
    %c0_11 = arith.constant 0 : index
    %15 = vector.load %arg4[%c0_10, %c0_11] : memref<2x24xf32, #tpu.memory_space<vmem>>, vector<2x24xf32>
    tpu.vector_store %arg4[%c0_10, %c0_11], %14 {strides = array<i32>} : memref<2x24xf32, #tpu.memory_space<vmem>>, vector<2x24xf32>,
    return
  }
  func.func @transform_0(%arg0: i32) -> (i32, i32) {
    %c0_i32 = arith.constant 0 : i32
    %c0_i32_0 = arith.constant 0 : i32
    return %arg0, %c0_i32 : i32, i32
  }
  func.func @transform_1(%arg0: i32) -> (i32, i32) {
    %c0_i32 = arith.constant 0 : i32
    %c0_i32_0 = arith.constant 0 : i32
    %c0_i32_1 = arith.constant 0 : i32
    return %c0_i32, %c0_i32_0 : i32, i32
  }
  func.func @transform_2(%arg0: i32) -> (i32, i32) {
    %c0_i32 = arith.constant 0 : i32
    %c0_i32_0 = arith.constant 0 : i32
    return %arg0, %c0_i32 : i32, i32
  }
  func.func @transform_3(%arg0: i32) -> (i32, i32) {
    %c0_i32 = arith.constant 0 : i32
    %c0_i32_0 = arith.constant 0 : i32
    %c0_i32_1 = arith.constant 0 : i32
    return %c0_i32, %c0_i32_0 : i32, i32
  }
}

module attributes {stable_mosaic.version = 11 : i64} {
  func.func @conv_stats_kernel(%arg0: i32, %arg1: memref<16x90xbf16, #tpu.memory_space<vmem>>, %arg2: memref<90x24xbf16, #tpu.memory_space<vmem>>, %arg3: memref<16x24xf32, #tpu.memory_space<vmem>>, %arg4: memref<2x24xf32, #tpu.memory_space<vmem>>) attributes {dimension_semantics = [#tpu.dimension_semantics<arbitrary>], iteration_bounds = array<i64: 1>, scalar_prefetch = 0 : i64, scratch_operands = 0 : i64, tpu.core_type = #tpu.core_type<tc>, window_params = [{transform_indices = @transform_0, window_bounds = array<i64: 16, 90>}, {pipeline_mode = #tpu.pipeline_mode<synchronous>, transform_indices = @transform_1, window_bounds = array<i64: 90, 24>}, {transform_indices = @transform_2, window_bounds = array<i64: 16, 24>}, {pipeline_mode = #tpu.pipeline_mode<synchronous>, transform_indices = @transform_3, window_bounds = array<i64: 2, 24>}]} {
    %c0 = arith.constant 0 : index
    %c0_0 = arith.constant 0 : index
    %0 = vector.load %arg1[%c0, %c0_0] : memref<16x90xbf16, #tpu.memory_space<vmem>>, vector<16x90xbf16>
    %c0_1 = arith.constant 0 : index
    %c0_2 = arith.constant 0 : index
    %1 = vector.load %arg2[%c0_1, %c0_2] : memref<90x24xbf16, #tpu.memory_space<vmem>>, vector<90x24xbf16>
    %cst = arith.constant dense<0.000000e+00> : vector<16x24xf32>
    %2 = tpu.matmul %0, %1, %cst {dimension_numbers = #tpu.dot_dimension_numbers<[1], [0], [0], [1], [0, 0, 1, 1], [], []>} : vector<16x90xbf16>, vector<90x24xbf16>, vector<16x24xf32> -> vector<16x24xf32>
    %c0_3 = arith.constant 0 : index
    %c0_4 = arith.constant 0 : index
    %3 = vector.load %arg3[%c0_3, %c0_4] : memref<16x24xf32, #tpu.memory_space<vmem>>, vector<16x24xf32>
    tpu.vector_store %arg3[%c0_3, %c0_4], %2 {strides = array<i32>} : memref<16x24xf32, #tpu.memory_space<vmem>>, vector<16x24xf32>,
    %c0_i32 = arith.constant 0 : i32
    %4 = arith.cmpi eq, %arg0, %c0_i32 : i32
    %5 = arith.extui %4 : i1 to i32
    %c0_i32_5 = arith.constant 0 : i32
    %6 = arith.cmpi ne, %5, %c0_i32_5 : i32
    scf.if %6 {
      %cst_12 = arith.constant 0.000000e+00 : f32
      %16 = vector.broadcast %cst_12 : f32 to vector<2x24xf32>
      %c0_13 = arith.constant 0 : index
      %c0_14 = arith.constant 0 : index
      %17 = vector.load %arg4[%c0_13, %c0_14] : memref<2x24xf32, #tpu.memory_space<vmem>>, vector<2x24xf32>
      tpu.vector_store %arg4[%c0_13, %c0_14], %16 {strides = array<i32>} : memref<2x24xf32, #tpu.memory_space<vmem>>, vector<2x24xf32>,
    } else {
    }
    %cst_6 = arith.constant dense<0.000000e+00> : vector<24xf32>
    %7 = vector.multi_reduction <add>, %2, %cst_6 [0] : vector<16x24xf32> to vector<24xf32>
    %8 = vector.shape_cast %7 : vector<24xf32> to vector<1x24xf32>
    %9 = arith.mulf %2, %2 : vector<16x24xf32>
    %cst_7 = arith.constant dense<0.000000e+00> : vector<24xf32>
    %10 = vector.multi_reduction <add>, %9, %cst_7 [0] : vector<16x24xf32> to vector<24xf32>
    %11 = vector.shape_cast %10 : vector<24xf32> to vector<1x24xf32>
    %12 = tpu.concatenate %8, %11 in 0 : vector<1x24xf32>, vector<1x24xf32> -> vector<2x24xf32>
    %c0_8 = arith.constant 0 : index
    %c0_9 = arith.constant 0 : index
    %13 = vector.load %arg4[%c0_8, %c0_9] : memref<2x24xf32, #tpu.memory_space<vmem>>, vector<2x24xf32>
    %14 = arith.addf %13, %12 : vector<2x24xf32>
    %c0_10 = arith.constant 0 : index
    %c0_11 = arith.constant 0 : index
    %15 = vector.load %arg4[%c0_10, %c0_11] : memref<2x24xf32, #tpu.memory_space<vmem>>, vector<2x24xf32>
    tpu.vector_store %arg4[%c0_10, %c0_11], %14 {strides = array<i32>} : memref<2x24xf32, #tpu.memory_space<vmem>>, vector<2x24xf32>,
    return
  }
  func.func @transform_0(%arg0: i32) -> (i32, i32) {
    %c0_i32 = arith.constant 0 : i32
    %c0_i32_0 = arith.constant 0 : i32
    return %arg0, %c0_i32 : i32, i32
  }
  func.func @transform_1(%arg0: i32) -> (i32, i32) {
    %c0_i32 = arith.constant 0 : i32
    %c0_i32_0 = arith.constant 0 : i32
    %c0_i32_1 = arith.constant 0 : i32
    return %c0_i32, %c0_i32_0 : i32, i32
  }
  func.func @transform_2(%arg0: i32) -> (i32, i32) {
    %c0_i32 = arith.constant 0 : i32
    %c0_i32_0 = arith.constant 0 : i32
    return %arg0, %c0_i32 : i32, i32
  }
  func.func @transform_3(%arg0: i32) -> (i32, i32) {
    %c0_i32 = arith.constant 0 : i32
    %c0_i32_0 = arith.constant 0 : i32
    %c0_i32_1 = arith.constant 0 : i32
    return %c0_i32, %c0_i32_0 : i32, i32
  }
}

module attributes {stable_mosaic.version = 11 : i64} {
  func.func @conv_bias_act_kernel(%arg0: i32, %arg1: memref<64x3xbf16, #tpu.memory_space<vmem>>, %arg2: memref<3x12xbf16, #tpu.memory_space<vmem>>, %arg3: memref<1x12xf32, #tpu.memory_space<vmem>>, %arg4: memref<64x12xf32, #tpu.memory_space<vmem>>) attributes {dimension_semantics = [#tpu.dimension_semantics<parallel>], iteration_bounds = array<i64: 2>, scalar_prefetch = 0 : i64, scratch_operands = 0 : i64, tpu.core_type = #tpu.core_type<tc>, window_params = [{transform_indices = @transform_0, window_bounds = array<i64: 64, 3>}, {pipeline_mode = #tpu.pipeline_mode<synchronous>, transform_indices = @transform_1, window_bounds = array<i64: 3, 12>}, {pipeline_mode = #tpu.pipeline_mode<synchronous>, transform_indices = @transform_2, window_bounds = array<i64: 1, 12>}, {transform_indices = @transform_3, window_bounds = array<i64: 64, 12>}]} {
    %c0 = arith.constant 0 : index
    %c0_0 = arith.constant 0 : index
    %0 = vector.load %arg1[%c0, %c0_0] : memref<64x3xbf16, #tpu.memory_space<vmem>>, vector<64x3xbf16>
    %c0_1 = arith.constant 0 : index
    %c0_2 = arith.constant 0 : index
    %1 = vector.load %arg2[%c0_1, %c0_2] : memref<3x12xbf16, #tpu.memory_space<vmem>>, vector<3x12xbf16>
    %cst = arith.constant dense<0.000000e+00> : vector<64x12xf32>
    %2 = tpu.matmul %0, %1, %cst {dimension_numbers = #tpu.dot_dimension_numbers<[1], [0], [0], [1], [0, 0, 1, 1], [], []>} : vector<64x3xbf16>, vector<3x12xbf16>, vector<64x12xf32> -> vector<64x12xf32>
    %c0_3 = arith.constant 0 : index
    %c0_4 = arith.constant 0 : index
    %3 = vector.load %arg3[%c0_3, %c0_4] : memref<1x12xf32, #tpu.memory_space<vmem>>, vector<1x12xf32>
    %4 = vector.broadcast %3 : vector<1x12xf32> to vector<64x12xf32>
    %5 = arith.addf %2, %4 : vector<64x12xf32>
    %6 = arith.negf %5 : vector<64x12xf32>
    %7 = math.exp %6 : vector<64x12xf32>
    %cst_5 = arith.constant 1.000000e+00 : f32
    %8 = vector.broadcast %cst_5 : f32 to vector<64x12xf32>
    %9 = arith.addf %8, %7 : vector<64x12xf32>
    %10 = arith.divf %8, %9 : vector<64x12xf32>
    %c0_6 = arith.constant 0 : index
    %c0_7 = arith.constant 0 : index
    %11 = vector.load %arg4[%c0_6, %c0_7] : memref<64x12xf32, #tpu.memory_space<vmem>>, vector<64x12xf32>
    tpu.vector_store %arg4[%c0_6, %c0_7], %10 {strides = array<i32>} : memref<64x12xf32, #tpu.memory_space<vmem>>, vector<64x12xf32>,
    return
  }
  func.func @transform_0(%arg0: i32) -> (i32, i32) {
    %c0_i32 = arith.constant 0 : i32
    %c0_i32_0 = arith.constant 0 : i32
    return %arg0, %c0_i32 : i32, i32
  }
  func.func @transform_1(%arg0: i32) -> (i32, i32) {
    %c0_i32 = arith.constant 0 : i32
    %c0_i32_0 = arith.constant 0 : i32
    %c0_i32_1 = arith.constant 0 : i32
    return %c0_i32, %c0_i32_0 : i32, i32
  }
  func.func @transform_2(%arg0: i32) -> (i32, i32) {
    %c0_i32 = arith.constant 0 : i32
    %c0_i32_0 = arith.constant 0 : i32
    %c0_i32_1 = arith.constant 0 : i32
    return %c0_i32, %c0_i32_0 : i32, i32
  }
  func.func @transform_3(%arg0: i32) -> (i32, i32) {
    %c0_i32 = arith.constant 0 : i32
    %c0_i32_0 = arith.constant 0 : i32
    return %arg0, %c0_i32 : i32, i32
  }
}

</mosaic_0001>

<bundles_post_ra>
// kernel: tile.333
= control target key start
LH: loop header
LB: loop body
LE: loop exit
PB: predicated region body
PF: predicated region fallthrough
CT: control target
= control target key end

     0   :  { %s28_s0 = inlined_call_operand.vmem [shape: f32[16], index: 0, kind: input, shape index: {}]   ;;  %s29_s1 = inlined_call_operand.vmem [shape: f32[16,16], index: 1, kind: output, shape index: {}]  }
   0x1   :  { %v4_v0 = vld [vmem:[%s28_s0] ss:$0 sm:$0xff] }
   0x2   :  { %5 = vst [vmem:[%s29_s1] sm:$0xff] %v4_v0  ;;  %8 = vst [vmem:[%s29_s1 + $0x8] sm:$0xff] %v4_v0 }

// kernel: tile.334
= control target key start
LH: loop header
LB: loop body
LE: loop exit
PB: predicated region body
PF: predicated region fallthrough
CT: control target
= control target key end

     0   :  { %s7_s6 = smov 3  ;;  %s21_s9 = smov 3  ;;  %vm4_vm0 = vcmask 130048   ;;  %vm11_vm1 = vcmask 1048448   ;;  %vm18_vm2 = vcmask 917248   ;;  %vm25_vm3 = vcmask 786048   ;;  %s128_s0 = inlined_call_operand.vmem [shape: f32[16,16], index: 0, kind: input, shape index: {}]   ;;  %s129_s1 = inlined_call_operand.vmem [shape: f32[1,256], index: 1, kind: output, shape index: {}]  }
   0x1   :  { %v66_v0 = vld [vmem:[%s128_s0 + $0x7] ss:$8 sm:%s7_s6]   ;;  %s81_s10 = smov 112   ;;  %v68_v1 = vld [vmem:[%s128_s0 + $0x5] ss:$8 sm:%s21_s9]   ;;  %s14_s13 = smov 3 }
   0x2   :  { %9 = vrot.lane.b32.xlu0 %v66_v0, %s81_s10  ;;  %s82_s14 = smov 80   ;;  %v67_v2 = vld [vmem:[%s128_s0 + $0x6] ss:$8 sm:%s14_s13]   ;;  %s28_s17 = smov 3  ;;  %vm32_vm4 = vcmask 654848   ;;  %vm39_vm5 = vcmask 523648  }
   0x3   :  { %23 = vrot.lane.b32.xlu1 %v68_v1, %s82_s14  ;;  %v69_v3 = vld [vmem:[%s128_s0 + $0x4] ss:$8 sm:%s28_s17]   ;;  %s35_s20 = smov 3  ;;  %s42_s21 = smov 3  ;;  %vm46_vm6 = vcmask 392448   ;;  %vm53_vm7 = vcmask 261248  }
   0x4   :  { %s83_s22 = smov 96   ;;  %s84_s23 = smov 64   ;;  %v70_v4 = vld [vmem:[%s128_s0 + $0x3] ss:$8 sm:%s35_s20]   ;;  %v71_v5 = vld [vmem:[%s128_s0 + $0x2] ss:$8 sm:%s42_s21]  }
   0x5   :  { %s2_s26 = smov 3  ;;  %s49_s29 = smov 3 }
   0x6   :  { %16 = vrot.lane.b32.xlu0 %v67_v2, %s83_s22  ;;  %v3_v6 = vld [vmem:[%s128_s0] ss:$8 sm:%s2_s26]   ;;  %s85_s3 = smov 48   ;;  %s86_s4 = smov 32  }
   0x7   :  { %30 = vrot.lane.b32.xlu1 %v69_v3, %s84_s23  ;;  %5 = vst.msk [vmem:[#allocation0] ss:$8 sm:$0x3] %vm4_vm0, %v3_v6   ;;  %v72_v7 = vld [vmem:[%s128_s0 + $0x1] ss:$8 sm:%s49_s29]   ;;  %s87_s0 = smov 16  }
   0xa   :  { %37 = vrot.lane.b32.xlu0 %v70_v4, %s85_s3 }
   0xb   :  { %44 = vrot.lane.b32.xlu1 %v71_v5, %s86_s4 }
   0xe   :  { %51 = vrot.lane.b32.xlu0 %v72_v7, %s87_s0 }
  0x74   :  { %v10_v8 = vpop.permute.xlu0 %9  }
  0x75   :  { %12 = vst.msk [vmem:[#allocation0] ss:$8 sm:$0x3] %vm11_vm1, %v10_v8   ;;  %v24_v9 = vpop.permute.xlu1 %23  }
  0x78   :  { %v17_v10 = vpop.permute.xlu0 %16  }
  0x79   :  { %19 = vst.msk [vmem:[#allocation0] ss:$8 sm:$0x3] %vm18_vm2, %v17_v10   ;;  %v31_v11 = vpop.permute.xlu1 %30  }
  0x7a   :  { %26 = vst.msk [vmem:[#allocation0] ss:$8 sm:$0x3] %vm25_vm3, %v24_v9  }
  0x7b   :  { %33 = vst.msk [vmem:[#allocation0] ss:$8 sm:$0x3] %vm32_vm4, %v31_v11  }
  0x7c   :  { %v38_v12 = vpop.permute.xlu0 %37  }
  0x7d   :  { %40 = vst.msk [vmem:[#allocation0] ss:$8 sm:$0x3] %vm39_vm5, %v38_v12   ;;  %v45_v13 = vpop.permute.xlu1 %44  }
  0x7e   :  { %47 = vst.msk [vmem:[#allocation0] ss:$8 sm:$0x3] %vm46_vm6, %v45_v13  }
  0x80   :  { %v52_v14 = vpop.permute.xlu0 %51  }
  0x81   :  { %54 = vst.msk [vmem:[#allocation0] ss:$8 sm:$0x3] %vm53_vm7, %v52_v14  }
  0x88   :  { %v58_v15 = vld [vmem:[#allocation0] sm:$0x1]  ;;  %v62_v16 = vld [vmem:[#allocation0 + $0x8] sm:$0x1] }
  0x89   :  { %60 = vst [vmem:[%s129_s1] sm:$0x1] %v58_v15  ;;  %73 = vst [vmem:[%s129_s1 + $0x1] sm:$0x1] %v62_v16 }

// kernel: _lambda_.71
= control target key start
LH: loop header
LB: loop body
LE: loop exit
PB: predicated region body
PF: predicated region fallthrough
CT: control target
= control target key end

     0   :  { %v603_v1 = vmov 0   ;;  %vm285_vm0 = vcmask 1045504   ;;  %vm278_vm1 = vcmask 359424   ;;  %v604_v46 = vmov 0.0   ;;  %s793_s1 = inlined_call_operand.vmem [shape: bf16[300,256], index: 1, kind: input, shape index: {}]   ;;  %s794_s0 = inlined_call_operand.vmem [shape: bf16[32,300], index: 0, kind: input, shape index: {}]   ;;  %s795_s3 = inlined_call_operand.vmem [shape: f32[2,256], index: 3, kind: output, shape index: {1}]   ;;  %s796_s2 = inlined_call_operand.vmem [shape: f32[32,256], index: 2, kind: output, shape index: {0}]  }
   0x1   :  { %v538_v0 = vld [vmem:[%s793_s1 + $0x4] ss:$8 sps:$4 sm:$0xff]   ;;  %377 = vmatprep.mubr.bf16.mxu0 %v603_v1  ;;  %v540_v2 = vld [vmem:[%s793_s1] ss:$8 sps:$4 sm:$0xff]   ;;  %v541_v3 = vld [vmem:[%s793_s1 + $0x14] ss:$8 sps:$4 sm:$0xff]  }
   0x2   :  { %292 = vmatprep.subr.bf16.mxu1 %v538_v0  ;;  %v543_v4 = vld [vmem:[%s793_s1 + $0x10] ss:$8 sps:$4 sm:$0xff]   ;;  %v544_v5 = vld [vmem:[%s793_s1 + $0x24] ss:$8 sps:$4 sm:$0xff]   ;;  %v546_v6 = vld [vmem:[%s793_s1 + $0x20] ss:$8 sps:$4 sm:$0xff]  }
   0x3   :  { %293 = vmatpush1.bf16.msra.mxu1 %v540_v2  ;;  %v547_v7 = vld [vmem:[%s793_s1 + $0x34] ss:$8 sps:$4 sm:$0xff]   ;;  %v549_v8 = vld [vmem:[%s793_s1 + $0x30] ss:$8 sps:$4 sm:$0xff]   ;;  %v550_v9 = vld [vmem:[%s793_s1 + $0x44] ss:$8 sps:$4 sm:$0xff]  }
   0x4   :  { %294 = vmatprep.subr.bf16.mxu1 %v541_v3  ;;  %v552_v10 = vld [vmem:[%s793_s1 + $0x40] ss:$8 sps:$4 sm:$0xff]   ;;  %v553_v11 = vld [vmem:[%s793_s1 + $0x54] ss:$8 sps:$4 sm:$0xff]   ;;  %v577_v12 = vld [vmem:[%s793_s1 + $0x104] ss:$8 sps:$4 sm:$0xff]  }
   0x5   :  { %v579_v13 = vld [vmem:[%s793_s1 + $0x100] ss:$8 sps:$4 sm:$0xff]   ;;  %v555_v14 = vld [vmem:[%s793_s1 + $0x50] ss:$8 sps:$4 sm:$0xff]   ;;  %v556_v15 = vld [vmem:[%s793_s1 + $0x64] ss:$8 sps:$4 sm:$0xff]   ;;  %345 = vmatprep.subr.bf16.mxu0 %v577_v12 }
   0x6   :  { %v583_v16 = vld [vmem:[%s793_s1 + $0x114] ss:$8 sps:$4 sm:$0xff]   ;;  %346 = vmatpush1.bf16.msra.mxu0 %v579_v13  ;;  %v585_v17 = vld [vmem:[%s793_s1 + $0x110] ss:$8 sps:$4 sm:$0xff]   ;;  %v558_v18 = vld [vmem:[%s793_s1 + $0x60] ss:$8 sps:$4 sm:$0xff]  }
   0x7   :  { %295 = vmatpush1.bf16.msra.mxu1 %v543_v4  ;;  %347 = vmatprep.subr.bf16.mxu0 %v583_v16  ;;  %v589_v19 = vld [vmem:[%s793_s1 + $0x124] ss:$8 sps:$4 sm:$0x3f]   ;;  %v559_v20 = vld [vmem:[%s793_s1 + $0x74] ss:$8 sps:$4 sm:$0xff]   ;;  %410 = vst [vmem:[%s795_s3] sm:$0xf] %v604_v46 }
   0x8   :  { %296 = vmatprep.subr.bf16.mxu1 %v544_v5  ;;  %v591_v21 = vld [vmem:[%s793_s1 + $0x120] ss:$8 sps:$4 sm:$0x3f]   ;;  %v561_v22 = vld [vmem:[%s793_s1 + $0x70] ss:$8 sps:$4 sm:$0xff]   ;;  %vm455_vm2 = vcmask 1040384  }
   0x9   :  { %v287_v23 = vsel %vm285_vm0, %v591_v21, 0  ;;  %v562_v24 = vld [vmem:[%s793_s1 + $0x84] ss:$8 sps:$4 sm:$0xff]   ;;  %v595_v26 = vld [vmem:[%s794_s0 + $0x8] ss:$12 sps:$4 sm:$0xff]  }
   0xa   :  { %348 = vmatpush1.bf16.msra.mxu0 %v585_v17  ;;  %v598_v25 = vld [vmem:[%s794_s0 + $0x4] ss:$12 sps:$4 sm:$0xff]   ;;  %v564_v27 = vld [vmem:[%s793_s1 + $0x80] ss:$8 sps:$4 sm:$0xff]   ;;  %v565_v28 = vld [vmem:[%s793_s1 + $0x94] ss:$8 sps:$4 sm:$0xff]  }
   0xb   :  { %297 = vmatpush1.bf16.msra.mxu1 %v546_v6  ;;  %524 = vmatprep.subr.msk.bf16.mxu0 %vm285_vm0, %v589_v19  ;;  %v567_v29 = vld [vmem:[%s793_s1 + $0x90] ss:$8 sps:$4 sm:$0xff]   ;;  %v568_v30 = vld [vmem:[%s793_s1 + $0xa4] ss:$8 sps:$4 sm:$0xff]   ;;  %v570_v32 = vld [vmem:[%s793_s1 + $0xa0] ss:$8 sps:$4 sm:$0xff]  }
   0xc   :  { %298 = vmatprep.subr.bf16.mxu1 %v547_v7  ;;  %324 = vmatprep.mubr.bf16.mxu1 %v598_v25  ;;  %v599_v31 = vld [vmem:[%s794_s0 + $0x20] ss:$12 sps:$4 sm:$0xff]   ;;  %v571_v33 = vld [vmem:[%s793_s1 + $0xb4] ss:$8 sps:$4 sm:$0xff]   ;;  %v573_v34 = vld [vmem:[%s793_s1 + $0xb0] ss:$8 sps:$4 sm:$0xff]  }
   0xd   :  { %v574_v35 = vld [vmem:[%s793_s1 + $0xc4] ss:$8 sps:$4 sm:$0xff]   ;;  %v576_v36 = vld [vmem:[%s793_s1 + $0xc0] ss:$8 sps:$4 sm:$0xff]   ;;  %v580_v37 = vld [vmem:[%s793_s1 + $0xd4] ss:$8 sps:$4 sm:$0xff]  }
   0xe   :  { %350 = vmatpush1.bf16.msra.mxu0 %v287_v23  ;;  %v582_v38 = vld [vmem:[%s793_s1 + $0xd0] ss:$8 sps:$4 sm:$0xff]   ;;  %v586_v39 = vld [vmem:[%s793_s1 + $0xe4] ss:$8 sps:$4 sm:$0xff]   ;;  %v588_v40 = vld [vmem:[%s793_s1 + $0xe0] ss:$8 sps:$4 sm:$0xff]  }
   0xf   :  { %299 = vmatpush1.bf16.msra.mxu1 %v549_v8  ;;  %v592_v41 = vld [vmem:[%s793_s1 + $0xf4] ss:$8 sps:$4 sm:$0xff]   ;;  %v594_v42 = vld [vmem:[%s793_s1 + $0xf0] ss:$8 sps:$4 sm:$0xff]   ;;  %v596_v43 = vld [vmem:[%s794_s0] ss:$12 sps:$4 sm:$0xff]  }
  0x10   :  { %300 = vmatprep.subr.bf16.mxu1 %v550_v9  ;;  %v600_v44 = vld [vmem:[%s794_s0 + $0x1c] ss:$12 sps:$4 sm:$0xff]   ;;  %v602_v45 = vld [vmem:[%s794_s0 + $0x18] ss:$12 sps:$4 sm:$0xff]  }
  0x11   :  { %525 = vmatmul.mubr.msk.bf16.vlgmr.msra.gmra.mrb[0].mxu0 %vm278_vm1, %v595_v26 }
  0x12   :  { %387 = vmatprep.mubr.bf16.mxu0 %v603_v1 }
  0x13   :  { %301 = vmatpush1.bf16.msra.mxu1 %v552_v10 }
  0x14   :  { %302 = vmatprep.subr.bf16.mxu1 %v553_v11 }
  0x17   :  { %303 = vmatpush1.bf16.msra.mxu1 %v555_v14 }
  0x18   :  { %304 = vmatprep.subr.bf16.mxu1 %v556_v15 }
  0x19   :  { %526 = vmatmul.mubr.msk.bf16.gmra.mrb[4].mxu0 %vm278_vm1, %v599_v31 }
  0x1b   :  { %305 = vmatpush1.bf16.msra.mxu1 %v558_v18 }
  0x1c   :  { %306 = vmatprep.subr.bf16.mxu1 %v559_v20 }
  0x1f   :  { %307 = vmatpush1.bf16.msra.mxu1 %v561_v22 }
  0x20   :  { %308 = vmatprep.subr.bf16.mxu1 %v562_v24 }
  0x23   :  { %309 = vmatpush1.bf16.msra.mxu1 %v564_v27 }
  0x24   :  { %310 = vmatprep.subr.bf16.mxu1 %v565_v28 }
  0x27   :  { %311 = vmatpush1.bf16.msra.mxu1 %v567_v29 }
  0x28   :  { %312 = vmatprep.subr.bf16.mxu1 %v568_v30 }
  0x2b   :  { %313 = vmatpush1.bf16.msra.mxu1 %v570_v32 }
  0x2c   :  { %314 = vmatprep.subr.bf16.mxu1 %v571_v33 }
  0x2f   :  { %315 = vmatpush1.bf16.msra.mxu1 %v573_v34 }
  0x30   :  { %316 = vmatprep.subr.bf16.mxu1 %v574_v35 }
  0x33   :  { %317 = vmatpush1.bf16.msra.mxu1 %v576_v36 }
  0x34   :  { %318 = vmatprep.subr.bf16.mxu1 %v580_v37 }
  0x37   :  { %319 = vmatpush1.bf16.msra.mxu1 %v582_v38 }
  0x38   :  { %320 = vmatprep.subr.bf16.mxu1 %v586_v39  ;;  %v605_v39 = vmov 1983009808  }
  0x3b   :  { %321 = vmatpush1.bf16.msra.mxu1 %v588_v40  ;;  %v463_v40 = vunpack.c.l.s4 %v605_v39 }
  0x3c   :  { %322 = vmatprep.subr.bf16.mxu1 %v592_v41  ;;  %v465_v41 = vlaneseq }
  0x3f   :  { %323 = vmatpush1.bf16.msra.mxu1 %v594_v42 }
  0x42   :  { %325 = vmatmul.mubr.bf16.vlgmr.msra.gmra.mrb[0].mxu1 %v596_v43 }
  0x43   :  { %334 = vmatprep.mubr.bf16.mxu1 %v600_v44 }
  0x4a   :  { %335 = vmatmul.mubr.bf16.gmra.mrb[4].mxu1 %v602_v45 }
  0xe4   :  { %v379_v47 = vpop.f32.mrb[0].mxu0 }
  0xe5   :  { %v381_v48 = vpop.f32.mrb[1].mxu0 }
  0xe6   :  { %v383_v49 = vpop.f32.mrb[2].mxu0 }
  0xe7   :  { %v385_v50 = vpop.f32.mrb[3].mxu0 }
  0xec   :  { %v389_v51 = vpop.f32.mrb[4].mxu0 }
  0xed   :  { %v391_v52 = vpop.f32.mrb[5].mxu0 }
  0xee   :  { %v393_v53 = vpop.f32.mrb[6].mxu0 }
  0xef   :  { %v395_v54 = vpop.f32.mrb[7].mxu0 }
 0x115   :  { %v326_v55 = vpop.f32.mrb[0].mxu1 }
 0x116   :  { %v380_v56 = vadd.f32 %v379_v47, %v326_v55  ;;  %v328_v57 = vpop.f32.mrb[1].mxu1 }
 0x117   :  { %v382_v58 = vadd.f32 %v381_v48, %v328_v57  ;;  %v330_v59 = vpop.f32.mrb[2].mxu1 }
 0x118   :  { %398 = vst [vmem:[%s796_s2] sm:$0xff] %v380_v56  ;;  %v384_v60 = vadd.f32 %v383_v49, %v330_v59  ;;  %v332_v61 = vpop.f32.mrb[3].mxu1  ;;  %v429_v63 = vmul.f32 %v380_v56, %v380_v56  ;;  %v464_v49 = vunpack.c.0.s8 %v463_v40 }
 0x119   :  { %399 = vst [vmem:[%s796_s2 + $0x8] sm:$0xff] %v382_v58  ;;  %v386_v62 = vadd.f32 %v385_v50, %v332_v61  ;;  %v430_v2 = vmul.f32 %v382_v58, %v382_v58  ;;  %v466_v50 = vshrl.u32 %v465_v41, 7 }
 0x11a   :  { %400 = vst [vmem:[%s796_s2 + $0x10] sm:$0xff] %v384_v60  ;;  %v411_v0 = vadd.f32 %v384_v60, %v380_v56  ;;  %v431_v1 = vmul.f32 %v384_v60, %v384_v60  ;;  %v458_v60 = vld [vmem:[%s795_s3] sm:$0xf] }
 0x11b   :  { %401 = vst [vmem:[%s796_s2 + $0x18] sm:$0xff] %v386_v62  ;;  %v420_v3 = vadd.f32 %v386_v62, %v382_v58  ;;  %v432_v4 = vmul.f32 %v386_v62, %v386_v62  ;;  %v467_v57 = vsub.s32 %v464_v49, %v466_v50 }
 0x11c   :  { %v437_v5 = vadd.f32 %v431_v1, %v429_v63 }
 0x11d   :  { %v446_v6 = vadd.f32 %v432_v4, %v430_v2  ;;  %v336_v7 = vpop.f32.mrb[4].mxu1 }
 0x11e   :  { %v390_v8 = vadd.f32 %v389_v51, %v336_v7  ;;  %v338_v9 = vpop.f32.mrb[5].mxu1 }
 0x11f   :  { %v392_v10 = vadd.f32 %v391_v52, %v338_v9  ;;  %v340_v11 = vpop.f32.mrb[6].mxu1 }
 0x120   :  { %402 = vst [vmem:[%s796_s2 + $0x20] sm:$0xff] %v390_v8  ;;  %v412_v12 = vadd.f32 %v411_v0, %v390_v8  ;;  %v433_v13 = vmul.f32 %v390_v8, %v390_v8  ;;  %v394_v14 = vadd.f32 %v393_v53, %v340_v11  ;;  %v342_v15 = vpop.f32.mrb[7].mxu1 }
 0x121   :  { %403 = vst [vmem:[%s796_s2 + $0x28] sm:$0xff] %v392_v10  ;;  %v421_v16 = vadd.f32 %v420_v3, %v392_v10  ;;  %v434_v17 = vmul.f32 %v392_v10, %v392_v10  ;;  %v396_v18 = vadd.f32 %v395_v54, %v342_v15 }
 0x122   :  { %v438_v19 = vadd.f32 %v437_v5, %v433_v13  ;;  %404 = vst [vmem:[%s796_s2 + $0x30] sm:$0xff] %v394_v14  ;;  %v413_v20 = vadd.f32 %v412_v12, %v394_v14  ;;  %v435_v21 = vmul.f32 %v394_v14, %v394_v14 }
 0x123   :  { %v447_v22 = vadd.f32 %v446_v6, %v434_v17  ;;  %405 = vst [vmem:[%s796_s2 + $0x38] sm:$0xff] %v396_v18  ;;  %v422_v23 = vadd.f32 %v421_v16, %v396_v18  ;;  %v436_v24 = vmul.f32 %v396_v18, %v396_v18 }
 0x124   :  { %v414_v25 = vrot.slane %v413_v20, 4  ;;  %v439_v26 = vadd.f32 %v438_v19, %v435_v21 }
 0x125   :  { %v423_v27 = vrot.slane %v422_v23, 4  ;;  %v448_v28 = vadd.f32 %v447_v22, %v436_v24 }
 0x126   :  { %v415_v29 = vadd.f32 %v414_v25, %v413_v20  ;;  %v440_v30 = vrot.slane %v439_v26, 4 }
 0x127   :  { %v424_v31 = vadd.f32 %v423_v27, %v422_v23  ;;  %v449_v32 = vrot.slane %v448_v28, 4 }
 0x128   :  { %v416_v33 = vrot.slane %v415_v29, 2  ;;  %v441_v34 = vadd.f32 %v440_v30, %v439_v26 }
 0x129   :  { %v425_v35 = vrot.slane %v424_v31, 2  ;;  %v450_v36 = vadd.f32 %v449_v32, %v448_v28 }
 0x12a   :  { %v417_v37 = vadd.f32 %v416_v33, %v415_v29  ;;  %v442_v38 = vrot.slane %v441_v34, 2 }
 0x12b   :  { %v426_v42 = vadd.f32 %v425_v35, %v424_v31  ;;  %v451_v43 = vrot.slane %v450_v36, 2 }
 0x12c   :  { %v418_v44 = vrot.slane %v417_v37, 1  ;;  %v443_v45 = vadd.f32 %v442_v38, %v441_v34 }
 0x12d   :  { %v427_v46 = vrot.slane %v426_v42, 1  ;;  %v452_v47 = vadd.f32 %v451_v43, %v450_v36 }
 0x12e   :  { %v444_v48 = vrot.slane %v443_v45, 1  ;;  %v419_v52 = vadd.f32 %v418_v44, %v417_v37 }
 0x12f   :  { %v453_v51 = vrot.slane %v452_v47, 1  ;;  %v428_v54 = vadd.f32 %v427_v46, %v426_v42 }
 0x130   :  { %v445_v53 = vadd.f32 %v444_v48, %v443_v45 }
 0x131   :  { %v454_v55 = vadd.f32 %v453_v51, %v452_v47 }
 0x132   :  { %v456_v56 = vsel %vm455_vm2, %v419_v52, %v445_v53 }
 0x133   :  { %v457_v58 = vsel %vm455_vm2, %v428_v54, %v454_v55 }
 0x134   :  { %v461_v59 = vcombine.low %v456_v56, %v457_v58 }
 0x136   :  { %v468_v61 = vrot.slane %v461_v59, %v467_v57 }
 0x138   :  { %v470_v62 = vadd.f32 %v468_v61, %v458_v60 }
 0x13a   :  { %471 = vst [vmem:[%s795_s3] sm:$0xf] %v470_v62 }

// kernel: _lambda_.72
= control target key start
LH: loop header
LB: loop body
LE: loop exit
PB: predicated region body
PF: predicated region fallthrough
CT: control target
= control target key end

     0   :  { %v24_v0 = vlaneseq  ;;  %s156_s1 = inlined_call_operand.vmem [shape: f32[1,256], index: 1, kind: input, shape index: {}]   ;;  %s157_s2 = inlined_call_operand.vmem [shape: f32[1,256], index: 2, kind: input, shape index: {}]   ;;  %s158_s0 = inlined_call_operand.vmem [shape: f32[32,256], index: 0, kind: input, shape index: {}]   ;;  %s159_s3 = inlined_call_operand.vmem [shape: f32[32,256], index: 3, kind: output, shape index: {}]  }
   0x1   :  { %v22_v2 = vld [vmem:[%s156_s1] sm:$0x3]  ;;  %v15_v6 = vld [vmem:[%s158_s0 + $0x8] sm:$0xff]  ;;  %v16_v8 = vld [vmem:[%s158_s0 + $0x10] sm:$0xff] }
   0x2   :  { %v25_v1 = vshrl.u32 %v24_v0, 7  ;;  %v42_v3 = vld [vmem:[%s157_s2] sm:$0x3]  ;;  %v17_v9 = vld [vmem:[%s158_s0 + $0x18] sm:$0xff]  ;;  %v19_v15 = vld [vmem:[%s158_s0 + $0x28] sm:$0xff] }
   0x3   :  { %v14_v4 = vld [vmem:[%s158_s0] sm:$0xff]  ;;  %v20_v16 = vld [vmem:[%s158_s0 + $0x30] sm:$0xff]  ;;  %v21_v17 = vld [vmem:[%s158_s0 + $0x38] sm:$0xff] }
   0x4   :  { %v26_v5 = vsub.s32 0, %v25_v1  ;;  %v30_v7 = vsub.s32 1, %v25_v1  ;;  %v18_v10 = vld [vmem:[%s158_s0 + $0x20] sm:$0xff] }
   0x6   :  { %v27_v11 = vrot.slane %v22_v2, %v26_v5  ;;  %v47_v12 = vrot.slane %v42_v3, %v26_v5  ;;  %v31_v13 = vrot.slane %v22_v2, %v30_v7  ;;  %v51_v14 = vrot.slane %v42_v3, %v30_v7 }
   0x8   :  { %v34_v18 = vmul.f32 %v27_v11, %v14_v4  ;;  %v35_v19 = vmul.f32 %v31_v13, %v15_v6  ;;  %v36_v20 = vmul.f32 %v27_v11, %v16_v8  ;;  %v37_v21 = vmul.f32 %v31_v13, %v17_v9 }
   0x9   :  { %v38_v22 = vmul.f32 %v27_v11, %v18_v10  ;;  %v39_v23 = vmul.f32 %v31_v13, %v19_v15  ;;  %v40_v24 = vmul.f32 %v27_v11, %v20_v16  ;;  %v41_v25 = vmul.f32 %v31_v13, %v21_v17 }
   0xa   :  { %v54_v26 = vadd.f32 %v47_v12, %v34_v18  ;;  %v55_v27 = vadd.f32 %v51_v14, %v35_v19  ;;  %v56_v28 = vadd.f32 %v47_v12, %v36_v20  ;;  %v57_v29 = vadd.f32 %v51_v14, %v37_v21 }
   0xb   :  { %v58_v30 = vadd.f32 %v47_v12, %v38_v22  ;;  %v59_v31 = vadd.f32 %v51_v14, %v39_v23  ;;  %v60_v32 = vadd.f32 %v47_v12, %v40_v24  ;;  %v61_v33 = vadd.f32 %v51_v14, %v41_v25 }
   0xc   :  { %v62_v34 = vmax.f32 %v54_v26, 0.0  ;;  %v63_v35 = vmax.f32 %v55_v27, 0.0  ;;  %v64_v36 = vmax.f32 %v56_v28, 0.0  ;;  %v65_v37 = vmax.f32 %v57_v29, 0.0 }
   0xd   :  { %v66_v38 = vmax.f32 %v58_v30, 0.0  ;;  %v67_v39 = vmax.f32 %v59_v31, 0.0  ;;  %v68_v40 = vmax.f32 %v60_v32, 0.0  ;;  %v69_v41 = vmax.f32 %v61_v33, 0.0 }
   0xe   :  { %70 = vst [vmem:[%s159_s3] sm:$0xff] %v62_v34  ;;  %71 = vst [vmem:[%s159_s3 + $0x8] sm:$0xff] %v63_v35 }
   0xf   :  { %72 = vst [vmem:[%s159_s3 + $0x10] sm:$0xff] %v64_v36  ;;  %73 = vst [vmem:[%s159_s3 + $0x18] sm:$0xff] %v65_v37 }
  0x10   :  { %74 = vst [vmem:[%s159_s3 + $0x20] sm:$0xff] %v66_v38  ;;  %75 = vst [vmem:[%s159_s3 + $0x28] sm:$0xff] %v67_v39 }
  0x11   :  { %76 = vst [vmem:[%s159_s3 + $0x30] sm:$0xff] %v68_v40  ;;  %77 = vst [vmem:[%s159_s3 + $0x38] sm:$0xff] %v69_v41 }

// kernel: _lambda_.73
= control target key start
LH: loop header
LB: loop body
LE: loop exit
PB: predicated region body
PF: predicated region fallthrough
CT: control target
= control target key end

     0   :  { %vm1372_vm0 = vcmask 523264   ;;  %vm1807_vm1 = vcmask 1040384   ;;  %s3191_s1 = inlined_call_operand.vmem [shape: bf16[1600,256], index: 1, kind: input, shape index: {}]   ;;  %s3192_s0 = inlined_call_operand.vmem [shape: bf16[32,1600], index: 0, kind: input, shape index: {}]   ;;  %s3193_s3 = inlined_call_operand.vmem [shape: f32[2,256], index: 3, kind: output, shape index: {1}]   ;;  %s3194_s2 = inlined_call_operand.vmem [shape: f32[32,256], index: 2, kind: output, shape index: {0}]  }
   0x1   :  { %v2119_v0 = vld [vmem:[%s3191_s1 + $0x4] ss:$8 sps:$4 sm:$0xff]   ;;  %v2123_v2 = vld [vmem:[%s3191_s1] ss:$8 sps:$4 sm:$0xff]   ;;  %v2125_v4 = vld [vmem:[%s3191_s1 + $0x14] ss:$8 sps:$4 sm:$0xff]  }
   0x2   :  { %v2121_v1 = vld [vmem:[%s3191_s1 + $0x304] ss:$8 sps:$4 sm:$0xff]   ;;  %1379 = vmatprep.subr.bf16.mxu1 %v2119_v0  ;;  %v2124_v3 = vld [vmem:[%s3191_s1 + $0x300] ss:$8 sps:$4 sm:$0xff]   ;;  %v2127_v5 = vld [vmem:[%s3191_s1 + $0x314] ss:$8 sps:$4 sm:$0xff]  }
   0x3   :  { %1538 = vmatprep.subr.bf16.mxu0 %v2121_v1  ;;  %1380 = vmatpush1.bf16.msra.mxu1 %v2123_v2  ;;  %v2129_v6 = vld [vmem:[%s3191_s1 + $0x10] ss:$8 sps:$4 sm:$0xff]   ;;  %v2131_v8 = vld [vmem:[%s3191_s1 + $0x24] ss:$8 sps:$4 sm:$0xff]   ;;  %v2135_v10 = vld [vmem:[%s3191_s1 + $0x20] ss:$8 sps:$4 sm:$0xff]  }
   0x4   :  { %1539 = vmatpush1.bf16.msra.mxu0 %v2124_v3  ;;  %1381 = vmatprep.subr.bf16.mxu1 %v2125_v4  ;;  %v2130_v7 = vld [vmem:[%s3191_s1 + $0x310] ss:$8 sps:$4 sm:$0xff]   ;;  %v2133_v9 = vld [vmem:[%s3191_s1 + $0x324] ss:$8 sps:$4 sm:$0xff]   ;;  %v2136_v11 = vld [vmem:[%s3191_s1 + $0x320] ss:$8 sps:$4 sm:$0xff]  }
   0x5   :  { %1540 = vmatprep.subr.bf16.mxu0 %v2127_v5  ;;  %v2137_v12 = vld [vmem:[%s3191_s1 + $0x34] ss:$8 sps:$4 sm:$0xff]   ;;  %v2141_v14 = vld [vmem:[%s3191_s1 + $0x30] ss:$8 sps:$4 sm:$0xff]   ;;  %v2143_v16 = vld [vmem:[%s3191_s1 + $0x44] ss:$8 sps:$4 sm:$0xff]  }
   0x6   :  { %v2139_v13 = vld [vmem:[%s3191_s1 + $0x334] ss:$8 sps:$4 sm:$0xff]   ;;  %v2142_v15 = vld [vmem:[%s3191_s1 + $0x330] ss:$8 sps:$4 sm:$0xff]   ;;  %v2145_v17 = vld [vmem:[%s3191_s1 + $0x344] ss:$8 sps:$4 sm:$0xff]  }
   0x7   :  { %1382 = vmatpush1.bf16.msra.mxu1 %v2129_v6  ;;  %v2147_v18 = vld [vmem:[%s3191_s1 + $0x40] ss:$8 sps:$4 sm:$0xff]   ;;  %v2149_v20 = vld [vmem:[%s3191_s1 + $0x54] ss:$8 sps:$4 sm:$0xff]   ;;  %v2153_v22 = vld [vmem:[%s3191_s1 + $0x50] ss:$8 sps:$4 sm:$0xff]  }
   0x8   :  { %1541 = vmatpush1.bf16.msra.mxu0 %v2130_v7  ;;  %1383 = vmatprep.subr.bf16.mxu1 %v2131_v8  ;;  %v2148_v19 = vld [vmem:[%s3191_s1 + $0x340] ss:$8 sps:$4 sm:$0xff]   ;;  %v2151_v21 = vld [vmem:[%s3191_s1 + $0x354] ss:$8 sps:$4 sm:$0xff]   ;;  %v2154_v23 = vld [vmem:[%s3191_s1 + $0x350] ss:$8 sps:$4 sm:$0xff]  }
   0x9   :  { %1542 = vmatprep.subr.bf16.mxu0 %v2133_v9  ;;  %v2155_v24 = vld [vmem:[%s3191_s1 + $0x64] ss:$8 sps:$4 sm:$0xff]   ;;  %v2159_v26 = vld [vmem:[%s3191_s1 + $0x60] ss:$8 sps:$4 sm:$0xff]   ;;  %v2161_v28 = vld [vmem:[%s3191_s1 + $0x74] ss:$8 sps:$4 sm:$0xff]  }
   0xa   :  { %v2157_v25 = vld [vmem:[%s3191_s1 + $0x364] ss:$8 sps:$4 sm:$0xff]   ;;  %v2160_v27 = vld [vmem:[%s3191_s1 + $0x360] ss:$8 sps:$4 sm:$0xff]   ;;  %v2163_v29 = vld [vmem:[%s3191_s1 + $0x374] ss:$8 sps:$4 sm:$0xff]  }
   0xb   :  { %1384 = vmatpush1.bf16.msra.mxu1 %v2135_v10  ;;  %v2165_v30 = vld [vmem:[%s3191_s1 + $0x70] ss:$8 sps:$4 sm:$0xff]   ;;  %v2167_v32 = vld [vmem:[%s3191_s1 + $0x84] ss:$8 sps:$4 sm:$0xff]   ;;  %v2171_v34 = vld [vmem:[%s3191_s1 + $0x80] ss:$8 sps:$4 sm:$0xff]  }
   0xc   :  { %1543 = vmatpush1.bf16.msra.mxu0 %v2136_v11  ;;  %1385 = vmatprep.subr.bf16.mxu1 %v2137_v12  ;;  %v2166_v31 = vld [vmem:[%s3191_s1 + $0x370] ss:$8 sps:$4 sm:$0xff]   ;;  %v2169_v33 = vld [vmem:[%s3191_s1 + $0x384] ss:$8 sps:$4 sm:$0xff]   ;;  %v2172_v35 = vld [vmem:[%s3191_s1 + $0x380] ss:$8 sps:$4 sm:$0xff]  }
   0xd   :  { %1544 = vmatprep.subr.bf16.mxu0 %v2139_v13  ;;  %v2173_v36 = vld [vmem:[%s3191_s1 + $0x94] ss:$8 sps:$4 sm:$0xff]   ;;  %v2177_v38 = vld [vmem:[%s3191_s1 + $0x90] ss:$8 sps:$4 sm:$0xff]   ;;  %v2179_v40 = vld [vmem:[%s3191_s1 + $0xa4] ss:$8 sps:$4 sm:$0xff]  }
   0xe   :  { %v2175_v37 = vld [vmem:[%s3191_s1 + $0x394] ss:$8 sps:$4 sm:$0xff]   ;;  %v2178_v39 = vld [vmem:[%s3191_s1 + $0x390] ss:$8 sps:$4 sm:$0xff]   ;;  %v2181_v41 = vld [vmem:[%s3191_s1 + $0x3a4] ss:$8 sps:$4 sm:$0xff]  }
   0xf   :  { %1386 = vmatpush1.bf16.msra.mxu1 %v2141_v14  ;;  %v2183_v42 = vld [vmem:[%s3191_s1 + $0xa0] ss:$8 sps:$4 sm:$0xff]   ;;  %v2185_v44 = vld [vmem:[%s3191_s1 + $0xb4] ss:$8 sps:$4 sm:$0xff]   ;;  %v2189_v46 = vld [vmem:[%s3191_s1 + $0xb0] ss:$8 sps:$4 sm:$0xff]  }
  0x10   :  { %1545 = vmatpush1.bf16.msra.mxu0 %v2142_v15  ;;  %1387 = vmatprep.subr.bf16.mxu1 %v2143_v16  ;;  %v2184_v43 = vld [vmem:[%s3191_s1 + $0x3a0] ss:$8 sps:$4 sm:$0xff]   ;;  %v2187_v45 = vld [vmem:[%s3191_s1 + $0x3b4] ss:$8 sps:$4 sm:$0xff]   ;;  %v2190_v47 = vld [vmem:[%s3191_s1 + $0x3b0] ss:$8 sps:$4 sm:$0xff]  }
  0x11   :  { %1546 = vmatprep.subr.bf16.mxu0 %v2145_v17  ;;  %v2217_v48 = vld [vmem:[%s3192_s0 + $0x4] ss:$52 sps:$4 sm:$0xff]   ;;  %v2223_v51 = vld [vmem:[%s3192_s0 + $0x1c] ss:$52 sps:$4 sm:$0xff]   ;;  %v2195_v52 = vld [vmem:[%s3191_s1 + $0xc0] ss:$8 sps:$4 sm:$0xff]  }
  0x12   :  { %v2191_v49 = vld [vmem:[%s3191_s1 + $0xc4] ss:$8 sps:$4 sm:$0xff]   ;;  %1411 = vmatprep.mubr.bf16.mxu1 %v2217_v48  ;;  %v2196_v53 = vld [vmem:[%s3191_s1 + $0x3c0] ss:$8 sps:$4 sm:$0xff]   ;;  %v2197_v54 = vld [vmem:[%s3191_s1 + $0xd4] ss:$8 sps:$4 sm:$0xff]   ;;  %1570 = vmatprep.mubr.bf16.mxu0 %v2223_v51 }
  0x13   :  { %1388 = vmatpush1.bf16.msra.mxu1 %v2147_v18  ;;  %v2193_v50 = vld [vmem:[%s3191_s1 + $0x3c4] ss:$8 sps:$4 sm:$0xff]   ;;  %v2199_v55 = vld [vmem:[%s3191_s1 + $0x3d4] ss:$8 sps:$4 sm:$0xff]   ;;  %v2201_v56 = vld [vmem:[%s3191_s1 + $0xd0] ss:$8 sps:$4 sm:$0xff]  }
  0x14   :  { %1547 = vmatpush1.bf16.msra.mxu0 %v2148_v19  ;;  %1389 = vmatprep.subr.bf16.mxu1 %v2149_v20  ;;  %v2202_v57 = vld [vmem:[%s3191_s1 + $0x3d0] ss:$8 sps:$4 sm:$0xff]   ;;  %v2203_v58 = vld [vmem:[%s3191_s1 + $0xe4] ss:$8 sps:$4 sm:$0xff]   ;;  %v2207_v60 = vld [vmem:[%s3191_s1 + $0xe0] ss:$8 sps:$4 sm:$0xff]  }
  0x15   :  { %1548 = vmatprep.subr.bf16.mxu0 %v2151_v21  ;;  %v2205_v59 = vld [vmem:[%s3191_s1 + $0x3e4] ss:$8 sps:$4 sm:$0xff]   ;;  %v2208_v61 = vld [vmem:[%s3191_s1 + $0x3e0] ss:$8 sps:$4 sm:$0xff]   ;;  %v2209_v62 = vld [vmem:[%s3191_s1 + $0xf4] ss:$8 sps:$4 sm:$0xff]  }
  0x16   :  { %v2211_v63 = vld [vmem:[%s3191_s1 + $0x3f4] ss:$8 sps:$4 sm:$0xff]   ;;  %v2213_v0 = vld [vmem:[%s3191_s1 + $0xf0] ss:$8 sps:$4 sm:$0xff]   ;;  %v2220_v2 = vld [vmem:[%s3191_s1 + $0x104] ss:$8 sps:$4 sm:$0xff]  }
  0x17   :  { %1390 = vmatpush1.bf16.msra.mxu1 %v2153_v22  ;;  %v2214_v1 = vld [vmem:[%s3191_s1 + $0x3f0] ss:$8 sps:$4 sm:$0xff]   ;;  %v2226_v3 = vld [vmem:[%s3191_s1 + $0x404] ss:$8 sps:$4 sm:$0xff]   ;;  %v2215_v4 = vld [vmem:[%s3192_s0] ss:$52 sps:$4 sm:$0xff]  }
  0x18   :  { %1549 = vmatpush1.bf16.msra.mxu0 %v2154_v23  ;;  %1391 = vmatprep.subr.bf16.mxu1 %v2155_v24  ;;  %v2218_v5 = vld [vmem:[%s3191_s1 + $0x100] ss:$8 sps:$4 sm:$0xff]   ;;  %v2221_v6 = vld [vmem:[%s3192_s0 + $0x18] ss:$52 sps:$4 sm:$0xff]   ;;  %v2229_v8 = vld [vmem:[%s3191_s1 + $0x114] ss:$8 sps:$4 sm:$0xff]  }
  0x19   :  { %1550 = vmatprep.subr.bf16.mxu0 %v2157_v25  ;;  %v2224_v7 = vld [vmem:[%s3191_s1 + $0x400] ss:$8 sps:$4 sm:$0xff]   ;;  %v2232_v9 = vld [vmem:[%s3191_s1 + $0x414] ss:$8 sps:$4 sm:$0xff]   ;;  %v2227_v10 = vld [vmem:[%s3191_s1 + $0x110] ss:$8 sps:$4 sm:$0xff]  }
  0x1a   :  { %v2230_v11 = vld [vmem:[%s3191_s1 + $0x410] ss:$8 sps:$4 sm:$0xff]   ;;  %v2235_v12 = vld [vmem:[%s3191_s1 + $0x124] ss:$8 sps:$4 sm:$0xff]   ;;  %v2233_v14 = vld [vmem:[%s3191_s1 + $0x120] ss:$8 sps:$4 sm:$0xff]  }
  0x1b   :  { %1392 = vmatpush1.bf16.msra.mxu1 %v2159_v26  ;;  %v2238_v13 = vld [vmem:[%s3191_s1 + $0x424] ss:$8 sps:$4 sm:$0xff]   ;;  %v2236_v15 = vld [vmem:[%s3191_s1 + $0x420] ss:$8 sps:$4 sm:$0xff]   ;;  %v2241_v16 = vld [vmem:[%s3191_s1 + $0x134] ss:$8 sps:$4 sm:$0xff]  }
  0x1c   :  { %1551 = vmatpush1.bf16.msra.mxu0 %v2160_v27  ;;  %1393 = vmatprep.subr.bf16.mxu1 %v2161_v28  ;;  %v2244_v17 = vld [vmem:[%s3191_s1 + $0x434] ss:$8 sps:$4 sm:$0xff]   ;;  %v2239_v18 = vld [vmem:[%s3191_s1 + $0x130] ss:$8 sps:$4 sm:$0xff]   ;;  %v2247_v20 = vld [vmem:[%s3191_s1 + $0x144] ss:$8 sps:$4 sm:$0xff]  }
  0x1d   :  { %1552 = vmatprep.subr.bf16.mxu0 %v2163_v29  ;;  %v2242_v19 = vld [vmem:[%s3191_s1 + $0x430] ss:$8 sps:$4 sm:$0xff]   ;;  %v2250_v21 = vld [vmem:[%s3191_s1 + $0x444] ss:$8 sps:$4 sm:$0xff]   ;;  %v2245_v22 = vld [vmem:[%s3191_s1 + $0x140] ss:$8 sps:$4 sm:$0xff]  }
  0x1e   :  { %v2248_v23 = vld [vmem:[%s3191_s1 + $0x440] ss:$8 sps:$4 sm:$0xff]   ;;  %v2253_v24 = vld [vmem:[%s3191_s1 + $0x154] ss:$8 sps:$4 sm:$0xff]   ;;  %v2251_v26 = vld [vmem:[%s3191_s1 + $0x150] ss:$8 sps:$4 sm:$0xff]  }
  0x1f   :  { %1394 = vmatpush1.bf16.msra.mxu1 %v2165_v30  ;;  %v2256_v25 = vld [vmem:[%s3191_s1 + $0x454] ss:$8 sps:$4 sm:$0xff]   ;;  %v2254_v27 = vld [vmem:[%s3191_s1 + $0x450] ss:$8 sps:$4 sm:$0xff]   ;;  %v2305_v28 = vld [vmem:[%s3192_s0 + $0x6c] ss:$52 sps:$4 sm:$0xff]  }
  0x20   :  { %1553 = vmatpush1.bf16.msra.mxu0 %v2166_v31  ;;  %1395 = vmatprep.subr.bf16.mxu1 %v2167_v32  ;;  %v2259_v29 = vld [vmem:[%s3191_s1 + $0x164] ss:$8 sps:$4 sm:$0xff]   ;;  %v2257_v32 = vld [vmem:[%s3191_s1 + $0x160] ss:$8 sps:$4 sm:$0xff]   ;;  %v2275_v48 = vld [vmem:[%s3191_s1 + $0x190] ss:$8 sps:$4 sm:$0xff]  }
  0x21   :  { %1554 = vmatprep.subr.bf16.mxu0 %v2169_v33  ;;  %v2262_v30 = vld [vmem:[%s3191_s1 + $0x464] ss:$8 sps:$4 sm:$0xff]   ;;  %v2260_v33 = vld [vmem:[%s3191_s1 + $0x460] ss:$8 sps:$4 sm:$0xff]  }
  0x22   :  { %v2310_v31 = vld [vmem:[%s3192_s0 + $0x84] ss:$52 sps:$4 sm:$0xff]  }
  0x23   :  { %1396 = vmatpush1.bf16.msra.mxu1 %v2171_v34  ;;  %v2315_v34 = vld [vmem:[%s3192_s0 + $0x68] ss:$52 sps:$4 sm:$0xff]   ;;  %v2286_v51 = vld [vmem:[%s3191_s1 + $0x4a4] ss:$8 sps:$4 sm:$0xff]  }
  0x24   :  { %1555 = vmatpush1.bf16.msra.mxu0 %v2172_v35  ;;  %1397 = vmatprep.subr.bf16.mxu1 %v2173_v36  ;;  %v2316_v35 = vld [vmem:[%s3192_s0 + $0x80] ss:$52 sps:$4 sm:$0xff]  }
  0x25   :  { %1556 = vmatprep.subr.bf16.mxu0 %v2175_v37  ;;  %v2265_v36 = vld [vmem:[%s3191_s1 + $0x174] ss:$8 sps:$4 sm:$0xff]  }
  0x26   :  { %v2268_v37 = vld [vmem:[%s3191_s1 + $0x474] ss:$8 sps:$4 sm:$0xff]  }
  0x27   :  { %1398 = vmatpush1.bf16.msra.mxu1 %v2177_v38  ;;  %v2263_v38 = vld [vmem:[%s3191_s1 + $0x170] ss:$8 sps:$4 sm:$0xff]  }
  0x28   :  { %1557 = vmatpush1.bf16.msra.mxu0 %v2178_v39  ;;  %1399 = vmatprep.subr.bf16.mxu1 %v2179_v40  ;;  %v2266_v39 = vld [vmem:[%s3191_s1 + $0x470] ss:$8 sps:$4 sm:$0xff]   ;;  %v2325_v40 = vld [vmem:[%s3192_s0 + $0xc] ss:$52 sps:$4 sm:$0xff]  }
  0x29   :  { %1558 = vmatprep.subr.bf16.mxu0 %v2181_v41  ;;  %v2271_v41 = vld [vmem:[%s3191_s1 + $0x184] ss:$8 sps:$4 sm:$0xff]  }
  0x2b   :  { %1400 = vmatpush1.bf16.msra.mxu1 %v2183_v42  ;;  %v2274_v42 = vld [vmem:[%s3191_s1 + $0x484] ss:$8 sps:$4 sm:$0xff]  }
  0x2c   :  { %1559 = vmatpush1.bf16.msra.mxu0 %v2184_v43  ;;  %1401 = vmatprep.subr.bf16.mxu1 %v2185_v44  ;;  %v2331_v43 = vld [vmem:[%s3192_s0 + $0x24] ss:$52 sps:$4 sm:$0xff]   ;;  %v2269_v44 = vld [vmem:[%s3191_s1 + $0x180] ss:$8 sps:$4 sm:$0xff]  }
  0x2d   :  { %1560 = vmatprep.subr.bf16.mxu0 %v2187_v45  ;;  %v2272_v45 = vld [vmem:[%s3191_s1 + $0x480] ss:$8 sps:$4 sm:$0xff]  }
  0x2f   :  { %1402 = vmatpush1.bf16.msra.mxu1 %v2189_v46  ;;  %v2277_v46 = vld [vmem:[%s3191_s1 + $0x194] ss:$8 sps:$4 sm:$0xff]  }
  0x30   :  { %1561 = vmatpush1.bf16.msra.mxu0 %v2190_v47  ;;  %1403 = vmatprep.subr.bf16.mxu1 %v2191_v49  ;;  %v2280_v47 = vld [vmem:[%s3191_s1 + $0x494] ss:$8 sps:$4 sm:$0xff]   ;;  %v2278_v49 = vld [vmem:[%s3191_s1 + $0x490] ss:$8 sps:$4 sm:$0xff]  }
  0x31   :  { %1562 = vmatprep.subr.bf16.mxu0 %v2193_v50  ;;  %v2283_v50 = vld [vmem:[%s3191_s1 + $0x1a4] ss:$8 sps:$4 sm:$0xff]  }
  0x33   :  { %1404 = vmatpush1.bf16.msra.mxu1 %v2195_v52  ;;  %v2281_v52 = vld [vmem:[%s3191_s1 + $0x1a0] ss:$8 sps:$4 sm:$0xff]  }
  0x34   :  { %1563 = vmatpush1.bf16.msra.mxu0 %v2196_v53  ;;  %1405 = vmatprep.subr.bf16.mxu1 %v2197_v54  ;;  %v2284_v53 = vld [vmem:[%s3191_s1 + $0x4a0] ss:$8 sps:$4 sm:$0xff]   ;;  %v2289_v54 = vld [vmem:[%s3191_s1 + $0x1b4] ss:$8 sps:$4 sm:$0xff]  }
  0x35   :  { %1564 = vmatprep.subr.bf16.mxu0 %v2199_v55  ;;  %v2292_v55 = vld [vmem:[%s3191_s1 + $0x4b4] ss:$8 sps:$4 sm:$0xff]  }
  0x37   :  { %1406 = vmatpush1.bf16.msra.mxu1 %v2201_v56  ;;  %v2287_v56 = vld [vmem:[%s3191_s1 + $0x1b0] ss:$8 sps:$4 sm:$0xff]  }
  0x38   :  { %1565 = vmatpush1.bf16.msra.mxu0 %v2202_v57  ;;  %1407 = vmatprep.subr.bf16.mxu1 %v2203_v58  ;;  %v2290_v57 = vld [vmem:[%s3191_s1 + $0x4b0] ss:$8 sps:$4 sm:$0xff]   ;;  %v2295_v58 = vld [vmem:[%s3191_s1 + $0x1c4] ss:$8 sps:$4 sm:$0xff]  }
  0x39   :  { %1566 = vmatprep.subr.bf16.mxu0 %v2205_v59  ;;  %v2298_v59 = vld [vmem:[%s3191_s1 + $0x4c4] ss:$8 sps:$4 sm:$0xff]  }
  0x3b   :  { %1408 = vmatpush1.bf16.msra.mxu1 %v2207_v60  ;;  %v2293_v60 = vld [vmem:[%s3191_s1 + $0x1c0] ss:$8 sps:$4 sm:$0xff]  }
  0x3c   :  { %1567 = vmatpush1.bf16.msra.mxu0 %v2208_v61  ;;  %1409 = vmatprep.subr.bf16.mxu1 %v2209_v62  ;;  %v2296_v61 = vld [vmem:[%s3191_s1 + $0x4c0] ss:$8 sps:$4 sm:$0xff]   ;;  %v2301_v62 = vld [vmem:[%s3191_s1 + $0x1d4] ss:$8 sps:$4 sm:$0xff]  }
  0x3d   :  { %1568 = vmatprep.subr.bf16.mxu0 %v2211_v63  ;;  %v2304_v63 = vld [vmem:[%s3191_s1 + $0x4d4] ss:$8 sps:$4 sm:$0xff]  }
  0x3f   :  { %1410 = vmatpush1.bf16.msra.mxu1 %v2213_v0  ;;  %v2299_v0 = vld [vmem:[%s3191_s1 + $0x1d0] ss:$8 sps:$4 sm:$0xff]  }
  0x40   :  { %1569 = vmatpush1.bf16.msra.mxu0 %v2214_v1  ;;  %1432 = vmatprep.subr.bf16.mxu1 %v2220_v2  ;;  %v2302_v1 = vld [vmem:[%s3191_s1 + $0x4d0] ss:$8 sps:$4 sm:$0xff]   ;;  %v2309_v2 = vld [vmem:[%s3191_s1 + $0x1e4] ss:$8 sps:$4 sm:$0xff]  }
  0x41   :  { %1591 = vmatprep.subr.bf16.mxu0 %v2226_v3  ;;  %v2314_v3 = vld [vmem:[%s3191_s1 + $0x4e4] ss:$8 sps:$4 sm:$0xff]  }
  0x42   :  { %1412 = vmatmul.mubr.bf16.vlgmr.msra.gmra.mrb[0].mxu1 %v2215_v4  ;;  %v2307_v4 = vld [vmem:[%s3191_s1 + $0x1e0] ss:$8 sps:$4 sm:$0xff]  }
  0x43   :  { %1571 = vmatmul.mubr.bf16.vlgmr.msra.gmra.mrb[0].mxu0 %v2221_v6  ;;  %1433 = vmatpush1.bf16.msra.mxu1 %v2218_v5  ;;  %v2312_v5 = vld [vmem:[%s3191_s1 + $0x4e0] ss:$8 sps:$4 sm:$0xff]   ;;  %v2319_v6 = vld [vmem:[%s3191_s1 + $0x1f4] ss:$8 sps:$4 sm:$0xff]  }
  0x44   :  { %1592 = vmatpush1.bf16.msra.mxu0 %v2224_v7  ;;  %1434 = vmatprep.subr.bf16.mxu1 %v2229_v8  ;;  %v2322_v7 = vld [vmem:[%s3191_s1 + $0x4f4] ss:$8 sps:$4 sm:$0xff]   ;;  %v2317_v8 = vld [vmem:[%s3191_s1 + $0x1f0] ss:$8 sps:$4 sm:$0xff]  }
  0x45   :  { %1593 = vmatprep.subr.bf16.mxu0 %v2232_v9  ;;  %1421 = vmatprep.mubr.bf16.mxu1 %v2305_v28  ;;  %v2320_v9 = vld [vmem:[%s3191_s1 + $0x4f0] ss:$8 sps:$4 sm:$0xff]   ;;  %v2349_v28 = vld [vmem:[%s3191_s1 + $0x234] ss:$8 sps:$4 sm:$0xff]  }
  0x46   :  { %1580 = vmatprep.mubr.bf16.mxu0 %v2310_v31  ;;  %v2350_v31 = vld [vmem:[%s3191_s1 + $0x530] ss:$8 sps:$4 sm:$0xff]  }
  0x47   :  { %1435 = vmatpush1.bf16.msra.mxu1 %v2227_v10  ;;  %v2328_v10 = vld [vmem:[%s3191_s1 + $0x204] ss:$8 sps:$4 sm:$0xff]  }
  0x48   :  { %1594 = vmatpush1.bf16.msra.mxu0 %v2230_v11  ;;  %1436 = vmatprep.subr.bf16.mxu1 %v2235_v12  ;;  %v2334_v11 = vld [vmem:[%s3191_s1 + $0x504] ss:$8 sps:$4 sm:$0xff]   ;;  %v2323_v12 = vld [vmem:[%s3192_s0 + $0x8] ss:$52 sps:$4 sm:$0xff]  }
  0x49   :  { %1595 = vmatprep.subr.bf16.mxu0 %v2238_v13  ;;  %v2326_v13 = vld [vmem:[%s3191_s1 + $0x200] ss:$8 sps:$4 sm:$0xff]  }
  0x4a   :  { %1422 = vmatmul.mubr.bf16.gmra.mrb[4].mxu1 %v2315_v34  ;;  %v2358_v34 = vld [vmem:[%s3191_s1 + $0x544] ss:$8 sps:$4 sm:$0xff]  }
  0x4b   :  { %1437 = vmatpush1.bf16.msra.mxu1 %v2233_v14  ;;  %1581 = vmatmul.mubr.bf16.gmra.mrb[4].mxu0 %v2316_v35  ;;  %v2329_v14 = vld [vmem:[%s3192_s0 + $0x20] ss:$52 sps:$4 sm:$0xff]  }
  0x4c   :  { %1596 = vmatpush1.bf16.msra.mxu0 %v2236_v15  ;;  %1438 = vmatprep.subr.bf16.mxu1 %v2241_v16  ;;  %v2332_v15 = vld [vmem:[%s3191_s1 + $0x500] ss:$8 sps:$4 sm:$0xff]   ;;  %v2337_v16 = vld [vmem:[%s3191_s1 + $0x214] ss:$8 sps:$4 sm:$0xff]  }
  0x4d   :  { %1597 = vmatprep.subr.bf16.mxu0 %v2244_v17  ;;  %1464 = vmatprep.mubr.bf16.mxu1 %v2325_v40  ;;  %v2340_v17 = vld [vmem:[%s3191_s1 + $0x514] ss:$8 sps:$4 sm:$0xff]   ;;  %v2436_v35 = vld [vmem:[%s3192_s0 + $0x2c] ss:$52 sps:$4 sm:$0xff]   ;;  %v2359_v40 = vld [vmem:[%s3191_s1 + $0x250] ss:$8 sps:$4 sm:$0xff]  }
  0x4e   :  { %1623 = vmatprep.mubr.bf16.mxu0 %v2331_v43  ;;  %v2370_v43 = vld [vmem:[%s3191_s1 + $0x564] ss:$8 sps:$4 sm:$0xff]  }
  0x4f   :  { %1439 = vmatpush1.bf16.msra.mxu1 %v2239_v18  ;;  %v2335_v18 = vld [vmem:[%s3191_s1 + $0x210] ss:$8 sps:$4 sm:$0xff]  }
  0x50   :  { %1598 = vmatpush1.bf16.msra.mxu0 %v2242_v19  ;;  %1440 = vmatprep.subr.bf16.mxu1 %v2247_v20  ;;  %v2338_v19 = vld [vmem:[%s3191_s1 + $0x510] ss:$8 sps:$4 sm:$0xff]   ;;  %v2413_v20 = vld [vmem:[%s3192_s0 + $0x74] ss:$52 sps:$4 sm:$0xff]  }
  0x51   :  { %1599 = vmatprep.subr.bf16.mxu0 %v2250_v21  ;;  %v2343_v21 = vld [vmem:[%s3191_s1 + $0x224] ss:$8 sps:$4 sm:$0xff]  }
  0x53   :  { %1441 = vmatpush1.bf16.msra.mxu1 %v2245_v22  ;;  %v2415_v22 = vld [vmem:[%s3192_s0 + $0x8c] ss:$52 sps:$4 sm:$0xff]  }
  0x54   :  { %1600 = vmatpush1.bf16.msra.mxu0 %v2248_v23  ;;  %1442 = vmatprep.subr.bf16.mxu1 %v2253_v24  ;;  %v2346_v23 = vld [vmem:[%s3191_s1 + $0x524] ss:$8 sps:$4 sm:$0xff]   ;;  %v2341_v24 = vld [vmem:[%s3191_s1 + $0x220] ss:$8 sps:$4 sm:$0xff]  }
  0x55   :  { %1601 = vmatprep.subr.bf16.mxu0 %v2256_v25  ;;  %v2344_v25 = vld [vmem:[%s3191_s1 + $0x520] ss:$8 sps:$4 sm:$0xff]  }
  0x57   :  { %1443 = vmatpush1.bf16.msra.mxu1 %v2251_v26  ;;  %v2417_v26 = vld [vmem:[%s3192_s0 + $0x70] ss:$52 sps:$4 sm:$0xff]  }
  0x58   :  { %1602 = vmatpush1.bf16.msra.mxu0 %v2254_v27  ;;  %1444 = vmatprep.subr.bf16.mxu1 %v2259_v29  ;;  %v2421_v27 = vld [vmem:[%s3192_s0 + $0x88] ss:$52 sps:$4 sm:$0xff]  }
  0x59   :  { %1603 = vmatprep.subr.bf16.mxu0 %v2262_v30  ;;  %v2352_v29 = vld [vmem:[%s3191_s1 + $0x534] ss:$8 sps:$4 sm:$0xff]   ;;  %v2347_v30 = vld [vmem:[%s3191_s1 + $0x230] ss:$8 sps:$4 sm:$0xff]  }
  0x5b   :  { %1445 = vmatpush1.bf16.msra.mxu1 %v2257_v32  ;;  %v2355_v32 = vld [vmem:[%s3191_s1 + $0x244] ss:$8 sps:$4 sm:$0xff]  }
  0x5c   :  { %1604 = vmatpush1.bf16.msra.mxu0 %v2260_v33  ;;  %1446 = vmatprep.subr.bf16.mxu1 %v2265_v36  ;;  %v2433_v33 = vld [vmem:[%s3192_s0 + $0x14] ss:$52 sps:$4 sm:$0xff]  }
  0x5d   :  { %1605 = vmatprep.subr.bf16.mxu0 %v2268_v37  ;;  %v2353_v36 = vld [vmem:[%s3191_s1 + $0x240] ss:$8 sps:$4 sm:$0xff]  }
  0x5e   :  { %v2356_v37 = vld [vmem:[%s3191_s1 + $0x540] ss:$8 sps:$4 sm:$0xff]  }
  0x5f   :  { %1447 = vmatpush1.bf16.msra.mxu1 %v2263_v38  ;;  %v2361_v38 = vld [vmem:[%s3191_s1 + $0x254] ss:$8 sps:$4 sm:$0xff]  }
  0x60   :  { %1606 = vmatpush1.bf16.msra.mxu0 %v2266_v39  ;;  %1448 = vmatprep.subr.bf16.mxu1 %v2271_v41  ;;  %v2364_v39 = vld [vmem:[%s3191_s1 + $0x554] ss:$8 sps:$4 sm:$0xff]   ;;  %v2362_v41 = vld [vmem:[%s3191_s1 + $0x550] ss:$8 sps:$4 sm:$0xff]  }
  0x61   :  { %1607 = vmatprep.subr.bf16.mxu0 %v2274_v42  ;;  %v2367_v42 = vld [vmem:[%s3191_s1 + $0x264] ss:$8 sps:$4 sm:$0xff]  }
  0x63   :  { %1449 = vmatpush1.bf16.msra.mxu1 %v2269_v44  ;;  %v2365_v44 = vld [vmem:[%s3191_s1 + $0x260] ss:$8 sps:$4 sm:$0xff]  }
  0x64   :  { %1608 = vmatpush1.bf16.msra.mxu0 %v2272_v45  ;;  %1450 = vmatprep.subr.bf16.mxu1 %v2277_v46  ;;  %v2368_v45 = vld [vmem:[%s3191_s1 + $0x560] ss:$8 sps:$4 sm:$0xff]   ;;  %v2373_v46 = vld [vmem:[%s3191_s1 + $0x274] ss:$8 sps:$4 sm:$0xff]  }
  0x65   :  { %1609 = vmatprep.subr.bf16.mxu0 %v2280_v47  ;;  %v2376_v47 = vld [vmem:[%s3191_s1 + $0x574] ss:$8 sps:$4 sm:$0xff]  }
  0x67   :  { %1451 = vmatpush1.bf16.msra.mxu1 %v2275_v48  ;;  %v2371_v48 = vld [vmem:[%s3191_s1 + $0x270] ss:$8 sps:$4 sm:$0xff]  }
  0x68   :  { %1610 = vmatpush1.bf16.msra.mxu0 %v2278_v49  ;;  %1452 = vmatprep.subr.bf16.mxu1 %v2283_v50  ;;  %v2374_v49 = vld [vmem:[%s3191_s1 + $0x570] ss:$8 sps:$4 sm:$0xff]   ;;  %v2379_v50 = vld [vmem:[%s3191_s1 + $0x284] ss:$8 sps:$4 sm:$0xff]  }
  0x69   :  { %1611 = vmatprep.subr.bf16.mxu0 %v2286_v51  ;;  %v2382_v51 = vld [vmem:[%s3191_s1 + $0x584] ss:$8 sps:$4 sm:$0xff]  }
  0x6b   :  { %1453 = vmatpush1.bf16.msra.mxu1 %v2281_v52  ;;  %v2377_v52 = vld [vmem:[%s3191_s1 + $0x280] ss:$8 sps:$4 sm:$0xff]  }
  0x6c   :  { %1612 = vmatpush1.bf16.msra.mxu0 %v2284_v53  ;;  %1454 = vmatprep.subr.bf16.mxu1 %v2289_v54  ;;  %v2380_v53 = vld [vmem:[%s3191_s1 + $0x580] ss:$8 sps:$4 sm:$0xff]   ;;  %v2385_v54 = vld [vmem:[%s3191_s1 + $0x294] ss:$8 sps:$4 sm:$0xff]  }
  0x6d   :  { %1613 = vmatprep.subr.bf16.mxu0 %v2292_v55  ;;  %v2388_v55 = vld [vmem:[%s3191_s1 + $0x594] ss:$8 sps:$4 sm:$0xff]  }
  0x6f   :  { %1455 = vmatpush1.bf16.msra.mxu1 %v2287_v56  ;;  %v2383_v56 = vld [vmem:[%s3191_s1 + $0x290] ss:$8 sps:$4 sm:$0xff]  }
  0x70   :  { %1614 = vmatpush1.bf16.msra.mxu0 %v2290_v57  ;;  %1456 = vmatprep.subr.bf16.mxu1 %v2295_v58  ;;  %v2386_v57 = vld [vmem:[%s3191_s1 + $0x590] ss:$8 sps:$4 sm:$0xff]   ;;  %v2391_v58 = vld [vmem:[%s3191_s1 + $0x2a4] ss:$8 sps:$4 sm:$0xff]  }
  0x71   :  { %1615 = vmatprep.subr.bf16.mxu0 %v2298_v59  ;;  %v2394_v59 = vld [vmem:[%s3191_s1 + $0x5a4] ss:$8 sps:$4 sm:$0xff]  }
  0x73   :  { %1457 = vmatpush1.bf16.msra.mxu1 %v2293_v60  ;;  %v2389_v60 = vld [vmem:[%s3191_s1 + $0x2a0] ss:$8 sps:$4 sm:$0xff]  }
  0x74   :  { %1616 = vmatpush1.bf16.msra.mxu0 %v2296_v61  ;;  %1458 = vmatprep.subr.bf16.mxu1 %v2301_v62  ;;  %v2392_v61 = vld [vmem:[%s3191_s1 + $0x5a0] ss:$8 sps:$4 sm:$0xff]   ;;  %v2397_v62 = vld [vmem:[%s3191_s1 + $0x2b4] ss:$8 sps:$4 sm:$0xff]  }
  0x75   :  { %1617 = vmatprep.subr.bf16.mxu0 %v2304_v63  ;;  %v2400_v63 = vld [vmem:[%s3191_s1 + $0x5b4] ss:$8 sps:$4 sm:$0xff]  }
  0x77   :  { %1459 = vmatpush1.bf16.msra.mxu1 %v2299_v0  ;;  %v2395_v0 = vld [vmem:[%s3191_s1 + $0x2b0] ss:$8 sps:$4 sm:$0xff]  }
  0x78   :  { %1618 = vmatpush1.bf16.msra.mxu0 %v2302_v1  ;;  %1460 = vmatprep.subr.bf16.mxu1 %v2309_v2  ;;  %v2398_v1 = vld [vmem:[%s3191_s1 + $0x5b0] ss:$8 sps:$4 sm:$0xff]   ;;  %v2403_v2 = vld [vmem:[%s3191_s1 + $0x2c4] ss:$8 sps:$4 sm:$0xff]  }
  0x79   :  { %1619 = vmatprep.subr.bf16.mxu0 %v2314_v3  ;;  %v2406_v3 = vld [vmem:[%s3191_s1 + $0x5c4] ss:$8 sps:$4 sm:$0xff]  }
  0x7b   :  { %1461 = vmatpush1.bf16.msra.mxu1 %v2307_v4  ;;  %v2401_v4 = vld [vmem:[%s3191_s1 + $0x2c0] ss:$8 sps:$4 sm:$0xff]  }
  0x7c   :  { %1620 = vmatpush1.bf16.msra.mxu0 %v2312_v5  ;;  %1462 = vmatprep.subr.bf16.mxu1 %v2319_v6  ;;  %v2404_v5 = vld [vmem:[%s3191_s1 + $0x5c0] ss:$8 sps:$4 sm:$0xff]   ;;  %v2409_v6 = vld [vmem:[%s3191_s1 + $0x2d4] ss:$8 sps:$4 sm:$0xff]  }
  0x7d   :  { %1621 = vmatprep.subr.bf16.mxu0 %v2322_v7  ;;  %v2412_v7 = vld [vmem:[%s3191_s1 + $0x5d4] ss:$8 sps:$4 sm:$0xff]  }
  0x7f   :  { %1463 = vmatpush1.bf16.msra.mxu1 %v2317_v8  ;;  %v2407_v8 = vld [vmem:[%s3191_s1 + $0x2d0] ss:$8 sps:$4 sm:$0xff]  }
  0x80   :  { %1622 = vmatpush1.bf16.msra.mxu0 %v2320_v9  ;;  %1485 = vmatprep.subr.bf16.mxu1 %v2328_v10  ;;  %v2410_v9 = vld [vmem:[%s3191_s1 + $0x5d0] ss:$8 sps:$4 sm:$0xff]   ;;  %v2420_v10 = vld [vmem:[%s3191_s1 + $0x2e4] ss:$8 sps:$4 sm:$0xff]  }
  0x81   :  { %1644 = vmatprep.subr.bf16.mxu0 %v2334_v11  ;;  %v2424_v11 = vld [vmem:[%s3191_s1 + $0x5e4] ss:$8 sps:$4 sm:$0xff]  }
  0x82   :  { %1465 = vmatmul.mubr.bf16.vlgmr.msra.gmra.mrb[0].mxu1 %v2323_v12  ;;  %v2418_v12 = vld [vmem:[%s3191_s1 + $0x2e0] ss:$8 sps:$4 sm:$0xff]  }
  0x83   :  { %1624 = vmatmul.mubr.bf16.vlgmr.msra.gmra.mrb[0].mxu0 %v2329_v14  ;;  %1486 = vmatpush1.bf16.msra.mxu1 %v2326_v13  ;;  %v2422_v13 = vld [vmem:[%s3191_s1 + $0x5e0] ss:$8 sps:$4 sm:$0xff]   ;;  %v2427_v14 = vld [vmem:[%s3191_s1 + $0x2f4] ss:$8 sps:$4 sm:$0xff]  }
  0x84   :  { %1645 = vmatpush1.bf16.msra.mxu0 %v2332_v15  ;;  %1487 = vmatprep.subr.bf16.mxu1 %v2337_v16  ;;  %v2430_v15 = vld [vmem:[%s3191_s1 + $0x5f4] ss:$8 sps:$4 sm:$0xff]   ;;  %v2425_v16 = vld [vmem:[%s3191_s1 + $0x2f0] ss:$8 sps:$4 sm:$0xff]  }
  0x85   :  { %1646 = vmatprep.subr.bf16.mxu0 %v2340_v17  ;;  %1474 = vmatprep.mubr.bf16.mxu1 %v2413_v20  ;;  %v2428_v17 = vld [vmem:[%s3191_s1 + $0x5f0] ss:$8 sps:$4 sm:$0xff]   ;;  %v2434_v20 = vld [vmem:[%s3192_s0 + $0x28] ss:$52 sps:$4 sm:$0xff]  }
  0x86   :  { %1633 = vmatprep.mubr.bf16.mxu0 %v2415_v22  ;;  %v2442_v22 = vld [vmem:[%s3191_s1 + $0x614] ss:$8 sps:$4 sm:$0xff]  }
  0x87   :  { %1488 = vmatpush1.bf16.msra.mxu1 %v2335_v18  ;;  %v2439_v18 = vld [vmem:[%s3191_s1 + $0x604] ss:$8 sps:$4 sm:$0xff]  }
  0x88   :  { %1647 = vmatpush1.bf16.msra.mxu0 %v2338_v19  ;;  %1489 = vmatprep.subr.bf16.mxu1 %v2343_v21  ;;  %v2431_v19 = vld [vmem:[%s3192_s0 + $0x10] ss:$52 sps:$4 sm:$0xff]   ;;  %v2437_v21 = vld [vmem:[%s3191_s1 + $0x600] ss:$8 sps:$4 sm:$0xff]  }
  0x89   :  { %1648 = vmatprep.subr.bf16.mxu0 %v2346_v23  ;;  %v2443_v23 = vld [vmem:[%s3192_s0 + $0x7c] ss:$52 sps:$4 sm:$0xff]  }
  0x8a   :  { %1475 = vmatmul.mubr.bf16.gmra.mrb[4].mxu1 %v2417_v26  ;;  %v2451_v26 = vld [vmem:[%s3191_s1 + $0x624] ss:$8 sps:$4 sm:$0xff]  }
  0x8b   :  { %1634 = vmatmul.mubr.bf16.gmra.mrb[4].mxu0 %v2421_v27  ;;  %1490 = vmatpush1.bf16.msra.mxu1 %v2341_v24  ;;  %v2445_v24 = vld [vmem:[%s3192_s0 + $0x94] ss:$52 sps:$4 sm:$0xff]   ;;  %v2447_v27 = vld [vmem:[%s3192_s0 + $0x78] ss:$52 sps:$4 sm:$0xff]  }
  0x8c   :  { %1649 = vmatpush1.bf16.msra.mxu0 %v2344_v25  ;;  %1491 = vmatprep.subr.bf16.mxu1 %v2349_v28  ;;  %v2440_v25 = vld [vmem:[%s3191_s1 + $0x610] ss:$8 sps:$4 sm:$0xff]  }
  0x8d   :  { %1650 = vmatprep.subr.bf16.mxu0 %v2352_v29  ;;  %1517 = vmatprep.mubr.bf16.mxu1 %v2433_v33  ;;  %v2448_v28 = vld [vmem:[%s3192_s0 + $0x90] ss:$52 sps:$4 sm:$0xff]   ;;  %v2449_v29 = vld [vmem:[%s3191_s1 + $0x620] ss:$8 sps:$4 sm:$0xff]  }
  0x8e   :  { %1676 = vmatprep.mubr.bf16.mxu0 %v2436_v35  ;;  %v2455_v33 = vld [vmem:[%s3192_s0 + $0x30] ss:$52 sps:$4 sm:$0xff]   ;;  %v2458_v35 = vmov 0.0  }
  0x8f   :  { %1492 = vmatpush1.bf16.msra.mxu1 %v2347_v30  ;;  %v2454_v30 = vld [vmem:[%s3191_s1 + $0x634] ss:$8 sps:$4 sm:$0xff]   ;;  %1762 = vst [vmem:[%s3193_s3] sm:$0xf] %v2458_v35 }
  0x90   :  { %1651 = vmatpush1.bf16.msra.mxu0 %v2350_v31  ;;  %1493 = vmatprep.subr.bf16.mxu1 %v2355_v32  ;;  %v2452_v31 = vld [vmem:[%s3191_s1 + $0x630] ss:$8 sps:$4 sm:$0xff]   ;;  %v2457_v32 = vmov 0  }
  0x91   :  { %1652 = vmatprep.subr.bf16.mxu0 %v2358_v34  ;;  %v2456_v34 = vld [vmem:[%s3192_s0 + $0x98] ss:$52 sps:$4 sm:$0xff]  }
  0x93   :  { %1494 = vmatpush1.bf16.msra.mxu1 %v2353_v36 }
  0x94   :  { %1653 = vmatpush1.bf16.msra.mxu0 %v2356_v37  ;;  %1495 = vmatprep.subr.bf16.mxu1 %v2361_v38 }
  0x95   :  { %1654 = vmatprep.subr.bf16.mxu0 %v2364_v39 }
  0x97   :  { %1496 = vmatpush1.bf16.msra.mxu1 %v2359_v40 }
  0x98   :  { %1655 = vmatpush1.bf16.msra.mxu0 %v2362_v41  ;;  %1497 = vmatprep.subr.bf16.mxu1 %v2367_v42 }
  0x99   :  { %1656 = vmatprep.subr.bf16.mxu0 %v2370_v43 }
  0x9b   :  { %1498 = vmatpush1.bf16.msra.mxu1 %v2365_v44 }
  0x9c   :  { %1657 = vmatpush1.bf16.msra.mxu0 %v2368_v45  ;;  %1499 = vmatprep.subr.bf16.mxu1 %v2373_v46 }
  0x9d   :  { %1658 = vmatprep.subr.bf16.mxu0 %v2376_v47 }
  0x9f   :  { %1500 = vmatpush1.bf16.msra.mxu1 %v2371_v48 }
  0xa0   :  { %1659 = vmatpush1.bf16.msra.mxu0 %v2374_v49  ;;  %1501 = vmatprep.subr.bf16.mxu1 %v2379_v50 }
  0xa1   :  { %1660 = vmatprep.subr.bf16.mxu0 %v2382_v51 }
  0xa3   :  { %1502 = vmatpush1.bf16.msra.mxu1 %v2377_v52 }
  0xa4   :  { %1661 = vmatpush1.bf16.msra.mxu0 %v2380_v53  ;;  %1503 = vmatprep.subr.bf16.mxu1 %v2385_v54 }
  0xa5   :  { %1662 = vmatprep.subr.bf16.mxu0 %v2388_v55 }
  0xa7   :  { %1504 = vmatpush1.bf16.msra.mxu1 %v2383_v56 }
  0xa8   :  { %1663 = vmatpush1.bf16.msra.mxu0 %v2386_v57  ;;  %1505 = vmatprep.subr.bf16.mxu1 %v2391_v58 }
  0xa9   :  { %1664 = vmatprep.subr.bf16.mxu0 %v2394_v59 }
  0xab   :  { %1506 = vmatpush1.bf16.msra.mxu1 %v2389_v60 }
  0xac   :  { %1665 = vmatpush1.bf16.msra.mxu0 %v2392_v61  ;;  %1507 = vmatprep.subr.bf16.mxu1 %v2397_v62 }
  0xad   :  { %1666 = vmatprep.subr.bf16.mxu0 %v2400_v63 }
  0xaf   :  { %1508 = vmatpush1.bf16.msra.mxu1 %v2395_v0 }
  0xb0   :  { %1667 = vmatpush1.bf16.msra.mxu0 %v2398_v1  ;;  %1509 = vmatprep.subr.bf16.mxu1 %v2403_v2 }
  0xb1   :  { %1668 = vmatprep.subr.bf16.mxu0 %v2406_v3 }
  0xb3   :  { %1510 = vmatpush1.bf16.msra.mxu1 %v2401_v4 }
  0xb4   :  { %1669 = vmatpush1.bf16.msra.mxu0 %v2404_v5  ;;  %1511 = vmatprep.subr.bf16.mxu1 %v2409_v6 }
  0xb5   :  { %1670 = vmatprep.subr.bf16.mxu0 %v2412_v7 }
  0xb7   :  { %1512 = vmatpush1.bf16.msra.mxu1 %v2407_v8 }
  0xb8   :  { %1671 = vmatpush1.bf16.msra.mxu0 %v2410_v9  ;;  %1513 = vmatprep.subr.bf16.mxu1 %v2420_v10 }
  0xb9   :  { %1672 = vmatprep.subr.bf16.mxu0 %v2424_v11 }
  0xbb   :  { %1514 = vmatpush1.bf16.msra.mxu1 %v2418_v12 }
  0xbc   :  { %1673 = vmatpush1.bf16.msra.mxu0 %v2422_v13  ;;  %1515 = vmatprep.subr.bf16.mxu1 %v2427_v14 }
  0xbd   :  { %1674 = vmatprep.subr.bf16.mxu0 %v2430_v15 }
  0xbf   :  { %1516 = vmatpush1.bf16.msra.mxu1 %v2425_v16 }
  0xc0   :  { %1675 = vmatpush1.bf16.msra.mxu0 %v2428_v17  ;;  %2060 = vmatprep.subr.bf16.mxu1 %v2439_v18 }
  0xc1   :  { %1697 = vmatprep.subr.bf16.mxu0 %v2439_v18 }
  0xc2   :  { %1518 = vmatmul.mubr.bf16.vlgmr.msra.gmra.mrb[0].mxu1 %v2431_v19 }
  0xc3   :  { %1677 = vmatmul.mubr.bf16.vlgmr.msra.gmra.mrb[0].mxu0 %v2434_v20  ;;  %2064 = vmatpush1.bf16.msra.mxu1 %v2437_v21 }
  0xc4   :  { %1698 = vmatpush1.bf16.msra.mxu0 %v2437_v21  ;;  %2061 = vmatprep.subr.bf16.mxu1 %v2442_v22 }
  0xc5   :  { %1699 = vmatprep.subr.bf16.mxu0 %v2442_v22  ;;  %1527 = vmatprep.mubr.bf16.mxu1 %v2443_v23 }
  0xc6   :  { %1686 = vmatprep.mubr.bf16.mxu0 %v2445_v24 }
  0xc7   :  { %2065 = vmatpush1.bf16.msra.mxu1 %v2440_v25 }
  0xc8   :  { %1700 = vmatpush1.bf16.msra.mxu0 %v2440_v25  ;;  %2062 = vmatprep.subr.bf16.mxu1 %v2451_v26 }
  0xc9   :  { %1701 = vmatprep.subr.bf16.mxu0 %v2451_v26 }
  0xca   :  { %1528 = vmatmul.mubr.bf16.gmra.mrb[4].mxu1 %v2447_v27 }
  0xcb   :  { %1687 = vmatmul.mubr.bf16.gmra.mrb[4].mxu0 %v2448_v28  ;;  %2066 = vmatpush1.bf16.msra.mxu1 %v2449_v29 }
  0xcc   :  { %1702 = vmatpush1.bf16.msra.mxu0 %v2449_v29  ;;  %2063 = vmatprep.subr.bf16.mxu1 %v2454_v30 }
  0xcd   :  { %1703 = vmatprep.subr.bf16.mxu0 %v2454_v30  ;;  %1729 = vmatprep.mubr.bf16.mxu0 %v2457_v32 }
  0xce   :  { %1739 = vmatprep.mubr.bf16.mxu1 %v2457_v32 }
  0xcf   :  { %2067 = vmatpush1.bf16.msra.mxu1 %v2452_v31 }
  0xd0   :  { %1704 = vmatpush1.bf16.msra.mxu0 %v2452_v31 }
  0xd2   :  { %2059 = vmatmul.mubr.msk.bf16.vlgmr.msra.gmra.mrb[8].mxu1 %vm1372_vm0, %v2456_v34 }
  0xd3   :  { %2058 = vmatmul.mubr.msk.bf16.vlgmr.msra.gmra.mrb[0].mxu0 %vm1372_vm0, %v2455_v33 }
 0x195   :  { %v1519_v36 = vpop.f32.mrb[0].mxu1 }
 0x196   :  { %v1521_v37 = vpop.f32.mrb[1].mxu1 }
 0x197   :  { %v1523_v38 = vpop.f32.mrb[2].mxu1 }
 0x198   :  { %v1525_v39 = vpop.f32.mrb[3].mxu1 }
 0x19d   :  { %v1529_v40 = vpop.f32.mrb[4].mxu1 }
 0x19e   :  { %v1688_v41 = vpop.f32.mrb[4].mxu0  ;;  %v1531_v43 = vpop.f32.mrb[5].mxu1 }
 0x19f   :  { %v2072_v42 = vadd.f32 %v1688_v41, %v1529_v40  ;;  %v1690_v44 = vpop.f32.mrb[5].mxu0  ;;  %v1533_v46 = vpop.f32.mrb[6].mxu1 }
 0x1a0   :  { %v2074_v45 = vadd.f32 %v1690_v44, %v1531_v43  ;;  %v1692_v47 = vpop.f32.mrb[6].mxu0  ;;  %v1535_v49 = vpop.f32.mrb[7].mxu1 }
 0x1a1   :  { %v2076_v48 = vadd.f32 %v1692_v47, %v1533_v46  ;;  %v1694_v50 = vpop.f32.mrb[7].mxu0 }
 0x1a2   :  { %v2078_v51 = vadd.f32 %v1694_v50, %v1535_v49 }
 0x1a5   :  { %v1741_v53 = vpop.f32.mrb[8].mxu1 }
 0x1a6   :  { %v1731_v52 = vpop.f32.mrb[0].mxu0  ;;  %v2073_v55 = vadd.f32 %v2072_v42, %v1741_v53  ;;  %v1743_v57 = vpop.f32.mrb[9].mxu1 }
 0x1a7   :  { %v2068_v54 = vadd.f32 %v1731_v52, %v1519_v36  ;;  %v1733_v56 = vpop.f32.mrb[1].mxu0  ;;  %v2075_v59 = vadd.f32 %v2074_v45, %v1743_v57  ;;  %v1745_v61 = vpop.f32.mrb[10].mxu1  ;;  %v2459_v36 = vmov 1983009808   ;;  %v1810_v57 = vld [vmem:[%s3193_s3] sm:$0xf] }
 0x1a8   :  { %v2069_v58 = vadd.f32 %v1733_v56, %v1521_v37  ;;  %v1735_v60 = vpop.f32.mrb[2].mxu0  ;;  %1754 = vst [vmem:[%s3194_s2 + $0x20] sm:$0xff] %v2073_v55  ;;  %v2077_v63 = vadd.f32 %v2076_v48, %v1745_v61  ;;  %v1747_v1 = vpop.f32.mrb[11].mxu1  ;;  %v1785_v10 = vmul.f32 %v2073_v55, %v2073_v55  ;;  %v1815_v37 = vunpack.c.l.s4 %v2459_v36 }
 0x1a9   :  { %1750 = vst [vmem:[%s3194_s2] sm:$0xff] %v2068_v54  ;;  %v2070_v62 = vadd.f32 %v1735_v60, %v1523_v38  ;;  %v1737_v0 = vpop.f32.mrb[3].mxu0  ;;  %1755 = vst [vmem:[%s3194_s2 + $0x28] sm:$0xff] %v2075_v59  ;;  %v2079_v3 = vadd.f32 %v2078_v51, %v1747_v1  ;;  %v1781_v4 = vmul.f32 %v2068_v54, %v2068_v54  ;;  %v1817_v38 = vlaneseq }
 0x1aa   :  { %1751 = vst [vmem:[%s3194_s2 + $0x8] sm:$0xff] %v2069_v58  ;;  %v2071_v2 = vadd.f32 %v1737_v0, %v1525_v39  ;;  %1756 = vst [vmem:[%s3194_s2 + $0x30] sm:$0xff] %v2077_v63  ;;  %v1782_v7 = vmul.f32 %v2069_v58, %v2069_v58  ;;  %v1786_v13 = vmul.f32 %v2075_v59, %v2075_v59  ;;  %v1816_v46 = vunpack.c.0.s8 %v1815_v37 }
 0x1ab   :  { %1752 = vst [vmem:[%s3194_s2 + $0x10] sm:$0xff] %v2070_v62  ;;  %v1763_v5 = vadd.f32 %v2070_v62, %v2068_v54  ;;  %v1783_v6 = vmul.f32 %v2070_v62, %v2070_v62  ;;  %1757 = vst [vmem:[%s3194_s2 + $0x38] sm:$0xff] %v2079_v3  ;;  %v1787_v17 = vmul.f32 %v2077_v63, %v2077_v63  ;;  %v1818_v47 = vshrl.u32 %v1817_v38, 7 }
 0x1ac   :  { %1753 = vst [vmem:[%s3194_s2 + $0x18] sm:$0xff] %v2071_v2  ;;  %v1772_v8 = vadd.f32 %v2071_v2, %v2069_v58  ;;  %v1784_v9 = vmul.f32 %v2071_v2, %v2071_v2  ;;  %v1788_v20 = vmul.f32 %v2079_v3, %v2079_v3 }
 0x1ad   :  { %v1789_v11 = vadd.f32 %v1783_v6, %v1781_v4  ;;  %v1764_v12 = vadd.f32 %v2073_v55, %v1763_v5  ;;  %v1819_v54 = vsub.s32 %v1816_v46, %v1818_v47 }
 0x1ae   :  { %v1798_v14 = vadd.f32 %v1784_v9, %v1782_v7  ;;  %v1773_v15 = vadd.f32 %v2075_v59, %v1772_v8 }
 0x1af   :  { %v1765_v16 = vadd.f32 %v2077_v63, %v1764_v12  ;;  %v1790_v18 = vadd.f32 %v1789_v11, %v1785_v10 }
 0x1b0   :  { %v1774_v19 = vadd.f32 %v2079_v3, %v1773_v15  ;;  %v1799_v21 = vadd.f32 %v1798_v14, %v1786_v13 }
 0x1b1   :  { %v1766_v22 = vrot.slane %v1765_v16, 4  ;;  %v1791_v23 = vadd.f32 %v1790_v18, %v1787_v17 }
 0x1b2   :  { %v1775_v24 = vrot.slane %v1774_v19, 4  ;;  %v1800_v25 = vadd.f32 %v1799_v21, %v1788_v20 }
 0x1b3   :  { %v1767_v26 = vadd.f32 %v1766_v22, %v1765_v16  ;;  %v1792_v27 = vrot.slane %v1791_v23, 4 }
 0x1b4   :  { %v1776_v28 = vadd.f32 %v1775_v24, %v1774_v19  ;;  %v1801_v29 = vrot.slane %v1800_v25, 4 }
 0x1b5   :  { %v1768_v30 = vrot.slane %v1767_v26, 2  ;;  %v1793_v31 = vadd.f32 %v1792_v27, %v1791_v23 }
 0x1b6   :  { %v1777_v32 = vrot.slane %v1776_v28, 2  ;;  %v1802_v33 = vadd.f32 %v1801_v29, %v1800_v25 }
 0x1b7   :  { %v1769_v34 = vadd.f32 %v1768_v30, %v1767_v26  ;;  %v1794_v35 = vrot.slane %v1793_v31, 2 }
 0x1b8   :  { %v1778_v39 = vadd.f32 %v1777_v32, %v1776_v28  ;;  %v1803_v40 = vrot.slane %v1802_v33, 2 }
 0x1b9   :  { %v1770_v41 = vrot.slane %v1769_v34, 1  ;;  %v1795_v42 = vadd.f32 %v1794_v35, %v1793_v31 }
 0x1ba   :  { %v1779_v43 = vrot.slane %v1778_v39, 1  ;;  %v1804_v44 = vadd.f32 %v1803_v40, %v1802_v33 }
 0x1bb   :  { %v1796_v45 = vrot.slane %v1795_v42, 1  ;;  %v1771_v49 = vadd.f32 %v1770_v41, %v1769_v34 }
 0x1bc   :  { %v1805_v48 = vrot.slane %v1804_v44, 1  ;;  %v1780_v51 = vadd.f32 %v1779_v43, %v1778_v39 }
 0x1bd   :  { %v1797_v50 = vadd.f32 %v1796_v45, %v1795_v42 }
 0x1be   :  { %v1806_v52 = vadd.f32 %v1805_v48, %v1804_v44 }
 0x1bf   :  { %v1808_v53 = vsel %vm1807_vm1, %v1771_v49, %v1797_v50 }
 0x1c0   :  { %v1809_v55 = vsel %vm1807_vm1, %v1780_v51, %v1806_v52 }
 0x1c1   :  { %v1813_v56 = vcombine.low %v1808_v53, %v1809_v55 }
 0x1c3   :  { %v1820_v58 = vrot.slane %v1813_v56, %v1819_v54 }
 0x1c5   :  { %v1822_v59 = vadd.f32 %v1820_v58, %v1810_v57 }
 0x1c7   :  { %1823 = vst [vmem:[%s3193_s3] sm:$0xf] %v1822_v59 }

// kernel: _lambda_.75
= control target key start
LH: loop header
LB: loop body
LE: loop exit
PB: predicated region body
PF: predicated region fallthrough
CT: control target
= control target key end

     0   :  { %vm748_vm0 = vcmask 785408   ;;  %vm1024_vm1 = vcmask 1040384   ;;  %s1806_s1 = inlined_call_operand.vmem [shape: bf16[864,256], index: 1, kind: input, shape index: {}]   ;;  %s1807_s0 = inlined_call_operand.vmem [shape: bf16[32,864], index: 0, kind: input, shape index: {}]   ;;  %s1808_s3 = inlined_call_operand.vmem [shape: f32[2,256], index: 3, kind: output, shape index: {1}]   ;;  %s1809_s2 = inlined_call_operand.vmem [shape: f32[32,256], index: 2, kind: output, shape index: {0}]  }
   0x1   :  { %v1200_v0 = vld [vmem:[%s1806_s1 + $0x4] ss:$8 sps:$4 sm:$0xff]   ;;  %v1202_v1 = vld [vmem:[%s1806_s1] ss:$8 sps:$4 sm:$0xff]   ;;  %v1203_v2 = vld [vmem:[%s1806_s1 + $0x14] ss:$8 sps:$4 sm:$0xff]  }
   0x2   :  { %755 = vmatprep.subr.bf16.mxu1 %v1200_v0  ;;  %v1205_v3 = vld [vmem:[%s1806_s1 + $0x10] ss:$8 sps:$4 sm:$0xff]   ;;  %v1206_v4 = vld [vmem:[%s1806_s1 + $0x24] ss:$8 sps:$4 sm:$0xff]   ;;  %v1214_v6 = vld [vmem:[%s1806_s1 + $0x200] ss:$8 sps:$4 sm:$0xff]  }
   0x3   :  { %756 = vmatpush1.bf16.msra.mxu1 %v1202_v1  ;;  %v1212_v5 = vld [vmem:[%s1806_s1 + $0x204] ss:$8 sps:$4 sm:$0xff]   ;;  %v1208_v7 = vld [vmem:[%s1806_s1 + $0x20] ss:$8 sps:$4 sm:$0xff]   ;;  %v1209_v8 = vld [vmem:[%s1806_s1 + $0x34] ss:$8 sps:$4 sm:$0xff]  }
   0x4   :  { %757 = vmatprep.subr.bf16.mxu1 %v1203_v2  ;;  %861 = vmatprep.subr.bf16.mxu0 %v1212_v5  ;;  %v1218_v9 = vld [vmem:[%s1806_s1 + $0x214] ss:$8 sps:$4 sm:$0xff]   ;;  %v1220_v10 = vld [vmem:[%s1806_s1 + $0x210] ss:$8 sps:$4 sm:$0xff]   ;;  %v1224_v12 = vld [vmem:[%s1806_s1 + $0x224] ss:$8 sps:$4 sm:$0xff]  }
   0x5   :  { %862 = vmatpush1.bf16.msra.mxu0 %v1214_v6  ;;  %v1211_v11 = vld [vmem:[%s1806_s1 + $0x30] ss:$8 sps:$4 sm:$0xff]   ;;  %v1215_v13 = vld [vmem:[%s1806_s1 + $0x44] ss:$8 sps:$4 sm:$0xff]   ;;  %v1226_v14 = vld [vmem:[%s1806_s1 + $0x220] ss:$8 sps:$4 sm:$0xff]  }
   0x6   :  { %863 = vmatprep.subr.bf16.mxu0 %v1218_v9  ;;  %v1230_v15 = vld [vmem:[%s1806_s1 + $0x234] ss:$8 sps:$4 sm:$0xff]   ;;  %v1217_v16 = vld [vmem:[%s1806_s1 + $0x40] ss:$8 sps:$4 sm:$0xff]   ;;  %v1232_v18 = vld [vmem:[%s1806_s1 + $0x230] ss:$8 sps:$4 sm:$0xff]  }
   0x7   :  { %758 = vmatpush1.bf16.msra.mxu1 %v1205_v3  ;;  %v1221_v17 = vld [vmem:[%s1806_s1 + $0x54] ss:$8 sps:$4 sm:$0xff]   ;;  %v1236_v19 = vld [vmem:[%s1806_s1 + $0x244] ss:$8 sps:$4 sm:$0xff]   ;;  %v1223_v20 = vld [vmem:[%s1806_s1 + $0x50] ss:$8 sps:$4 sm:$0xff]  }
   0x8   :  { %759 = vmatprep.subr.bf16.mxu1 %v1206_v4  ;;  %v1227_v21 = vld [vmem:[%s1806_s1 + $0x64] ss:$8 sps:$4 sm:$0xff]   ;;  %v1238_v22 = vld [vmem:[%s1806_s1 + $0x240] ss:$8 sps:$4 sm:$0xff]   ;;  %v1242_v23 = vld [vmem:[%s1806_s1 + $0x254] ss:$8 sps:$4 sm:$0xff]  }
   0x9   :  { %864 = vmatpush1.bf16.msra.mxu0 %v1220_v10  ;;  %v1229_v24 = vld [vmem:[%s1806_s1 + $0x60] ss:$8 sps:$4 sm:$0xff]   ;;  %v1233_v25 = vld [vmem:[%s1806_s1 + $0x74] ss:$8 sps:$4 sm:$0xff]   ;;  %v1244_v26 = vld [vmem:[%s1806_s1 + $0x250] ss:$8 sps:$4 sm:$0xff]  }
   0xa   :  { %865 = vmatprep.subr.bf16.mxu0 %v1224_v12  ;;  %v1248_v27 = vld [vmem:[%s1806_s1 + $0x264] ss:$8 sps:$4 sm:$0xff]   ;;  %v1235_v28 = vld [vmem:[%s1806_s1 + $0x70] ss:$8 sps:$4 sm:$0xff]   ;;  %v1250_v30 = vld [vmem:[%s1806_s1 + $0x260] ss:$8 sps:$4 sm:$0xff]  }
   0xb   :  { %760 = vmatpush1.bf16.msra.mxu1 %v1208_v7  ;;  %v1239_v29 = vld [vmem:[%s1806_s1 + $0x84] ss:$8 sps:$4 sm:$0xff]   ;;  %v1254_v31 = vld [vmem:[%s1806_s1 + $0x274] ss:$8 sps:$4 sm:$0xff]   ;;  %v1241_v32 = vld [vmem:[%s1806_s1 + $0x80] ss:$8 sps:$4 sm:$0xff]  }
   0xc   :  { %761 = vmatprep.subr.bf16.mxu1 %v1209_v8  ;;  %v1245_v33 = vld [vmem:[%s1806_s1 + $0x94] ss:$8 sps:$4 sm:$0xff]   ;;  %v1256_v34 = vld [vmem:[%s1806_s1 + $0x270] ss:$8 sps:$4 sm:$0xff]   ;;  %v1260_v35 = vld [vmem:[%s1806_s1 + $0x284] ss:$8 sps:$4 sm:$0xff]  }
   0xd   :  { %866 = vmatpush1.bf16.msra.mxu0 %v1226_v14  ;;  %v1247_v36 = vld [vmem:[%s1806_s1 + $0x90] ss:$8 sps:$4 sm:$0xff]   ;;  %v1251_v37 = vld [vmem:[%s1806_s1 + $0xa4] ss:$8 sps:$4 sm:$0xff]   ;;  %v1262_v38 = vld [vmem:[%s1806_s1 + $0x280] ss:$8 sps:$4 sm:$0xff]  }
   0xe   :  { %867 = vmatprep.subr.bf16.mxu0 %v1230_v15  ;;  %v1266_v39 = vld [vmem:[%s1806_s1 + $0x294] ss:$8 sps:$4 sm:$0xff]   ;;  %v1253_v40 = vld [vmem:[%s1806_s1 + $0xa0] ss:$8 sps:$4 sm:$0xff]   ;;  %v1268_v43 = vld [vmem:[%s1806_s1 + $0x290] ss:$8 sps:$4 sm:$0xff]  }
   0xf   :  { %762 = vmatpush1.bf16.msra.mxu1 %v1211_v11  ;;  %v1289_v41 = vld [vmem:[%s1807_s0 + $0x4] ss:$28 sps:$4 sm:$0xff]   ;;  %v1257_v42 = vld [vmem:[%s1806_s1 + $0xb4] ss:$8 sps:$4 sm:$0xff]   ;;  %v1259_v45 = vld [vmem:[%s1806_s1 + $0xb0] ss:$8 sps:$4 sm:$0xff]  }
  0x10   :  { %763 = vmatprep.subr.bf16.mxu1 %v1215_v13  ;;  %787 = vmatprep.mubr.bf16.mxu1 %v1289_v41  ;;  %v1272_v44 = vld [vmem:[%s1806_s1 + $0x2a4] ss:$8 sps:$4 sm:$0xff]   ;;  %v1274_v47 = vld [vmem:[%s1806_s1 + $0x2a0] ss:$8 sps:$4 sm:$0xff]   ;;  %v1278_v48 = vld [vmem:[%s1806_s1 + $0x2b4] ss:$8 sps:$4 sm:$0xff]  }
  0x11   :  { %868 = vmatpush1.bf16.msra.mxu0 %v1232_v18  ;;  %v1263_v46 = vld [vmem:[%s1806_s1 + $0xc4] ss:$8 sps:$4 sm:$0xff]   ;;  %v1265_v49 = vld [vmem:[%s1806_s1 + $0xc0] ss:$8 sps:$4 sm:$0xff]   ;;  %v1269_v50 = vld [vmem:[%s1806_s1 + $0xd4] ss:$8 sps:$4 sm:$0xff]  }
  0x12   :  { %869 = vmatprep.subr.bf16.mxu0 %v1236_v19  ;;  %v1280_v51 = vld [vmem:[%s1806_s1 + $0x2b0] ss:$8 sps:$4 sm:$0xff]   ;;  %v1284_v52 = vld [vmem:[%s1806_s1 + $0x2c4] ss:$8 sps:$4 sm:$0xff]   ;;  %v1286_v56 = vld [vmem:[%s1806_s1 + $0x2c0] ss:$8 sps:$4 sm:$0xff]  }
  0x13   :  { %764 = vmatpush1.bf16.msra.mxu1 %v1217_v16  ;;  %v1313_v53 = vld [vmem:[%s1807_s0 + $0x14] ss:$28 sps:$4 sm:$0xff]   ;;  %v1275_v55 = vld [vmem:[%s1806_s1 + $0xe4] ss:$8 sps:$4 sm:$0xff]   ;;  %v1277_v58 = vld [vmem:[%s1806_s1 + $0xe0] ss:$8 sps:$4 sm:$0xff]  }
  0x14   :  { %765 = vmatprep.subr.bf16.mxu1 %v1221_v17  ;;  %v1271_v54 = vld [vmem:[%s1806_s1 + $0xd0] ss:$8 sps:$4 sm:$0xff]   ;;  %893 = vmatprep.mubr.bf16.mxu0 %v1313_v53  ;;  %v1293_v57 = vld [vmem:[%s1806_s1 + $0x2d4] ss:$8 sps:$4 sm:$0xff]   ;;  %v1299_v61 = vld [vmem:[%s1806_s1 + $0x2e4] ss:$8 sps:$4 sm:$0xff]  }
  0x15   :  { %870 = vmatpush1.bf16.msra.mxu0 %v1238_v22  ;;  %v1281_v59 = vld [vmem:[%s1806_s1 + $0xf4] ss:$8 sps:$4 sm:$0xff]   ;;  %v1295_v60 = vld [vmem:[%s1806_s1 + $0x2d0] ss:$8 sps:$4 sm:$0xff]   ;;  %v1292_v63 = vld [vmem:[%s1806_s1 + $0x104] ss:$8 sps:$4 sm:$0xff]  }
  0x16   :  { %871 = vmatprep.subr.bf16.mxu0 %v1242_v23  ;;  %v1283_v62 = vld [vmem:[%s1806_s1 + $0xf0] ss:$8 sps:$4 sm:$0xff]   ;;  %v1301_v0 = vld [vmem:[%s1806_s1 + $0x2e0] ss:$8 sps:$4 sm:$0xff]   ;;  %v1305_v2 = vld [vmem:[%s1806_s1 + $0x2f4] ss:$8 sps:$4 sm:$0xff]  }
  0x17   :  { %766 = vmatpush1.bf16.msra.mxu1 %v1223_v20  ;;  %v1287_v1 = vld [vmem:[%s1807_s0] ss:$28 sps:$4 sm:$0xff]   ;;  %v1307_v5 = vld [vmem:[%s1806_s1 + $0x2f0] ss:$8 sps:$4 sm:$0xff]   ;;  %v1316_v7 = vld [vmem:[%s1806_s1 + $0x304] ss:$8 sps:$4 sm:$0xff]  }
  0x18   :  { %767 = vmatprep.subr.bf16.mxu1 %v1227_v21  ;;  %v1290_v3 = vld [vmem:[%s1806_s1 + $0x100] ss:$8 sps:$4 sm:$0xff]   ;;  %v1298_v4 = vld [vmem:[%s1806_s1 + $0x114] ss:$8 sps:$4 sm:$0xff]   ;;  %v1296_v6 = vld [vmem:[%s1806_s1 + $0x110] ss:$8 sps:$4 sm:$0xff]  }
  0x19   :  { %872 = vmatpush1.bf16.msra.mxu0 %v1244_v26  ;;  %v1304_v8 = vld [vmem:[%s1806_s1 + $0x124] ss:$8 sps:$4 sm:$0xff]   ;;  %v1314_v10 = vld [vmem:[%s1806_s1 + $0x300] ss:$8 sps:$4 sm:$0xff]   ;;  %v1322_v12 = vld [vmem:[%s1806_s1 + $0x314] ss:$8 sps:$4 sm:$0xff]  }
  0x1a   :  { %873 = vmatprep.subr.bf16.mxu0 %v1248_v27  ;;  %v1311_v9 = vld [vmem:[%s1807_s0 + $0x10] ss:$28 sps:$4 sm:$0xff]   ;;  %v1302_v13 = vld [vmem:[%s1806_s1 + $0x120] ss:$8 sps:$4 sm:$0xff]   ;;  %v1310_v14 = vld [vmem:[%s1806_s1 + $0x134] ss:$8 sps:$4 sm:$0xff]  }
  0x1b   :  { %768 = vmatpush1.bf16.msra.mxu1 %v1229_v24  ;;  %v1338_v11 = vld [vmem:[%s1807_s0 + $0x4c] ss:$28 sps:$4 sm:$0xff]   ;;  %v1308_v15 = vld [vmem:[%s1806_s1 + $0x130] ss:$8 sps:$4 sm:$0xff]   ;;  %v1334_v22 = vld [vmem:[%s1806_s1 + $0x334] ss:$8 sps:$4 sm:$0xff]  }
  0x1c   :  { %769 = vmatprep.subr.bf16.mxu1 %v1233_v25  ;;  %v1320_v16 = vld [vmem:[%s1806_s1 + $0x310] ss:$8 sps:$4 sm:$0xff]   ;;  %v1328_v17 = vld [vmem:[%s1806_s1 + $0x324] ss:$8 sps:$4 sm:$0xff]   ;;  %v1326_v21 = vld [vmem:[%s1806_s1 + $0x320] ss:$8 sps:$4 sm:$0xff]  }
  0x1d   :  { %874 = vmatpush1.bf16.msra.mxu0 %v1250_v30  ;;  %v1319_v18 = vld [vmem:[%s1806_s1 + $0x144] ss:$8 sps:$4 sm:$0xff]   ;;  %v1367_v20 = vld [vmem:[%s1807_s0 + $0x3c] ss:$28 sps:$4 sm:$0xff]   ;;  %v1317_v24 = vld [vmem:[%s1806_s1 + $0x140] ss:$8 sps:$4 sm:$0xff]  }
  0x1e   :  { %875 = vmatprep.subr.bf16.mxu0 %v1254_v31  ;;  %v1340_v19 = vld [vmem:[%s1807_s0 + $0x48] ss:$28 sps:$4 sm:$0xff]   ;;  %v1369_v23 = vld [vmem:[%s1807_s0 + $0x38] ss:$28 sps:$4 sm:$0xff]  }
  0x1f   :  { %770 = vmatpush1.bf16.msra.mxu1 %v1235_v28  ;;  %v1325_v25 = vld [vmem:[%s1806_s1 + $0x154] ss:$8 sps:$4 sm:$0xff]   ;;  %v1378_v26 = vld [vmem:[%s1807_s0 + $0xc] ss:$28 sps:$4 sm:$0xff]   ;;  %v1332_v27 = vld [vmem:[%s1806_s1 + $0x330] ss:$8 sps:$4 sm:$0xff]  }
  0x20   :  { %771 = vmatprep.subr.bf16.mxu1 %v1239_v29  ;;  %v1382_v28 = vmov 0   ;;  %v1343_v29 = vld [vmem:[%s1806_s1 + $0x344] ss:$8 sps:$4 sm:$0xff]   ;;  %v1323_v30 = vld [vmem:[%s1806_s1 + $0x150] ss:$8 sps:$4 sm:$0xff]  }
  0x21   :  { %876 = vmatpush1.bf16.msra.mxu0 %v1256_v34  ;;  %v1331_v31 = vld [vmem:[%s1806_s1 + $0x164] ss:$8 sps:$4 sm:$0xff]   ;;  %v1329_v34 = vld [vmem:[%s1806_s1 + $0x160] ss:$8 sps:$4 sm:$0xff]   ;;  %v1352_v41 = vld [vmem:[%s1806_s1 + $0x194] ss:$8 sps:$4 sm:$0xff]  }
  0x22   :  { %877 = vmatprep.subr.bf16.mxu0 %v1260_v35  ;;  %v1337_v35 = vld [vmem:[%s1806_s1 + $0x174] ss:$8 sps:$4 sm:$0xff]   ;;  %v1370_v53 = vld [vmem:[%s1806_s1 + $0x1e0] ss:$8 sps:$4 sm:$0xff]  }
  0x23   :  { %772 = vmatpush1.bf16.msra.mxu1 %v1241_v32  ;;  %v1341_v32 = vld [vmem:[%s1806_s1 + $0x340] ss:$8 sps:$4 sm:$0xff]  }
  0x24   :  { %773 = vmatprep.subr.bf16.mxu1 %v1245_v33  ;;  %v1349_v33 = vld [vmem:[%s1806_s1 + $0x354] ss:$8 sps:$4 sm:$0xff]  }
  0x25   :  { %878 = vmatpush1.bf16.msra.mxu0 %v1262_v38  ;;  %v1346_v38 = vld [vmem:[%s1806_s1 + $0x184] ss:$8 sps:$4 sm:$0xff]  }
  0x26   :  { %879 = vmatprep.subr.bf16.mxu0 %v1266_v39  ;;  %v1353_v39 = vld [vmem:[%s1807_s0 + $0x18] ss:$28 sps:$4 sm:$0xff]  }
  0x27   :  { %774 = vmatpush1.bf16.msra.mxu1 %v1247_v36  ;;  %v1347_v36 = vld [vmem:[%s1806_s1 + $0x350] ss:$8 sps:$4 sm:$0xff]  }
  0x28   :  { %775 = vmatprep.subr.bf16.mxu1 %v1251_v37  ;;  %v1335_v37 = vld [vmem:[%s1806_s1 + $0x170] ss:$8 sps:$4 sm:$0xff]  }
  0x29   :  { %880 = vmatpush1.bf16.msra.mxu0 %v1268_v43  ;;  %v1356_v43 = vld [vmem:[%s1806_s1 + $0x1a4] ss:$8 sps:$4 sm:$0xff]  }
  0x2a   :  { %881 = vmatprep.subr.bf16.mxu0 %v1272_v44  ;;  %v1366_v44 = vld [vmem:[%s1807_s0 + $0x50] ss:$28 sps:$4 sm:$0xff]  }
  0x2b   :  { %776 = vmatpush1.bf16.msra.mxu1 %v1253_v40  ;;  %v1344_v40 = vld [vmem:[%s1806_s1 + $0x180] ss:$8 sps:$4 sm:$0xff]  }
  0x2c   :  { %777 = vmatprep.subr.bf16.mxu1 %v1257_v42  ;;  %v1350_v42 = vld [vmem:[%s1806_s1 + $0x190] ss:$8 sps:$4 sm:$0xff]  }
  0x2d   :  { %882 = vmatpush1.bf16.msra.mxu0 %v1274_v47  ;;  %v1357_v47 = vld [vmem:[%s1806_s1 + $0x1b0] ss:$8 sps:$4 sm:$0xff]  }
  0x2e   :  { %883 = vmatprep.subr.bf16.mxu0 %v1278_v48  ;;  %v1362_v48 = vld [vmem:[%s1806_s1 + $0x1c4] ss:$8 sps:$4 sm:$0xff]  }
  0x2f   :  { %778 = vmatpush1.bf16.msra.mxu1 %v1259_v45  ;;  %v1354_v45 = vld [vmem:[%s1806_s1 + $0x1a0] ss:$8 sps:$4 sm:$0xff]  }
  0x30   :  { %779 = vmatprep.subr.bf16.mxu1 %v1263_v46  ;;  %v1359_v46 = vld [vmem:[%s1806_s1 + $0x1b4] ss:$8 sps:$4 sm:$0xff]  }
  0x31   :  { %884 = vmatpush1.bf16.msra.mxu0 %v1280_v51  ;;  %v1363_v51 = vld [vmem:[%s1806_s1 + $0x1d0] ss:$8 sps:$4 sm:$0xff]  }
  0x32   :  { %885 = vmatprep.subr.bf16.mxu0 %v1284_v52  ;;  %v1372_v52 = vld [vmem:[%s1806_s1 + $0x1e4] ss:$8 sps:$4 sm:$0xff]  }
  0x33   :  { %780 = vmatpush1.bf16.msra.mxu1 %v1265_v49  ;;  %v1360_v49 = vld [vmem:[%s1806_s1 + $0x1c0] ss:$8 sps:$4 sm:$0xff]  }
  0x34   :  { %781 = vmatprep.subr.bf16.mxu1 %v1269_v50  ;;  %v1365_v50 = vld [vmem:[%s1806_s1 + $0x1d4] ss:$8 sps:$4 sm:$0xff]  }
  0x35   :  { %886 = vmatpush1.bf16.msra.mxu0 %v1286_v56  ;;  %v1376_v56 = vld [vmem:[%s1807_s0 + $0x8] ss:$28 sps:$4 sm:$0xff]  }
  0x36   :  { %887 = vmatprep.subr.bf16.mxu0 %v1293_v57  ;;  %v1379_v57 = vld [vmem:[%s1807_s0 + $0x44] ss:$28 sps:$4 sm:$0xff]  }
  0x37   :  { %782 = vmatpush1.bf16.msra.mxu1 %v1271_v54  ;;  %v1375_v54 = vld [vmem:[%s1806_s1 + $0x1f4] ss:$8 sps:$4 sm:$0xff]  }
  0x38   :  { %783 = vmatprep.subr.bf16.mxu1 %v1275_v55  ;;  %v1373_v55 = vld [vmem:[%s1806_s1 + $0x1f0] ss:$8 sps:$4 sm:$0xff]  }
  0x39   :  { %888 = vmatpush1.bf16.msra.mxu0 %v1295_v60 }
  0x3a   :  { %889 = vmatprep.subr.bf16.mxu0 %v1299_v61 }
  0x3b   :  { %784 = vmatpush1.bf16.msra.mxu1 %v1277_v58  ;;  %v1381_v58 = vld [vmem:[%s1807_s0 + $0x40] ss:$28 sps:$4 sm:$0xff]  }
  0x3c   :  { %785 = vmatprep.subr.bf16.mxu1 %v1281_v59  ;;  %v1383_v59 = vmov 0.0  }
  0x3d   :  { %890 = vmatpush1.bf16.msra.mxu0 %v1301_v0  ;;  %979 = vst [vmem:[%s1808_s3] sm:$0xf] %v1383_v59 }
  0x3e   :  { %891 = vmatprep.subr.bf16.mxu0 %v1305_v2 }
  0x3f   :  { %786 = vmatpush1.bf16.msra.mxu1 %v1283_v62 }
  0x40   :  { %808 = vmatprep.subr.bf16.mxu1 %v1292_v63 }
  0x41   :  { %892 = vmatpush1.bf16.msra.mxu0 %v1307_v5 }
  0x42   :  { %788 = vmatmul.mubr.bf16.vlgmr.msra.gmra.mrb[0].mxu1 %v1287_v1  ;;  %914 = vmatprep.subr.bf16.mxu0 %v1316_v7 }
  0x43   :  { %809 = vmatpush1.bf16.msra.mxu1 %v1290_v3  ;;  %797 = vmatprep.mubr.bf16.mxu1 %v1367_v20 }
  0x44   :  { %810 = vmatprep.subr.bf16.mxu1 %v1298_v4  ;;  %894 = vmatmul.mubr.bf16.vlgmr.msra.gmra.mrb[0].mxu0 %v1311_v9 }
  0x45   :  { %915 = vmatpush1.bf16.msra.mxu0 %v1314_v10  ;;  %903 = vmatprep.mubr.bf16.mxu0 %v1338_v11 }
  0x46   :  { %916 = vmatprep.subr.bf16.mxu0 %v1322_v12 }
  0x47   :  { %811 = vmatpush1.bf16.msra.mxu1 %v1296_v6 }
  0x48   :  { %812 = vmatprep.subr.bf16.mxu1 %v1304_v8 }
  0x49   :  { %917 = vmatpush1.bf16.msra.mxu0 %v1320_v16 }
  0x4a   :  { %918 = vmatprep.subr.bf16.mxu0 %v1328_v17  ;;  %798 = vmatmul.mubr.bf16.gmra.mrb[4].mxu1 %v1369_v23 }
  0x4b   :  { %813 = vmatpush1.bf16.msra.mxu1 %v1302_v13  ;;  %840 = vmatprep.mubr.bf16.mxu1 %v1378_v26 }
  0x4c   :  { %814 = vmatprep.subr.bf16.mxu1 %v1310_v14  ;;  %904 = vmatmul.mubr.bf16.gmra.mrb[4].mxu0 %v1340_v19 }
  0x4d   :  { %919 = vmatpush1.bf16.msra.mxu0 %v1326_v21  ;;  %946 = vmatprep.mubr.bf16.mxu0 %v1382_v28 }
  0x4e   :  { %920 = vmatprep.subr.bf16.mxu0 %v1334_v22 }
  0x4f   :  { %815 = vmatpush1.bf16.msra.mxu1 %v1308_v15 }
  0x50   :  { %816 = vmatprep.subr.bf16.mxu1 %v1319_v18 }
  0x51   :  { %921 = vmatpush1.bf16.msra.mxu0 %v1332_v27 }
  0x52   :  { %922 = vmatprep.subr.bf16.mxu0 %v1343_v29 }
  0x53   :  { %817 = vmatpush1.bf16.msra.mxu1 %v1317_v24 }
  0x54   :  { %818 = vmatprep.subr.bf16.mxu1 %v1325_v25 }
  0x55   :  { %923 = vmatpush1.bf16.msra.mxu0 %v1341_v32 }
  0x56   :  { %924 = vmatprep.subr.bf16.mxu0 %v1349_v33 }
  0x57   :  { %819 = vmatpush1.bf16.msra.mxu1 %v1323_v30 }
  0x58   :  { %820 = vmatprep.subr.bf16.mxu1 %v1331_v31 }
  0x59   :  { %925 = vmatpush1.bf16.msra.mxu0 %v1347_v36 }
  0x5b   :  { %821 = vmatpush1.bf16.msra.mxu1 %v1329_v34 }
  0x5c   :  { %822 = vmatprep.subr.bf16.mxu1 %v1337_v35  ;;  %1171 = vmatmul.mubr.msk.bf16.vlgmr.msra.gmra.mrb[0].mxu0 %vm748_vm0, %v1353_v39 }
  0x5d   :  { %956 = vmatprep.mubr.bf16.mxu0 %v1382_v28 }
  0x5f   :  { %823 = vmatpush1.bf16.msra.mxu1 %v1335_v37 }
  0x60   :  { %824 = vmatprep.subr.bf16.mxu1 %v1346_v38 }
  0x63   :  { %825 = vmatpush1.bf16.msra.mxu1 %v1344_v40 }
  0x64   :  { %826 = vmatprep.subr.bf16.mxu1 %v1352_v41  ;;  %1172 = vmatmul.mubr.msk.bf16.gmra.mrb[4].mxu0 %vm748_vm0, %v1366_v44 }
  0x67   :  { %827 = vmatpush1.bf16.msra.mxu1 %v1350_v42 }
  0x68   :  { %828 = vmatprep.subr.bf16.mxu1 %v1356_v43 }
  0x6b   :  { %829 = vmatpush1.bf16.msra.mxu1 %v1354_v45 }
  0x6c   :  { %830 = vmatprep.subr.bf16.mxu1 %v1359_v46 }
  0x6f   :  { %831 = vmatpush1.bf16.msra.mxu1 %v1357_v47 }
  0x70   :  { %832 = vmatprep.subr.bf16.mxu1 %v1362_v48 }
  0x73   :  { %833 = vmatpush1.bf16.msra.mxu1 %v1360_v49 }
  0x74   :  { %834 = vmatprep.subr.bf16.mxu1 %v1365_v50 }
  0x77   :  { %835 = vmatpush1.bf16.msra.mxu1 %v1363_v51 }
  0x78   :  { %836 = vmatprep.subr.bf16.mxu1 %v1372_v52  ;;  %v1384_v52 = vmov 1983009808  }
  0x7b   :  { %837 = vmatpush1.bf16.msra.mxu1 %v1370_v53  ;;  %v1032_v53 = vunpack.c.l.s4 %v1384_v52 }
  0x7c   :  { %838 = vmatprep.subr.bf16.mxu1 %v1375_v54  ;;  %v1034_v54 = vlaneseq }
  0x7f   :  { %839 = vmatpush1.bf16.msra.mxu1 %v1373_v55 }
  0x82   :  { %841 = vmatmul.mubr.bf16.vlgmr.msra.gmra.mrb[0].mxu1 %v1376_v56 }
  0x83   :  { %850 = vmatprep.mubr.bf16.mxu1 %v1379_v57 }
  0x8a   :  { %851 = vmatmul.mubr.bf16.gmra.mrb[4].mxu1 %v1381_v58 }
 0x12f   :  { %v948_v60 = vpop.f32.mrb[0].mxu0 }
 0x130   :  { %v950_v61 = vpop.f32.mrb[1].mxu0 }
 0x131   :  { %v952_v62 = vpop.f32.mrb[2].mxu0 }
 0x132   :  { %v954_v63 = vpop.f32.mrb[3].mxu0 }
 0x137   :  { %v958_v0 = vpop.f32.mrb[4].mxu0 }
 0x138   :  { %v960_v1 = vpop.f32.mrb[5].mxu0 }
 0x139   :  { %v962_v2 = vpop.f32.mrb[6].mxu0 }
 0x13a   :  { %v964_v3 = vpop.f32.mrb[7].mxu0 }
 0x155   :  { %v842_v4 = vpop.f32.mrb[0].mxu1 }
 0x156   :  { %v1173_v5 = vadd.f32 %v948_v60, %v842_v4  ;;  %v844_v6 = vpop.f32.mrb[1].mxu1 }
 0x157   :  { %v1174_v7 = vadd.f32 %v950_v61, %v844_v6  ;;  %v846_v8 = vpop.f32.mrb[2].mxu1 }
 0x158   :  { %967 = vst [vmem:[%s1809_s2] sm:$0xff] %v1173_v5  ;;  %v1175_v9 = vadd.f32 %v952_v62, %v846_v8  ;;  %v848_v10 = vpop.f32.mrb[3].mxu1  ;;  %v998_v12 = vmul.f32 %v1173_v5, %v1173_v5  ;;  %v1033_v62 = vunpack.c.0.s8 %v1032_v53 }
 0x159   :  { %968 = vst [vmem:[%s1809_s2 + $0x8] sm:$0xff] %v1174_v7  ;;  %v1176_v11 = vadd.f32 %v954_v63, %v848_v10  ;;  %v999_v15 = vmul.f32 %v1174_v7, %v1174_v7  ;;  %v1035_v63 = vshrl.u32 %v1034_v54, 7 }
 0x15a   :  { %969 = vst [vmem:[%s1809_s2 + $0x10] sm:$0xff] %v1175_v9  ;;  %v980_v13 = vadd.f32 %v1175_v9, %v1173_v5  ;;  %v1000_v14 = vmul.f32 %v1175_v9, %v1175_v9  ;;  %v1027_v9 = vld [vmem:[%s1808_s3] sm:$0xf] }
 0x15b   :  { %970 = vst [vmem:[%s1809_s2 + $0x18] sm:$0xff] %v1176_v11  ;;  %v989_v16 = vadd.f32 %v1176_v11, %v1174_v7  ;;  %v1001_v17 = vmul.f32 %v1176_v11, %v1176_v11  ;;  %v1036_v6 = vsub.s32 %v1033_v62, %v1035_v63 }
 0x15c   :  { %v1006_v18 = vadd.f32 %v1000_v14, %v998_v12 }
 0x15d   :  { %v1015_v19 = vadd.f32 %v1001_v17, %v999_v15  ;;  %v852_v20 = vpop.f32.mrb[4].mxu1 }
 0x15e   :  { %v1177_v21 = vadd.f32 %v958_v0, %v852_v20  ;;  %v854_v22 = vpop.f32.mrb[5].mxu1 }
 0x15f   :  { %v1178_v23 = vadd.f32 %v960_v1, %v854_v22  ;;  %v856_v24 = vpop.f32.mrb[6].mxu1 }
 0x160   :  { %971 = vst [vmem:[%s1809_s2 + $0x20] sm:$0xff] %v1177_v21  ;;  %v981_v25 = vadd.f32 %v1177_v21, %v980_v13  ;;  %v1002_v26 = vmul.f32 %v1177_v21, %v1177_v21  ;;  %v1179_v27 = vadd.f32 %v962_v2, %v856_v24  ;;  %v858_v28 = vpop.f32.mrb[7].mxu1 }
 0x161   :  { %972 = vst [vmem:[%s1809_s2 + $0x28] sm:$0xff] %v1178_v23  ;;  %v990_v29 = vadd.f32 %v1178_v23, %v989_v16  ;;  %v1003_v30 = vmul.f32 %v1178_v23, %v1178_v23  ;;  %v1180_v31 = vadd.f32 %v964_v3, %v858_v28 }
 0x162   :  { %v1007_v32 = vadd.f32 %v1006_v18, %v1002_v26  ;;  %973 = vst [vmem:[%s1809_s2 + $0x30] sm:$0xff] %v1179_v27  ;;  %v982_v33 = vadd.f32 %v1179_v27, %v981_v25  ;;  %v1004_v34 = vmul.f32 %v1179_v27, %v1179_v27 }
 0x163   :  { %v1016_v35 = vadd.f32 %v1015_v19, %v1003_v30  ;;  %974 = vst [vmem:[%s1809_s2 + $0x38] sm:$0xff] %v1180_v31  ;;  %v991_v36 = vadd.f32 %v1180_v31, %v990_v29  ;;  %v1005_v37 = vmul.f32 %v1180_v31, %v1180_v31 }
 0x164   :  { %v983_v38 = vrot.slane %v982_v33, 4  ;;  %v1008_v39 = vadd.f32 %v1007_v32, %v1004_v34 }
 0x165   :  { %v992_v40 = vrot.slane %v991_v36, 4  ;;  %v1017_v41 = vadd.f32 %v1016_v35, %v1005_v37 }
 0x166   :  { %v984_v42 = vadd.f32 %v983_v38, %v982_v33  ;;  %v1009_v43 = vrot.slane %v1008_v39, 4 }
 0x167   :  { %v993_v44 = vadd.f32 %v992_v40, %v991_v36  ;;  %v1018_v45 = vrot.slane %v1017_v41, 4 }
 0x168   :  { %v985_v46 = vrot.slane %v984_v42, 2  ;;  %v1010_v47 = vadd.f32 %v1009_v43, %v1008_v39 }
 0x169   :  { %v994_v48 = vrot.slane %v993_v44, 2  ;;  %v1019_v49 = vadd.f32 %v1018_v45, %v1017_v41 }
 0x16a   :  { %v986_v50 = vadd.f32 %v985_v46, %v984_v42  ;;  %v1011_v51 = vrot.slane %v1010_v47, 2 }
 0x16b   :  { %v995_v55 = vadd.f32 %v994_v48, %v993_v44  ;;  %v1020_v56 = vrot.slane %v1019_v49, 2 }
 0x16c   :  { %v987_v57 = vrot.slane %v986_v50, 1  ;;  %v1012_v58 = vadd.f32 %v1011_v51, %v1010_v47 }
 0x16d   :  { %v996_v59 = vrot.slane %v995_v55, 1  ;;  %v1021_v60 = vadd.f32 %v1020_v56, %v1019_v49 }
 0x16e   :  { %v1013_v61 = vrot.slane %v1012_v58, 1  ;;  %v988_v1 = vadd.f32 %v987_v57, %v986_v50 }
 0x16f   :  { %v1022_v0 = vrot.slane %v1021_v60, 1  ;;  %v997_v3 = vadd.f32 %v996_v59, %v995_v55 }
 0x170   :  { %v1014_v2 = vadd.f32 %v1013_v61, %v1012_v58 }
 0x171   :  { %v1023_v4 = vadd.f32 %v1022_v0, %v1021_v60 }
 0x172   :  { %v1025_v5 = vsel %vm1024_vm1, %v988_v1, %v1014_v2 }
 0x173   :  { %v1026_v7 = vsel %vm1024_vm1, %v997_v3, %v1023_v4 }
 0x174   :  { %v1030_v8 = vcombine.low %v1025_v5, %v1026_v7 }
 0x176   :  { %v1037_v10 = vrot.slane %v1030_v8, %v1036_v6 }
 0x178   :  { %v1039_v11 = vadd.f32 %v1037_v10, %v1027_v9 }
 0x17a   :  { %1040 = vst [vmem:[%s1808_s3] sm:$0xf] %v1039_v11 }

// kernel: _lambda_.81
= control target key start
LH: loop header
LB: loop body
LE: loop exit
PB: predicated region body
PF: predicated region fallthrough
CT: control target
= control target key end

     0   :  { %s546_s12 = smov 0   ;;  %s616_s0 = inlined_call_operand.vmem [shape: bf16[128,64], index: 0, kind: input, shape index: {}]   ;;  %s617_s1 = inlined_call_operand.vmem [shape: bf16[64,16], index: 1, kind: input, shape index: {}]   ;;  %s618_s2 = inlined_call_operand.vmem [shape: f32[128,16], index: 2, kind: output, shape index: {0}]   ;;  %s619_s3 = inlined_call_operand.vmem [shape: f32[2,16], index: 3, kind: output, shape index: {1}]  }
   0x1 LB: > { %s444_s13 = sadd.s32 4294967295, %s523_s12   ;;  %p448_p0 = scmp.ge.s32.totalorder %s523_s12, 1  ;;  %s523_s12 = sphi %s546_s12, %s14_s12  }
   0x2   : > { %p136_p1 = scmp.lt.s32.totalorder %s523_s12, 3 }
   0x4   : > { %p137_p2 = pnand %p448_p0, %p136_p1 }
   0x5   : > { %v509_v0 = vld [vmem:[%s617_s1] sm:$0xff] (!%p137_p2)   ;;  %s449_s16 = sshll.u32 (!%p137_p2), %s444_s13, 3  ;;  %v510_v1 = vld [vmem:[%s617_s1 + $0x8] sm:$0xff] (!%p137_p2)   ;;  %v511_v2 = vld [vmem:[%s617_s1 + $0x10] sm:$0xff] (!%p137_p2)   ;;  %vm233_vm0 = vcmask (!%p137_p2), 523264   ;;  %vm311_vm1 = vcmask (!%p137_p2), 130048  }
   0x6   : > { %140 = sbr.rel (%p137_p2) target bundleno = 272 (0x110), region = 28  ;;  %p161_p3 = scmp.lt.s32.totalorder (!%p137_p2), %s449_s16, 15  ;;  %476 = vmatprep.subr.bf16.mxu0 (!%p137_p2), %v509_v0  ;;  %492 = vmatprep.subr.bf16.mxu1 (!%p137_p2), %v509_v0  ;;  %v512_v3 = vld [vmem:[%s617_s1 + $0x18] sm:$0xff] (!%p137_p2)  }
   0x7   : > { %477 = vmatpush3.bf16.msra.mxu0 (!%p137_p2), %v509_v0  ;;  %496 = vmatpush3.bf16.msra.mxu1 (!%p137_p2), %v509_v0  ;;  %p465_p4 = scmp.ne.s32.totalorder (!%p137_p2), %s444_s13, 0 }
   0x8   : > { %478 = vmatprep.subr.bf16.mxu0 (!%p137_p2), %v510_v1  ;;  %493 = vmatprep.subr.bf16.mxu1 (!%p137_p2), %v510_v1 }
   0xb   : > { %479 = vmatpush3.bf16.msra.mxu0 (!%p137_p2), %v510_v1  ;;  %497 = vmatpush3.bf16.msra.mxu1 (!%p137_p2), %v510_v1 }
   0xc   : > { %480 = vmatprep.subr.bf16.mxu0 (!%p137_p2), %v511_v2  ;;  %494 = vmatprep.subr.bf16.mxu1 (!%p137_p2), %v511_v2 }
   0xd   : > { %s621_s16 = smov (!%p161_p3, %s449_s16), 15  ;;  %vm324_vm2 = vcmask (!%p465_p4), 123904   ;;  %v525_v16 = vmov (!%p465_p4), 0.0  }
   0xe   : > { %s450_s21 = sshll.u32 %s621_s16, 2  ;;  %s452_s27 = sshll.u32 %s621_s16, 3  ;;  %325 = vst.msk [vmem:[%s619_s3] sm:$0x3] (!%p465_p4), %vm324_vm2, %v525_v16 }
   0xf   : > { %s164_s26 = scalar_lea.vmem %s616_s0, %s450_s21  ;;  %481 = vmatpush3.bf16.msra.mxu0 %v511_v2  ;;  %498 = vmatpush3.bf16.msra.mxu1 %v511_v2  ;;  %s170_s30 = scalar_lea.vmem %s618_s2, %s452_s27 }
  0x10   : > { %v513_v4 = vld [vmem:[%s164_s26] sm:$0xff]   ;;  %v514_v5 = vld [vmem:[%s164_s26 + $0x10] sm:$0xff]   ;;  %482 = vmatprep.subr.bf16.mxu0 %v512_v3  ;;  %495 = vmatprep.subr.bf16.mxu1 %v512_v3  ;;  %v515_v6 = vld [vmem:[%s164_s26 + $0x8] sm:$0xff]  }
  0x11   : > { %484 = vmatprep.mubr.msk.bf16.mxu0 %vm233_vm0, %v513_v4  ;;  %488 = vmatprep.mubr.msk.bf16.mxu1 %vm233_vm0, %v514_v5  ;;  %v516_v7 = vld [vmem:[%s164_s26 + $0x18] sm:$0xff]  }
  0x13   : > { %483 = vmatpush3.bf16.msra.mxu0 %v512_v3  ;;  %499 = vmatpush3.bf16.msra.mxu1 %v512_v3 }
  0x16   : > { %485 = vmatmul.mubr.msk.bf16.vlgmr.msra.gmra.mrb[0].mxu0 %vm233_vm0, %v515_v6  ;;  %489 = vmatmul.mubr.msk.bf16.vlgmr.msra.gmra.mrb[0].mxu1 %vm233_vm0, %v516_v7 }
  0xe7   : > { %323 = sbr.rel (%p465_p4) target bundleno = 238 (0xee), region = 32 }
  0xe9   : > { %v486_v8 = vpop.f32.mrb[0].mxu0  ;;  %v490_v9 = vpop.f32.mrb[0].mxu1 }
  0xea   : > { %314 = vst.msk [vmem:[%s170_s30 + $0x10] sm:$0xff] %vm311_vm1, %v486_v8  ;;  %318 = vst.msk [vmem:[%s170_s30 + $0x30] sm:$0xff] %vm311_vm1, %v490_v9  ;;  %v280_v10 = vpop.f32.mrb[1].mxu0  ;;  %v296_v11 = vpop.f32.mrb[1].mxu1 }
  0xeb   : > { %312 = vst.msk [vmem:[%s170_s30] sm:$0xff] %vm311_vm1, %v280_v10  ;;  %316 = vst.msk [vmem:[%s170_s30 + $0x20] sm:$0xff] %vm311_vm1, %v296_v11  ;;  %v487_v12 = vpop.f32.mrb[2].mxu0  ;;  %v491_v13 = vpop.f32.mrb[2].mxu1 }
  0xec   : > { %315 = vst.msk [vmem:[%s170_s30 + $0x18] sm:$0xff] %vm311_vm1, %v487_v12  ;;  %319 = vst.msk [vmem:[%s170_s30 + $0x38] sm:$0xff] %vm311_vm1, %v491_v13  ;;  %v283_v14 = vpop.f32.mrb[3].mxu0  ;;  %v299_v15 = vpop.f32.mrb[3].mxu1 }
  0xed   : > { %313 = vst.msk [vmem:[%s170_s30 + $0x8] sm:$0xff] %vm311_vm1, %v283_v14  ;;  %317 = vst.msk [vmem:[%s170_s30 + $0x28] sm:$0xff] %vm311_vm1, %v299_v15 }
  0xee PF: > { %v326_v17 = vsel %vm311_vm1, %v280_v10, 0.0  ;;  %v327_v18 = vsel %vm311_vm1, %v283_v14, 0.0  ;;  %v329_v19 = vsel %vm311_vm1, %v486_v8, 0.0  ;;  %v331_v21 = vsel %vm311_vm1, %v487_v12, 0.0  ;;  %v378_v3 = vld [vmem:[%s619_s3] sm:$0x3] }
  0xef   : > { %v328_v20 = vadd.f32 %v327_v18, %v326_v17  ;;  %v347_v22 = vmul.f32 %v280_v10, %v280_v10  ;;  %v348_v23 = vmul.f32 %v283_v14, %v283_v14  ;;  %v349_v24 = vmul.f32 %v486_v8, %v486_v8 }
  0xf0   : > { %v350_v26 = vmul.f32 %v487_v12, %v487_v12  ;;  %v333_v27 = vsel %vm311_vm1, %v296_v11, 0.0  ;;  %v351_v28 = vmul.f32 %v296_v11, %v296_v11  ;;  %v335_v34 = vsel %vm311_vm1, %v299_v15, 0.0 }
  0xf1   : > { %v330_v25 = vadd.f32 %v329_v19, %v328_v20  ;;  %v355_v29 = vsel %vm311_vm1, %v347_v22, 0.0  ;;  %v356_v30 = vsel %vm311_vm1, %v348_v23, 0.0  ;;  %v358_v33 = vsel %vm311_vm1, %v349_v24, 0.0 }
  0xf2   : > { %v357_v32 = vadd.f32 %v356_v30, %v355_v29  ;;  %v352_v35 = vmul.f32 %v299_v15, %v299_v15  ;;  %v360_v36 = vsel %vm311_vm1, %v350_v26, 0.0  ;;  %v337_v39 = vsel %vm311_vm1, %v490_v9, 0.0 }
  0xf3   : > { %v332_v31 = vadd.f32 %v331_v21, %v330_v25  ;;  %v353_v40 = vmul.f32 %v490_v9, %v490_v9  ;;  %v362_v41 = vsel %vm311_vm1, %v351_v28, 0.0  ;;  %v339_v44 = vsel %vm311_vm1, %v491_v13, 0.0 }
  0xf4   : > { %v359_v38 = vadd.f32 %v358_v33, %v357_v32  ;;  %v354_v45 = vmul.f32 %v491_v13, %v491_v13  ;;  %v364_v46 = vsel %vm311_vm1, %v352_v35, 0.0  ;;  %vm376_vm3 = vcmask 1040384  }
  0xf5   : > { %v334_v37 = vadd.f32 %v333_v27, %v332_v31  ;;  %v366_v49 = vsel %vm311_vm1, %v353_v40, 0.0  ;;  %vm380_vm4 = vcmask 123904  }
  0xf6   : > { %v361_v43 = vadd.f32 %v360_v36, %v359_v38  ;;  %v368_v52 = vsel %vm311_vm1, %v354_v45, 0.0 }
  0xf7   : > { %v336_v42 = vadd.f32 %v335_v34, %v334_v37 }
  0xf8   : > { %v363_v48 = vadd.f32 %v362_v41, %v361_v43 }
  0xf9   : > { %v338_v47 = vadd.f32 %v337_v39, %v336_v42 }
  0xfa   : > { %v365_v51 = vadd.f32 %v364_v46, %v363_v48 }
  0xfb   : > { %v340_v50 = vadd.f32 %v339_v44, %v338_v47 }
  0xfc   : > { %v367_v54 = vadd.f32 %v366_v49, %v365_v51 }
  0xfd   : > { %v341_v53 = vrot.slane %v340_v50, 4 }
  0xfe   : > { %v369_v56 = vadd.f32 %v368_v52, %v367_v54 }
  0xff   : > { %v342_v55 = vadd.f32 %v341_v53, %v340_v50 }
 0x100   : > { %v370_v58 = vrot.slane %v369_v56, 4 }
 0x101   : > { %v343_v57 = vrot.slane %v342_v55, 2 }
 0x102   : > { %v371_v60 = vadd.f32 %v370_v58, %v369_v56 }
 0x103   : > { %v344_v59 = vadd.f32 %v343_v57, %v342_v55 }
 0x104   : > { %v372_v62 = vrot.slane %v371_v60, 2 }
 0x105   : > { %v345_v61 = vrot.slane %v344_v59, 1 }
 0x106   : > { %v373_v63 = vadd.f32 %v372_v62, %v371_v60 }
 0x107   : > { %v346_v0 = vadd.f32 %v345_v61, %v344_v59 }
 0x108   : > { %v374_v1 = vrot.slane %v373_v63, 1 }
 0x10a   : > { %v375_v2 = vadd.f32 %v374_v1, %v373_v63 }
 0x10c   : > { %v377_v4 = vsel %vm376_vm3, %v346_v0, %v375_v2 }
 0x10d   : > { %v379_v5 = vadd.f32 %v378_v3, %v377_v4 }
 0x10f   : > { %381 = vst.msk [vmem:[%s619_s3] sm:$0x3] %vm380_vm4, %v379_v5 }
 0x110 PF: > { %s14_s12 = sadd.s32 1, %s523_s12  }
 0x111   : > { %p11_p5 = scmp.ge.s32.totalorder %s14_s12, 4  }
 0x113   :  { %13 = sbr.rel (!%p11_p5) target bundleno = 1 (0x1), region = 70 }

// kernel: _lambda_.82
= control target key start
LH: loop header
LB: loop body
LE: loop exit
PB: predicated region body
PF: predicated region fallthrough
CT: control target
= control target key end

     0   :  { %s334_s12 = smov 0   ;;  %s365_s0 = inlined_call_operand.vmem [shape: f32[128,16], index: 0, kind: input, shape index: {}]   ;;  %s366_s1 = inlined_call_operand.vmem [shape: f32[1,16], index: 1, kind: input, shape index: {}]   ;;  %s367_s2 = inlined_call_operand.vmem [shape: f32[1,16], index: 2, kind: input, shape index: {}]   ;;  %s368_s3 = inlined_call_operand.vmem [shape: f32[128,16], index: 3, kind: output, shape index: {}]  }
   0x1 LB: > { %s285_s13 = sadd.s32 4294967295, %s312_s12   ;;  %p289_p0 = scmp.ge.s32.totalorder %s312_s12, 1  ;;  %s312_s12 = sphi %s334_s12, %s13_s12  }
   0x2   : > { %p138_p1 = scmp.lt.s32.totalorder %s312_s12, 3 }
   0x4   : > { %p139_p2 = pnand %p289_p0, %p138_p1 }
   0x5   : > { %s290_s14 = sshll.u32 (!%p139_p2), %s285_s13, 3  ;;  %v294_v0 = vld [vmem:[%s366_s1] ss:$0 sm:$0xff] (!%p139_p2)  ;;  %vm220_vm0 = vcmask (!%p139_p2), 130048  }
   0x6   : > { %142 = sbr.rel (%p139_p2) target bundleno = 27 (0x1b), region = 32  ;;  %p163_p3 = scmp.lt.s32.totalorder (!%p139_p2), %s290_s14, 15  ;;  %v295_v1 = vld [vmem:[%s367_s2] ss:$0 sm:$0xff] (!%p139_p2) }
   0xd   : > { %s370_s14 = smov (!%p163_p3, %s290_s14), 15 }
   0xe   : > { %s291_s15 = sshll.u32 %s370_s14, 3 }
   0xf   : > { %s166_s20 = scalar_lea.vmem %s365_s0, %s291_s15  ;;  %s172_s25 = scalar_lea.vmem %s368_s3, %s291_s15 }
  0x10   : > { %v174_v2 = vld [vmem:[%s166_s20] sm:$0xff]  ;;  %v175_v3 = vld [vmem:[%s166_s20 + $0x8] sm:$0xff]  ;;  %v176_v4 = vld [vmem:[%s166_s20 + $0x10] sm:$0xff] }
  0x11   : > { %v189_v5 = vmul.f32 %v294_v0, %v174_v2  ;;  %v190_v6 = vmul.f32 %v294_v0, %v175_v3  ;;  %v191_v7 = vmul.f32 %v294_v0, %v176_v4  ;;  %v177_v8 = vld [vmem:[%s166_s20 + $0x18] sm:$0xff]  ;;  %v178_v9 = vld [vmem:[%s166_s20 + $0x20] sm:$0xff]  ;;  %v179_v10 = vld [vmem:[%s166_s20 + $0x28] sm:$0xff] }
  0x12   : > { %v192_v11 = vmul.f32 %v294_v0, %v177_v8  ;;  %v193_v12 = vmul.f32 %v294_v0, %v178_v9  ;;  %v194_v13 = vmul.f32 %v294_v0, %v179_v10  ;;  %v180_v14 = vld [vmem:[%s166_s20 + $0x30] sm:$0xff]  ;;  %v181_v15 = vld [vmem:[%s166_s20 + $0x38] sm:$0xff] }
  0x13   : > { %v204_v16 = vadd.f32 %v295_v1, %v189_v5  ;;  %v205_v17 = vadd.f32 %v295_v1, %v190_v6  ;;  %v206_v18 = vadd.f32 %v295_v1, %v191_v7  ;;  %v195_v19 = vmul.f32 %v294_v0, %v180_v14 }
  0x14   : > { %v207_v20 = vadd.f32 %v295_v1, %v192_v11  ;;  %v208_v21 = vadd.f32 %v295_v1, %v193_v12  ;;  %v209_v22 = vadd.f32 %v295_v1, %v194_v13  ;;  %v196_v23 = vmul.f32 %v294_v0, %v181_v15 }
  0x15   : > { %v212_v24 = vmax.f32 %v204_v16, 0.0  ;;  %v213_v25 = vmax.f32 %v205_v17, 0.0  ;;  %v214_v26 = vmax.f32 %v206_v18, 0.0  ;;  %v210_v27 = vadd.f32 %v295_v1, %v195_v19 }
  0x16   : > { %v215_v28 = vmax.f32 %v207_v20, 0.0  ;;  %v216_v29 = vmax.f32 %v208_v21, 0.0  ;;  %v217_v30 = vmax.f32 %v209_v22, 0.0  ;;  %v211_v31 = vadd.f32 %v295_v1, %v196_v23 }
  0x17   : > { %221 = vst.msk [vmem:[%s172_s25] sm:$0xff] %vm220_vm0, %v212_v24  ;;  %222 = vst.msk [vmem:[%s172_s25 + $0x8] sm:$0xff] %vm220_vm0, %v213_v25  ;;  %v218_v32 = vmax.f32 %v210_v27, 0.0 }
  0x18   : > { %223 = vst.msk [vmem:[%s172_s25 + $0x10] sm:$0xff] %vm220_vm0, %v214_v26  ;;  %224 = vst.msk [vmem:[%s172_s25 + $0x18] sm:$0xff] %vm220_vm0, %v215_v28  ;;  %v219_v33 = vmax.f32 %v211_v31, 0.0 }
  0x19   : > { %225 = vst.msk [vmem:[%s172_s25 + $0x20] sm:$0xff] %vm220_vm0, %v216_v29  ;;  %226 = vst.msk [vmem:[%s172_s25 + $0x28] sm:$0xff] %vm220_vm0, %v217_v30 }
  0x1a   : > { %227 = vst.msk [vmem:[%s172_s25 + $0x30] sm:$0xff] %vm220_vm0, %v218_v32  ;;  %228 = vst.msk [vmem:[%s172_s25 + $0x38] sm:$0xff] %vm220_vm0, %v219_v33 }
  0x1b PF: > { %s13_s12 = sadd.s32 1, %s312_s12  }
  0x1c   : > { %p10_p4 = scmp.ge.s32.totalorder %s13_s12, 4  }
  0x1e   :  { %12 = sbr.rel (!%p10_p4) target bundleno = 1 (0x1), region = 62 }

// kernel: _lambda_.83
= control target key start
LH: loop header
LB: loop body
LE: loop exit
PB: predicated region body
PF: predicated region fallthrough
CT: control target
= control target key end

     0   :  { %v948_v41 = vmov 0   ;;  %vm541_vm0 = vcmask 523264   ;;  %vm715_vm1 = vcmask 517120   ;;  %vm737_vm2 = vcmask 1040384   ;;  %s1210_s1 = inlined_call_operand.vmem [shape: bf16[960,64], index: 1, kind: input, shape index: {}]   ;;  %s1211_s0 = inlined_call_operand.vmem [shape: bf16[16,960], index: 0, kind: input, shape index: {}]   ;;  %s1212_s3 = inlined_call_operand.vmem [shape: f32[2,64], index: 3, kind: output, shape index: {1}]   ;;  %s1213_s2 = inlined_call_operand.vmem [shape: f32[16,64], index: 2, kind: output, shape index: {0}]  }
   0x1   :  { %v888_v0 = vld [vmem:[%s1210_s1 + $0x40] sm:$0xff]   ;;  %v892_v4 = vld [vmem:[%s1210_s1 + $0x48] sm:$0xff]   ;;  %v896_v8 = vld [vmem:[%s1210_s1 + $0x50] sm:$0xff]  }
   0x2   :  { %v889_v1 = vld [vmem:[%s1210_s1 + $0xc0] sm:$0xff]   ;;  %820 = vmatprep.subr.bf16.mxu0 %v888_v0  ;;  %v893_v5 = vld [vmem:[%s1210_s1 + $0xc8] sm:$0xff]   ;;  %v897_v9 = vld [vmem:[%s1210_s1 + $0xd0] sm:$0xff]  }
   0x3   :  { %v890_v2 = vld [vmem:[%s1210_s1] sm:$0xff]   ;;  %842 = vmatprep.subr.bf16.mxu1 %v889_v1  ;;  %v894_v6 = vld [vmem:[%s1210_s1 + $0x8] sm:$0xff]   ;;  %v898_v10 = vld [vmem:[%s1210_s1 + $0x10] sm:$0xff]  }
   0x4   :  { %v891_v3 = vld [vmem:[%s1210_s1 + $0x80] sm:$0xff]   ;;  %821 = vmatpush3.bf16.msra.mxu0 %v890_v2  ;;  %v895_v7 = vld [vmem:[%s1210_s1 + $0x88] sm:$0xff]   ;;  %v899_v11 = vld [vmem:[%s1210_s1 + $0x90] sm:$0xff]  }
   0x5   :  { %843 = vmatpush3.bf16.msra.mxu1 %v891_v3  ;;  %822 = vmatprep.subr.bf16.mxu0 %v892_v4  ;;  %v900_v12 = vld [vmem:[%s1210_s1 + $0x58] sm:$0xff]   ;;  %v904_v16 = vld [vmem:[%s1210_s1 + $0x60] sm:$0xff]   ;;  %v908_v20 = vld [vmem:[%s1210_s1 + $0x68] sm:$0xff]  }
   0x6   :  { %844 = vmatprep.subr.bf16.mxu1 %v893_v5  ;;  %v901_v13 = vld [vmem:[%s1210_s1 + $0xd8] sm:$0xff]   ;;  %v905_v17 = vld [vmem:[%s1210_s1 + $0xe0] sm:$0xff]   ;;  %v909_v21 = vld [vmem:[%s1210_s1 + $0xe8] sm:$0xff]  }
   0x7   :  { %v902_v14 = vld [vmem:[%s1210_s1 + $0x18] sm:$0xff]   ;;  %v906_v18 = vld [vmem:[%s1210_s1 + $0x20] sm:$0xff]   ;;  %v910_v22 = vld [vmem:[%s1210_s1 + $0x28] sm:$0xff]  }
   0x8   :  { %823 = vmatpush3.bf16.msra.mxu0 %v894_v6  ;;  %v903_v15 = vld [vmem:[%s1210_s1 + $0x98] sm:$0xff]   ;;  %v907_v19 = vld [vmem:[%s1210_s1 + $0xa0] sm:$0xff]   ;;  %v911_v23 = vld [vmem:[%s1210_s1 + $0xa8] sm:$0xff]  }
   0x9   :  { %845 = vmatpush3.bf16.msra.mxu1 %v895_v7  ;;  %824 = vmatprep.subr.bf16.mxu0 %v896_v8  ;;  %v912_v24 = vld [vmem:[%s1210_s1 + $0x70] sm:$0xff]   ;;  %v916_v28 = vld [vmem:[%s1210_s1 + $0x78] sm:$0xff]   ;;  %v14_v32 = vld [vmem:[%s1211_s0] sm:$0xff] }
   0xa   :  { %846 = vmatprep.subr.bf16.mxu1 %v897_v9  ;;  %v913_v25 = vld [vmem:[%s1210_s1 + $0xf0] sm:$0xff]   ;;  %v917_v29 = vld [vmem:[%s1210_s1 + $0xf8] sm:$0xff]   ;;  %v18_v33 = vld [vmem:[%s1211_s0 + $0x20] sm:$0xff] }
   0xb   :  { %v914_v26 = vld [vmem:[%s1210_s1 + $0x30] sm:$0xff]   ;;  %v918_v30 = vld [vmem:[%s1210_s1 + $0x38] sm:$0xff]   ;;  %v15_v34 = vld [vmem:[%s1211_s0 + $0x8] sm:$0xff]  ;;  %v751_v35 = vcombine.low %v14_v32, %v18_v33  ;;  %v752_v36 = vcombine.high %v14_v32, %v18_v33 }
   0xc   :  { %825 = vmatpush3.bf16.msra.mxu0 %v898_v10  ;;  %v915_v27 = vld [vmem:[%s1210_s1 + $0xb0] sm:$0xff]   ;;  %v919_v31 = vld [vmem:[%s1210_s1 + $0xb8] sm:$0xff]   ;;  %v19_v37 = vld [vmem:[%s1211_s0 + $0x28] sm:$0xff] }
   0xd   :  { %847 = vmatpush3.bf16.msra.mxu1 %v899_v11  ;;  %826 = vmatprep.subr.bf16.mxu0 %v900_v12  ;;  %v753_v38 = vcombine.low %v15_v34, %v19_v37  ;;  %v754_v39 = vcombine.high %v15_v34, %v19_v37  ;;  %v920_v40 = vld [vmem:[%s1210_s1 + $0x140] sm:$0xff]   ;;  %v923_v44 = vld [vmem:[%s1210_s1 + $0x148] sm:$0xff]   ;;  %v926_v47 = vld [vmem:[%s1210_s1 + $0x150] sm:$0xff]  }
   0xe   :  { %848 = vmatprep.subr.bf16.mxu1 %v901_v13  ;;  %577 = vmatprep.mubr.bf16.mxu0 %v752_v36  ;;  %v921_v42 = vld [vmem:[%s1210_s1 + $0x100] sm:$0xff]   ;;  %v924_v45 = vld [vmem:[%s1210_s1 + $0x108] sm:$0xff]   ;;  %v927_v48 = vld [vmem:[%s1210_s1 + $0x110] sm:$0xff]   ;;  %v949_v13 = vmov 0.0  }
   0xf   :  { %618 = vmatprep.mubr.bf16.mxu1 %v754_v39  ;;  %v922_v43 = vld [vmem:[%s1210_s1 + $0x180] sm:$0xff]   ;;  %v925_v46 = vld [vmem:[%s1210_s1 + $0x188] sm:$0xff]   ;;  %v928_v49 = vld [vmem:[%s1210_s1 + $0x190] sm:$0xff]   ;;  %716 = vst.msk [vmem:[%s1212_s3] sm:$0x3] %vm715_vm1, %v949_v13 }
  0x10   :  { %827 = vmatpush3.bf16.msra.mxu0 %v902_v14  ;;  %v929_v50 = vld [vmem:[%s1210_s1 + $0x158] sm:$0xff]   ;;  %v932_v53 = vld [vmem:[%s1210_s1 + $0x160] sm:$0xff]   ;;  %v935_v56 = vld [vmem:[%s1210_s1 + $0x168] sm:$0xff]  }
  0x11   :  { %849 = vmatpush3.bf16.msra.mxu1 %v903_v15  ;;  %828 = vmatprep.subr.bf16.mxu0 %v904_v16  ;;  %v930_v51 = vld [vmem:[%s1210_s1 + $0x118] sm:$0xff]   ;;  %v933_v54 = vld [vmem:[%s1210_s1 + $0x120] sm:$0xff]   ;;  %v936_v57 = vld [vmem:[%s1210_s1 + $0x128] sm:$0xff]  }
  0x12   :  { %850 = vmatprep.subr.bf16.mxu1 %v905_v17  ;;  %v931_v52 = vld [vmem:[%s1210_s1 + $0x198] sm:$0xff]   ;;  %v934_v55 = vld [vmem:[%s1210_s1 + $0x1a0] sm:$0xff]   ;;  %v937_v58 = vld [vmem:[%s1210_s1 + $0x1a8] sm:$0xff]  }
  0x13   :  { %v938_v59 = vld [vmem:[%s1210_s1 + $0x170] sm:$0xff]   ;;  %v941_v1 = vld [vmem:[%s1210_s1 + $0x178] sm:$0xff]   ;;  %v944_v8 = vld [vmem:[%s1210_s1 + $0x1c0] sm:$0xff]  }
  0x14   :  { %829 = vmatpush3.bf16.msra.mxu0 %v906_v18  ;;  %v939_v60 = vld [vmem:[%s1210_s1 + $0x130] sm:$0xff]   ;;  %v942_v2 = vld [vmem:[%s1210_s1 + $0x138] sm:$0xff]   ;;  %v945_v9 = vld [vmem:[%s1210_s1 + $0x1c8] sm:$0xff]  }
  0x15   :  { %851 = vmatpush3.bf16.msra.mxu1 %v907_v19  ;;  %830 = vmatprep.subr.bf16.mxu0 %v908_v20  ;;  %v16_v61 = vld [vmem:[%s1211_s0 + $0x10] sm:$0xff]  ;;  %v943_v3 = vld [vmem:[%s1210_s1 + $0x1b8] sm:$0xff]  }
  0x16   :  { %852 = vmatprep.subr.bf16.mxu1 %v909_v21  ;;  %v20_v62 = vld [vmem:[%s1211_s0 + $0x30] sm:$0xff]  ;;  %v17_v4 = vld [vmem:[%s1211_s0 + $0x18] sm:$0xff] }
  0x17   :  { %v940_v63 = vld [vmem:[%s1210_s1 + $0x1b0] sm:$0xff]   ;;  %v756_v0 = vcombine.high %v16_v61, %v20_v62  ;;  %v21_v5 = vld [vmem:[%s1211_s0 + $0x38] sm:$0xff]  ;;  %v755_v7 = vcombine.low %v16_v61, %v20_v62  ;;  %v739_v62 = vld [vmem:[%s1212_s3] sm:$0x3] }
  0x18   :  { %831 = vmatpush3.bf16.msra.mxu0 %v910_v22  ;;  %v758_v6 = vcombine.high %v17_v4, %v21_v5  ;;  %v946_v10 = vld [vmem:[%s1210_s1 + $0x1d0] sm:$0xff]   ;;  %v947_v11 = vld [vmem:[%s1210_s1 + $0x1d8] sm:$0xff]   ;;  %v757_v12 = vcombine.low %v17_v4, %v21_v5 }
  0x19   :  { %853 = vmatpush3.bf16.msra.mxu1 %v911_v23  ;;  %832 = vmatprep.subr.bf16.mxu0 %v912_v24 }
  0x1a   :  { %854 = vmatprep.subr.bf16.mxu1 %v913_v25 }
  0x1c   :  { %833 = vmatpush3.bf16.msra.mxu0 %v914_v26 }
  0x1d   :  { %855 = vmatpush3.bf16.msra.mxu1 %v915_v27  ;;  %834 = vmatprep.subr.bf16.mxu0 %v916_v28 }
  0x1e   :  { %856 = vmatprep.subr.bf16.mxu1 %v917_v29 }
  0x20   :  { %835 = vmatpush3.bf16.msra.mxu0 %v918_v30 }
  0x21   :  { %857 = vmatpush3.bf16.msra.mxu1 %v919_v31  ;;  %864 = vmatprep.subr.bf16.mxu0 %v920_v40 }
  0x22   :  { %668 = vmatprep.subr.bf16.mxu1 %v948_v41 }
  0x23   :  { %578 = vmatmul.mubr.bf16.vlgmr.msra.gmra.mrb[0].mxu0 %v751_v35 }
  0x24   :  { %619 = vmatmul.mubr.bf16.vlgmr.msra.gmra.mrb[0].mxu1 %v753_v38  ;;  %865 = vmatpush3.bf16.msra.mxu0 %v921_v42 }
  0x25   :  { %669 = vmatpush1.bf16.msra.mxu1 %v922_v43  ;;  %866 = vmatprep.subr.bf16.mxu0 %v923_v44 }
  0x26   :  { %670 = vmatprep.subr.bf16.mxu1 %v948_v41  ;;  %659 = vmatprep.mubr.bf16.mxu0 %v756_v0 }
  0x27   :  { %819 = vmatprep.mubr.msk.bf16.mxu1 %vm541_vm0, %v758_v6 }
  0x28   :  { %867 = vmatpush3.bf16.msra.mxu0 %v924_v45 }
  0x29   :  { %671 = vmatpush1.bf16.msra.mxu1 %v925_v46  ;;  %868 = vmatprep.subr.bf16.mxu0 %v926_v47 }
  0x2a   :  { %672 = vmatprep.subr.bf16.mxu1 %v948_v41 }
  0x2c   :  { %869 = vmatpush3.bf16.msra.mxu0 %v927_v48 }
  0x2d   :  { %673 = vmatpush1.bf16.msra.mxu1 %v928_v49  ;;  %870 = vmatprep.subr.bf16.mxu0 %v929_v50 }
  0x2e   :  { %674 = vmatprep.subr.bf16.mxu1 %v948_v41 }
  0x30   :  { %871 = vmatpush3.bf16.msra.mxu0 %v930_v51 }
  0x31   :  { %675 = vmatpush1.bf16.msra.mxu1 %v931_v52  ;;  %872 = vmatprep.subr.bf16.mxu0 %v932_v53 }
  0x32   :  { %676 = vmatprep.subr.bf16.mxu1 %v948_v41 }
  0x34   :  { %873 = vmatpush3.bf16.msra.mxu0 %v933_v54 }
  0x35   :  { %677 = vmatpush1.bf16.msra.mxu1 %v934_v55  ;;  %874 = vmatprep.subr.bf16.mxu0 %v935_v56 }
  0x36   :  { %678 = vmatprep.subr.bf16.mxu1 %v948_v41 }
  0x38   :  { %875 = vmatpush3.bf16.msra.mxu0 %v936_v57 }
  0x39   :  { %679 = vmatpush1.bf16.msra.mxu1 %v937_v58  ;;  %876 = vmatprep.subr.bf16.mxu0 %v938_v59 }
  0x3a   :  { %680 = vmatprep.subr.bf16.mxu1 %v948_v41 }
  0x3c   :  { %877 = vmatpush3.bf16.msra.mxu0 %v939_v60 }
  0x3d   :  { %681 = vmatpush1.bf16.msra.mxu1 %v940_v63  ;;  %878 = vmatprep.subr.bf16.mxu0 %v941_v1 }
  0x3e   :  { %682 = vmatprep.subr.bf16.mxu1 %v948_v41 }
  0x40   :  { %879 = vmatpush3.bf16.msra.mxu0 %v942_v2 }
  0x41   :  { %683 = vmatpush1.bf16.msra.mxu1 %v943_v3 }
  0x42   :  { %684 = vmatprep.subr.bf16.mxu1 %v948_v41 }
  0x43   :  { %660 = vmatmul.mubr.bf16.vlgmr.msra.gmra.mrb[4].mxu0 %v755_v7 }
  0x45   :  { %685 = vmatpush1.bf16.msra.mxu1 %v944_v8 }
  0x46   :  { %686 = vmatprep.subr.bf16.mxu1 %v948_v41 }
  0x49   :  { %687 = vmatpush1.bf16.msra.mxu1 %v945_v9 }
  0x4a   :  { %688 = vmatprep.subr.bf16.mxu1 %v948_v41 }
  0x4d   :  { %689 = vmatpush1.bf16.msra.mxu1 %v946_v10 }
  0x4e   :  { %690 = vmatprep.subr.bf16.mxu1 %v948_v41 }
  0x51   :  { %691 = vmatpush1.bf16.msra.mxu1 %v947_v11 }
  0x54   :  { %701 = vmatmul.mubr.bf16.vlgmr.msra.gmra.mrb[4].mxu1 %v757_v12 }
  0xf6   :  { %v836_v14 = vpop.f32.mrb[0].mxu0 }
  0xf7   :  { %v858_v15 = vpop.f32.mrb[0].mxu1  ;;  %v837_v16 = vpop.f32.mrb[1].mxu0 }
  0xf8   :  { %v838_v17 = vadd.f32 %v837_v16, %v836_v14  ;;  %v859_v18 = vpop.f32.mrb[1].mxu1  ;;  %v839_v19 = vpop.f32.mrb[2].mxu0 }
  0xf9   :  { %v860_v20 = vadd.f32 %v859_v18, %v858_v15  ;;  %v861_v21 = vpop.f32.mrb[2].mxu1  ;;  %v840_v22 = vpop.f32.mrb[3].mxu0 }
  0xfa   :  { %v841_v23 = vadd.f32 %v840_v22, %v839_v19  ;;  %v862_v24 = vpop.f32.mrb[3].mxu1 }
  0xfb   :  { %v621_v25 = vadd.f32 %v860_v20, %v838_v17  ;;  %v863_v26 = vadd.f32 %v862_v24, %v861_v21 }
  0xfd   :  { %v624_v27 = vadd.f32 %v863_v26, %v841_v23 }
 0x116   :  { %v880_v28 = vpop.f32.mrb[4].mxu0 }
 0x117   :  { %v881_v29 = vpop.f32.mrb[5].mxu0 }
 0x118   :  { %v882_v30 = vadd.f32 %v881_v29, %v880_v28  ;;  %v883_v31 = vpop.f32.mrb[6].mxu0 }
 0x119   :  { %v884_v32 = vpop.f32.mrb[7].mxu0 }
 0x11a   :  { %v885_v33 = vadd.f32 %v884_v32, %v883_v31  ;;  %v662_v34 = vadd.f32 %v882_v30, %v621_v25 }
 0x11c   :  { %v665_v35 = vadd.f32 %v885_v33, %v624_v27 }
 0x127   :  { %v702_v36 = vpop.f32.mrb[4].mxu1 }
 0x128   :  { %v703_v37 = vadd.f32 %v702_v36, %v662_v34  ;;  %v704_v38 = vpop.f32.mrb[5].mxu1 }
 0x129   :  { %v705_v39 = vpop.f32.mrb[6].mxu1 }
 0x12a   :  { %709 = vst.msk [vmem:[%s1213_s2] sm:$0xff] %vm541_vm0, %v703_v37  ;;  %v726_v40 = vmul.f32 %v703_v37, %v703_v37  ;;  %v706_v41 = vadd.f32 %v705_v39, %v665_v35  ;;  %v707_v42 = vpop.f32.mrb[7].mxu1  ;;  %v717_v43 = vsel %vm541_vm0, %v703_v37, 0.0 }
 0x12c   :  { %710 = vst.msk [vmem:[%s1213_s2 + $0x8] sm:$0xff] %vm541_vm0, %v706_v41  ;;  %v718_v44 = vsel %vm541_vm0, %v706_v41, 0.0  ;;  %v727_v45 = vmul.f32 %v706_v41, %v706_v41  ;;  %v728_v47 = vsel %vm541_vm0, %v726_v40, 0.0 }
 0x12d   :  { %v719_v46 = vadd.f32 %v718_v44, %v717_v43 }
 0x12e   :  { %v729_v48 = vsel %vm541_vm0, %v727_v45, 0.0 }
 0x12f   :  { %v720_v49 = vrot.slane %v719_v46, 4  ;;  %v730_v50 = vadd.f32 %v729_v48, %v728_v47 }
 0x131   :  { %v721_v51 = vadd.f32 %v720_v49, %v719_v46  ;;  %v731_v52 = vrot.slane %v730_v50, 4 }
 0x133   :  { %v722_v53 = vrot.slane %v721_v51, 2  ;;  %v732_v54 = vadd.f32 %v731_v52, %v730_v50 }
 0x135   :  { %v723_v55 = vadd.f32 %v722_v53, %v721_v51  ;;  %v733_v56 = vrot.slane %v732_v54, 2 }
 0x137   :  { %v724_v57 = vrot.slane %v723_v55, 1  ;;  %v734_v58 = vadd.f32 %v733_v56, %v732_v54 }
 0x139   :  { %v735_v59 = vrot.slane %v734_v58, 1  ;;  %v725_v60 = vadd.f32 %v724_v57, %v723_v55 }
 0x13b   :  { %v736_v61 = vadd.f32 %v735_v59, %v734_v58 }
 0x13d   :  { %v738_v63 = vsel %vm737_vm2, %v725_v60, %v736_v61 }
 0x13e   :  { %v740_v0 = vadd.f32 %v739_v62, %v738_v63 }
 0x140   :  { %742 = vst.msk [vmem:[%s1212_s3] sm:$0x3] %vm715_vm1, %v740_v0 }

// kernel: tile.385
= control target key start
LH: loop header
LB: loop body
LE: loop exit
PB: predicated region body
PF: predicated region fallthrough
CT: control target
= control target key end

     0   :  { %s22_s0 = inlined_call_operand.vmem [shape: f32[8], index: 0, kind: input, shape index: {}]   ;;  %s23_s1 = inlined_call_operand.vmem [shape: f32[8,8], index: 1, kind: output, shape index: {}]  }
   0x1   :  { %v4_v0 = vld [vmem:[%s22_s0] ss:$0 sm:$0xff] }
   0x2   :  { %5 = vst [vmem:[%s23_s1] sm:$0xff] %v4_v0 }

// kernel: tile.386
= control target key start
LH: loop header
LB: loop body
LE: loop exit
PB: predicated region body
PF: predicated region fallthrough
CT: control target
= control target key end

     0   :  { %s67_s10 = smov 56   ;;  %s68_s11 = smov 40   ;;  %vm3_vm0 = vcmask 64512   ;;  %vm9_vm1 = vcmask 523712   ;;  %vm15_vm2 = vcmask 458112   ;;  %vm21_vm3 = vcmask 392512   ;;  %s111_s0 = inlined_call_operand.vmem [shape: f32[8,8], index: 0, kind: input, shape index: {}]   ;;  %s112_s1 = inlined_call_operand.vmem [shape: f32[1,64], index: 1, kind: output, shape index: {}]  }
   0x1   :  { %v53_v0 = vld [vmem:[%s111_s0 + $0x7] sm:$0x1]   ;;  %v55_v1 = vld [vmem:[%s111_s0 + $0x5] sm:$0x1]   ;;  %v54_v2 = vld [vmem:[%s111_s0 + $0x6] sm:$0x1]  }
   0x2   :  { %7 = vrot.lane.b32.xlu0 %v53_v0, %s67_s10  ;;  %19 = vrot.lane.b32.xlu1 %v55_v1, %s68_s11  ;;  %v56_v3 = vld [vmem:[%s111_s0 + $0x4] sm:$0x1]   ;;  %v2_v4 = vld [vmem:[%s111_s0] sm:$0x1]   ;;  %s69_s18 = smov 48   ;;  %s70_s19 = smov 32  }
   0x3   :  { %4 = vst.msk [vmem:[#allocation0] sm:$0x1] %vm3_vm0, %v2_v4   ;;  %v57_v5 = vld [vmem:[%s111_s0 + $0x3] sm:$0x1]   ;;  %v58_v6 = vld [vmem:[%s111_s0 + $0x2] sm:$0x1]  }
   0x4   :  { %s71_s24 = smov 24   ;;  %s72_s25 = smov 16   ;;  %v59_v7 = vld [vmem:[%s111_s0 + $0x1] sm:$0x1]   ;;  %vm27_vm4 = vcmask 326912   ;;  %vm33_vm5 = vcmask 261312  }
   0x5   :  { %s73_s0 = smov 8   ;;  %vm39_vm6 = vcmask 195712   ;;  %vm45_vm7 = vcmask 130112  }
   0x6   :  { %13 = vrot.lane.b32.xlu0 %v54_v2, %s69_s18  ;;  %25 = vrot.lane.b32.xlu1 %v56_v3, %s70_s19 }
   0xa   :  { %31 = vrot.lane.b32.xlu0 %v57_v5, %s71_s24  ;;  %37 = vrot.lane.b32.xlu1 %v58_v6, %s72_s25 }
   0xe   :  { %43 = vrot.lane.b32.xlu0 %v59_v7, %s73_s0 }
  0x74   :  { %v8_v8 = vpop.permute.xlu0 %7   ;;  %v20_v9 = vpop.permute.xlu1 %19  }
  0x75   :  { %10 = vst.msk [vmem:[#allocation0] sm:$0x1] %vm9_vm1, %v8_v8  }
  0x78   :  { %v14_v10 = vpop.permute.xlu0 %13   ;;  %v26_v11 = vpop.permute.xlu1 %25  }
  0x79   :  { %16 = vst.msk [vmem:[#allocation0] sm:$0x1] %vm15_vm2, %v14_v10  }
  0x7a   :  { %22 = vst.msk [vmem:[#allocation0] sm:$0x1] %vm21_vm3, %v20_v9  }
  0x7b   :  { %28 = vst.msk [vmem:[#allocation0] sm:$0x1] %vm27_vm4, %v26_v11  }
  0x7c   :  { %v32_v12 = vpop.permute.xlu0 %31   ;;  %v38_v13 = vpop.permute.xlu1 %37  }
  0x7d   :  { %34 = vst.msk [vmem:[#allocation0] sm:$0x1] %vm33_vm5, %v32_v12  }
  0x7e   :  { %40 = vst.msk [vmem:[#allocation0] sm:$0x1] %vm39_vm6, %v38_v13  }
  0x80   :  { %v44_v14 = vpop.permute.xlu0 %43  }
  0x81   :  { %46 = vst.msk [vmem:[#allocation0] sm:$0x1] %vm45_vm7, %v44_v14  }
  0x88   :  { %v50_v15 = vld [vmem:[#allocation0] sm:$0x1] }
  0x89   :  { %52 = vst [vmem:[%s112_s1] sm:$0x1] %v50_v15 }

// kernel: _lambda_.84
= control target key start
LH: loop header
LB: loop body
LE: loop exit
PB: predicated region body
PF: predicated region fallthrough
CT: control target
= control target key end

     0   :  { %vm36_vm0 = vcmask 523264   ;;  %s83_s0 = inlined_call_operand.vmem [shape: f32[16,64], index: 0, kind: input, shape index: {}]   ;;  %s84_s1 = inlined_call_operand.vmem [shape: f32[1,64], index: 1, kind: input, shape index: {}]   ;;  %s85_s2 = inlined_call_operand.vmem [shape: f32[1,64], index: 2, kind: input, shape index: {}]   ;;  %s86_s3 = inlined_call_operand.vmem [shape: f32[16,64], index: 3, kind: output, shape index: {}]  }
   0x1   :  { %v14_v0 = vld [vmem:[%s83_s0] sm:$0xff]  ;;  %v15_v4 = vld [vmem:[%s83_s0 + $0x8] sm:$0xff] }
   0x2   :  { %v43_v1 = vld [vmem:[%s84_s1] ss:$0 sm:$0xff] }
   0x3   :  { %v44_v2 = vld [vmem:[%s85_s2] ss:$0 sm:$0xff]  ;;  %v23_v3 = vmul.f32 %v43_v1, %v14_v0  ;;  %v24_v5 = vmul.f32 %v43_v1, %v15_v4 }
   0x5   :  { %v32_v6 = vadd.f32 %v44_v2, %v23_v3  ;;  %v33_v7 = vadd.f32 %v44_v2, %v24_v5 }
   0x7   :  { %v34_v8 = vmax.f32 %v32_v6, 0.0  ;;  %v35_v9 = vmax.f32 %v33_v7, 0.0 }
   0x9   :  { %37 = vst.msk [vmem:[%s86_s3] sm:$0xff] %vm36_vm0, %v34_v8  ;;  %38 = vst.msk [vmem:[%s86_s3 + $0x8] sm:$0xff] %vm36_vm0, %v35_v9 }

// kernel: _lambda_.85
= control target key start
LH: loop header
LB: loop body
LE: loop exit
PB: predicated region body
PF: predicated region fallthrough
CT: control target
= control target key end

     0   :  { %v501_v0 = vmov 0   ;;  %vm277_vm0 = vcmask 785408   ;;  %vm370_vm1 = vcmask 517120   ;;  %v502_v35 = vmov 0.0   ;;  %s656_s1 = inlined_call_operand.vmem [shape: bf16[480,64], index: 1, kind: input, shape index: {}]   ;;  %s657_s0 = inlined_call_operand.vmem [shape: bf16[16,480], index: 0, kind: input, shape index: {}]   ;;  %s658_s3 = inlined_call_operand.vmem [shape: f32[2,64], index: 3, kind: output, shape index: {1}]   ;;  %s659_s2 = inlined_call_operand.vmem [shape: f32[16,64], index: 2, kind: output, shape index: {0}]  }
   0x1   :  { %322 = vmatprep.subr.bf16.mxu1 %v501_v0  ;;  %v465_v1 = vld [vmem:[%s656_s1 + $0x80] sm:$0xff]   ;;  %v466_v2 = vld [vmem:[%s656_s1 + $0x88] sm:$0xff]   ;;  %v467_v3 = vld [vmem:[%s656_s1 + $0x90] sm:$0xff]   ;;  %371 = vst.msk [vmem:[%s658_s3] sm:$0x3] %vm370_vm1, %v502_v35  ;;  %vm363_vm2 = vcmask 523264  }
   0x2   :  { %323 = vmatpush1.bf16.msra.mxu1 %v465_v1  ;;  %v470_v4 = vld [vmem:[%s656_s1 + $0x40] sm:$0xff]   ;;  %v473_v6 = vld [vmem:[%s656_s1 + $0x48] sm:$0xff]   ;;  %v468_v8 = vld [vmem:[%s656_s1 + $0x98] sm:$0xff]   ;;  %vm392_vm3 = vcmask 1040384  }
   0x3   :  { %324 = vmatprep.subr.bf16.mxu1 %v501_v0  ;;  %v471_v5 = vld [vmem:[%s656_s1] sm:$0xff]   ;;  %441 = vmatprep.subr.bf16.mxu0 %v470_v4  ;;  %v474_v7 = vld [vmem:[%s656_s1 + $0x8] sm:$0xff]   ;;  %v476_v9 = vld [vmem:[%s656_s1 + $0x50] sm:$0xff]  }
   0x4   :  { %442 = vmatpush3.bf16.msra.mxu0 %v471_v5  ;;  %v477_v10 = vld [vmem:[%s656_s1 + $0x10] sm:$0xff]   ;;  %v469_v11 = vld [vmem:[%s656_s1 + $0xa0] sm:$0xff]   ;;  %v479_v12 = vld [vmem:[%s656_s1 + $0x58] sm:$0xff]  }
   0x5   :  { %443 = vmatprep.subr.bf16.mxu0 %v473_v6  ;;  %v480_v13 = vld [vmem:[%s656_s1 + $0x18] sm:$0xff]   ;;  %v482_v14 = vld [vmem:[%s656_s1 + $0x60] sm:$0xff]   ;;  %v472_v15 = vld [vmem:[%s656_s1 + $0xa8] sm:$0xff]  }
   0x6   :  { %325 = vmatpush1.bf16.msra.mxu1 %v466_v2  ;;  %v483_v16 = vld [vmem:[%s656_s1 + $0x20] sm:$0xff]   ;;  %v485_v17 = vld [vmem:[%s656_s1 + $0x68] sm:$0xff]   ;;  %v475_v18 = vld [vmem:[%s656_s1 + $0xb0] sm:$0xff]  }
   0x7   :  { %326 = vmatprep.subr.bf16.mxu1 %v501_v0  ;;  %v486_v19 = vld [vmem:[%s656_s1 + $0x28] sm:$0xff]   ;;  %v488_v20 = vld [vmem:[%s656_s1 + $0x70] sm:$0xff]   ;;  %v478_v21 = vld [vmem:[%s656_s1 + $0xb8] sm:$0xff]  }
   0x8   :  { %444 = vmatpush3.bf16.msra.mxu0 %v474_v7  ;;  %v489_v22 = vld [vmem:[%s656_s1 + $0x30] sm:$0xff]   ;;  %v491_v23 = vld [vmem:[%s656_s1 + $0x78] sm:$0xff]   ;;  %v481_v25 = vld [vmem:[%s656_s1 + $0xc0] sm:$0xff]  }
   0x9   :  { %445 = vmatprep.subr.bf16.mxu0 %v476_v9  ;;  %v495_v24 = vld [vmem:[%s657_s0 + $0x4] ss:$16 sps:$4 sm:$0xff]   ;;  %v492_v26 = vld [vmem:[%s656_s1 + $0x38] sm:$0xff]   ;;  %v484_v28 = vld [vmem:[%s656_s1 + $0xc8] sm:$0xff]  }
   0xa   :  { %327 = vmatpush1.bf16.msra.mxu1 %v467_v3  ;;  %313 = vmatprep.mubr.bf16.mxu0 %v495_v24  ;;  %v500_v27 = vld [vmem:[%s657_s0 + $0xc] ss:$16 sps:$4 sm:$0xff]   ;;  %v493_v29 = vld [vmem:[%s657_s0] ss:$16 sps:$4 sm:$0xff]   ;;  %v498_v34 = vld [vmem:[%s657_s0 + $0x8] ss:$16 sps:$4 sm:$0xff]  }
   0xb   :  { %328 = vmatprep.subr.bf16.mxu1 %v501_v0  ;;  %440 = vmatprep.mubr.msk.bf16.mxu1 %vm277_vm0, %v500_v27  ;;  %v487_v30 = vld [vmem:[%s656_s1 + $0xd0] sm:$0xff]   ;;  %v490_v31 = vld [vmem:[%s656_s1 + $0xd8] sm:$0xff]   ;;  %v496_v32 = vld [vmem:[%s656_s1 + $0xe0] sm:$0xff]  }
   0xc   :  { %446 = vmatpush3.bf16.msra.mxu0 %v477_v10  ;;  %v497_v33 = vld [vmem:[%s656_s1 + $0xe8] sm:$0xff]   ;;  %v394_v4 = vld [vmem:[%s658_s3] sm:$0x3] }
   0xd   :  { %447 = vmatprep.subr.bf16.mxu0 %v479_v12 }
   0xe   :  { %329 = vmatpush1.bf16.msra.mxu1 %v468_v8 }
   0xf   :  { %330 = vmatprep.subr.bf16.mxu1 %v501_v0 }
  0x10   :  { %448 = vmatpush3.bf16.msra.mxu0 %v480_v13 }
  0x11   :  { %449 = vmatprep.subr.bf16.mxu0 %v482_v14 }
  0x12   :  { %331 = vmatpush1.bf16.msra.mxu1 %v469_v11 }
  0x13   :  { %332 = vmatprep.subr.bf16.mxu1 %v501_v0 }
  0x14   :  { %450 = vmatpush3.bf16.msra.mxu0 %v483_v16 }
  0x15   :  { %451 = vmatprep.subr.bf16.mxu0 %v485_v17 }
  0x16   :  { %333 = vmatpush1.bf16.msra.mxu1 %v472_v15 }
  0x17   :  { %334 = vmatprep.subr.bf16.mxu1 %v501_v0 }
  0x18   :  { %452 = vmatpush3.bf16.msra.mxu0 %v486_v19 }
  0x19   :  { %453 = vmatprep.subr.bf16.mxu0 %v488_v20 }
  0x1a   :  { %335 = vmatpush1.bf16.msra.mxu1 %v475_v18 }
  0x1b   :  { %336 = vmatprep.subr.bf16.mxu1 %v501_v0 }
  0x1c   :  { %454 = vmatpush3.bf16.msra.mxu0 %v489_v22 }
  0x1d   :  { %455 = vmatprep.subr.bf16.mxu0 %v491_v23 }
  0x1e   :  { %337 = vmatpush1.bf16.msra.mxu1 %v478_v21 }
  0x1f   :  { %338 = vmatprep.subr.bf16.mxu1 %v501_v0 }
  0x20   :  { %456 = vmatpush3.bf16.msra.mxu0 %v492_v26 }
  0x22   :  { %339 = vmatpush1.bf16.msra.mxu1 %v481_v25 }
  0x23   :  { %340 = vmatprep.subr.bf16.mxu1 %v501_v0  ;;  %314 = vmatmul.mubr.bf16.vlgmr.msra.gmra.mrb[0].mxu0 %v493_v29 }
  0x26   :  { %341 = vmatpush1.bf16.msra.mxu1 %v484_v28 }
  0x27   :  { %342 = vmatprep.subr.bf16.mxu1 %v501_v0 }
  0x2a   :  { %343 = vmatpush1.bf16.msra.mxu1 %v487_v30 }
  0x2b   :  { %344 = vmatprep.subr.bf16.mxu1 %v501_v0 }
  0x2e   :  { %345 = vmatpush1.bf16.msra.mxu1 %v490_v31 }
  0x2f   :  { %346 = vmatprep.subr.bf16.mxu1 %v501_v0 }
  0x32   :  { %347 = vmatpush1.bf16.msra.mxu1 %v496_v32 }
  0x33   :  { %348 = vmatprep.subr.bf16.mxu1 %v501_v0 }
  0x36   :  { %349 = vmatpush1.bf16.msra.mxu1 %v497_v33 }
  0x39   :  { %355 = vmatmul.mubr.bf16.vlgmr.msra.gmra.mrb[0].mxu1 %v498_v34 }
  0xf6   :  { %v457_v36 = vpop.f32.mrb[0].mxu0 }
  0xf7   :  { %v458_v37 = vpop.f32.mrb[1].mxu0 }
  0xf8   :  { %v459_v38 = vadd.f32 %v458_v37, %v457_v36  ;;  %v460_v39 = vpop.f32.mrb[2].mxu0 }
  0xf9   :  { %v461_v40 = vpop.f32.mrb[3].mxu0 }
  0xfa   :  { %v462_v41 = vadd.f32 %v461_v40, %v460_v39 }
 0x10c   :  { %v356_v42 = vpop.f32.mrb[0].mxu1 }
 0x10d   :  { %v357_v43 = vadd.f32 %v459_v38, %v356_v42  ;;  %v358_v44 = vpop.f32.mrb[1].mxu1 }
 0x10e   :  { %v359_v45 = vpop.f32.mrb[2].mxu1 }
 0x10f   :  { %364 = vst.msk [vmem:[%s659_s2] sm:$0xff] %vm363_vm2, %v357_v43  ;;  %v381_v46 = vmul.f32 %v357_v43, %v357_v43  ;;  %v360_v47 = vadd.f32 %v462_v41, %v359_v45  ;;  %v361_v48 = vpop.f32.mrb[3].mxu1  ;;  %v372_v49 = vsel %vm363_vm2, %v357_v43, 0.0 }
 0x111   :  { %365 = vst.msk [vmem:[%s659_s2 + $0x8] sm:$0xff] %vm363_vm2, %v360_v47  ;;  %v373_v50 = vsel %vm363_vm2, %v360_v47, 0.0  ;;  %v382_v51 = vmul.f32 %v360_v47, %v360_v47  ;;  %v383_v53 = vsel %vm363_vm2, %v381_v46, 0.0 }
 0x112   :  { %v374_v52 = vadd.f32 %v373_v50, %v372_v49 }
 0x113   :  { %v384_v54 = vsel %vm363_vm2, %v382_v51, 0.0 }
 0x114   :  { %v375_v55 = vrot.slane %v374_v52, 4  ;;  %v385_v56 = vadd.f32 %v384_v54, %v383_v53 }
 0x116   :  { %v376_v57 = vadd.f32 %v375_v55, %v374_v52  ;;  %v386_v58 = vrot.slane %v385_v56, 4 }
 0x118   :  { %v377_v59 = vrot.slane %v376_v57, 2  ;;  %v387_v60 = vadd.f32 %v386_v58, %v385_v56 }
 0x11a   :  { %v378_v61 = vadd.f32 %v377_v59, %v376_v57  ;;  %v388_v62 = vrot.slane %v387_v60, 2 }
 0x11c   :  { %v379_v63 = vrot.slane %v378_v61, 1  ;;  %v389_v0 = vadd.f32 %v388_v62, %v387_v60 }
 0x11e   :  { %v390_v1 = vrot.slane %v389_v0, 1  ;;  %v380_v2 = vadd.f32 %v379_v63, %v378_v61 }
 0x120   :  { %v391_v3 = vadd.f32 %v390_v1, %v389_v0 }
 0x122   :  { %v393_v5 = vsel %vm392_vm3, %v380_v2, %v391_v3 }
 0x123   :  { %v395_v6 = vadd.f32 %v394_v4, %v393_v5 }
 0x125   :  { %397 = vst.msk [vmem:[%s658_s3] sm:$0x3] %vm370_vm1, %v395_v6 }

// kernel: _lambda_.87
= control target key start
LH: loop header
LB: loop body
LE: loop exit
PB: predicated region body
PF: predicated region fallthrough
CT: control target
= control target key end

     0   :  { %v271_v0 = vmov 0   ;;  %vm145_vm0 = vcmask 916480   ;;  %vm197_vm1 = vcmask 517120   ;;  %v272_v18 = vmov 0.0   ;;  %s361_s1 = inlined_call_operand.vmem [shape: bf16[240,64], index: 1, kind: input, shape index: {}]   ;;  %s362_s0 = inlined_call_operand.vmem [shape: bf16[16,240], index: 0, kind: input, shape index: {}]   ;;  %s363_s3 = inlined_call_operand.vmem [shape: f32[2,64], index: 3, kind: output, shape index: {1}]   ;;  %s364_s2 = inlined_call_operand.vmem [shape: f32[16,64], index: 2, kind: output, shape index: {0}]  }
   0x1   :  { %149 = vmatprep.subr.bf16.mxu0 %v271_v0  ;;  %v253_v1 = vld [vmem:[%s361_s1] sm:$0xff]   ;;  %v254_v2 = vld [vmem:[%s361_s1 + $0x8] sm:$0xff]   ;;  %v255_v3 = vld [vmem:[%s361_s1 + $0x10] sm:$0xff]   ;;  %198 = vst.msk [vmem:[%s363_s3] sm:$0x3] %vm197_vm1, %v272_v18  ;;  %vm190_vm2 = vcmask 523264  }
   0x2   :  { %150 = vmatpush1.bf16.msra.mxu0 %v253_v1  ;;  %v256_v4 = vld [vmem:[%s361_s1 + $0x18] sm:$0xff]   ;;  %v257_v5 = vld [vmem:[%s361_s1 + $0x20] sm:$0xff]   ;;  %v258_v7 = vld [vmem:[%s361_s1 + $0x28] sm:$0xff]   ;;  %vm219_vm3 = vcmask 1040384  }
   0x3   :  { %151 = vmatprep.subr.bf16.mxu0 %v271_v0  ;;  %v270_v6 = vld [vmem:[%s362_s0 + $0x4] ss:$8 sps:$4 sm:$0xff]   ;;  %v259_v8 = vld [vmem:[%s361_s1 + $0x30] sm:$0xff]   ;;  %v260_v9 = vld [vmem:[%s361_s1 + $0x38] sm:$0xff]  }
   0x4   :  { %250 = vmatprep.mubr.msk.bf16.mxu0 %vm145_vm0, %v270_v6  ;;  %v261_v10 = vld [vmem:[%s361_s1 + $0x40] sm:$0xff]   ;;  %v262_v11 = vld [vmem:[%s361_s1 + $0x48] sm:$0xff]   ;;  %v263_v12 = vld [vmem:[%s361_s1 + $0x50] sm:$0xff]  }
   0x5   :  { %v264_v13 = vld [vmem:[%s361_s1 + $0x58] sm:$0xff]   ;;  %v265_v14 = vld [vmem:[%s361_s1 + $0x60] sm:$0xff]   ;;  %v266_v15 = vld [vmem:[%s361_s1 + $0x68] sm:$0xff]  }
   0x6   :  { %152 = vmatpush1.bf16.msra.mxu0 %v254_v2  ;;  %v267_v16 = vld [vmem:[%s361_s1 + $0x70] sm:$0xff]   ;;  %v268_v17 = vld [vmem:[%s362_s0] ss:$8 sps:$4 sm:$0xff]  }
   0x7   :  { %153 = vmatprep.subr.bf16.mxu0 %v271_v0 }
   0x8   :  { %v221_v43 = vld [vmem:[%s363_s3] sm:$0x3] }
   0xa   :  { %154 = vmatpush1.bf16.msra.mxu0 %v255_v3 }
   0xb   :  { %155 = vmatprep.subr.bf16.mxu0 %v271_v0 }
   0xe   :  { %156 = vmatpush1.bf16.msra.mxu0 %v256_v4 }
   0xf   :  { %157 = vmatprep.subr.bf16.mxu0 %v271_v0 }
  0x12   :  { %158 = vmatpush1.bf16.msra.mxu0 %v257_v5 }
  0x13   :  { %159 = vmatprep.subr.bf16.mxu0 %v271_v0 }
  0x16   :  { %160 = vmatpush1.bf16.msra.mxu0 %v258_v7 }
  0x17   :  { %161 = vmatprep.subr.bf16.mxu0 %v271_v0 }
  0x1a   :  { %162 = vmatpush1.bf16.msra.mxu0 %v259_v8 }
  0x1b   :  { %163 = vmatprep.subr.bf16.mxu0 %v271_v0 }
  0x1e   :  { %164 = vmatpush1.bf16.msra.mxu0 %v260_v9 }
  0x1f   :  { %165 = vmatprep.subr.bf16.mxu0 %v271_v0 }
  0x22   :  { %166 = vmatpush1.bf16.msra.mxu0 %v261_v10 }
  0x23   :  { %167 = vmatprep.subr.bf16.mxu0 %v271_v0 }
  0x26   :  { %168 = vmatpush1.bf16.msra.mxu0 %v262_v11 }
  0x27   :  { %169 = vmatprep.subr.bf16.mxu0 %v271_v0 }
  0x2a   :  { %170 = vmatpush1.bf16.msra.mxu0 %v263_v12 }
  0x2b   :  { %171 = vmatprep.subr.bf16.mxu0 %v271_v0 }
  0x2e   :  { %172 = vmatpush1.bf16.msra.mxu0 %v264_v13 }
  0x2f   :  { %173 = vmatprep.subr.bf16.mxu0 %v271_v0 }
  0x32   :  { %174 = vmatpush1.bf16.msra.mxu0 %v265_v14 }
  0x33   :  { %175 = vmatprep.subr.bf16.mxu0 %v271_v0 }
  0x36   :  { %176 = vmatpush1.bf16.msra.mxu0 %v266_v15 }
  0x37   :  { %177 = vmatprep.subr.bf16.mxu0 %v271_v0 }
  0x3a   :  { %178 = vmatpush1.bf16.msra.mxu0 %v267_v16 }
  0x3d   :  { %182 = vmatmul.mubr.bf16.vlgmr.msra.gmra.mrb[0].mxu0 %v268_v17 }
 0x110   :  { %v183_v19 = vpop.f32.mrb[0].mxu0 }
 0x111   :  { %191 = vst.msk [vmem:[%s364_s2] sm:$0xff] %vm190_vm2, %v183_v19  ;;  %v208_v20 = vmul.f32 %v183_v19, %v183_v19  ;;  %v185_v21 = vpop.f32.mrb[1].mxu0  ;;  %v199_v23 = vsel %vm190_vm2, %v183_v19, 0.0 }
 0x112   :  { %v186_v22 = vpop.f32.mrb[2].mxu0 }
 0x113   :  { %192 = vst.msk [vmem:[%s364_s2 + $0x8] sm:$0xff] %vm190_vm2, %v186_v22  ;;  %v200_v24 = vsel %vm190_vm2, %v186_v22, 0.0  ;;  %v209_v25 = vmul.f32 %v186_v22, %v186_v22  ;;  %v188_v26 = vpop.f32.mrb[3].mxu0  ;;  %v210_v28 = vsel %vm190_vm2, %v208_v20, 0.0 }
 0x114   :  { %v201_v27 = vadd.f32 %v200_v24, %v199_v23 }
 0x115   :  { %v211_v29 = vsel %vm190_vm2, %v209_v25, 0.0 }
 0x116   :  { %v202_v30 = vrot.slane %v201_v27, 4  ;;  %v212_v31 = vadd.f32 %v211_v29, %v210_v28 }
 0x118   :  { %v203_v32 = vadd.f32 %v202_v30, %v201_v27  ;;  %v213_v33 = vrot.slane %v212_v31, 4 }
 0x11a   :  { %v204_v34 = vrot.slane %v203_v32, 2  ;;  %v214_v35 = vadd.f32 %v213_v33, %v212_v31 }
 0x11c   :  { %v205_v36 = vadd.f32 %v204_v34, %v203_v32  ;;  %v215_v37 = vrot.slane %v214_v35, 2 }
 0x11e   :  { %v206_v38 = vrot.slane %v205_v36, 1  ;;  %v216_v39 = vadd.f32 %v215_v37, %v214_v35 }
 0x120   :  { %v217_v40 = vrot.slane %v216_v39, 1  ;;  %v207_v41 = vadd.f32 %v206_v38, %v205_v36 }
 0x122   :  { %v218_v42 = vadd.f32 %v217_v40, %v216_v39 }
 0x124   :  { %v220_v44 = vsel %vm219_vm3, %v207_v41, %v218_v42 }
 0x125   :  { %v222_v45 = vadd.f32 %v221_v43, %v220_v44 }
 0x127   :  { %224 = vst.msk [vmem:[%s363_s3] sm:$0x3] %vm197_vm1, %v222_v45 }

// kernel: _lambda_.94
= control target key start
LH: loop header
LB: loop body
LE: loop exit
PB: predicated region body
PF: predicated region fallthrough
CT: control target
= control target key end

     0   :  { %vm44_vm0 = vcmask 64512   ;;  %s105_s0 = inlined_call_operand.vmem [shape: f32[32,8], index: 0, kind: input, shape index: {}]   ;;  %s106_s1 = inlined_call_operand.vmem [shape: f32[1,8], index: 1, kind: input, shape index: {}]   ;;  %s107_s2 = inlined_call_operand.vmem [shape: f32[1,8], index: 2, kind: input, shape index: {}]   ;;  %s108_s3 = inlined_call_operand.vmem [shape: f32[32,8], index: 3, kind: output, shape index: {}]  }
   0x1   :  { %v14_v0 = vld [vmem:[%s105_s0] sm:$0xff]  ;;  %v15_v4 = vld [vmem:[%s105_s0 + $0x8] sm:$0xff]  ;;  %v16_v5 = vld [vmem:[%s105_s0 + $0x10] sm:$0xff] }
   0x2   :  { %v53_v1 = vld [vmem:[%s106_s1] ss:$0 sm:$0xff]  ;;  %v17_v6 = vld [vmem:[%s105_s0 + $0x18] sm:$0xff] }
   0x3   :  { %v54_v2 = vld [vmem:[%s107_s2] ss:$0 sm:$0xff]  ;;  %v25_v3 = vmul.f32 %v53_v1, %v14_v0  ;;  %v26_v7 = vmul.f32 %v53_v1, %v15_v4  ;;  %v27_v8 = vmul.f32 %v53_v1, %v16_v5  ;;  %v28_v9 = vmul.f32 %v53_v1, %v17_v6 }
   0x5   :  { %v36_v10 = vadd.f32 %v54_v2, %v25_v3  ;;  %v37_v11 = vadd.f32 %v54_v2, %v26_v7  ;;  %v38_v12 = vadd.f32 %v54_v2, %v27_v8  ;;  %v39_v13 = vadd.f32 %v54_v2, %v28_v9 }
   0x7   :  { %v40_v14 = vmax.f32 %v36_v10, 0.0  ;;  %v41_v15 = vmax.f32 %v37_v11, 0.0  ;;  %v42_v16 = vmax.f32 %v38_v12, 0.0  ;;  %v43_v17 = vmax.f32 %v39_v13, 0.0 }
   0x9   :  { %45 = vst.msk [vmem:[%s108_s3] sm:$0xff] %vm44_vm0, %v40_v14  ;;  %46 = vst.msk [vmem:[%s108_s3 + $0x8] sm:$0xff] %vm44_vm0, %v41_v15 }
   0xa   :  { %47 = vst.msk [vmem:[%s108_s3 + $0x10] sm:$0xff] %vm44_vm0, %v42_v16  ;;  %48 = vst.msk [vmem:[%s108_s3 + $0x18] sm:$0xff] %vm44_vm0, %v43_v17 }

// kernel: _lambda_.93
= control target key start
LH: loop header
LB: loop body
LE: loop exit
PB: predicated region body
PF: predicated region fallthrough
CT: control target
= control target key end

     0   :  { %vm44_vm0 = vcmask 261120   ;;  %vm109_vm1 = vcmask 58368   ;;  %v178_v4 = vmov 0.0   ;;  %vm100_vm2 = vcmask 64512   ;;  %s246_s1 = inlined_call_operand.vmem [shape: bf16[32,8], index: 1, kind: input, shape index: {}]   ;;  %s247_s0 = inlined_call_operand.vmem [shape: bf16[32,32], index: 0, kind: input, shape index: {}]   ;;  %s248_s3 = inlined_call_operand.vmem [shape: f32[2,8], index: 3, kind: output, shape index: {1}]   ;;  %s249_s2 = inlined_call_operand.vmem [shape: f32[32,8], index: 2, kind: output, shape index: {0}]  }
   0x1   :  { %v174_v0 = vld [vmem:[%s246_s1] sm:$0xff]   ;;  %v175_v1 = vld [vmem:[%s246_s1 + $0x8] sm:$0xff]   ;;  %110 = vst.msk [vmem:[%s248_s3] sm:$0x3] %vm109_vm1, %v178_v4  ;;  %vm141_vm3 = vcmask 1040384  }
   0x2   :  { %165 = vmatprep.subr.bf16.mxu0 %v174_v0  ;;  %v176_v2 = vld [vmem:[%s247_s0] sm:$0xff]   ;;  %v177_v3 = vld [vmem:[%s247_s0 + $0x8] sm:$0xff]  }
   0x3   :  { %166 = vmatpush3.bf16.msra.mxu0 %v174_v0  ;;  %169 = vmatprep.mubr.msk.bf16.mxu0 %vm44_vm0, %v176_v2 }
   0x4   :  { %167 = vmatprep.subr.bf16.mxu0 %v175_v1 }
   0x7   :  { %168 = vmatpush3.bf16.msra.mxu0 %v175_v1 }
   0x8   :  { %v143_v39 = vld [vmem:[%s248_s3] sm:$0x3] }
   0xa   :  { %170 = vmatmul.mubr.msk.bf16.vlgmr.msra.gmra.mrb[0].mxu0 %vm44_vm0, %v177_v3 }
  0xdd   :  { %v171_v5 = vpop.f32.mrb[0].mxu0 }
  0xde   :  { %103 = vst.msk [vmem:[%s249_s2 + $0x10] sm:$0xff] %vm100_vm2, %v171_v5  ;;  %v85_v6 = vpop.f32.mrb[1].mxu0  ;;  %v126_v10 = vmul.f32 %v171_v5, %v171_v5  ;;  %v114_v15 = vsel %vm100_vm2, %v171_v5, 0.0 }
  0xdf   :  { %101 = vst.msk [vmem:[%s249_s2] sm:$0xff] %vm100_vm2, %v85_v6  ;;  %v124_v7 = vmul.f32 %v85_v6, %v85_v6  ;;  %v172_v8 = vpop.f32.mrb[2].mxu0  ;;  %v111_v11 = vsel %vm100_vm2, %v85_v6, 0.0 }
  0xe0   :  { %104 = vst.msk [vmem:[%s249_s2 + $0x18] sm:$0xff] %vm100_vm2, %v172_v8  ;;  %v88_v9 = vpop.f32.mrb[3].mxu0  ;;  %v127_v17 = vmul.f32 %v172_v8, %v172_v8  ;;  %v131_v21 = vsel %vm100_vm2, %v126_v10, 0.0  ;;  %v116_v22 = vsel %vm100_vm2, %v172_v8, 0.0 }
  0xe1   :  { %102 = vst.msk [vmem:[%s249_s2 + $0x8] sm:$0xff] %vm100_vm2, %v88_v9  ;;  %v112_v12 = vsel %vm100_vm2, %v88_v9, 0.0  ;;  %v125_v13 = vmul.f32 %v88_v9, %v88_v9  ;;  %v128_v16 = vsel %vm100_vm2, %v124_v7, 0.0 }
  0xe2   :  { %v113_v14 = vadd.f32 %v112_v12, %v111_v11  ;;  %v133_v25 = vsel %vm100_vm2, %v127_v17, 0.0 }
  0xe3   :  { %v129_v18 = vsel %vm100_vm2, %v125_v13, 0.0 }
  0xe4   :  { %v115_v19 = vadd.f32 %v114_v15, %v113_v14  ;;  %v130_v20 = vadd.f32 %v129_v18, %v128_v16 }
  0xe6   :  { %v117_v23 = vadd.f32 %v116_v22, %v115_v19  ;;  %v132_v24 = vadd.f32 %v131_v21, %v130_v20 }
  0xe8   :  { %v118_v26 = vrot.slane %v117_v23, 4  ;;  %v134_v27 = vadd.f32 %v133_v25, %v132_v24 }
  0xea   :  { %v119_v28 = vadd.f32 %v118_v26, %v117_v23  ;;  %v135_v29 = vrot.slane %v134_v27, 4 }
  0xec   :  { %v120_v30 = vrot.slane %v119_v28, 2  ;;  %v136_v31 = vadd.f32 %v135_v29, %v134_v27 }
  0xee   :  { %v121_v32 = vadd.f32 %v120_v30, %v119_v28  ;;  %v137_v33 = vrot.slane %v136_v31, 2 }
  0xf0   :  { %v122_v34 = vrot.slane %v121_v32, 1  ;;  %v138_v35 = vadd.f32 %v137_v33, %v136_v31 }
  0xf2   :  { %v139_v36 = vrot.slane %v138_v35, 1  ;;  %v123_v37 = vadd.f32 %v122_v34, %v121_v32 }
  0xf4   :  { %v140_v38 = vadd.f32 %v139_v36, %v138_v35 }
  0xf6   :  { %v142_v40 = vsel %vm141_vm3, %v123_v37, %v140_v38 }
  0xf7   :  { %v144_v41 = vadd.f32 %v143_v39, %v142_v40 }
  0xf9   :  { %146 = vst.msk [vmem:[%s248_s3] sm:$0x3] %vm109_vm1, %v144_v41 }

// kernel: tile.437
= control target key start
LH: loop header
LB: loop body
LE: loop exit
PB: predicated region body
PF: predicated region fallthrough
CT: control target
= control target key end

     0   :  { %s22_s0 = inlined_call_operand.vmem [shape: f32[4], index: 0, kind: input, shape index: {}]   ;;  %s23_s1 = inlined_call_operand.vmem [shape: f32[4,4], index: 1, kind: output, shape index: {}]  }
   0x1   :  { %v4_v0 = vld [vmem:[%s22_s0] ss:$0 sm:$0xff] }
   0x2   :  { %5 = vst [vmem:[%s23_s1] sm:$0xf] %v4_v0 }

// kernel: tile.438
= control target key start
LH: loop header
LB: loop body
LE: loop exit
PB: predicated region body
PF: predicated region fallthrough
CT: control target
= control target key end

     0   :  { %vm7_vm0 = vcmask 31744   ;;  %s37_s8 = smov 4   ;;  %s38_s9 = smov 8   ;;  %vm13_vm1 = vcmask 130144   ;;  %vm19_vm2 = vcmask 97344   ;;  %vm25_vm3 = vcmask 64544   ;;  %s55_s0 = inlined_call_operand.vmem [shape: f32[4,4], index: 0, kind: input, shape index: {}]   ;;  %s56_s1 = inlined_call_operand.vmem [shape: f32[1,16], index: 1, kind: output, shape index: {}]  }
   0x1   :  { %v4_v0 = vld [vmem:[%s55_s0] sm:$0xf]  ;;  %s36_s0 = smov 12  }
   0x2   :  { %5 = vst [vmem:[#allocation1] sm:$0xf] %v4_v0 }
   0x9   :  { %v10_v1 = vld [vmem:[#allocation1 + $0x3] sm:$0x1]   ;;  %v22_v2 = vld [vmem:[#allocation1 + $0x1] sm:$0x1]   ;;  %v6_v3 = vld [vmem:[#allocation1] sm:$0x1]  }
   0xa   :  { %11 = vrot.lane.b32.xlu0 %v10_v1, %s36_s0  ;;  %23 = vrot.lane.b32.xlu1 %v22_v2, %s37_s8  ;;  %v16_v4 = vld [vmem:[#allocation1 + $0x2] sm:$0x1]   ;;  %8 = vst.msk [vmem:[#allocation0] sm:$0x1] %vm7_vm0, %v6_v3  }
   0xe   :  { %17 = vrot.lane.b32.xlu0 %v16_v4, %s38_s9 }
  0x7c   :  { %v12_v5 = vpop.permute.xlu0 %11   ;;  %v24_v6 = vpop.permute.xlu1 %23  }
  0x7d   :  { %14 = vst.msk [vmem:[#allocation0] sm:$0x1] %vm13_vm1, %v12_v5  }
  0x80   :  { %v18_v7 = vpop.permute.xlu0 %17  }
  0x81   :  { %20 = vst.msk [vmem:[#allocation0] sm:$0x1] %vm19_vm2, %v18_v7  }
  0x82   :  { %26 = vst.msk [vmem:[#allocation0] sm:$0x1] %vm25_vm3, %v24_v6  }
  0x89   :  { %v30_v8 = vld [vmem:[#allocation0] sm:$0x1] }
  0x8a   :  { %32 = vst [vmem:[%s56_s1] sm:$0x1] %v30_v8 }

// kernel: _lambda_.95
= control target key start
LH: loop header
LB: loop body
LE: loop exit
PB: predicated region body
PF: predicated region fallthrough
CT: control target
= control target key end

     0   :  { %vm286_vm0 = vcmask 123904   ;;  %v411_v1 = vmov 0.0   ;;  %vm412_vm1 = vmmov 0   ;;  %vm193_vm2 = vcmask 523264   ;;  %s519_s1 = inlined_call_operand.vmem [shape: bf16[320,16], index: 1, kind: input, shape index: {}]   ;;  %s520_s3 = inlined_call_operand.vmem [shape: f32[2,16], index: 3, kind: output, shape index: {1}]   ;;  %s521_s0 = inlined_call_operand.vmem [shape: bf16[16,320], index: 0, kind: input, shape index: {}]   ;;  %s522_s2 = inlined_call_operand.vmem [shape: f32[16,16], index: 2, kind: output, shape index: {0}]  }
   0x1   :  { %v387_v0 = vld [vmem:[%s519_s1 + $0x40] sm:$0xff]   ;;  %373 = vmatprep.subr.bf16.mxu1 %v411_v1  ;;  %287 = vst.msk [vmem:[%s520_s3] sm:$0x3] %vm286_vm0, %v411_v1  ;;  %381 = vmatprep.mubr.msk.bf16.mxu1 %vm412_vm1, %v411_v1  ;;  %v389_v3 = vld [vmem:[%s519_s1 + $0x48] sm:$0xff]   ;;  %v391_v5 = vld [vmem:[%s519_s1 + $0x50] sm:$0xff]   ;;  %vm279_vm3 = vcmask 130048  }
   0x2   :  { %v388_v2 = vld [vmem:[%s519_s1] sm:$0xff]   ;;  %346 = vmatprep.subr.bf16.mxu0 %v387_v0  ;;  %v390_v4 = vld [vmem:[%s519_s1 + $0x8] sm:$0xff]   ;;  %v392_v6 = vld [vmem:[%s519_s1 + $0x10] sm:$0xff]   ;;  %vm308_vm4 = vcmask 1040384  }
   0x3   :  { %347 = vmatpush3.bf16.msra.mxu0 %v388_v2  ;;  %v393_v7 = vld [vmem:[%s519_s1 + $0x58] sm:$0xff]   ;;  %v397_v8 = vld [vmem:[%s519_s1 + $0x80] sm:$0xff]   ;;  %v400_v11 = vld [vmem:[%s519_s1 + $0x88] sm:$0xff]  }
   0x4   :  { %348 = vmatprep.subr.bf16.mxu0 %v389_v3  ;;  %v394_v9 = vld [vmem:[%s519_s1 + $0x18] sm:$0xff]   ;;  %v395_v10 = vld [vmem:[%s519_s1 + $0x60] sm:$0xff]   ;;  %374 = vmatpush3.bf16.msra.mxu1 %v397_v8  ;;  %v398_v13 = vld [vmem:[%s519_s1 + $0x68] sm:$0xff]  }
   0x5   :  { %375 = vmatprep.subr.bf16.mxu1 %v411_v1  ;;  %v396_v12 = vld [vmem:[%s519_s1 + $0x20] sm:$0xff]   ;;  %v403_v14 = vld [vmem:[%s519_s1 + $0x90] sm:$0xff]   ;;  %v399_v15 = vld [vmem:[%s519_s1 + $0x28] sm:$0xff]  }
   0x6   :  { %v401_v16 = vld [vmem:[%s519_s1 + $0x70] sm:$0xff]   ;;  %v406_v17 = vld [vmem:[%s519_s1 + $0x98] sm:$0xff]   ;;  %v407_v23 = vld [vmem:[%s521_s0] ss:$12 sps:$4 sm:$0xff]  }
   0x7   :  { %349 = vmatpush3.bf16.msra.mxu0 %v390_v4  ;;  %v409_v18 = vld [vmem:[%s521_s0 + $0x4] ss:$12 sps:$4 sm:$0xff]   ;;  %v410_v20 = vld [vmem:[%s521_s0 + $0x8] ss:$12 sps:$4 sm:$0xff]   ;;  %v404_v21 = vld [vmem:[%s519_s1 + $0x78] sm:$0xff]  }
   0x8   :  { %350 = vmatprep.subr.bf16.mxu0 %v391_v5  ;;  %376 = vmatpush3.bf16.msra.mxu1 %v400_v11  ;;  %v402_v19 = vld [vmem:[%s519_s1 + $0x30] sm:$0xff]   ;;  %v405_v22 = vld [vmem:[%s519_s1 + $0x38] sm:$0xff]   ;;  %v310_v56 = vld [vmem:[%s520_s3] sm:$0x3] }
   0x9   :  { %377 = vmatprep.subr.bf16.mxu1 %v411_v1  ;;  %229 = vmatprep.mubr.bf16.mxu0 %v409_v18 }
   0xb   :  { %351 = vmatpush3.bf16.msra.mxu0 %v392_v6 }
   0xc   :  { %352 = vmatprep.subr.bf16.mxu0 %v393_v7  ;;  %378 = vmatpush3.bf16.msra.mxu1 %v403_v14 }
   0xd   :  { %379 = vmatprep.subr.bf16.mxu1 %v411_v1 }
   0xf   :  { %353 = vmatpush3.bf16.msra.mxu0 %v394_v9 }
  0x10   :  { %354 = vmatprep.subr.bf16.mxu0 %v395_v10  ;;  %380 = vmatpush3.bf16.msra.mxu1 %v406_v17 }
  0x13   :  { %355 = vmatpush3.bf16.msra.mxu0 %v396_v12  ;;  %382 = vmatmul.mubr.msk.bf16.vlgmr.msra.gmra.mrb[0].mxu1 %vm193_vm2, %v410_v20 }
  0x14   :  { %356 = vmatprep.subr.bf16.mxu0 %v398_v13 }
  0x17   :  { %357 = vmatpush3.bf16.msra.mxu0 %v399_v15 }
  0x18   :  { %358 = vmatprep.subr.bf16.mxu0 %v401_v16 }
  0x1b   :  { %359 = vmatpush3.bf16.msra.mxu0 %v402_v19 }
  0x1c   :  { %360 = vmatprep.subr.bf16.mxu0 %v404_v21 }
  0x1f   :  { %361 = vmatpush3.bf16.msra.mxu0 %v405_v22 }
  0x22   :  { %230 = vmatmul.mubr.bf16.vlgmr.msra.gmra.mrb[0].mxu0 %v407_v23 }
  0xe6   :  { %v272_v24 = vpop.f32.mrb[0].mxu1 }
  0xe7   :  { %v383_v25 = vpop.f32.mrb[1].mxu1 }
  0xe8   :  { %v275_v26 = vpop.f32.mrb[2].mxu1 }
  0xe9   :  { %v384_v27 = vpop.f32.mrb[3].mxu1 }
  0xf5   :  { %v362_v28 = vpop.f32.mrb[0].mxu0 }
  0xf6   :  { %v363_v29 = vpop.f32.mrb[1].mxu0 }
  0xf7   :  { %v364_v30 = vadd.f32 %v363_v29, %v362_v28  ;;  %v365_v31 = vpop.f32.mrb[2].mxu0 }
  0xf8   :  { %v366_v32 = vpop.f32.mrb[3].mxu0 }
  0xf9   :  { %v273_v33 = vadd.f32 %v364_v30, %v272_v24  ;;  %v367_v34 = vadd.f32 %v366_v32, %v365_v31 }
  0xfb   :  { %280 = vst.msk [vmem:[%s522_s2] sm:$0xff] %vm279_vm3, %v273_v33  ;;  %v297_v35 = vmul.f32 %v273_v33, %v273_v33  ;;  %v276_v36 = vadd.f32 %v367_v34, %v275_v26  ;;  %v288_v37 = vsel %vm279_vm3, %v273_v33, 0.0 }
  0xfd   :  { %281 = vst.msk [vmem:[%s522_s2 + $0x8] sm:$0xff] %vm279_vm3, %v276_v36  ;;  %v289_v38 = vsel %vm279_vm3, %v276_v36, 0.0  ;;  %v298_v39 = vmul.f32 %v276_v36, %v276_v36  ;;  %v299_v41 = vsel %vm279_vm3, %v297_v35, 0.0 }
  0xfe   :  { %v290_v40 = vadd.f32 %v289_v38, %v288_v37 }
  0xff   :  { %v300_v42 = vsel %vm279_vm3, %v298_v39, 0.0 }
 0x100   :  { %v291_v43 = vrot.slane %v290_v40, 4  ;;  %v301_v44 = vadd.f32 %v300_v42, %v299_v41 }
 0x102   :  { %v292_v45 = vadd.f32 %v291_v43, %v290_v40  ;;  %v302_v46 = vrot.slane %v301_v44, 4 }
 0x104   :  { %v293_v47 = vrot.slane %v292_v45, 2  ;;  %v303_v48 = vadd.f32 %v302_v46, %v301_v44 }
 0x106   :  { %v294_v49 = vadd.f32 %v293_v47, %v292_v45  ;;  %v304_v50 = vrot.slane %v303_v48, 2 }
 0x108   :  { %v295_v51 = vrot.slane %v294_v49, 1  ;;  %v305_v52 = vadd.f32 %v304_v50, %v303_v48 }
 0x10a   :  { %v306_v53 = vrot.slane %v305_v52, 1  ;;  %v296_v54 = vadd.f32 %v295_v51, %v294_v49 }
 0x10c   :  { %v307_v55 = vadd.f32 %v306_v53, %v305_v52 }
 0x10e   :  { %v309_v57 = vsel %vm308_vm4, %v296_v54, %v307_v55 }
 0x10f   :  { %v311_v58 = vadd.f32 %v310_v56, %v309_v57 }
 0x111   :  { %313 = vst.msk [vmem:[%s520_s3] sm:$0x3] %vm286_vm0, %v311_v58 }

// kernel: _lambda_.96
= control target key start
LH: loop header
LB: loop body
LE: loop exit
PB: predicated region body
PF: predicated region fallthrough
CT: control target
= control target key end

     0   :  { %vm36_vm0 = vcmask 130048   ;;  %s83_s0 = inlined_call_operand.vmem [shape: f32[16,16], index: 0, kind: input, shape index: {}]   ;;  %s84_s1 = inlined_call_operand.vmem [shape: f32[1,16], index: 1, kind: input, shape index: {}]   ;;  %s85_s2 = inlined_call_operand.vmem [shape: f32[1,16], index: 2, kind: input, shape index: {}]   ;;  %s86_s3 = inlined_call_operand.vmem [shape: f32[16,16], index: 3, kind: output, shape index: {}]  }
   0x1   :  { %v14_v0 = vld [vmem:[%s83_s0] sm:$0xff]  ;;  %v15_v4 = vld [vmem:[%s83_s0 + $0x8] sm:$0xff] }
   0x2   :  { %v43_v1 = vld [vmem:[%s84_s1] ss:$0 sm:$0xff] }
   0x3   :  { %v44_v2 = vld [vmem:[%s85_s2] ss:$0 sm:$0xff]  ;;  %v23_v3 = vmul.f32 %v43_v1, %v14_v0  ;;  %v24_v5 = vmul.f32 %v43_v1, %v15_v4 }
   0x5   :  { %v32_v6 = vadd.f32 %v44_v2, %v23_v3  ;;  %v33_v7 = vadd.f32 %v44_v2, %v24_v5 }
   0x7   :  { %v34_v8 = vmax.f32 %v32_v6, 0.0  ;;  %v35_v9 = vmax.f32 %v33_v7, 0.0 }
   0x9   :  { %37 = vst.msk [vmem:[%s86_s3] sm:$0xff] %vm36_vm0, %v34_v8  ;;  %38 = vst.msk [vmem:[%s86_s3 + $0x8] sm:$0xff] %vm36_vm0, %v35_v9 }

// kernel: _lambda_.97
= control target key start
LH: loop header
LB: loop body
LE: loop exit
PB: predicated region body
PF: predicated region fallthrough
CT: control target
= control target key end

     0   :  { %v221_v0 = vmov 0   ;;  %vm105_vm0 = vcmask 261120   ;;  %vm157_vm1 = vcmask 123904   ;;  %v222_v13 = vmov 0.0   ;;  %s296_s1 = inlined_call_operand.vmem [shape: bf16[160,16], index: 1, kind: input, shape index: {}]   ;;  %s297_s0 = inlined_call_operand.vmem [shape: bf16[16,160], index: 0, kind: input, shape index: {}]   ;;  %s298_s3 = inlined_call_operand.vmem [shape: f32[2,16], index: 3, kind: output, shape index: {1}]   ;;  %s299_s2 = inlined_call_operand.vmem [shape: f32[16,16], index: 2, kind: output, shape index: {0}]  }
   0x1   :  { %109 = vmatprep.subr.bf16.mxu0 %v221_v0  ;;  %v208_v1 = vld [vmem:[%s296_s1] sm:$0xff]   ;;  %v209_v2 = vld [vmem:[%s296_s1 + $0x8] sm:$0xff]   ;;  %v210_v3 = vld [vmem:[%s296_s1 + $0x10] sm:$0xff]   ;;  %158 = vst.msk [vmem:[%s298_s3] sm:$0x3] %vm157_vm1, %v222_v13  ;;  %vm150_vm2 = vcmask 130048  }
   0x2   :  { %110 = vmatpush1.bf16.msra.mxu0 %v208_v1  ;;  %v211_v4 = vld [vmem:[%s296_s1 + $0x18] sm:$0xff]   ;;  %v220_v5 = vld [vmem:[%s297_s0 + $0x4] ss:$8 sps:$4 sm:$0xff]   ;;  %v214_v8 = vld [vmem:[%s296_s1 + $0x30] sm:$0xff]   ;;  %vm179_vm3 = vcmask 1040384  }
   0x3   :  { %111 = vmatprep.subr.bf16.mxu0 %v221_v0  ;;  %205 = vmatprep.mubr.msk.bf16.mxu0 %vm105_vm0, %v220_v5  ;;  %v212_v6 = vld [vmem:[%s296_s1 + $0x20] sm:$0xff]   ;;  %v213_v7 = vld [vmem:[%s296_s1 + $0x28] sm:$0xff]   ;;  %v215_v9 = vld [vmem:[%s296_s1 + $0x38] sm:$0xff]  }
   0x4   :  { %v216_v10 = vld [vmem:[%s296_s1 + $0x40] sm:$0xff]   ;;  %v217_v11 = vld [vmem:[%s296_s1 + $0x48] sm:$0xff]  }
   0x5   :  { %v218_v12 = vld [vmem:[%s297_s0] ss:$8 sps:$4 sm:$0xff]  }
   0x6   :  { %112 = vmatpush1.bf16.msra.mxu0 %v209_v2 }
   0x7   :  { %113 = vmatprep.subr.bf16.mxu0 %v221_v0 }
   0x8   :  { %v181_v38 = vld [vmem:[%s298_s3] sm:$0x3] }
   0xa   :  { %114 = vmatpush1.bf16.msra.mxu0 %v210_v3 }
   0xb   :  { %115 = vmatprep.subr.bf16.mxu0 %v221_v0 }
   0xe   :  { %116 = vmatpush1.bf16.msra.mxu0 %v211_v4 }
   0xf   :  { %117 = vmatprep.subr.bf16.mxu0 %v221_v0 }
  0x12   :  { %118 = vmatpush1.bf16.msra.mxu0 %v212_v6 }
  0x13   :  { %119 = vmatprep.subr.bf16.mxu0 %v221_v0 }
  0x16   :  { %120 = vmatpush1.bf16.msra.mxu0 %v213_v7 }
  0x17   :  { %121 = vmatprep.subr.bf16.mxu0 %v221_v0 }
  0x1a   :  { %122 = vmatpush1.bf16.msra.mxu0 %v214_v8 }
  0x1b   :  { %123 = vmatprep.subr.bf16.mxu0 %v221_v0 }
  0x1e   :  { %124 = vmatpush1.bf16.msra.mxu0 %v215_v9 }
  0x1f   :  { %125 = vmatprep.subr.bf16.mxu0 %v221_v0 }
  0x22   :  { %126 = vmatpush1.bf16.msra.mxu0 %v216_v10 }
  0x23   :  { %127 = vmatprep.subr.bf16.mxu0 %v221_v0 }
  0x26   :  { %128 = vmatpush1.bf16.msra.mxu0 %v217_v11 }
  0x29   :  { %142 = vmatmul.mubr.bf16.vlgmr.msra.gmra.mrb[0].mxu0 %v218_v12 }
  0xfc   :  { %v143_v14 = vpop.f32.mrb[0].mxu0 }
  0xfd   :  { %151 = vst.msk [vmem:[%s299_s2] sm:$0xff] %vm150_vm2, %v143_v14  ;;  %v168_v15 = vmul.f32 %v143_v14, %v143_v14  ;;  %v145_v16 = vpop.f32.mrb[1].mxu0  ;;  %v159_v18 = vsel %vm150_vm2, %v143_v14, 0.0 }
  0xfe   :  { %v146_v17 = vpop.f32.mrb[2].mxu0 }
  0xff   :  { %152 = vst.msk [vmem:[%s299_s2 + $0x8] sm:$0xff] %vm150_vm2, %v146_v17  ;;  %v160_v19 = vsel %vm150_vm2, %v146_v17, 0.0  ;;  %v169_v20 = vmul.f32 %v146_v17, %v146_v17  ;;  %v148_v21 = vpop.f32.mrb[3].mxu0  ;;  %v170_v23 = vsel %vm150_vm2, %v168_v15, 0.0 }
 0x100   :  { %v161_v22 = vadd.f32 %v160_v19, %v159_v18 }
 0x101   :  { %v171_v24 = vsel %vm150_vm2, %v169_v20, 0.0 }
 0x102   :  { %v162_v25 = vrot.slane %v161_v22, 4  ;;  %v172_v26 = vadd.f32 %v171_v24, %v170_v23 }
 0x104   :  { %v163_v27 = vadd.f32 %v162_v25, %v161_v22  ;;  %v173_v28 = vrot.slane %v172_v26, 4 }
 0x106   :  { %v164_v29 = vrot.slane %v163_v27, 2  ;;  %v174_v30 = vadd.f32 %v173_v28, %v172_v26 }
 0x108   :  { %v165_v31 = vadd.f32 %v164_v29, %v163_v27  ;;  %v175_v32 = vrot.slane %v174_v30, 2 }
 0x10a   :  { %v166_v33 = vrot.slane %v165_v31, 1  ;;  %v176_v34 = vadd.f32 %v175_v32, %v174_v30 }
 0x10c   :  { %v177_v35 = vrot.slane %v176_v34, 1  ;;  %v167_v36 = vadd.f32 %v166_v33, %v165_v31 }
 0x10e   :  { %v178_v37 = vadd.f32 %v177_v35, %v176_v34 }
 0x110   :  { %v180_v39 = vsel %vm179_vm3, %v167_v36, %v178_v37 }
 0x111   :  { %v182_v40 = vadd.f32 %v181_v38, %v180_v39 }
 0x113   :  { %184 = vst.msk [vmem:[%s298_s3] sm:$0x3] %vm157_vm1, %v182_v40 }

// kernel: _lambda_.99
= control target key start
LH: loop header
LB: loop body
LE: loop exit
PB: predicated region body
PF: predicated region fallthrough
CT: control target
= control target key end

     0   :  { %v184_v0 = vmov 0.0   ;;  %vm185_vm0 = vmmov 0   ;;  %vm61_vm1 = vcmask 1043456   ;;  %vm57_vm2 = vcmask 588800   ;;  %s241_s1 = inlined_call_operand.vmem [shape: bf16[72,16], index: 1, kind: input, shape index: {}]   ;;  %s242_s0 = inlined_call_operand.vmem [shape: bf16[16,72], index: 0, kind: input, shape index: {}]   ;;  %s243_s3 = inlined_call_operand.vmem [shape: f32[2,16], index: 3, kind: output, shape index: {1}]   ;;  %s244_s2 = inlined_call_operand.vmem [shape: f32[16,16], index: 2, kind: output, shape index: {0}]  }
   0x1   :  { %162 = vmatprep.subr.bf16.mxu0 %v184_v0  ;;  %v178_v1 = vld [vmem:[%s241_s1] sm:$0xff]   ;;  %172 = vmatprep.mubr.msk.bf16.mxu0 %vm185_vm0, %v184_v0  ;;  %v179_v2 = vld [vmem:[%s241_s1 + $0x8] sm:$0xff]   ;;  %v180_v3 = vld [vmem:[%s241_s1 + $0x10] sm:$0xff]   ;;  %vm113_vm3 = vcmask 123904   ;;  %vm106_vm4 = vcmask 130048   ;;  %vm135_vm5 = vcmask 1040384  }
   0x2   :  { %163 = vmatpush3.bf16.msra.mxu0 %v178_v1  ;;  %v181_v4 = vld [vmem:[%s241_s1 + $0x18] sm:$0xff]   ;;  %v182_v5 = vld [vmem:[%s241_s1 + $0x20] ss:$0 sps:$4 sm:$0xff]   ;;  %114 = vst.msk [vmem:[%s243_s3] sm:$0x3] %vm113_vm3, %v184_v0 }
   0x3   :  { %164 = vmatprep.subr.bf16.mxu0 %v184_v0  ;;  %v63_v6 = vsel %vm61_vm1, %v182_v5, 0  ;;  %v183_v7 = vld [vmem:[%s242_s0] sm:$0xff]  }
   0x6   :  { %165 = vmatpush3.bf16.msra.mxu0 %v179_v2 }
   0x7   :  { %166 = vmatprep.subr.bf16.mxu0 %v184_v0 }
   0x9   :  { %v137_v32 = vld [vmem:[%s243_s3] sm:$0x3] }
   0xa   :  { %167 = vmatpush3.bf16.msra.mxu0 %v180_v3 }
   0xb   :  { %168 = vmatprep.subr.bf16.mxu0 %v184_v0 }
   0xe   :  { %169 = vmatpush3.bf16.msra.mxu0 %v181_v4 }
   0xf   :  { %170 = vmatprep.subr.bf16.mxu0 %v184_v0 }
  0x12   :  { %171 = vmatpush3.bf16.msra.mxu0 %v63_v6 }
  0x15   :  { %173 = vmatmul.mubr.msk.bf16.vlgmr.msra.gmra.mrb[0].mxu0 %vm57_vm2, %v183_v7 }
  0xe8   :  { %v99_v8 = vpop.f32.mrb[0].mxu0 }
  0xe9   :  { %107 = vst.msk [vmem:[%s244_s2] sm:$0xff] %vm106_vm4, %v99_v8  ;;  %v124_v9 = vmul.f32 %v99_v8, %v99_v8  ;;  %v174_v10 = vpop.f32.mrb[1].mxu0  ;;  %v115_v12 = vsel %vm106_vm4, %v99_v8, 0.0 }
  0xea   :  { %v102_v11 = vpop.f32.mrb[2].mxu0 }
  0xeb   :  { %108 = vst.msk [vmem:[%s244_s2 + $0x8] sm:$0xff] %vm106_vm4, %v102_v11  ;;  %v116_v13 = vsel %vm106_vm4, %v102_v11, 0.0  ;;  %v125_v14 = vmul.f32 %v102_v11, %v102_v11  ;;  %v175_v15 = vpop.f32.mrb[3].mxu0  ;;  %v126_v17 = vsel %vm106_vm4, %v124_v9, 0.0 }
  0xec   :  { %v117_v16 = vadd.f32 %v116_v13, %v115_v12 }
  0xed   :  { %v127_v18 = vsel %vm106_vm4, %v125_v14, 0.0 }
  0xee   :  { %v118_v19 = vrot.slane %v117_v16, 4  ;;  %v128_v20 = vadd.f32 %v127_v18, %v126_v17 }
  0xf0   :  { %v119_v21 = vadd.f32 %v118_v19, %v117_v16  ;;  %v129_v22 = vrot.slane %v128_v20, 4 }
  0xf2   :  { %v120_v23 = vrot.slane %v119_v21, 2  ;;  %v130_v24 = vadd.f32 %v129_v22, %v128_v20 }
  0xf4   :  { %v121_v25 = vadd.f32 %v120_v23, %v119_v21  ;;  %v131_v26 = vrot.slane %v130_v24, 2 }
  0xf6   :  { %v122_v27 = vrot.slane %v121_v25, 1  ;;  %v132_v28 = vadd.f32 %v131_v26, %v130_v24 }
  0xf8   :  { %v133_v29 = vrot.slane %v132_v28, 1  ;;  %v123_v30 = vadd.f32 %v122_v27, %v121_v25 }
  0xfa   :  { %v134_v31 = vadd.f32 %v133_v29, %v132_v28 }
  0xfc   :  { %v136_v33 = vsel %vm135_vm5, %v123_v30, %v134_v31 }
  0xfd   :  { %v138_v34 = vadd.f32 %v137_v32, %v136_v33 }
  0xff   :  { %140 = vst.msk [vmem:[%s243_s3] sm:$0x3] %vm113_vm3, %v138_v34 }

// kernel: _lambda_.106
= control target key start
LH: loop header
LB: loop body
LE: loop exit
PB: predicated region body
PF: predicated region fallthrough
CT: control target
= control target key end

     0   :  { %vm36_vm0 = vcmask 31744   ;;  %s83_s0 = inlined_call_operand.vmem [shape: f32[16,4], index: 0, kind: input, shape index: {}]   ;;  %s84_s1 = inlined_call_operand.vmem [shape: f32[1,4], index: 1, kind: input, shape index: {}]   ;;  %s85_s2 = inlined_call_operand.vmem [shape: f32[1,4], index: 2, kind: input, shape index: {}]   ;;  %s86_s3 = inlined_call_operand.vmem [shape: f32[16,4], index: 3, kind: output, shape index: {}]  }
   0x1   :  { %v14_v0 = vld [vmem:[%s83_s0] sm:$0xff]  ;;  %v15_v4 = vld [vmem:[%s83_s0 + $0x8] sm:$0xff] }
   0x2   :  { %v43_v1 = vld [vmem:[%s84_s1] ss:$0 sm:$0xff] }
   0x3   :  { %v44_v2 = vld [vmem:[%s85_s2] ss:$0 sm:$0xff]  ;;  %v23_v3 = vmul.f32 %v43_v1, %v14_v0  ;;  %v24_v5 = vmul.f32 %v43_v1, %v15_v4 }
   0x5   :  { %v32_v6 = vadd.f32 %v44_v2, %v23_v3  ;;  %v33_v7 = vadd.f32 %v44_v2, %v24_v5 }
   0x7   :  { %v34_v8 = vmax.f32 %v32_v6, 0.0  ;;  %v35_v9 = vmax.f32 %v33_v7, 0.0 }
   0x9   :  { %37 = vst.msk [vmem:[%s86_s3] sm:$0xff] %vm36_vm0, %v34_v8  ;;  %38 = vst.msk [vmem:[%s86_s3 + $0x8] sm:$0xff] %vm36_vm0, %v35_v9 }

// kernel: _lambda_.105
= control target key start
LH: loop header
LB: loop body
LE: loop exit
PB: predicated region body
PF: predicated region fallthrough
CT: control target
= control target key end

     0   :  { %vm81_vm0 = vcmask 25600   ;;  %v132_v0 = vmov 0.0   ;;  %vm133_vm1 = vmmov 0   ;;  %vm29_vm2 = vcmask 130048   ;;  %s177_s3 = inlined_call_operand.vmem [shape: f32[2,4], index: 3, kind: output, shape index: {1}]   ;;  %s178_s1 = inlined_call_operand.vmem [shape: bf16[16,4], index: 1, kind: input, shape index: {}]   ;;  %s179_s0 = inlined_call_operand.vmem [shape: bf16[16,16], index: 0, kind: input, shape index: {}]   ;;  %s180_s2 = inlined_call_operand.vmem [shape: f32[16,4], index: 2, kind: output, shape index: {0}]  }
   0x1   :  { %122 = vmatprep.subr.bf16.mxu0 %v132_v0  ;;  %82 = vst.msk [vmem:[%s177_s3] sm:$0x3] %vm81_vm0, %v132_v0  ;;  %v130_v1 = vld [vmem:[%s178_s1] sm:$0xff]   ;;  %124 = vmatprep.mubr.msk.bf16.mxu0 %vm133_vm1, %v132_v0  ;;  %vm74_vm3 = vcmask 31744   ;;  %vm103_vm4 = vcmask 1040384  }
   0x2   :  { %v131_v2 = vld [vmem:[%s179_s0] sm:$0xff]   ;;  %123 = vmatpush3.bf16.msra.mxu0 %v130_v1 }
   0x5   :  { %125 = vmatmul.mubr.msk.bf16.vlgmr.msra.gmra.mrb[0].mxu0 %vm29_vm2, %v131_v2 }
   0x8   :  { %v105_v25 = vld [vmem:[%s177_s3] sm:$0x3] }
  0xd8   :  { %v67_v3 = vpop.f32.mrb[0].mxu0 }
  0xd9   :  { %75 = vst.msk [vmem:[%s180_s2] sm:$0xff] %vm74_vm3, %v67_v3  ;;  %v92_v4 = vmul.f32 %v67_v3, %v67_v3  ;;  %v126_v5 = vpop.f32.mrb[1].mxu0  ;;  %v83_v7 = vsel %vm74_vm3, %v67_v3, 0.0 }
  0xda   :  { %v70_v6 = vpop.f32.mrb[2].mxu0 }
  0xdb   :  { %76 = vst.msk [vmem:[%s180_s2 + $0x8] sm:$0xff] %vm74_vm3, %v70_v6  ;;  %v84_v8 = vsel %vm74_vm3, %v70_v6, 0.0  ;;  %v93_v9 = vmul.f32 %v70_v6, %v70_v6  ;;  %v127_v10 = vpop.f32.mrb[3].mxu0  ;;  %v94_v12 = vsel %vm74_vm3, %v92_v4, 0.0 }
  0xdc   :  { %v85_v11 = vadd.f32 %v84_v8, %v83_v7 }
  0xdd   :  { %v95_v13 = vsel %vm74_vm3, %v93_v9, 0.0 }
  0xde   :  { %v86_v14 = vrot.slane %v85_v11, 4  ;;  %v96_v15 = vadd.f32 %v95_v13, %v94_v12 }
  0xe0   :  { %v87_v16 = vadd.f32 %v86_v14, %v85_v11  ;;  %v97_v17 = vrot.slane %v96_v15, 4 }
  0xe2   :  { %v88_v18 = vrot.slane %v87_v16, 2  ;;  %v98_v19 = vadd.f32 %v97_v17, %v96_v15 }
  0xe4   :  { %v89_v20 = vadd.f32 %v88_v18, %v87_v16  ;;  %v99_v21 = vrot.slane %v98_v19, 2 }
  0xe6   :  { %v90_v22 = vrot.slane %v89_v20, 1  ;;  %v100_v23 = vadd.f32 %v99_v21, %v98_v19 }
  0xe8   :  { %v101_v24 = vrot.slane %v100_v23, 1  ;;  %v91_v26 = vadd.f32 %v90_v22, %v89_v20 }
  0xea   :  { %v102_v27 = vadd.f32 %v101_v24, %v100_v23 }
  0xec   :  { %v104_v28 = vsel %vm103_vm4, %v91_v26, %v102_v27 }
  0xed   :  { %v106_v29 = vadd.f32 %v105_v25, %v104_v28 }
  0xef   :  { %108 = vst.msk [vmem:[%s177_s3] sm:$0x3] %vm81_vm0, %v106_v29 }

// kernel: tile.489
= control target key start
LH: loop header
LB: loop body
LE: loop exit
PB: predicated region body
PF: predicated region fallthrough
CT: control target
= control target key end

     0   :  { %s22_s0 = inlined_call_operand.vmem [shape: f32[8], index: 0, kind: input, shape index: {}]   ;;  %s23_s1 = inlined_call_operand.vmem [shape: f32[2,8], index: 1, kind: output, shape index: {}]  }
   0x1   :  { %v4_v0 = vld [vmem:[%s22_s0] ss:$0 sm:$0xff] }
   0x2   :  { %5 = vst [vmem:[%s23_s1] sm:$0x3] %v4_v0 }

// kernel: tile.490
= control target key start
LH: loop header
LB: loop body
LE: loop exit
PB: predicated region body
PF: predicated region fallthrough
CT: control target
= control target key end

     0   :  { %vm7_vm0 = vcmask 64512   ;;  %vm13_vm1 = vcmask 130112   ;;  %s39_s0 = inlined_call_operand.vmem [shape: f32[2,8], index: 0, kind: input, shape index: {}]   ;;  %s40_s1 = inlined_call_operand.vmem [shape: f32[1,16], index: 1, kind: output, shape index: {}]  }
   0x1   :  { %v4_v0 = vld [vmem:[%s39_s0] sm:$0x3]  ;;  %s22_s0 = smov 8  }
   0x2   :  { %5 = vst [vmem:[#allocation1] sm:$0x3] %v4_v0 }
   0x9   :  { %v10_v1 = vld [vmem:[#allocation1 + $0x1] sm:$0x1]   ;;  %v6_v2 = vld [vmem:[#allocation1] sm:$0x1]  }
   0xa   :  { %11 = vrot.lane.b32.xlu0 %v10_v1, %s22_s0  ;;  %8 = vst.msk [vmem:[#allocation0] sm:$0x1] %vm7_vm0, %v6_v2  }
  0x7c   :  { %v12_v3 = vpop.permute.xlu0 %11  }
  0x7d   :  { %14 = vst.msk [vmem:[#allocation0] sm:$0x1] %vm13_vm1, %v12_v3  }
  0x84   :  { %v18_v4 = vld [vmem:[#allocation0] sm:$0x1] }
  0x85   :  { %20 = vst [vmem:[%s40_s1] sm:$0x1] %v18_v4 }

// kernel: _lambda_.107
= control target key start
LH: loop header
LB: loop body
LE: loop exit
PB: predicated region body
PF: predicated region fallthrough
CT: control target
= control target key end

     0   :  { %v223_v0 = vmov 0.0   ;;  %vm224_vm0 = vmmov 0   ;;  %vm85_vm1 = vcmask 1043456   ;;  %vm81_vm2 = vcmask 982016   ;;  %s289_s1 = inlined_call_operand.vmem [shape: bf16[120,16], index: 1, kind: input, shape index: {}]   ;;  %s290_s0 = inlined_call_operand.vmem [shape: bf16[16,120], index: 0, kind: input, shape index: {}]   ;;  %s291_s3 = inlined_call_operand.vmem [shape: f32[2,16], index: 3, kind: output, shape index: {1}]   ;;  %s292_s2 = inlined_call_operand.vmem [shape: f32[16,16], index: 2, kind: output, shape index: {0}]  }
   0x1   :  { %192 = vmatprep.subr.bf16.mxu0 %v223_v0  ;;  %v214_v1 = vld [vmem:[%s289_s1] sm:$0xff]   ;;  %208 = vmatprep.mubr.msk.bf16.mxu0 %vm224_vm0, %v223_v0  ;;  %v215_v2 = vld [vmem:[%s289_s1 + $0x8] sm:$0xff]   ;;  %v216_v3 = vld [vmem:[%s289_s1 + $0x10] sm:$0xff]   ;;  %vm137_vm3 = vcmask 123904   ;;  %vm130_vm4 = vcmask 130048   ;;  %vm159_vm5 = vcmask 1040384  }
   0x2   :  { %193 = vmatpush3.bf16.msra.mxu0 %v214_v1  ;;  %v217_v4 = vld [vmem:[%s289_s1 + $0x18] sm:$0xff]   ;;  %v218_v5 = vld [vmem:[%s289_s1 + $0x20] sm:$0xff]   ;;  %v219_v6 = vld [vmem:[%s289_s1 + $0x28] sm:$0xff]   ;;  %138 = vst.msk [vmem:[%s291_s3] sm:$0x3] %vm137_vm3, %v223_v0 }
   0x3   :  { %194 = vmatprep.subr.bf16.mxu0 %v223_v0  ;;  %v220_v7 = vld [vmem:[%s289_s1 + $0x30] sm:$0xff]   ;;  %v221_v8 = vld [vmem:[%s289_s1 + $0x38] ss:$0 sps:$4 sm:$0xff]   ;;  %v222_v10 = vld [vmem:[%s290_s0] sm:$0xff]  }
   0x4   :  { %v87_v9 = vsel %vm85_vm1, %v221_v8, 0 }
   0x6   :  { %195 = vmatpush3.bf16.msra.mxu0 %v215_v2 }
   0x7   :  { %196 = vmatprep.subr.bf16.mxu0 %v223_v0 }
   0x9   :  { %v161_v35 = vld [vmem:[%s291_s3] sm:$0x3] }
   0xa   :  { %197 = vmatpush3.bf16.msra.mxu0 %v216_v3 }
   0xb   :  { %198 = vmatprep.subr.bf16.mxu0 %v223_v0 }
   0xe   :  { %199 = vmatpush3.bf16.msra.mxu0 %v217_v4 }
   0xf   :  { %200 = vmatprep.subr.bf16.mxu0 %v223_v0 }
  0x12   :  { %201 = vmatpush3.bf16.msra.mxu0 %v218_v5 }
  0x13   :  { %202 = vmatprep.subr.bf16.mxu0 %v223_v0 }
  0x16   :  { %203 = vmatpush3.bf16.msra.mxu0 %v219_v6 }
  0x17   :  { %204 = vmatprep.subr.bf16.mxu0 %v223_v0 }
  0x1a   :  { %205 = vmatpush3.bf16.msra.mxu0 %v220_v7 }
  0x1b   :  { %206 = vmatprep.subr.bf16.mxu0 %v223_v0 }
  0x1e   :  { %207 = vmatpush3.bf16.msra.mxu0 %v87_v9 }
  0x21   :  { %209 = vmatmul.mubr.msk.bf16.vlgmr.msra.gmra.mrb[0].mxu0 %vm81_vm2, %v222_v10 }
  0xf4   :  { %v123_v11 = vpop.f32.mrb[0].mxu0 }
  0xf5   :  { %131 = vst.msk [vmem:[%s292_s2] sm:$0xff] %vm130_vm4, %v123_v11  ;;  %v148_v12 = vmul.f32 %v123_v11, %v123_v11  ;;  %v210_v13 = vpop.f32.mrb[1].mxu0  ;;  %v139_v15 = vsel %vm130_vm4, %v123_v11, 0.0 }
  0xf6   :  { %v126_v14 = vpop.f32.mrb[2].mxu0 }
  0xf7   :  { %132 = vst.msk [vmem:[%s292_s2 + $0x8] sm:$0xff] %vm130_vm4, %v126_v14  ;;  %v140_v16 = vsel %vm130_vm4, %v126_v14, 0.0  ;;  %v149_v17 = vmul.f32 %v126_v14, %v126_v14  ;;  %v211_v18 = vpop.f32.mrb[3].mxu0  ;;  %v150_v20 = vsel %vm130_vm4, %v148_v12, 0.0 }
  0xf8   :  { %v141_v19 = vadd.f32 %v140_v16, %v139_v15 }
  0xf9   :  { %v151_v21 = vsel %vm130_vm4, %v149_v17, 0.0 }
  0xfa   :  { %v142_v22 = vrot.slane %v141_v19, 4  ;;  %v152_v23 = vadd.f32 %v151_v21, %v150_v20 }
  0xfc   :  { %v143_v24 = vadd.f32 %v142_v22, %v141_v19  ;;  %v153_v25 = vrot.slane %v152_v23, 4 }
  0xfe   :  { %v144_v26 = vrot.slane %v143_v24, 2  ;;  %v154_v27 = vadd.f32 %v153_v25, %v152_v23 }
 0x100   :  { %v145_v28 = vadd.f32 %v144_v26, %v143_v24  ;;  %v155_v29 = vrot.slane %v154_v27, 2 }
 0x102   :  { %v146_v30 = vrot.slane %v145_v28, 1  ;;  %v156_v31 = vadd.f32 %v155_v29, %v154_v27 }
 0x104   :  { %v157_v32 = vrot.slane %v156_v31, 1  ;;  %v147_v33 = vadd.f32 %v146_v30, %v145_v28 }
 0x106   :  { %v158_v34 = vadd.f32 %v157_v32, %v156_v31 }
 0x108   :  { %v160_v36 = vsel %vm159_vm5, %v147_v33, %v158_v34 }
 0x109   :  { %v162_v37 = vadd.f32 %v161_v35, %v160_v36 }
 0x10b   :  { %164 = vst.msk [vmem:[%s291_s3] sm:$0x3] %vm137_vm3, %v162_v37 }

// kernel: _lambda_.109
= control target key start
LH: loop header
LB: loop body
LE: loop exit
PB: predicated region body
PF: predicated region fallthrough
CT: control target
= control target key end

     0   :  { %v271_v0 = vmov 0   ;;  %vm145_vm0 = vcmask 916480   ;;  %vm197_vm1 = vcmask 123904   ;;  %v272_v18 = vmov 0.0   ;;  %s361_s1 = inlined_call_operand.vmem [shape: bf16[240,16], index: 1, kind: input, shape index: {}]   ;;  %s362_s0 = inlined_call_operand.vmem [shape: bf16[16,240], index: 0, kind: input, shape index: {}]   ;;  %s363_s3 = inlined_call_operand.vmem [shape: f32[2,16], index: 3, kind: output, shape index: {1}]   ;;  %s364_s2 = inlined_call_operand.vmem [shape: f32[16,16], index: 2, kind: output, shape index: {0}]  }
   0x1   :  { %149 = vmatprep.subr.bf16.mxu0 %v271_v0  ;;  %v253_v1 = vld [vmem:[%s361_s1] sm:$0xff]   ;;  %v254_v2 = vld [vmem:[%s361_s1 + $0x8] sm:$0xff]   ;;  %v255_v3 = vld [vmem:[%s361_s1 + $0x10] sm:$0xff]   ;;  %198 = vst.msk [vmem:[%s363_s3] sm:$0x3] %vm197_vm1, %v272_v18  ;;  %vm190_vm2 = vcmask 130048  }
   0x2   :  { %150 = vmatpush1.bf16.msra.mxu0 %v253_v1  ;;  %v256_v4 = vld [vmem:[%s361_s1 + $0x18] sm:$0xff]   ;;  %v257_v5 = vld [vmem:[%s361_s1 + $0x20] sm:$0xff]   ;;  %v258_v7 = vld [vmem:[%s361_s1 + $0x28] sm:$0xff]   ;;  %vm219_vm3 = vcmask 1040384  }
   0x3   :  { %151 = vmatprep.subr.bf16.mxu0 %v271_v0  ;;  %v270_v6 = vld [vmem:[%s362_s0 + $0x4] ss:$8 sps:$4 sm:$0xff]   ;;  %v259_v8 = vld [vmem:[%s361_s1 + $0x30] sm:$0xff]   ;;  %v260_v9 = vld [vmem:[%s361_s1 + $0x38] sm:$0xff]  }
   0x4   :  { %250 = vmatprep.mubr.msk.bf16.mxu0 %vm145_vm0, %v270_v6  ;;  %v261_v10 = vld [vmem:[%s361_s1 + $0x40] sm:$0xff]   ;;  %v262_v11 = vld [vmem:[%s361_s1 + $0x48] sm:$0xff]   ;;  %v263_v12 = vld [vmem:[%s361_s1 + $0x50] sm:$0xff]  }
   0x5   :  { %v264_v13 = vld [vmem:[%s361_s1 + $0x58] sm:$0xff]   ;;  %v265_v14 = vld [vmem:[%s361_s1 + $0x60] sm:$0xff]   ;;  %v266_v15 = vld [vmem:[%s361_s1 + $0x68] sm:$0xff]  }
   0x6   :  { %152 = vmatpush1.bf16.msra.mxu0 %v254_v2  ;;  %v267_v16 = vld [vmem:[%s361_s1 + $0x70] sm:$0xff]   ;;  %v268_v17 = vld [vmem:[%s362_s0] ss:$8 sps:$4 sm:$0xff]  }
   0x7   :  { %153 = vmatprep.subr.bf16.mxu0 %v271_v0 }
   0x8   :  { %v221_v43 = vld [vmem:[%s363_s3] sm:$0x3] }
   0xa   :  { %154 = vmatpush1.bf16.msra.mxu0 %v255_v3 }
   0xb   :  { %155 = vmatprep.subr.bf16.mxu0 %v271_v0 }
   0xe   :  { %156 = vmatpush1.bf16.msra.mxu0 %v256_v4 }
   0xf   :  { %157 = vmatprep.subr.bf16.mxu0 %v271_v0 }
  0x12   :  { %158 = vmatpush1.bf16.msra.mxu0 %v257_v5 }
  0x13   :  { %159 = vmatprep.subr.bf16.mxu0 %v271_v0 }
  0x16   :  { %160 = vmatpush1.bf16.msra.mxu0 %v258_v7 }
  0x17   :  { %161 = vmatprep.subr.bf16.mxu0 %v271_v0 }
  0x1a   :  { %162 = vmatpush1.bf16.msra.mxu0 %v259_v8 }
  0x1b   :  { %163 = vmatprep.subr.bf16.mxu0 %v271_v0 }
  0x1e   :  { %164 = vmatpush1.bf16.msra.mxu0 %v260_v9 }
  0x1f   :  { %165 = vmatprep.subr.bf16.mxu0 %v271_v0 }
  0x22   :  { %166 = vmatpush1.bf16.msra.mxu0 %v261_v10 }
  0x23   :  { %167 = vmatprep.subr.bf16.mxu0 %v271_v0 }
  0x26   :  { %168 = vmatpush1.bf16.msra.mxu0 %v262_v11 }
  0x27   :  { %169 = vmatprep.subr.bf16.mxu0 %v271_v0 }
  0x2a   :  { %170 = vmatpush1.bf16.msra.mxu0 %v263_v12 }
  0x2b   :  { %171 = vmatprep.subr.bf16.mxu0 %v271_v0 }
  0x2e   :  { %172 = vmatpush1.bf16.msra.mxu0 %v264_v13 }
  0x2f   :  { %173 = vmatprep.subr.bf16.mxu0 %v271_v0 }
  0x32   :  { %174 = vmatpush1.bf16.msra.mxu0 %v265_v14 }
  0x33   :  { %175 = vmatprep.subr.bf16.mxu0 %v271_v0 }
  0x36   :  { %176 = vmatpush1.bf16.msra.mxu0 %v266_v15 }
  0x37   :  { %177 = vmatprep.subr.bf16.mxu0 %v271_v0 }
  0x3a   :  { %178 = vmatpush1.bf16.msra.mxu0 %v267_v16 }
  0x3d   :  { %182 = vmatmul.mubr.bf16.vlgmr.msra.gmra.mrb[0].mxu0 %v268_v17 }
 0x110   :  { %v183_v19 = vpop.f32.mrb[0].mxu0 }
 0x111   :  { %191 = vst.msk [vmem:[%s364_s2] sm:$0xff] %vm190_vm2, %v183_v19  ;;  %v208_v20 = vmul.f32 %v183_v19, %v183_v19  ;;  %v185_v21 = vpop.f32.mrb[1].mxu0  ;;  %v199_v23 = vsel %vm190_vm2, %v183_v19, 0.0 }
 0x112   :  { %v186_v22 = vpop.f32.mrb[2].mxu0 }
 0x113   :  { %192 = vst.msk [vmem:[%s364_s2 + $0x8] sm:$0xff] %vm190_vm2, %v186_v22  ;;  %v200_v24 = vsel %vm190_vm2, %v186_v22, 0.0  ;;  %v209_v25 = vmul.f32 %v186_v22, %v186_v22  ;;  %v188_v26 = vpop.f32.mrb[3].mxu0  ;;  %v210_v28 = vsel %vm190_vm2, %v208_v20, 0.0 }
 0x114   :  { %v201_v27 = vadd.f32 %v200_v24, %v199_v23 }
 0x115   :  { %v211_v29 = vsel %vm190_vm2, %v209_v25, 0.0 }
 0x116   :  { %v202_v30 = vrot.slane %v201_v27, 4  ;;  %v212_v31 = vadd.f32 %v211_v29, %v210_v28 }
 0x118   :  { %v203_v32 = vadd.f32 %v202_v30, %v201_v27  ;;  %v213_v33 = vrot.slane %v212_v31, 4 }
 0x11a   :  { %v204_v34 = vrot.slane %v203_v32, 2  ;;  %v214_v35 = vadd.f32 %v213_v33, %v212_v31 }
 0x11c   :  { %v205_v36 = vadd.f32 %v204_v34, %v203_v32  ;;  %v215_v37 = vrot.slane %v214_v35, 2 }
 0x11e   :  { %v206_v38 = vrot.slane %v205_v36, 1  ;;  %v216_v39 = vadd.f32 %v215_v37, %v214_v35 }
 0x120   :  { %v217_v40 = vrot.slane %v216_v39, 1  ;;  %v207_v41 = vadd.f32 %v206_v38, %v205_v36 }
 0x122   :  { %v218_v42 = vadd.f32 %v217_v40, %v216_v39 }
 0x124   :  { %v220_v44 = vsel %vm219_vm3, %v207_v41, %v218_v42 }
 0x125   :  { %v222_v45 = vadd.f32 %v221_v43, %v220_v44 }
 0x127   :  { %224 = vst.msk [vmem:[%s363_s3] sm:$0x3] %vm197_vm1, %v222_v45 }

// kernel: tile.539
= control target key start
LH: loop header
LB: loop body
LE: loop exit
PB: predicated region body
PF: predicated region fallthrough
CT: control target
= control target key end

     0   :  { %s22_s0 = inlined_call_operand.vmem [shape: f32[8], index: 0, kind: input, shape index: {}]   ;;  %s23_s1 = inlined_call_operand.vmem [shape: f32[4,8], index: 1, kind: output, shape index: {}]  }
   0x1   :  { %v4_v0 = vld [vmem:[%s22_s0] ss:$0 sm:$0xff] }
   0x2   :  { %5 = vst [vmem:[%s23_s1] sm:$0xf] %v4_v0 }

// kernel: tile.540
= control target key start
LH: loop header
LB: loop body
LE: loop exit
PB: predicated region body
PF: predicated region fallthrough
CT: control target
= control target key end

     0   :  { %vm7_vm0 = vcmask 64512   ;;  %s37_s8 = smov 8   ;;  %s38_s9 = smov 16   ;;  %vm13_vm1 = vcmask 261312   ;;  %vm19_vm2 = vcmask 195712   ;;  %vm25_vm3 = vcmask 130112   ;;  %s55_s0 = inlined_call_operand.vmem [shape: f32[4,8], index: 0, kind: input, shape index: {}]   ;;  %s56_s1 = inlined_call_operand.vmem [shape: f32[1,32], index: 1, kind: output, shape index: {}]  }
   0x1   :  { %v4_v0 = vld [vmem:[%s55_s0] sm:$0xf]  ;;  %s36_s0 = smov 24  }
   0x2   :  { %5 = vst [vmem:[#allocation1] sm:$0xf] %v4_v0 }
   0x9   :  { %v10_v1 = vld [vmem:[#allocation1 + $0x3] sm:$0x1]   ;;  %v22_v2 = vld [vmem:[#allocation1 + $0x1] sm:$0x1]   ;;  %v6_v3 = vld [vmem:[#allocation1] sm:$0x1]  }
   0xa   :  { %11 = vrot.lane.b32.xlu0 %v10_v1, %s36_s0  ;;  %23 = vrot.lane.b32.xlu1 %v22_v2, %s37_s8  ;;  %v16_v4 = vld [vmem:[#allocation1 + $0x2] sm:$0x1]   ;;  %8 = vst.msk [vmem:[#allocation0] sm:$0x1] %vm7_vm0, %v6_v3  }
   0xe   :  { %17 = vrot.lane.b32.xlu0 %v16_v4, %s38_s9 }
  0x7c   :  { %v12_v5 = vpop.permute.xlu0 %11   ;;  %v24_v6 = vpop.permute.xlu1 %23  }
  0x7d   :  { %14 = vst.msk [vmem:[#allocation0] sm:$0x1] %vm13_vm1, %v12_v5  }
  0x80   :  { %v18_v7 = vpop.permute.xlu0 %17  }
  0x81   :  { %20 = vst.msk [vmem:[#allocation0] sm:$0x1] %vm19_vm2, %v18_v7  }
  0x82   :  { %26 = vst.msk [vmem:[#allocation0] sm:$0x1] %vm25_vm3, %v24_v6  }
  0x89   :  { %v30_v8 = vld [vmem:[#allocation0] sm:$0x1] }
  0x8a   :  { %32 = vst [vmem:[%s56_s1] sm:$0x1] %v30_v8 }

// kernel: _lambda_.118
= control target key start
LH: loop header
LB: loop body
LE: loop exit
PB: predicated region body
PF: predicated region fallthrough
CT: control target
= control target key end

     0   :  { %vm36_vm0 = vcmask 261120   ;;  %s83_s0 = inlined_call_operand.vmem [shape: f32[16,32], index: 0, kind: input, shape index: {}]   ;;  %s84_s1 = inlined_call_operand.vmem [shape: f32[1,32], index: 1, kind: input, shape index: {}]   ;;  %s85_s2 = inlined_call_operand.vmem [shape: f32[1,32], index: 2, kind: input, shape index: {}]   ;;  %s86_s3 = inlined_call_operand.vmem [shape: f32[16,32], index: 3, kind: output, shape index: {}]  }
   0x1   :  { %v14_v0 = vld [vmem:[%s83_s0] sm:$0xff]  ;;  %v15_v4 = vld [vmem:[%s83_s0 + $0x8] sm:$0xff] }
   0x2   :  { %v43_v1 = vld [vmem:[%s84_s1] ss:$0 sm:$0xff] }
   0x3   :  { %v44_v2 = vld [vmem:[%s85_s2] ss:$0 sm:$0xff]  ;;  %v23_v3 = vmul.f32 %v43_v1, %v14_v0  ;;  %v24_v5 = vmul.f32 %v43_v1, %v15_v4 }
   0x5   :  { %v32_v6 = vadd.f32 %v44_v2, %v23_v3  ;;  %v33_v7 = vadd.f32 %v44_v2, %v24_v5 }
   0x7   :  { %v34_v8 = vmax.f32 %v32_v6, 0.0  ;;  %v35_v9 = vmax.f32 %v33_v7, 0.0 }
   0x9   :  { %37 = vst.msk [vmem:[%s86_s3] sm:$0xff] %vm36_vm0, %v34_v8  ;;  %38 = vst.msk [vmem:[%s86_s3 + $0x8] sm:$0xff] %vm36_vm0, %v35_v9 }

// kernel: _lambda_.117
= control target key start
LH: loop header
LB: loop body
LE: loop exit
PB: predicated region body
PF: predicated region fallthrough
CT: control target
= control target key end

     0   :  { %vm78_vm0 = vcmask 254976   ;;  %vm26_vm1 = vcmask 1043456   ;;  %v127_v0 = vmov 0.0   ;;  %vm128_vm2 = vmmov 0   ;;  %s172_s3 = inlined_call_operand.vmem [shape: f32[2,32], index: 3, kind: output, shape index: {1}]   ;;  %s173_s1 = inlined_call_operand.vmem [shape: bf16[8,32], index: 1, kind: input, shape index: {}]   ;;  %s174_s0 = inlined_call_operand.vmem [shape: bf16[16,8], index: 0, kind: input, shape index: {}]   ;;  %s175_s2 = inlined_call_operand.vmem [shape: f32[16,32], index: 2, kind: output, shape index: {0}]  }
   0x1   :  { %118 = vmatprep.subr.bf16.mxu0 %v127_v0  ;;  %79 = vst.msk [vmem:[%s172_s3] sm:$0x3] %vm78_vm0, %v127_v0  ;;  %v16_v1 = vld [vmem:[%s173_s1] sm:$0xf]  ;;  %120 = vmatprep.mubr.msk.bf16.mxu0 %vm128_vm2, %v127_v0  ;;  %vm22_vm3 = vcmask 64512   ;;  %vm71_vm4 = vcmask 261120  }
   0x2   :  { %v28_v2 = vsel %vm26_vm1, %v16_v1, 0  ;;  %v126_v3 = vld [vmem:[%s174_s0] sm:$0xff]   ;;  %vm100_vm5 = vcmask 1040384  }
   0x3   :  { %119 = vmatpush3.bf16.msra.mxu0 %v28_v2 }
   0x6   :  { %121 = vmatmul.mubr.msk.bf16.vlgmr.msra.gmra.mrb[0].mxu0 %vm22_vm3, %v126_v3 }
   0x8   :  { %v102_v26 = vld [vmem:[%s172_s3] sm:$0x3] }
  0xd9   :  { %v64_v4 = vpop.f32.mrb[0].mxu0 }
  0xda   :  { %72 = vst.msk [vmem:[%s175_s2] sm:$0xff] %vm71_vm4, %v64_v4  ;;  %v89_v5 = vmul.f32 %v64_v4, %v64_v4  ;;  %v122_v6 = vpop.f32.mrb[1].mxu0  ;;  %v80_v8 = vsel %vm71_vm4, %v64_v4, 0.0 }
  0xdb   :  { %v67_v7 = vpop.f32.mrb[2].mxu0 }
  0xdc   :  { %73 = vst.msk [vmem:[%s175_s2 + $0x8] sm:$0xff] %vm71_vm4, %v67_v7  ;;  %v81_v9 = vsel %vm71_vm4, %v67_v7, 0.0  ;;  %v90_v10 = vmul.f32 %v67_v7, %v67_v7  ;;  %v123_v11 = vpop.f32.mrb[3].mxu0  ;;  %v91_v13 = vsel %vm71_vm4, %v89_v5, 0.0 }
  0xdd   :  { %v82_v12 = vadd.f32 %v81_v9, %v80_v8 }
  0xde   :  { %v92_v14 = vsel %vm71_vm4, %v90_v10, 0.0 }
  0xdf   :  { %v83_v15 = vrot.slane %v82_v12, 4  ;;  %v93_v16 = vadd.f32 %v92_v14, %v91_v13 }
  0xe1   :  { %v84_v17 = vadd.f32 %v83_v15, %v82_v12  ;;  %v94_v18 = vrot.slane %v93_v16, 4 }
  0xe3   :  { %v85_v19 = vrot.slane %v84_v17, 2  ;;  %v95_v20 = vadd.f32 %v94_v18, %v93_v16 }
  0xe5   :  { %v86_v21 = vadd.f32 %v85_v19, %v84_v17  ;;  %v96_v22 = vrot.slane %v95_v20, 2 }
  0xe7   :  { %v87_v23 = vrot.slane %v86_v21, 1  ;;  %v97_v24 = vadd.f32 %v96_v22, %v95_v20 }
  0xe9   :  { %v98_v25 = vrot.slane %v97_v24, 1  ;;  %v88_v27 = vadd.f32 %v87_v23, %v86_v21 }
  0xeb   :  { %v99_v28 = vadd.f32 %v98_v25, %v97_v24 }
  0xed   :  { %v101_v29 = vsel %vm100_vm5, %v88_v27, %v99_v28 }
  0xee   :  { %v103_v30 = vadd.f32 %v102_v26, %v101_v29 }
  0xf0   :  { %105 = vst.msk [vmem:[%s172_s3] sm:$0x3] %vm78_vm0, %v103_v30 }

// kernel: _lambda_.111
= control target key start
LH: loop header
LB: loop body
LE: loop exit
PB: predicated region body
PF: predicated region fallthrough
CT: control target
= control target key end

     0   :  { %v197_v0 = vmov 0.0   ;;  %vm198_vm0 = vmmov 0   ;;  %vm69_vm1 = vcmask 785408   ;;  %vm121_vm2 = vcmask 123904   ;;  %s257_s1 = inlined_call_operand.vmem [shape: bf16[96,16], index: 1, kind: input, shape index: {}]   ;;  %s258_s0 = inlined_call_operand.vmem [shape: bf16[16,96], index: 0, kind: input, shape index: {}]   ;;  %s259_s3 = inlined_call_operand.vmem [shape: f32[2,16], index: 3, kind: output, shape index: {1}]   ;;  %s260_s2 = inlined_call_operand.vmem [shape: f32[16,16], index: 2, kind: output, shape index: {0}]  }
   0x1   :  { %172 = vmatprep.subr.bf16.mxu0 %v197_v0  ;;  %v190_v1 = vld [vmem:[%s257_s1] sm:$0xff]   ;;  %184 = vmatprep.mubr.msk.bf16.mxu0 %vm198_vm0, %v197_v0  ;;  %v191_v2 = vld [vmem:[%s257_s1 + $0x8] sm:$0xff]   ;;  %v192_v3 = vld [vmem:[%s257_s1 + $0x10] sm:$0xff]   ;;  %122 = vst.msk [vmem:[%s259_s3] sm:$0x3] %vm121_vm2, %v197_v0  ;;  %vm114_vm3 = vcmask 130048  }
   0x2   :  { %173 = vmatpush3.bf16.msra.mxu0 %v190_v1  ;;  %v193_v4 = vld [vmem:[%s257_s1 + $0x18] sm:$0xff]   ;;  %v194_v5 = vld [vmem:[%s257_s1 + $0x20] sm:$0xff]   ;;  %v195_v6 = vld [vmem:[%s257_s1 + $0x28] sm:$0xff]   ;;  %vm143_vm4 = vcmask 1040384  }
   0x3   :  { %174 = vmatprep.subr.bf16.mxu0 %v197_v0  ;;  %v196_v7 = vld [vmem:[%s258_s0] sm:$0xff]  }
   0x6   :  { %175 = vmatpush3.bf16.msra.mxu0 %v191_v2 }
   0x7   :  { %176 = vmatprep.subr.bf16.mxu0 %v197_v0 }
   0x8   :  { %v145_v32 = vld [vmem:[%s259_s3] sm:$0x3] }
   0xa   :  { %177 = vmatpush3.bf16.msra.mxu0 %v192_v3 }
   0xb   :  { %178 = vmatprep.subr.bf16.mxu0 %v197_v0 }
   0xe   :  { %179 = vmatpush3.bf16.msra.mxu0 %v193_v4 }
   0xf   :  { %180 = vmatprep.subr.bf16.mxu0 %v197_v0 }
  0x12   :  { %181 = vmatpush3.bf16.msra.mxu0 %v194_v5 }
  0x13   :  { %182 = vmatprep.subr.bf16.mxu0 %v197_v0 }
  0x16   :  { %183 = vmatpush3.bf16.msra.mxu0 %v195_v6 }
  0x19   :  { %185 = vmatmul.mubr.msk.bf16.vlgmr.msra.gmra.mrb[0].mxu0 %vm69_vm1, %v196_v7 }
  0xec   :  { %v107_v8 = vpop.f32.mrb[0].mxu0 }
  0xed   :  { %115 = vst.msk [vmem:[%s260_s2] sm:$0xff] %vm114_vm3, %v107_v8  ;;  %v132_v9 = vmul.f32 %v107_v8, %v107_v8  ;;  %v186_v10 = vpop.f32.mrb[1].mxu0  ;;  %v123_v12 = vsel %vm114_vm3, %v107_v8, 0.0 }
  0xee   :  { %v110_v11 = vpop.f32.mrb[2].mxu0 }
  0xef   :  { %116 = vst.msk [vmem:[%s260_s2 + $0x8] sm:$0xff] %vm114_vm3, %v110_v11  ;;  %v124_v13 = vsel %vm114_vm3, %v110_v11, 0.0  ;;  %v133_v14 = vmul.f32 %v110_v11, %v110_v11  ;;  %v187_v15 = vpop.f32.mrb[3].mxu0  ;;  %v134_v17 = vsel %vm114_vm3, %v132_v9, 0.0 }
  0xf0   :  { %v125_v16 = vadd.f32 %v124_v13, %v123_v12 }
  0xf1   :  { %v135_v18 = vsel %vm114_vm3, %v133_v14, 0.0 }
  0xf2   :  { %v126_v19 = vrot.slane %v125_v16, 4  ;;  %v136_v20 = vadd.f32 %v135_v18, %v134_v17 }
  0xf4   :  { %v127_v21 = vadd.f32 %v126_v19, %v125_v16  ;;  %v137_v22 = vrot.slane %v136_v20, 4 }
  0xf6   :  { %v128_v23 = vrot.slane %v127_v21, 2  ;;  %v138_v24 = vadd.f32 %v137_v22, %v136_v20 }
  0xf8   :  { %v129_v25 = vadd.f32 %v128_v23, %v127_v21  ;;  %v139_v26 = vrot.slane %v138_v24, 2 }
  0xfa   :  { %v130_v27 = vrot.slane %v129_v25, 1  ;;  %v140_v28 = vadd.f32 %v139_v26, %v138_v24 }
  0xfc   :  { %v141_v29 = vrot.slane %v140_v28, 1  ;;  %v131_v30 = vadd.f32 %v130_v27, %v129_v25 }
  0xfe   :  { %v142_v31 = vadd.f32 %v141_v29, %v140_v28 }
 0x100   :  { %v144_v33 = vsel %vm143_vm4, %v131_v30, %v142_v31 }
 0x101   :  { %v146_v34 = vadd.f32 %v145_v32, %v144_v33 }
 0x103   :  { %148 = vst.msk [vmem:[%s259_s3] sm:$0x3] %vm121_vm2, %v146_v34 }

// kernel: tile.549
= control target key start
LH: loop header
LB: loop body
LE: loop exit
PB: predicated region body
PF: predicated region fallthrough
CT: control target
= control target key end

     0   :  { %s22_s0 = inlined_call_operand.vmem [shape: f32[16], index: 0, kind: input, shape index: {}]   ;;  %s23_s1 = inlined_call_operand.vmem [shape: f32[4,16], index: 1, kind: output, shape index: {}]  }
   0x1   :  { %v4_v0 = vld [vmem:[%s22_s0] ss:$0 sm:$0xff] }
   0x2   :  { %5 = vst [vmem:[%s23_s1] sm:$0xf] %v4_v0 }

// kernel: tile.550
= control target key start
LH: loop header
LB: loop body
LE: loop exit
PB: predicated region body
PF: predicated region fallthrough
CT: control target
= control target key end

     0   :  { %vm7_vm0 = vcmask 130048   ;;  %s37_s8 = smov 16   ;;  %s38_s9 = smov 32   ;;  %vm13_vm1 = vcmask 523648   ;;  %vm19_vm2 = vcmask 392448   ;;  %vm25_vm3 = vcmask 261248   ;;  %s55_s0 = inlined_call_operand.vmem [shape: f32[4,16], index: 0, kind: input, shape index: {}]   ;;  %s56_s1 = inlined_call_operand.vmem [shape: f32[1,64], index: 1, kind: output, shape index: {}]  }
   0x1   :  { %v4_v0 = vld [vmem:[%s55_s0] sm:$0xf]  ;;  %s36_s0 = smov 48  }
   0x2   :  { %5 = vst [vmem:[#allocation1] sm:$0xf] %v4_v0 }
   0x9   :  { %v10_v1 = vld [vmem:[#allocation1 + $0x3] sm:$0x1]   ;;  %v22_v2 = vld [vmem:[#allocation1 + $0x1] sm:$0x1]   ;;  %v6_v3 = vld [vmem:[#allocation1] sm:$0x1]  }
   0xa   :  { %11 = vrot.lane.b32.xlu0 %v10_v1, %s36_s0  ;;  %23 = vrot.lane.b32.xlu1 %v22_v2, %s37_s8  ;;  %v16_v4 = vld [vmem:[#allocation1 + $0x2] sm:$0x1]   ;;  %8 = vst.msk [vmem:[#allocation0] sm:$0x1] %vm7_vm0, %v6_v3  }
   0xe   :  { %17 = vrot.lane.b32.xlu0 %v16_v4, %s38_s9 }
  0x7c   :  { %v12_v5 = vpop.permute.xlu0 %11   ;;  %v24_v6 = vpop.permute.xlu1 %23  }
  0x7d   :  { %14 = vst.msk [vmem:[#allocation0] sm:$0x1] %vm13_vm1, %v12_v5  }
  0x80   :  { %v18_v7 = vpop.permute.xlu0 %17  }
  0x81   :  { %20 = vst.msk [vmem:[#allocation0] sm:$0x1] %vm19_vm2, %v18_v7  }
  0x82   :  { %26 = vst.msk [vmem:[#allocation0] sm:$0x1] %vm25_vm3, %v24_v6  }
  0x89   :  { %v30_v8 = vld [vmem:[#allocation0] sm:$0x1] }
  0x8a   :  { %32 = vst [vmem:[%s56_s1] sm:$0x1] %v30_v8 }

// kernel: _lambda_.119
= control target key start
LH: loop header
LB: loop body
LE: loop exit
PB: predicated region body
PF: predicated region fallthrough
CT: control target
= control target key end

     0   :  { %vm285_vm0 = vcmask 517120   ;;  %v410_v1 = vmov 0.0   ;;  %vm411_vm1 = vmmov 0   ;;  %vm193_vm2 = vcmask 523264   ;;  %s525_s1 = inlined_call_operand.vmem [shape: bf16[320,64], index: 1, kind: input, shape index: {}]   ;;  %s526_s3 = inlined_call_operand.vmem [shape: f32[2,64], index: 3, kind: output, shape index: {1}]   ;;  %s527_s0 = inlined_call_operand.vmem [shape: bf16[16,320], index: 0, kind: input, shape index: {}]   ;;  %s528_s2 = inlined_call_operand.vmem [shape: f32[16,64], index: 2, kind: output, shape index: {0}]  }
   0x1   :  { %v386_v0 = vld [vmem:[%s525_s1 + $0x40] sm:$0xff]   ;;  %372 = vmatprep.subr.bf16.mxu1 %v410_v1  ;;  %286 = vst.msk [vmem:[%s526_s3] sm:$0x3] %vm285_vm0, %v410_v1  ;;  %380 = vmatprep.mubr.msk.bf16.mxu1 %vm411_vm1, %v410_v1  ;;  %v388_v3 = vld [vmem:[%s525_s1 + $0x48] sm:$0xff]   ;;  %v390_v5 = vld [vmem:[%s525_s1 + $0x50] sm:$0xff]   ;;  %vm307_vm3 = vcmask 1040384  }
   0x2   :  { %v387_v2 = vld [vmem:[%s525_s1] sm:$0xff]   ;;  %345 = vmatprep.subr.bf16.mxu0 %v386_v0  ;;  %v389_v4 = vld [vmem:[%s525_s1 + $0x8] sm:$0xff]   ;;  %v391_v6 = vld [vmem:[%s525_s1 + $0x10] sm:$0xff]  }
   0x3   :  { %346 = vmatpush3.bf16.msra.mxu0 %v387_v2  ;;  %v392_v7 = vld [vmem:[%s525_s1 + $0x58] sm:$0xff]   ;;  %v396_v8 = vld [vmem:[%s525_s1 + $0x80] sm:$0xff]   ;;  %v399_v11 = vld [vmem:[%s525_s1 + $0x88] sm:$0xff]  }
   0x4   :  { %347 = vmatprep.subr.bf16.mxu0 %v388_v3  ;;  %v393_v9 = vld [vmem:[%s525_s1 + $0x18] sm:$0xff]   ;;  %v394_v10 = vld [vmem:[%s525_s1 + $0x60] sm:$0xff]   ;;  %373 = vmatpush3.bf16.msra.mxu1 %v396_v8  ;;  %v397_v13 = vld [vmem:[%s525_s1 + $0x68] sm:$0xff]  }
   0x5   :  { %374 = vmatprep.subr.bf16.mxu1 %v410_v1  ;;  %v395_v12 = vld [vmem:[%s525_s1 + $0x20] sm:$0xff]   ;;  %v402_v14 = vld [vmem:[%s525_s1 + $0x90] sm:$0xff]   ;;  %v398_v15 = vld [vmem:[%s525_s1 + $0x28] sm:$0xff]  }
   0x6   :  { %v400_v16 = vld [vmem:[%s525_s1 + $0x70] sm:$0xff]   ;;  %v405_v17 = vld [vmem:[%s525_s1 + $0x98] sm:$0xff]   ;;  %v406_v23 = vld [vmem:[%s527_s0] ss:$12 sps:$4 sm:$0xff]  }
   0x7   :  { %348 = vmatpush3.bf16.msra.mxu0 %v389_v4  ;;  %v408_v18 = vld [vmem:[%s527_s0 + $0x4] ss:$12 sps:$4 sm:$0xff]   ;;  %v409_v20 = vld [vmem:[%s527_s0 + $0x8] ss:$12 sps:$4 sm:$0xff]   ;;  %v403_v21 = vld [vmem:[%s525_s1 + $0x78] sm:$0xff]  }
   0x8   :  { %349 = vmatprep.subr.bf16.mxu0 %v390_v5  ;;  %375 = vmatpush3.bf16.msra.mxu1 %v399_v11  ;;  %v401_v19 = vld [vmem:[%s525_s1 + $0x30] sm:$0xff]   ;;  %v404_v22 = vld [vmem:[%s525_s1 + $0x38] sm:$0xff]   ;;  %v309_v56 = vld [vmem:[%s526_s3] sm:$0x3] }
   0x9   :  { %376 = vmatprep.subr.bf16.mxu1 %v410_v1  ;;  %229 = vmatprep.mubr.bf16.mxu0 %v408_v18 }
   0xb   :  { %350 = vmatpush3.bf16.msra.mxu0 %v391_v6 }
   0xc   :  { %351 = vmatprep.subr.bf16.mxu0 %v392_v7  ;;  %377 = vmatpush3.bf16.msra.mxu1 %v402_v14 }
   0xd   :  { %378 = vmatprep.subr.bf16.mxu1 %v410_v1 }
   0xf   :  { %352 = vmatpush3.bf16.msra.mxu0 %v393_v9 }
  0x10   :  { %353 = vmatprep.subr.bf16.mxu0 %v394_v10  ;;  %379 = vmatpush3.bf16.msra.mxu1 %v405_v17 }
  0x13   :  { %354 = vmatpush3.bf16.msra.mxu0 %v395_v12  ;;  %381 = vmatmul.mubr.msk.bf16.vlgmr.msra.gmra.mrb[0].mxu1 %vm193_vm2, %v409_v20 }
  0x14   :  { %355 = vmatprep.subr.bf16.mxu0 %v397_v13 }
  0x17   :  { %356 = vmatpush3.bf16.msra.mxu0 %v398_v15 }
  0x18   :  { %357 = vmatprep.subr.bf16.mxu0 %v400_v16 }
  0x1b   :  { %358 = vmatpush3.bf16.msra.mxu0 %v401_v19 }
  0x1c   :  { %359 = vmatprep.subr.bf16.mxu0 %v403_v21 }
  0x1f   :  { %360 = vmatpush3.bf16.msra.mxu0 %v404_v22 }
  0x22   :  { %230 = vmatmul.mubr.bf16.vlgmr.msra.gmra.mrb[0].mxu0 %v406_v23 }
  0xe6   :  { %v272_v24 = vpop.f32.mrb[0].mxu1 }
  0xe7   :  { %v382_v25 = vpop.f32.mrb[1].mxu1 }
  0xe8   :  { %v275_v26 = vpop.f32.mrb[2].mxu1 }
  0xe9   :  { %v383_v27 = vpop.f32.mrb[3].mxu1 }
  0xf5   :  { %v361_v28 = vpop.f32.mrb[0].mxu0 }
  0xf6   :  { %v362_v29 = vpop.f32.mrb[1].mxu0 }
  0xf7   :  { %v363_v30 = vadd.f32 %v362_v29, %v361_v28  ;;  %v364_v31 = vpop.f32.mrb[2].mxu0 }
  0xf8   :  { %v365_v32 = vpop.f32.mrb[3].mxu0 }
  0xf9   :  { %v273_v33 = vadd.f32 %v363_v30, %v272_v24  ;;  %v366_v34 = vadd.f32 %v365_v32, %v364_v31 }
  0xfb   :  { %279 = vst.msk [vmem:[%s528_s2] sm:$0xff] %vm193_vm2, %v273_v33  ;;  %v296_v35 = vmul.f32 %v273_v33, %v273_v33  ;;  %v276_v36 = vadd.f32 %v366_v34, %v275_v26  ;;  %v287_v37 = vsel %vm193_vm2, %v273_v33, 0.0 }
  0xfd   :  { %280 = vst.msk [vmem:[%s528_s2 + $0x8] sm:$0xff] %vm193_vm2, %v276_v36  ;;  %v288_v38 = vsel %vm193_vm2, %v276_v36, 0.0  ;;  %v297_v39 = vmul.f32 %v276_v36, %v276_v36  ;;  %v298_v41 = vsel %vm193_vm2, %v296_v35, 0.0 }
  0xfe   :  { %v289_v40 = vadd.f32 %v288_v38, %v287_v37 }
  0xff   :  { %v299_v42 = vsel %vm193_vm2, %v297_v39, 0.0 }
 0x100   :  { %v290_v43 = vrot.slane %v289_v40, 4  ;;  %v300_v44 = vadd.f32 %v299_v42, %v298_v41 }
 0x102   :  { %v291_v45 = vadd.f32 %v290_v43, %v289_v40  ;;  %v301_v46 = vrot.slane %v300_v44, 4 }
 0x104   :  { %v292_v47 = vrot.slane %v291_v45, 2  ;;  %v302_v48 = vadd.f32 %v301_v46, %v300_v44 }
 0x106   :  { %v293_v49 = vadd.f32 %v292_v47, %v291_v45  ;;  %v303_v50 = vrot.slane %v302_v48, 2 }
 0x108   :  { %v294_v51 = vrot.slane %v293_v49, 1  ;;  %v304_v52 = vadd.f32 %v303_v50, %v302_v48 }
 0x10a   :  { %v305_v53 = vrot.slane %v304_v52, 1  ;;  %v295_v54 = vadd.f32 %v294_v51, %v293_v49 }
 0x10c   :  { %v306_v55 = vadd.f32 %v305_v53, %v304_v52 }
 0x10e   :  { %v308_v57 = vsel %vm307_vm3, %v295_v54, %v306_v55 }
 0x10f   :  { %v310_v58 = vadd.f32 %v309_v56, %v308_v57 }
 0x111   :  { %312 = vst.msk [vmem:[%s526_s3] sm:$0x3] %vm285_vm0, %v310_v58 }

// kernel: _lambda_.121
= control target key start
LH: loop header
LB: loop body
LE: loop exit
PB: predicated region body
PF: predicated region fallthrough
CT: control target
= control target key end

     0   :  { %v699_v34 = vmov 0.0   ;;  %vm700_vm0 = vmmov 0   ;;  %vm496_vm1 = vcmask 517120   ;;  %vm489_vm2 = vcmask 523264   ;;  %s873_s1 = inlined_call_operand.vmem [shape: bf16[640,64], index: 1, kind: input, shape index: {}]   ;;  %s874_s0 = inlined_call_operand.vmem [shape: bf16[16,640], index: 0, kind: input, shape index: {}]   ;;  %s875_s3 = inlined_call_operand.vmem [shape: f32[2,64], index: 3, kind: output, shape index: {1}]   ;;  %s876_s2 = inlined_call_operand.vmem [shape: f32[16,64], index: 2, kind: output, shape index: {0}]  }
   0x1   :  { %v652_v0 = vld [vmem:[%s873_s1 + $0x40] sm:$0xff]   ;;  %v656_v4 = vld [vmem:[%s873_s1 + $0x48] sm:$0xff]   ;;  %v660_v8 = vld [vmem:[%s873_s1 + $0x50] sm:$0xff]   ;;  %497 = vst.msk [vmem:[%s875_s3] sm:$0x3] %vm496_vm1, %v699_v34  ;;  %vm518_vm3 = vcmask 1040384  }
   0x2   :  { %v653_v1 = vld [vmem:[%s873_s1 + $0xc0] sm:$0xff]   ;;  %577 = vmatprep.subr.bf16.mxu0 %v652_v0  ;;  %v657_v5 = vld [vmem:[%s873_s1 + $0xc8] sm:$0xff]   ;;  %v661_v9 = vld [vmem:[%s873_s1 + $0xd0] sm:$0xff]  }
   0x3   :  { %v654_v2 = vld [vmem:[%s873_s1] sm:$0xff]   ;;  %599 = vmatprep.subr.bf16.mxu1 %v653_v1  ;;  %v658_v6 = vld [vmem:[%s873_s1 + $0x8] sm:$0xff]   ;;  %v662_v10 = vld [vmem:[%s873_s1 + $0x10] sm:$0xff]  }
   0x4   :  { %v655_v3 = vld [vmem:[%s873_s1 + $0x80] sm:$0xff]   ;;  %578 = vmatpush3.bf16.msra.mxu0 %v654_v2  ;;  %v659_v7 = vld [vmem:[%s873_s1 + $0x88] sm:$0xff]   ;;  %v663_v11 = vld [vmem:[%s873_s1 + $0x90] sm:$0xff]  }
   0x5   :  { %600 = vmatpush3.bf16.msra.mxu1 %v655_v3  ;;  %579 = vmatprep.subr.bf16.mxu0 %v656_v4  ;;  %v664_v12 = vld [vmem:[%s873_s1 + $0x58] sm:$0xff]   ;;  %v668_v16 = vld [vmem:[%s873_s1 + $0x60] sm:$0xff]   ;;  %v672_v20 = vld [vmem:[%s873_s1 + $0x68] sm:$0xff]  }
   0x6   :  { %601 = vmatprep.subr.bf16.mxu1 %v657_v5  ;;  %v665_v13 = vld [vmem:[%s873_s1 + $0xd8] sm:$0xff]   ;;  %v669_v17 = vld [vmem:[%s873_s1 + $0xe0] sm:$0xff]   ;;  %v673_v21 = vld [vmem:[%s873_s1 + $0xe8] sm:$0xff]  }
   0x7   :  { %v666_v14 = vld [vmem:[%s873_s1 + $0x18] sm:$0xff]   ;;  %v670_v18 = vld [vmem:[%s873_s1 + $0x20] sm:$0xff]   ;;  %v674_v22 = vld [vmem:[%s873_s1 + $0x28] sm:$0xff]  }
   0x8   :  { %580 = vmatpush3.bf16.msra.mxu0 %v658_v6  ;;  %v667_v15 = vld [vmem:[%s873_s1 + $0x98] sm:$0xff]   ;;  %v671_v19 = vld [vmem:[%s873_s1 + $0xa0] sm:$0xff]   ;;  %v675_v23 = vld [vmem:[%s873_s1 + $0xa8] sm:$0xff]  }
   0x9   :  { %602 = vmatpush3.bf16.msra.mxu1 %v659_v7  ;;  %581 = vmatprep.subr.bf16.mxu0 %v660_v8  ;;  %v676_v24 = vld [vmem:[%s873_s1 + $0x70] sm:$0xff]   ;;  %v680_v28 = vld [vmem:[%s873_s1 + $0x78] sm:$0xff]   ;;  %v689_v36 = vld [vmem:[%s874_s0 + $0xc] ss:$20 sps:$4 sm:$0xff]  }
   0xa   :  { %603 = vmatprep.subr.bf16.mxu1 %v661_v9  ;;  %v677_v25 = vld [vmem:[%s873_s1 + $0xf0] sm:$0xff]   ;;  %v681_v29 = vld [vmem:[%s873_s1 + $0xf8] sm:$0xff]   ;;  %v690_v37 = vld [vmem:[%s873_s1 + $0x100] sm:$0xff]   ;;  %439 = vmatprep.mubr.bf16.mxu1 %v689_v36 }
   0xb   :  { %v678_v26 = vld [vmem:[%s873_s1 + $0x30] sm:$0xff]   ;;  %v682_v30 = vld [vmem:[%s873_s1 + $0x38] sm:$0xff]   ;;  %v691_v38 = vld [vmem:[%s873_s1 + $0x108] sm:$0xff]  }
   0xc   :  { %582 = vmatpush3.bf16.msra.mxu0 %v662_v10  ;;  %v679_v27 = vld [vmem:[%s873_s1 + $0xb0] sm:$0xff]   ;;  %v683_v31 = vld [vmem:[%s873_s1 + $0xb8] sm:$0xff]   ;;  %v694_v41 = vld [vmem:[%s873_s1 + $0x120] sm:$0xff]  }
   0xd   :  { %604 = vmatpush3.bf16.msra.mxu1 %v663_v11  ;;  %583 = vmatprep.subr.bf16.mxu0 %v664_v12  ;;  %v684_v32 = vld [vmem:[%s874_s0] ss:$20 sps:$4 sm:$0xff]   ;;  %v686_v33 = vld [vmem:[%s874_s0 + $0x4] ss:$20 sps:$4 sm:$0xff]   ;;  %v687_v35 = vld [vmem:[%s874_s0 + $0x8] ss:$20 sps:$4 sm:$0xff]  }
   0xe   :  { %605 = vmatprep.subr.bf16.mxu1 %v665_v13  ;;  %398 = vmatprep.mubr.bf16.mxu0 %v686_v33  ;;  %v692_v39 = vld [vmem:[%s873_s1 + $0x110] sm:$0xff]   ;;  %v693_v40 = vld [vmem:[%s873_s1 + $0x118] sm:$0xff]   ;;  %v695_v42 = vld [vmem:[%s873_s1 + $0x128] sm:$0xff]  }
   0xf   :  { %v696_v43 = vld [vmem:[%s873_s1 + $0x130] sm:$0xff]   ;;  %v697_v44 = vld [vmem:[%s873_s1 + $0x138] sm:$0xff]  }
  0x10   :  { %584 = vmatpush3.bf16.msra.mxu0 %v666_v14  ;;  %v698_v45 = vld [vmem:[%s874_s0 + $0x10] ss:$20 sps:$4 sm:$0xff]  }
  0x11   :  { %606 = vmatpush3.bf16.msra.mxu1 %v667_v15  ;;  %585 = vmatprep.subr.bf16.mxu0 %v668_v16 }
  0x12   :  { %607 = vmatprep.subr.bf16.mxu1 %v669_v17 }
  0x14   :  { %586 = vmatpush3.bf16.msra.mxu0 %v670_v18 }
  0x15   :  { %608 = vmatpush3.bf16.msra.mxu1 %v671_v19  ;;  %587 = vmatprep.subr.bf16.mxu0 %v672_v20 }
  0x16   :  { %609 = vmatprep.subr.bf16.mxu1 %v673_v21 }
  0x18   :  { %588 = vmatpush3.bf16.msra.mxu0 %v674_v22  ;;  %v520_v22 = vld [vmem:[%s875_s3] sm:$0x3] }
  0x19   :  { %610 = vmatpush3.bf16.msra.mxu1 %v675_v23  ;;  %589 = vmatprep.subr.bf16.mxu0 %v676_v24 }
  0x1a   :  { %611 = vmatprep.subr.bf16.mxu1 %v677_v25 }
  0x1c   :  { %590 = vmatpush3.bf16.msra.mxu0 %v678_v26 }
  0x1d   :  { %612 = vmatpush3.bf16.msra.mxu1 %v679_v27  ;;  %591 = vmatprep.subr.bf16.mxu0 %v680_v28 }
  0x1e   :  { %613 = vmatprep.subr.bf16.mxu1 %v681_v29 }
  0x20   :  { %592 = vmatpush3.bf16.msra.mxu0 %v682_v30 }
  0x21   :  { %614 = vmatpush3.bf16.msra.mxu1 %v683_v31  ;;  %630 = vmatprep.subr.bf16.mxu0 %v699_v34 }
  0x23   :  { %399 = vmatmul.mubr.bf16.vlgmr.msra.gmra.mrb[0].mxu0 %v684_v32 }
  0x24   :  { %440 = vmatmul.mubr.bf16.vlgmr.msra.gmra.mrb[0].mxu1 %v687_v35  ;;  %631 = vmatpush3.bf16.msra.mxu0 %v690_v37 }
  0x25   :  { %632 = vmatprep.subr.bf16.mxu0 %v699_v34  ;;  %646 = vmatprep.mubr.msk.bf16.mxu0 %vm700_vm0, %v699_v34 }
  0x28   :  { %633 = vmatpush3.bf16.msra.mxu0 %v691_v38 }
  0x29   :  { %634 = vmatprep.subr.bf16.mxu0 %v699_v34 }
  0x2c   :  { %635 = vmatpush3.bf16.msra.mxu0 %v692_v39 }
  0x2d   :  { %636 = vmatprep.subr.bf16.mxu0 %v699_v34 }
  0x30   :  { %637 = vmatpush3.bf16.msra.mxu0 %v693_v40 }
  0x31   :  { %638 = vmatprep.subr.bf16.mxu0 %v699_v34 }
  0x34   :  { %639 = vmatpush3.bf16.msra.mxu0 %v694_v41 }
  0x35   :  { %640 = vmatprep.subr.bf16.mxu0 %v699_v34 }
  0x38   :  { %641 = vmatpush3.bf16.msra.mxu0 %v695_v42 }
  0x39   :  { %642 = vmatprep.subr.bf16.mxu0 %v699_v34 }
  0x3c   :  { %643 = vmatpush3.bf16.msra.mxu0 %v696_v43 }
  0x3d   :  { %644 = vmatprep.subr.bf16.mxu0 %v699_v34 }
  0x40   :  { %645 = vmatpush3.bf16.msra.mxu0 %v697_v44 }
  0x43   :  { %647 = vmatmul.mubr.bf16.vlgmr.msra.gmra.mrb[4].mxu0 %v698_v45 }
  0xf6   :  { %v593_v46 = vpop.f32.mrb[0].mxu0 }
  0xf7   :  { %v615_v47 = vpop.f32.mrb[0].mxu1  ;;  %v594_v48 = vpop.f32.mrb[1].mxu0 }
  0xf8   :  { %v595_v49 = vadd.f32 %v594_v48, %v593_v46  ;;  %v616_v50 = vpop.f32.mrb[1].mxu1  ;;  %v596_v51 = vpop.f32.mrb[2].mxu0 }
  0xf9   :  { %v617_v52 = vadd.f32 %v616_v50, %v615_v47  ;;  %v618_v53 = vpop.f32.mrb[2].mxu1  ;;  %v597_v54 = vpop.f32.mrb[3].mxu0 }
  0xfa   :  { %v598_v55 = vadd.f32 %v597_v54, %v596_v51  ;;  %v619_v56 = vpop.f32.mrb[3].mxu1 }
  0xfb   :  { %v620_v57 = vadd.f32 %v619_v56, %v618_v53  ;;  %v442_v58 = vadd.f32 %v617_v52, %v595_v49 }
  0xfd   :  { %v445_v59 = vadd.f32 %v620_v57, %v598_v55 }
 0x116   :  { %v482_v60 = vpop.f32.mrb[4].mxu0 }
 0x117   :  { %v483_v61 = vadd.f32 %v482_v60, %v442_v58  ;;  %v648_v62 = vpop.f32.mrb[5].mxu0 }
 0x118   :  { %v485_v63 = vpop.f32.mrb[6].mxu0 }
 0x119   :  { %490 = vst.msk [vmem:[%s876_s2] sm:$0xff] %vm489_vm2, %v483_v61  ;;  %v507_v0 = vmul.f32 %v483_v61, %v483_v61  ;;  %v486_v1 = vadd.f32 %v485_v63, %v445_v59  ;;  %v649_v2 = vpop.f32.mrb[7].mxu0  ;;  %v498_v3 = vsel %vm489_vm2, %v483_v61, 0.0 }
 0x11b   :  { %491 = vst.msk [vmem:[%s876_s2 + $0x8] sm:$0xff] %vm489_vm2, %v486_v1  ;;  %v499_v4 = vsel %vm489_vm2, %v486_v1, 0.0  ;;  %v508_v5 = vmul.f32 %v486_v1, %v486_v1  ;;  %v509_v7 = vsel %vm489_vm2, %v507_v0, 0.0 }
 0x11c   :  { %v500_v6 = vadd.f32 %v499_v4, %v498_v3 }
 0x11d   :  { %v510_v8 = vsel %vm489_vm2, %v508_v5, 0.0 }
 0x11e   :  { %v501_v9 = vrot.slane %v500_v6, 4  ;;  %v511_v10 = vadd.f32 %v510_v8, %v509_v7 }
 0x120   :  { %v502_v11 = vadd.f32 %v501_v9, %v500_v6  ;;  %v512_v12 = vrot.slane %v511_v10, 4 }
 0x122   :  { %v503_v13 = vrot.slane %v502_v11, 2  ;;  %v513_v14 = vadd.f32 %v512_v12, %v511_v10 }
 0x124   :  { %v504_v15 = vadd.f32 %v503_v13, %v502_v11  ;;  %v514_v16 = vrot.slane %v513_v14, 2 }
 0x126   :  { %v505_v17 = vrot.slane %v504_v15, 1  ;;  %v515_v18 = vadd.f32 %v514_v16, %v513_v14 }
 0x128   :  { %v516_v19 = vrot.slane %v515_v18, 1  ;;  %v506_v20 = vadd.f32 %v505_v17, %v504_v15 }
 0x12a   :  { %v517_v21 = vadd.f32 %v516_v19, %v515_v18 }
 0x12c   :  { %v519_v23 = vsel %vm518_vm3, %v506_v20, %v517_v21 }
 0x12d   :  { %v521_v24 = vadd.f32 %v520_v22, %v519_v23 }
 0x12f   :  { %523 = vst.msk [vmem:[%s875_s3] sm:$0x3] %vm496_vm1, %v521_v24 }

// kernel: _lambda_.123
= control target key start
LH: loop header
LB: loop body
LE: loop exit
PB: predicated region body
PF: predicated region fallthrough
CT: control target
= control target key end

     0   :  { %vm270_vm0 = vcmask 517120   ;;  %v385_v1 = vmov 0.0   ;;  %vm386_vm1 = vmmov 0   ;;  %vm177_vm2 = vcmask 261120   ;;  %s487_s1 = inlined_call_operand.vmem [shape: bf16[288,64], index: 1, kind: input, shape index: {}]   ;;  %s488_s3 = inlined_call_operand.vmem [shape: f32[2,64], index: 3, kind: output, shape index: {1}]   ;;  %s489_s0 = inlined_call_operand.vmem [shape: bf16[16,288], index: 0, kind: input, shape index: {}]   ;;  %s490_s2 = inlined_call_operand.vmem [shape: f32[16,64], index: 2, kind: output, shape index: {0}]  }
   0x1   :  { %v363_v0 = vld [vmem:[%s487_s1 + $0x40] sm:$0xff]   ;;  %353 = vmatprep.subr.bf16.mxu1 %v385_v1  ;;  %271 = vst.msk [vmem:[%s488_s3] sm:$0x3] %vm270_vm0, %v385_v1  ;;  %357 = vmatprep.mubr.msk.bf16.mxu1 %vm386_vm1, %v385_v1  ;;  %v365_v3 = vld [vmem:[%s487_s1 + $0x48] sm:$0xff]   ;;  %v367_v5 = vld [vmem:[%s487_s1 + $0x50] sm:$0xff]   ;;  %vm263_vm3 = vcmask 523264  }
   0x2   :  { %v364_v2 = vld [vmem:[%s487_s1] sm:$0xff]   ;;  %328 = vmatprep.subr.bf16.mxu0 %v363_v0  ;;  %v366_v4 = vld [vmem:[%s487_s1 + $0x8] sm:$0xff]   ;;  %v368_v6 = vld [vmem:[%s487_s1 + $0x10] sm:$0xff]   ;;  %vm292_vm4 = vcmask 1040384  }
   0x3   :  { %329 = vmatpush3.bf16.msra.mxu0 %v364_v2  ;;  %v369_v7 = vld [vmem:[%s487_s1 + $0x58] sm:$0xff]   ;;  %v371_v9 = vld [vmem:[%s487_s1 + $0x60] sm:$0xff]   ;;  %v373_v12 = vld [vmem:[%s487_s1 + $0x68] sm:$0xff]  }
   0x4   :  { %330 = vmatprep.subr.bf16.mxu0 %v365_v3  ;;  %v370_v8 = vld [vmem:[%s487_s1 + $0x18] sm:$0xff]   ;;  %v372_v10 = vld [vmem:[%s487_s1 + $0x20] sm:$0xff]   ;;  %v380_v13 = vld [vmem:[%s487_s1 + $0x88] sm:$0xff]  }
   0x5   :  { %v377_v11 = vld [vmem:[%s487_s1 + $0x80] sm:$0xff]   ;;  %v374_v14 = vld [vmem:[%s487_s1 + $0x28] sm:$0xff]   ;;  %v375_v16 = vld [vmem:[%s487_s1 + $0x70] sm:$0xff]  }
   0x6   :  { %354 = vmatpush3.bf16.msra.mxu1 %v377_v11  ;;  %v383_v15 = vld [vmem:[%s489_s0 + $0x4] ss:$12 sps:$4 sm:$0xff]   ;;  %v384_v17 = vld [vmem:[%s489_s0 + $0x8] ss:$12 sps:$4 sm:$0xff]   ;;  %v378_v19 = vld [vmem:[%s487_s1 + $0x78] sm:$0xff]  }
   0x7   :  { %331 = vmatpush3.bf16.msra.mxu0 %v366_v4  ;;  %355 = vmatprep.subr.bf16.mxu1 %v385_v1  ;;  %v376_v18 = vld [vmem:[%s487_s1 + $0x30] sm:$0xff]   ;;  %v379_v20 = vld [vmem:[%s487_s1 + $0x38] sm:$0xff]   ;;  %v381_v21 = vld [vmem:[%s489_s0] ss:$12 sps:$4 sm:$0xff]  }
   0x8   :  { %332 = vmatprep.subr.bf16.mxu0 %v367_v5  ;;  %213 = vmatprep.mubr.bf16.mxu0 %v383_v15  ;;  %v294_v52 = vld [vmem:[%s488_s3] sm:$0x3] }
   0xa   :  { %356 = vmatpush3.bf16.msra.mxu1 %v380_v13 }
   0xb   :  { %333 = vmatpush3.bf16.msra.mxu0 %v368_v6 }
   0xc   :  { %334 = vmatprep.subr.bf16.mxu0 %v369_v7 }
   0xd   :  { %358 = vmatmul.mubr.msk.bf16.vlgmr.msra.gmra.mrb[0].mxu1 %vm177_vm2, %v384_v17 }
   0xf   :  { %335 = vmatpush3.bf16.msra.mxu0 %v370_v8 }
  0x10   :  { %336 = vmatprep.subr.bf16.mxu0 %v371_v9 }
  0x13   :  { %337 = vmatpush3.bf16.msra.mxu0 %v372_v10 }
  0x14   :  { %338 = vmatprep.subr.bf16.mxu0 %v373_v12 }
  0x17   :  { %339 = vmatpush3.bf16.msra.mxu0 %v374_v14 }
  0x18   :  { %340 = vmatprep.subr.bf16.mxu0 %v375_v16 }
  0x1b   :  { %341 = vmatpush3.bf16.msra.mxu0 %v376_v18 }
  0x1c   :  { %342 = vmatprep.subr.bf16.mxu0 %v378_v19 }
  0x1f   :  { %343 = vmatpush3.bf16.msra.mxu0 %v379_v20 }
  0x22   :  { %214 = vmatmul.mubr.bf16.vlgmr.msra.gmra.mrb[0].mxu0 %v381_v21 }
  0xe0   :  { %v256_v22 = vpop.f32.mrb[0].mxu1 }
  0xe1   :  { %v359_v23 = vpop.f32.mrb[1].mxu1 }
  0xe2   :  { %v259_v24 = vpop.f32.mrb[2].mxu1 }
  0xe3   :  { %v360_v25 = vpop.f32.mrb[3].mxu1 }
  0xf5   :  { %v344_v26 = vpop.f32.mrb[0].mxu0 }
  0xf6   :  { %v345_v27 = vpop.f32.mrb[1].mxu0 }
  0xf7   :  { %v346_v28 = vadd.f32 %v345_v27, %v344_v26  ;;  %v347_v29 = vpop.f32.mrb[2].mxu0 }
  0xf8   :  { %v348_v30 = vpop.f32.mrb[3].mxu0 }
  0xf9   :  { %v257_v31 = vadd.f32 %v346_v28, %v256_v22  ;;  %v349_v32 = vadd.f32 %v348_v30, %v347_v29 }
  0xfb   :  { %264 = vst.msk [vmem:[%s490_s2] sm:$0xff] %vm263_vm3, %v257_v31  ;;  %v281_v33 = vmul.f32 %v257_v31, %v257_v31  ;;  %v260_v34 = vadd.f32 %v349_v32, %v259_v24  ;;  %v272_v35 = vsel %vm263_vm3, %v257_v31, 0.0 }
  0xfd   :  { %265 = vst.msk [vmem:[%s490_s2 + $0x8] sm:$0xff] %vm263_vm3, %v260_v34  ;;  %v273_v36 = vsel %vm263_vm3, %v260_v34, 0.0  ;;  %v282_v37 = vmul.f32 %v260_v34, %v260_v34  ;;  %v283_v39 = vsel %vm263_vm3, %v281_v33, 0.0 }
  0xfe   :  { %v274_v38 = vadd.f32 %v273_v36, %v272_v35 }
  0xff   :  { %v284_v40 = vsel %vm263_vm3, %v282_v37, 0.0 }
 0x100   :  { %v275_v41 = vrot.slane %v274_v38, 4  ;;  %v285_v42 = vadd.f32 %v284_v40, %v283_v39 }
 0x102   :  { %v276_v43 = vadd.f32 %v275_v41, %v274_v38  ;;  %v286_v44 = vrot.slane %v285_v42, 4 }
 0x104   :  { %v277_v45 = vrot.slane %v276_v43, 2  ;;  %v287_v46 = vadd.f32 %v286_v44, %v285_v42 }
 0x106   :  { %v278_v47 = vadd.f32 %v277_v45, %v276_v43  ;;  %v288_v48 = vrot.slane %v287_v46, 2 }
 0x108   :  { %v279_v49 = vrot.slane %v278_v47, 1  ;;  %v289_v50 = vadd.f32 %v288_v48, %v287_v46 }
 0x10a   :  { %v290_v51 = vrot.slane %v289_v50, 1  ;;  %v280_v53 = vadd.f32 %v279_v49, %v278_v47 }
 0x10c   :  { %v291_v54 = vadd.f32 %v290_v51, %v289_v50 }
 0x10e   :  { %v293_v55 = vsel %vm292_vm4, %v280_v53, %v291_v54 }
 0x10f   :  { %v295_v56 = vadd.f32 %v294_v52, %v293_v55 }
 0x111   :  { %297 = vst.msk [vmem:[%s488_s3] sm:$0x3] %vm270_vm0, %v295_v56 }

// kernel: _lambda_.129
= control target key start
LH: loop header
LB: loop body
LE: loop exit
PB: predicated region body
PF: predicated region fallthrough
CT: control target
= control target key end

     0   :  { %vm36_vm0 = vcmask 130048   ;;  %vm101_vm1 = vcmask 517120   ;;  %v165_v3 = vmov 0.0   ;;  %vm92_vm2 = vcmask 523264   ;;  %s230_s1 = inlined_call_operand.vmem [shape: bf16[16,64], index: 1, kind: input, shape index: {}]   ;;  %s231_s0 = inlined_call_operand.vmem [shape: bf16[32,16], index: 0, kind: input, shape index: {}]   ;;  %s232_s3 = inlined_call_operand.vmem [shape: f32[2,64], index: 3, kind: output, shape index: {1}]   ;;  %s233_s2 = inlined_call_operand.vmem [shape: f32[32,64], index: 2, kind: output, shape index: {0}]  }
   0x1   :  { %v162_v0 = vld [vmem:[%s230_s1] sm:$0xff]   ;;  %v164_v2 = vld [vmem:[%s231_s0 + $0x8] sm:$0xff]   ;;  %102 = vst.msk [vmem:[%s232_s3] sm:$0x3] %vm101_vm1, %v165_v3  ;;  %vm133_vm3 = vcmask 1040384  }
   0x2   :  { %v163_v1 = vld [vmem:[%s231_s0] sm:$0xff]   ;;  %155 = vmatprep.subr.bf16.mxu0 %v162_v0 }
   0x3   :  { %156 = vmatpush3.bf16.msra.mxu0 %v162_v0  ;;  %157 = vmatprep.mubr.msk.bf16.mxu0 %vm36_vm0, %v163_v1 }
   0x6   :  { %158 = vmatmul.mubr.msk.bf16.vlgmr.msra.gmra.mrb[0].mxu0 %vm36_vm0, %v164_v2 }
   0x8   :  { %v135_v38 = vld [vmem:[%s232_s3] sm:$0x3] }
  0xd9   :  { %v159_v4 = vpop.f32.mrb[0].mxu0 }
  0xda   :  { %95 = vst.msk [vmem:[%s233_s2 + $0x10] sm:$0xff] %vm92_vm2, %v159_v4  ;;  %v77_v5 = vpop.f32.mrb[1].mxu0  ;;  %v118_v9 = vmul.f32 %v159_v4, %v159_v4  ;;  %v106_v14 = vsel %vm92_vm2, %v159_v4, 0.0 }
  0xdb   :  { %93 = vst.msk [vmem:[%s233_s2] sm:$0xff] %vm92_vm2, %v77_v5  ;;  %v116_v6 = vmul.f32 %v77_v5, %v77_v5  ;;  %v160_v7 = vpop.f32.mrb[2].mxu0  ;;  %v103_v10 = vsel %vm92_vm2, %v77_v5, 0.0 }
  0xdc   :  { %96 = vst.msk [vmem:[%s233_s2 + $0x18] sm:$0xff] %vm92_vm2, %v160_v7  ;;  %v80_v8 = vpop.f32.mrb[3].mxu0  ;;  %v119_v16 = vmul.f32 %v160_v7, %v160_v7  ;;  %v123_v20 = vsel %vm92_vm2, %v118_v9, 0.0  ;;  %v108_v21 = vsel %vm92_vm2, %v160_v7, 0.0 }
  0xdd   :  { %94 = vst.msk [vmem:[%s233_s2 + $0x8] sm:$0xff] %vm92_vm2, %v80_v8  ;;  %v104_v11 = vsel %vm92_vm2, %v80_v8, 0.0  ;;  %v117_v12 = vmul.f32 %v80_v8, %v80_v8  ;;  %v120_v15 = vsel %vm92_vm2, %v116_v6, 0.0 }
  0xde   :  { %v105_v13 = vadd.f32 %v104_v11, %v103_v10  ;;  %v125_v24 = vsel %vm92_vm2, %v119_v16, 0.0 }
  0xdf   :  { %v121_v17 = vsel %vm92_vm2, %v117_v12, 0.0 }
  0xe0   :  { %v107_v18 = vadd.f32 %v106_v14, %v105_v13  ;;  %v122_v19 = vadd.f32 %v121_v17, %v120_v15 }
  0xe2   :  { %v109_v22 = vadd.f32 %v108_v21, %v107_v18  ;;  %v124_v23 = vadd.f32 %v123_v20, %v122_v19 }
  0xe4   :  { %v110_v25 = vrot.slane %v109_v22, 4  ;;  %v126_v26 = vadd.f32 %v125_v24, %v124_v23 }
  0xe6   :  { %v111_v27 = vadd.f32 %v110_v25, %v109_v22  ;;  %v127_v28 = vrot.slane %v126_v26, 4 }
  0xe8   :  { %v112_v29 = vrot.slane %v111_v27, 2  ;;  %v128_v30 = vadd.f32 %v127_v28, %v126_v26 }
  0xea   :  { %v113_v31 = vadd.f32 %v112_v29, %v111_v27  ;;  %v129_v32 = vrot.slane %v128_v30, 2 }
  0xec   :  { %v114_v33 = vrot.slane %v113_v31, 1  ;;  %v130_v34 = vadd.f32 %v129_v32, %v128_v30 }
  0xee   :  { %v131_v35 = vrot.slane %v130_v34, 1  ;;  %v115_v36 = vadd.f32 %v114_v33, %v113_v31 }
  0xf0   :  { %v132_v37 = vadd.f32 %v131_v35, %v130_v34 }
  0xf2   :  { %v134_v39 = vsel %vm133_vm3, %v115_v36, %v132_v37 }
  0xf3   :  { %v136_v40 = vadd.f32 %v135_v38, %v134_v39 }
  0xf5   :  { %138 = vst.msk [vmem:[%s232_s3] sm:$0x3] %vm101_vm1, %v136_v40 }

// kernel: _lambda_.130
= control target key start
LH: loop header
LB: loop body
LE: loop exit
PB: predicated region body
PF: predicated region fallthrough
CT: control target
= control target key end

     0   :  { %vm44_vm0 = vcmask 523264   ;;  %s105_s0 = inlined_call_operand.vmem [shape: f32[32,64], index: 0, kind: input, shape index: {}]   ;;  %s106_s1 = inlined_call_operand.vmem [shape: f32[1,64], index: 1, kind: input, shape index: {}]   ;;  %s107_s2 = inlined_call_operand.vmem [shape: f32[1,64], index: 2, kind: input, shape index: {}]   ;;  %s108_s3 = inlined_call_operand.vmem [shape: f32[32,64], index: 3, kind: output, shape index: {}]  }
   0x1   :  { %v14_v0 = vld [vmem:[%s105_s0] sm:$0xff]  ;;  %v15_v4 = vld [vmem:[%s105_s0 + $0x8] sm:$0xff]  ;;  %v16_v5 = vld [vmem:[%s105_s0 + $0x10] sm:$0xff] }
   0x2   :  { %v53_v1 = vld [vmem:[%s106_s1] ss:$0 sm:$0xff]  ;;  %v17_v6 = vld [vmem:[%s105_s0 + $0x18] sm:$0xff] }
   0x3   :  { %v54_v2 = vld [vmem:[%s107_s2] ss:$0 sm:$0xff]  ;;  %v25_v3 = vmul.f32 %v53_v1, %v14_v0  ;;  %v26_v7 = vmul.f32 %v53_v1, %v15_v4  ;;  %v27_v8 = vmul.f32 %v53_v1, %v16_v5  ;;  %v28_v9 = vmul.f32 %v53_v1, %v17_v6 }
   0x5   :  { %v36_v10 = vadd.f32 %v54_v2, %v25_v3  ;;  %v37_v11 = vadd.f32 %v54_v2, %v26_v7  ;;  %v38_v12 = vadd.f32 %v54_v2, %v27_v8  ;;  %v39_v13 = vadd.f32 %v54_v2, %v28_v9 }
   0x7   :  { %v40_v14 = vmax.f32 %v36_v10, 0.0  ;;  %v41_v15 = vmax.f32 %v37_v11, 0.0  ;;  %v42_v16 = vmax.f32 %v38_v12, 0.0  ;;  %v43_v17 = vmax.f32 %v39_v13, 0.0 }
   0x9   :  { %45 = vst.msk [vmem:[%s108_s3] sm:$0xff] %vm44_vm0, %v40_v14  ;;  %46 = vst.msk [vmem:[%s108_s3 + $0x8] sm:$0xff] %vm44_vm0, %v41_v15 }
   0xa   :  { %47 = vst.msk [vmem:[%s108_s3 + $0x10] sm:$0xff] %vm44_vm0, %v42_v16  ;;  %48 = vst.msk [vmem:[%s108_s3 + $0x18] sm:$0xff] %vm44_vm0, %v43_v17 }

// kernel: tile.609
= control target key start
LH: loop header
LB: loop body
LE: loop exit
PB: predicated region body
PF: predicated region fallthrough
CT: control target
= control target key end

     0   :  { %s22_s0 = inlined_call_operand.vmem [shape: f32[3], index: 0, kind: input, shape index: {}]   ;;  %s23_s1 = inlined_call_operand.vmem [shape: f32[8,3], index: 1, kind: output, shape index: {}]  }
   0x1   :  { %v4_v0 = vld [vmem:[%s22_s0] ss:$0 sm:$0xff] }
   0x2   :  { %5 = vst [vmem:[%s23_s1] sm:$0xff] %v4_v0 }

// kernel: tile.610
= control target key start
LH: loop header
LB: loop body
LE: loop exit
PB: predicated region body
PF: predicated region fallthrough
CT: control target
= control target key end

     0   :  { %s67_s10 = smov 21   ;;  %s68_s11 = smov 15   ;;  %vm3_vm0 = vcmask 23552   ;;  %vm9_vm1 = vcmask 195752   ;;  %vm15_vm2 = vcmask 171152   ;;  %vm21_vm3 = vcmask 146552   ;;  %s111_s0 = inlined_call_operand.vmem [shape: f32[8,3], index: 0, kind: input, shape index: {}]   ;;  %s112_s1 = inlined_call_operand.vmem [shape: f32[1,24], index: 1, kind: output, shape index: {}]  }
   0x1   :  { %v53_v0 = vld [vmem:[%s111_s0 + $0x7] sm:$0x1]   ;;  %v55_v1 = vld [vmem:[%s111_s0 + $0x5] sm:$0x1]   ;;  %v54_v2 = vld [vmem:[%s111_s0 + $0x6] sm:$0x1]  }
   0x2   :  { %7 = vrot.lane.b32.xlu0 %v53_v0, %s67_s10  ;;  %19 = vrot.lane.b32.xlu1 %v55_v1, %s68_s11  ;;  %v56_v3 = vld [vmem:[%s111_s0 + $0x4] sm:$0x1]   ;;  %v2_v4 = vld [vmem:[%s111_s0] sm:$0x1]   ;;  %s69_s18 = smov 18   ;;  %s70_s19 = smov 12  }
   0x3   :  { %4 = vst.msk [vmem:[#allocation0] sm:$0x1] %vm3_vm0, %v2_v4   ;;  %v57_v5 = vld [vmem:[%s111_s0 + $0x3] sm:$0x1]   ;;  %v58_v6 = vld [vmem:[%s111_s0 + $0x2] sm:$0x1]  }
   0x4   :  { %s71_s24 = smov 9   ;;  %s72_s25 = smov 6   ;;  %v59_v7 = vld [vmem:[%s111_s0 + $0x1] sm:$0x1]   ;;  %vm27_vm4 = vcmask 121952   ;;  %vm33_vm5 = vcmask 97352  }
   0x5   :  { %s73_s0 = smov 3   ;;  %vm39_vm6 = vcmask 72752   ;;  %vm45_vm7 = vcmask 48152  }
   0x6   :  { %13 = vrot.lane.b32.xlu0 %v54_v2, %s69_s18  ;;  %25 = vrot.lane.b32.xlu1 %v56_v3, %s70_s19 }
   0xa   :  { %31 = vrot.lane.b32.xlu0 %v57_v5, %s71_s24  ;;  %37 = vrot.lane.b32.xlu1 %v58_v6, %s72_s25 }
   0xe   :  { %43 = vrot.lane.b32.xlu0 %v59_v7, %s73_s0 }
  0x74   :  { %v8_v8 = vpop.permute.xlu0 %7   ;;  %v20_v9 = vpop.permute.xlu1 %19  }
  0x75   :  { %10 = vst.msk [vmem:[#allocation0] sm:$0x1] %vm9_vm1, %v8_v8  }
  0x78   :  { %v14_v10 = vpop.permute.xlu0 %13   ;;  %v26_v11 = vpop.permute.xlu1 %25  }
  0x79   :  { %16 = vst.msk [vmem:[#allocation0] sm:$0x1] %vm15_vm2, %v14_v10  }
  0x7a   :  { %22 = vst.msk [vmem:[#allocation0] sm:$0x1] %vm21_vm3, %v20_v9  }
  0x7b   :  { %28 = vst.msk [vmem:[#allocation0] sm:$0x1] %vm27_vm4, %v26_v11  }
  0x7c   :  { %v32_v12 = vpop.permute.xlu0 %31   ;;  %v38_v13 = vpop.permute.xlu1 %37  }
  0x7d   :  { %34 = vst.msk [vmem:[#allocation0] sm:$0x1] %vm33_vm5, %v32_v12  }
  0x7e   :  { %40 = vst.msk [vmem:[#allocation0] sm:$0x1] %vm39_vm6, %v38_v13  }
  0x80   :  { %v44_v14 = vpop.permute.xlu0 %43  }
  0x81   :  { %46 = vst.msk [vmem:[#allocation0] sm:$0x1] %vm45_vm7, %v44_v14  }
  0x88   :  { %v50_v15 = vld [vmem:[#allocation0] sm:$0x1] }
  0x89   :  { %52 = vst [vmem:[%s112_s1] sm:$0x1] %v50_v15 }

// kernel: _lambda_.132
= control target key start
LH: loop header
LB: loop body
LE: loop exit
PB: predicated region body
PF: predicated region fallthrough
CT: control target
= control target key end

     0   :  { %vm36_vm0 = vcmask 195584   ;;  %s83_s0 = inlined_call_operand.vmem [shape: f32[16,24], index: 0, kind: input, shape index: {}]   ;;  %s84_s1 = inlined_call_operand.vmem [shape: f32[1,24], index: 1, kind: input, shape index: {}]   ;;  %s85_s2 = inlined_call_operand.vmem [shape: f32[1,24], index: 2, kind: input, shape index: {}]   ;;  %s86_s3 = inlined_call_operand.vmem [shape: f32[16,24], index: 3, kind: output, shape index: {}]  }
   0x1   :  { %v14_v0 = vld [vmem:[%s83_s0] sm:$0xff]  ;;  %v15_v4 = vld [vmem:[%s83_s0 + $0x8] sm:$0xff] }
   0x2   :  { %v43_v1 = vld [vmem:[%s84_s1] ss:$0 sm:$0xff] }
   0x3   :  { %v44_v2 = vld [vmem:[%s85_s2] ss:$0 sm:$0xff]  ;;  %v23_v3 = vmul.f32 %v43_v1, %v14_v0  ;;  %v24_v5 = vmul.f32 %v43_v1, %v15_v4 }
   0x5   :  { %v32_v6 = vadd.f32 %v44_v2, %v23_v3  ;;  %v33_v7 = vadd.f32 %v44_v2, %v24_v5 }
   0x7   :  { %v34_v8 = vmax.f32 %v32_v6, 0.0  ;;  %v35_v9 = vmax.f32 %v33_v7, 0.0 }
   0x9   :  { %37 = vst.msk [vmem:[%s86_s3] sm:$0xff] %vm36_vm0, %v34_v8  ;;  %38 = vst.msk [vmem:[%s86_s3 + $0x8] sm:$0xff] %vm36_vm0, %v35_v9 }

// kernel: _lambda_.131
= control target key start
LH: loop header
LB: loop body
LE: loop exit
PB: predicated region body
PF: predicated region fallthrough
CT: control target
= control target key end

     0   :  { %v949_v41 = vmov 0   ;;  %vm541_vm0 = vcmask 523264   ;;  %vm716_vm1 = vcmask 189440   ;;  %vm709_vm2 = vcmask 195584   ;;  %s1204_s1 = inlined_call_operand.vmem [shape: bf16[960,24], index: 1, kind: input, shape index: {}]   ;;  %s1205_s0 = inlined_call_operand.vmem [shape: bf16[16,960], index: 0, kind: input, shape index: {}]   ;;  %s1206_s3 = inlined_call_operand.vmem [shape: f32[2,24], index: 3, kind: output, shape index: {1}]   ;;  %s1207_s2 = inlined_call_operand.vmem [shape: f32[16,24], index: 2, kind: output, shape index: {0}]  }
   0x1   :  { %v889_v0 = vld [vmem:[%s1204_s1 + $0x40] sm:$0xff]   ;;  %v893_v4 = vld [vmem:[%s1204_s1 + $0x48] sm:$0xff]   ;;  %v897_v8 = vld [vmem:[%s1204_s1 + $0x50] sm:$0xff]   ;;  %vm738_vm3 = vcmask 1040384  }
   0x2   :  { %v890_v1 = vld [vmem:[%s1204_s1 + $0xc0] sm:$0xff]   ;;  %821 = vmatprep.subr.bf16.mxu0 %v889_v0  ;;  %v894_v5 = vld [vmem:[%s1204_s1 + $0xc8] sm:$0xff]   ;;  %v898_v9 = vld [vmem:[%s1204_s1 + $0xd0] sm:$0xff]  }
   0x3   :  { %v891_v2 = vld [vmem:[%s1204_s1] sm:$0xff]   ;;  %843 = vmatprep.subr.bf16.mxu1 %v890_v1  ;;  %v895_v6 = vld [vmem:[%s1204_s1 + $0x8] sm:$0xff]   ;;  %v899_v10 = vld [vmem:[%s1204_s1 + $0x10] sm:$0xff]  }
   0x4   :  { %v892_v3 = vld [vmem:[%s1204_s1 + $0x80] sm:$0xff]   ;;  %822 = vmatpush3.bf16.msra.mxu0 %v891_v2  ;;  %v896_v7 = vld [vmem:[%s1204_s1 + $0x88] sm:$0xff]   ;;  %v900_v11 = vld [vmem:[%s1204_s1 + $0x90] sm:$0xff]  }
   0x5   :  { %844 = vmatpush3.bf16.msra.mxu1 %v892_v3  ;;  %823 = vmatprep.subr.bf16.mxu0 %v893_v4  ;;  %v901_v12 = vld [vmem:[%s1204_s1 + $0x58] sm:$0xff]   ;;  %v905_v16 = vld [vmem:[%s1204_s1 + $0x60] sm:$0xff]   ;;  %v909_v20 = vld [vmem:[%s1204_s1 + $0x68] sm:$0xff]  }
   0x6   :  { %845 = vmatprep.subr.bf16.mxu1 %v894_v5  ;;  %v902_v13 = vld [vmem:[%s1204_s1 + $0xd8] sm:$0xff]   ;;  %v906_v17 = vld [vmem:[%s1204_s1 + $0xe0] sm:$0xff]   ;;  %v910_v21 = vld [vmem:[%s1204_s1 + $0xe8] sm:$0xff]  }
   0x7   :  { %v903_v14 = vld [vmem:[%s1204_s1 + $0x18] sm:$0xff]   ;;  %v907_v18 = vld [vmem:[%s1204_s1 + $0x20] sm:$0xff]   ;;  %v911_v22 = vld [vmem:[%s1204_s1 + $0x28] sm:$0xff]  }
   0x8   :  { %824 = vmatpush3.bf16.msra.mxu0 %v895_v6  ;;  %v904_v15 = vld [vmem:[%s1204_s1 + $0x98] sm:$0xff]   ;;  %v908_v19 = vld [vmem:[%s1204_s1 + $0xa0] sm:$0xff]   ;;  %v912_v23 = vld [vmem:[%s1204_s1 + $0xa8] sm:$0xff]  }
   0x9   :  { %846 = vmatpush3.bf16.msra.mxu1 %v896_v7  ;;  %825 = vmatprep.subr.bf16.mxu0 %v897_v8  ;;  %v913_v24 = vld [vmem:[%s1204_s1 + $0x70] sm:$0xff]   ;;  %v917_v28 = vld [vmem:[%s1204_s1 + $0x78] sm:$0xff]   ;;  %v14_v32 = vld [vmem:[%s1205_s0] sm:$0xff] }
   0xa   :  { %847 = vmatprep.subr.bf16.mxu1 %v898_v9  ;;  %v914_v25 = vld [vmem:[%s1204_s1 + $0xf0] sm:$0xff]   ;;  %v918_v29 = vld [vmem:[%s1204_s1 + $0xf8] sm:$0xff]   ;;  %v18_v33 = vld [vmem:[%s1205_s0 + $0x20] sm:$0xff] }
   0xb   :  { %v915_v26 = vld [vmem:[%s1204_s1 + $0x30] sm:$0xff]   ;;  %v919_v30 = vld [vmem:[%s1204_s1 + $0x38] sm:$0xff]   ;;  %v15_v34 = vld [vmem:[%s1205_s0 + $0x8] sm:$0xff]  ;;  %v752_v35 = vcombine.low %v14_v32, %v18_v33  ;;  %v753_v36 = vcombine.high %v14_v32, %v18_v33 }
   0xc   :  { %826 = vmatpush3.bf16.msra.mxu0 %v899_v10  ;;  %v916_v27 = vld [vmem:[%s1204_s1 + $0xb0] sm:$0xff]   ;;  %v920_v31 = vld [vmem:[%s1204_s1 + $0xb8] sm:$0xff]   ;;  %v19_v37 = vld [vmem:[%s1205_s0 + $0x28] sm:$0xff] }
   0xd   :  { %848 = vmatpush3.bf16.msra.mxu1 %v900_v11  ;;  %827 = vmatprep.subr.bf16.mxu0 %v901_v12  ;;  %v754_v38 = vcombine.low %v15_v34, %v19_v37  ;;  %v755_v39 = vcombine.high %v15_v34, %v19_v37  ;;  %v921_v40 = vld [vmem:[%s1204_s1 + $0x140] sm:$0xff]   ;;  %v924_v44 = vld [vmem:[%s1204_s1 + $0x148] sm:$0xff]   ;;  %v927_v47 = vld [vmem:[%s1204_s1 + $0x150] sm:$0xff]  }
   0xe   :  { %849 = vmatprep.subr.bf16.mxu1 %v902_v13  ;;  %577 = vmatprep.mubr.bf16.mxu0 %v753_v36  ;;  %v922_v42 = vld [vmem:[%s1204_s1 + $0x100] sm:$0xff]   ;;  %v925_v45 = vld [vmem:[%s1204_s1 + $0x108] sm:$0xff]   ;;  %v928_v48 = vld [vmem:[%s1204_s1 + $0x110] sm:$0xff]   ;;  %v950_v13 = vmov 0.0  }
   0xf   :  { %618 = vmatprep.mubr.bf16.mxu1 %v755_v39  ;;  %v923_v43 = vld [vmem:[%s1204_s1 + $0x180] sm:$0xff]   ;;  %v926_v46 = vld [vmem:[%s1204_s1 + $0x188] sm:$0xff]   ;;  %v929_v49 = vld [vmem:[%s1204_s1 + $0x190] sm:$0xff]   ;;  %717 = vst.msk [vmem:[%s1206_s3] sm:$0x3] %vm716_vm1, %v950_v13 }
  0x10   :  { %828 = vmatpush3.bf16.msra.mxu0 %v903_v14  ;;  %v930_v50 = vld [vmem:[%s1204_s1 + $0x158] sm:$0xff]   ;;  %v933_v53 = vld [vmem:[%s1204_s1 + $0x160] sm:$0xff]   ;;  %v936_v56 = vld [vmem:[%s1204_s1 + $0x168] sm:$0xff]  }
  0x11   :  { %850 = vmatpush3.bf16.msra.mxu1 %v904_v15  ;;  %829 = vmatprep.subr.bf16.mxu0 %v905_v16  ;;  %v931_v51 = vld [vmem:[%s1204_s1 + $0x118] sm:$0xff]   ;;  %v934_v54 = vld [vmem:[%s1204_s1 + $0x120] sm:$0xff]   ;;  %v937_v57 = vld [vmem:[%s1204_s1 + $0x128] sm:$0xff]  }
  0x12   :  { %851 = vmatprep.subr.bf16.mxu1 %v906_v17  ;;  %v932_v52 = vld [vmem:[%s1204_s1 + $0x198] sm:$0xff]   ;;  %v935_v55 = vld [vmem:[%s1204_s1 + $0x1a0] sm:$0xff]   ;;  %v938_v58 = vld [vmem:[%s1204_s1 + $0x1a8] sm:$0xff]  }
  0x13   :  { %v939_v59 = vld [vmem:[%s1204_s1 + $0x170] sm:$0xff]   ;;  %v942_v1 = vld [vmem:[%s1204_s1 + $0x178] sm:$0xff]   ;;  %v945_v8 = vld [vmem:[%s1204_s1 + $0x1c0] sm:$0xff]  }
  0x14   :  { %830 = vmatpush3.bf16.msra.mxu0 %v907_v18  ;;  %v940_v60 = vld [vmem:[%s1204_s1 + $0x130] sm:$0xff]   ;;  %v943_v2 = vld [vmem:[%s1204_s1 + $0x138] sm:$0xff]   ;;  %v946_v9 = vld [vmem:[%s1204_s1 + $0x1c8] sm:$0xff]  }
  0x15   :  { %852 = vmatpush3.bf16.msra.mxu1 %v908_v19  ;;  %831 = vmatprep.subr.bf16.mxu0 %v909_v20  ;;  %v16_v61 = vld [vmem:[%s1205_s0 + $0x10] sm:$0xff]  ;;  %v944_v3 = vld [vmem:[%s1204_s1 + $0x1b8] sm:$0xff]  }
  0x16   :  { %853 = vmatprep.subr.bf16.mxu1 %v910_v21  ;;  %v20_v62 = vld [vmem:[%s1205_s0 + $0x30] sm:$0xff]  ;;  %v17_v4 = vld [vmem:[%s1205_s0 + $0x18] sm:$0xff] }
  0x17   :  { %v941_v63 = vld [vmem:[%s1204_s1 + $0x1b0] sm:$0xff]   ;;  %v757_v0 = vcombine.high %v16_v61, %v20_v62  ;;  %v21_v5 = vld [vmem:[%s1205_s0 + $0x38] sm:$0xff]  ;;  %v756_v7 = vcombine.low %v16_v61, %v20_v62  ;;  %v740_v62 = vld [vmem:[%s1206_s3] sm:$0x3] }
  0x18   :  { %832 = vmatpush3.bf16.msra.mxu0 %v911_v22  ;;  %v759_v6 = vcombine.high %v17_v4, %v21_v5  ;;  %v947_v10 = vld [vmem:[%s1204_s1 + $0x1d0] sm:$0xff]   ;;  %v948_v11 = vld [vmem:[%s1204_s1 + $0x1d8] sm:$0xff]   ;;  %v758_v12 = vcombine.low %v17_v4, %v21_v5 }
  0x19   :  { %854 = vmatpush3.bf16.msra.mxu1 %v912_v23  ;;  %833 = vmatprep.subr.bf16.mxu0 %v913_v24 }
  0x1a   :  { %855 = vmatprep.subr.bf16.mxu1 %v914_v25 }
  0x1c   :  { %834 = vmatpush3.bf16.msra.mxu0 %v915_v26 }
  0x1d   :  { %856 = vmatpush3.bf16.msra.mxu1 %v916_v27  ;;  %835 = vmatprep.subr.bf16.mxu0 %v917_v28 }
  0x1e   :  { %857 = vmatprep.subr.bf16.mxu1 %v918_v29 }
  0x20   :  { %836 = vmatpush3.bf16.msra.mxu0 %v919_v30 }
  0x21   :  { %858 = vmatpush3.bf16.msra.mxu1 %v920_v31  ;;  %865 = vmatprep.subr.bf16.mxu0 %v921_v40 }
  0x22   :  { %668 = vmatprep.subr.bf16.mxu1 %v949_v41 }
  0x23   :  { %578 = vmatmul.mubr.bf16.vlgmr.msra.gmra.mrb[0].mxu0 %v752_v35 }
  0x24   :  { %619 = vmatmul.mubr.bf16.vlgmr.msra.gmra.mrb[0].mxu1 %v754_v38  ;;  %866 = vmatpush3.bf16.msra.mxu0 %v922_v42 }
  0x25   :  { %669 = vmatpush1.bf16.msra.mxu1 %v923_v43  ;;  %867 = vmatprep.subr.bf16.mxu0 %v924_v44 }
  0x26   :  { %670 = vmatprep.subr.bf16.mxu1 %v949_v41  ;;  %659 = vmatprep.mubr.bf16.mxu0 %v757_v0 }
  0x27   :  { %820 = vmatprep.mubr.msk.bf16.mxu1 %vm541_vm0, %v759_v6 }
  0x28   :  { %868 = vmatpush3.bf16.msra.mxu0 %v925_v45 }
  0x29   :  { %671 = vmatpush1.bf16.msra.mxu1 %v926_v46  ;;  %869 = vmatprep.subr.bf16.mxu0 %v927_v47 }
  0x2a   :  { %672 = vmatprep.subr.bf16.mxu1 %v949_v41 }
  0x2c   :  { %870 = vmatpush3.bf16.msra.mxu0 %v928_v48 }
  0x2d   :  { %673 = vmatpush1.bf16.msra.mxu1 %v929_v49  ;;  %871 = vmatprep.subr.bf16.mxu0 %v930_v50 }
  0x2e   :  { %674 = vmatprep.subr.bf16.mxu1 %v949_v41 }
  0x30   :  { %872 = vmatpush3.bf16.msra.mxu0 %v931_v51 }
  0x31   :  { %675 = vmatpush1.bf16.msra.mxu1 %v932_v52  ;;  %873 = vmatprep.subr.bf16.mxu0 %v933_v53 }
  0x32   :  { %676 = vmatprep.subr.bf16.mxu1 %v949_v41 }
  0x34   :  { %874 = vmatpush3.bf16.msra.mxu0 %v934_v54 }
  0x35   :  { %677 = vmatpush1.bf16.msra.mxu1 %v935_v55  ;;  %875 = vmatprep.subr.bf16.mxu0 %v936_v56 }
  0x36   :  { %678 = vmatprep.subr.bf16.mxu1 %v949_v41 }
  0x38   :  { %876 = vmatpush3.bf16.msra.mxu0 %v937_v57 }
  0x39   :  { %679 = vmatpush1.bf16.msra.mxu1 %v938_v58  ;;  %877 = vmatprep.subr.bf16.mxu0 %v939_v59 }
  0x3a   :  { %680 = vmatprep.subr.bf16.mxu1 %v949_v41 }
  0x3c   :  { %878 = vmatpush3.bf16.msra.mxu0 %v940_v60 }
  0x3d   :  { %681 = vmatpush1.bf16.msra.mxu1 %v941_v63  ;;  %879 = vmatprep.subr.bf16.mxu0 %v942_v1 }
  0x3e   :  { %682 = vmatprep.subr.bf16.mxu1 %v949_v41 }
  0x40   :  { %880 = vmatpush3.bf16.msra.mxu0 %v943_v2 }
  0x41   :  { %683 = vmatpush1.bf16.msra.mxu1 %v944_v3 }
  0x42   :  { %684 = vmatprep.subr.bf16.mxu1 %v949_v41 }
  0x43   :  { %660 = vmatmul.mubr.bf16.vlgmr.msra.gmra.mrb[4].mxu0 %v756_v7 }
  0x45   :  { %685 = vmatpush1.bf16.msra.mxu1 %v945_v8 }
  0x46   :  { %686 = vmatprep.subr.bf16.mxu1 %v949_v41 }
  0x49   :  { %687 = vmatpush1.bf16.msra.mxu1 %v946_v9 }
  0x4a   :  { %688 = vmatprep.subr.bf16.mxu1 %v949_v41 }
  0x4d   :  { %689 = vmatpush1.bf16.msra.mxu1 %v947_v10 }
  0x4e   :  { %690 = vmatprep.subr.bf16.mxu1 %v949_v41 }
  0x51   :  { %691 = vmatpush1.bf16.msra.mxu1 %v948_v11 }
  0x54   :  { %701 = vmatmul.mubr.bf16.vlgmr.msra.gmra.mrb[4].mxu1 %v758_v12 }
  0xf6   :  { %v837_v14 = vpop.f32.mrb[0].mxu0 }
  0xf7   :  { %v859_v15 = vpop.f32.mrb[0].mxu1  ;;  %v838_v16 = vpop.f32.mrb[1].mxu0 }
  0xf8   :  { %v839_v17 = vadd.f32 %v838_v16, %v837_v14  ;;  %v860_v18 = vpop.f32.mrb[1].mxu1  ;;  %v840_v19 = vpop.f32.mrb[2].mxu0 }
  0xf9   :  { %v861_v20 = vadd.f32 %v860_v18, %v859_v15  ;;  %v862_v21 = vpop.f32.mrb[2].mxu1  ;;  %v841_v22 = vpop.f32.mrb[3].mxu0 }
  0xfa   :  { %v842_v23 = vadd.f32 %v841_v22, %v840_v19  ;;  %v863_v24 = vpop.f32.mrb[3].mxu1 }
  0xfb   :  { %v621_v25 = vadd.f32 %v861_v20, %v839_v17  ;;  %v864_v26 = vadd.f32 %v863_v24, %v862_v21 }
  0xfd   :  { %v624_v27 = vadd.f32 %v864_v26, %v842_v23 }
 0x116   :  { %v881_v28 = vpop.f32.mrb[4].mxu0 }
 0x117   :  { %v882_v29 = vpop.f32.mrb[5].mxu0 }
 0x118   :  { %v883_v30 = vadd.f32 %v882_v29, %v881_v28  ;;  %v884_v31 = vpop.f32.mrb[6].mxu0 }
 0x119   :  { %v885_v32 = vpop.f32.mrb[7].mxu0 }
 0x11a   :  { %v886_v33 = vadd.f32 %v885_v32, %v884_v31  ;;  %v662_v34 = vadd.f32 %v883_v30, %v621_v25 }
 0x11c   :  { %v665_v35 = vadd.f32 %v886_v33, %v624_v27 }
 0x127   :  { %v702_v36 = vpop.f32.mrb[4].mxu1 }
 0x128   :  { %v703_v37 = vadd.f32 %v702_v36, %v662_v34  ;;  %v704_v38 = vpop.f32.mrb[5].mxu1 }
 0x129   :  { %v705_v39 = vpop.f32.mrb[6].mxu1 }
 0x12a   :  { %710 = vst.msk [vmem:[%s1207_s2] sm:$0xff] %vm709_vm2, %v703_v37  ;;  %v727_v40 = vmul.f32 %v703_v37, %v703_v37  ;;  %v706_v41 = vadd.f32 %v705_v39, %v665_v35  ;;  %v707_v42 = vpop.f32.mrb[7].mxu1  ;;  %v718_v43 = vsel %vm709_vm2, %v703_v37, 0.0 }
 0x12c   :  { %711 = vst.msk [vmem:[%s1207_s2 + $0x8] sm:$0xff] %vm709_vm2, %v706_v41  ;;  %v719_v44 = vsel %vm709_vm2, %v706_v41, 0.0  ;;  %v728_v45 = vmul.f32 %v706_v41, %v706_v41  ;;  %v729_v47 = vsel %vm709_vm2, %v727_v40, 0.0 }
 0x12d   :  { %v720_v46 = vadd.f32 %v719_v44, %v718_v43 }
 0x12e   :  { %v730_v48 = vsel %vm709_vm2, %v728_v45, 0.0 }
 0x12f   :  { %v721_v49 = vrot.slane %v720_v46, 4  ;;  %v731_v50 = vadd.f32 %v730_v48, %v729_v47 }
 0x131   :  { %v722_v51 = vadd.f32 %v721_v49, %v720_v46  ;;  %v732_v52 = vrot.slane %v731_v50, 4 }
 0x133   :  { %v723_v53 = vrot.slane %v722_v51, 2  ;;  %v733_v54 = vadd.f32 %v732_v52, %v731_v50 }
 0x135   :  { %v724_v55 = vadd.f32 %v723_v53, %v722_v51  ;;  %v734_v56 = vrot.slane %v733_v54, 2 }
 0x137   :  { %v725_v57 = vrot.slane %v724_v55, 1  ;;  %v735_v58 = vadd.f32 %v734_v56, %v733_v54 }
 0x139   :  { %v736_v59 = vrot.slane %v735_v58, 1  ;;  %v726_v60 = vadd.f32 %v725_v57, %v724_v55 }
 0x13b   :  { %v737_v61 = vadd.f32 %v736_v59, %v735_v58 }
 0x13d   :  { %v739_v63 = vsel %vm738_vm3, %v726_v60, %v737_v61 }
 0x13e   :  { %v741_v0 = vadd.f32 %v740_v62, %v739_v63 }
 0x140   :  { %743 = vst.msk [vmem:[%s1206_s3] sm:$0x3] %vm716_vm1, %v741_v0 }

// kernel: _lambda_.133
= control target key start
LH: loop header
LB: loop body
LE: loop exit
PB: predicated region body
PF: predicated region fallthrough
CT: control target
= control target key end

     0   :  { %v241_v0 = vmov 0   ;;  %vm117_vm0 = vcmask 424960   ;;  %vm121_vm1 = vcmask 1041408   ;;  %vm173_vm2 = vcmask 189440   ;;  %s322_s1 = inlined_call_operand.vmem [shape: bf16[180,24], index: 1, kind: input, shape index: {}]   ;;  %s323_s0 = inlined_call_operand.vmem [shape: bf16[16,180], index: 0, kind: input, shape index: {}]   ;;  %s324_s3 = inlined_call_operand.vmem [shape: f32[2,24], index: 3, kind: output, shape index: {1}]   ;;  %s325_s2 = inlined_call_operand.vmem [shape: f32[16,24], index: 2, kind: output, shape index: {0}]  }
   0x1   :  { %125 = vmatprep.subr.bf16.mxu0 %v241_v0  ;;  %v226_v1 = vld [vmem:[%s322_s1] sm:$0xff]   ;;  %v227_v2 = vld [vmem:[%s322_s1 + $0x8] sm:$0xff]   ;;  %v228_v3 = vld [vmem:[%s322_s1 + $0x10] sm:$0xff]   ;;  %v242_v16 = vmov 0.0   ;;  %vm166_vm3 = vcmask 195584   ;;  %vm195_vm4 = vcmask 1040384  }
   0x2   :  { %126 = vmatpush1.bf16.msra.mxu0 %v226_v1  ;;  %v229_v4 = vld [vmem:[%s322_s1 + $0x18] sm:$0xff]   ;;  %v240_v5 = vld [vmem:[%s323_s0 + $0x4] ss:$8 sps:$4 sm:$0xff]   ;;  %v232_v8 = vld [vmem:[%s322_s1 + $0x30] sm:$0xff]   ;;  %174 = vst.msk [vmem:[%s324_s3] sm:$0x3] %vm173_vm2, %v242_v16 }
   0x3   :  { %127 = vmatprep.subr.bf16.mxu0 %v241_v0  ;;  %v230_v6 = vld [vmem:[%s322_s1 + $0x20] sm:$0xff]   ;;  %223 = vmatprep.mubr.msk.bf16.mxu0 %vm117_vm0, %v240_v5  ;;  %v231_v7 = vld [vmem:[%s322_s1 + $0x28] sm:$0xff]   ;;  %v233_v9 = vld [vmem:[%s322_s1 + $0x38] sm:$0xff]  }
   0x4   :  { %v234_v10 = vld [vmem:[%s322_s1 + $0x40] sm:$0xff]   ;;  %v235_v11 = vld [vmem:[%s322_s1 + $0x48] sm:$0xff]   ;;  %v236_v12 = vld [vmem:[%s322_s1 + $0x50] sm:$0xff]  }
   0x5   :  { %v237_v13 = vld [vmem:[%s322_s1 + $0x58] ss:$0 sps:$4 sm:$0x33]   ;;  %v238_v15 = vld [vmem:[%s323_s0] ss:$8 sps:$4 sm:$0xff]  }
   0x6   :  { %128 = vmatpush1.bf16.msra.mxu0 %v227_v2  ;;  %v123_v14 = vsel %vm121_vm1, %v237_v13, 0 }
   0x7   :  { %129 = vmatprep.subr.bf16.mxu0 %v241_v0 }
   0x9   :  { %v197_v41 = vld [vmem:[%s324_s3] sm:$0x3] }
   0xa   :  { %130 = vmatpush1.bf16.msra.mxu0 %v228_v3 }
   0xb   :  { %131 = vmatprep.subr.bf16.mxu0 %v241_v0 }
   0xe   :  { %132 = vmatpush1.bf16.msra.mxu0 %v229_v4 }
   0xf   :  { %133 = vmatprep.subr.bf16.mxu0 %v241_v0 }
  0x12   :  { %134 = vmatpush1.bf16.msra.mxu0 %v230_v6 }
  0x13   :  { %135 = vmatprep.subr.bf16.mxu0 %v241_v0 }
  0x16   :  { %136 = vmatpush1.bf16.msra.mxu0 %v231_v7 }
  0x17   :  { %137 = vmatprep.subr.bf16.mxu0 %v241_v0 }
  0x1a   :  { %138 = vmatpush1.bf16.msra.mxu0 %v232_v8 }
  0x1b   :  { %139 = vmatprep.subr.bf16.mxu0 %v241_v0 }
  0x1e   :  { %140 = vmatpush1.bf16.msra.mxu0 %v233_v9 }
  0x1f   :  { %141 = vmatprep.subr.bf16.mxu0 %v241_v0 }
  0x22   :  { %142 = vmatpush1.bf16.msra.mxu0 %v234_v10 }
  0x23   :  { %143 = vmatprep.subr.bf16.mxu0 %v241_v0 }
  0x26   :  { %144 = vmatpush1.bf16.msra.mxu0 %v235_v11 }
  0x27   :  { %145 = vmatprep.subr.bf16.mxu0 %v241_v0 }
  0x2a   :  { %146 = vmatpush1.bf16.msra.mxu0 %v236_v12 }
  0x2b   :  { %147 = vmatprep.subr.bf16.mxu0 %v241_v0 }
  0x2e   :  { %148 = vmatpush1.bf16.msra.mxu0 %v123_v14 }
  0x31   :  { %158 = vmatmul.mubr.bf16.vlgmr.msra.gmra.mrb[0].mxu0 %v238_v15 }
 0x104   :  { %v159_v17 = vpop.f32.mrb[0].mxu0 }
 0x105   :  { %167 = vst.msk [vmem:[%s325_s2] sm:$0xff] %vm166_vm3, %v159_v17  ;;  %v184_v18 = vmul.f32 %v159_v17, %v159_v17  ;;  %v161_v19 = vpop.f32.mrb[1].mxu0  ;;  %v175_v21 = vsel %vm166_vm3, %v159_v17, 0.0 }
 0x106   :  { %v162_v20 = vpop.f32.mrb[2].mxu0 }
 0x107   :  { %168 = vst.msk [vmem:[%s325_s2 + $0x8] sm:$0xff] %vm166_vm3, %v162_v20  ;;  %v176_v22 = vsel %vm166_vm3, %v162_v20, 0.0  ;;  %v185_v23 = vmul.f32 %v162_v20, %v162_v20  ;;  %v164_v24 = vpop.f32.mrb[3].mxu0  ;;  %v186_v26 = vsel %vm166_vm3, %v184_v18, 0.0 }
 0x108   :  { %v177_v25 = vadd.f32 %v176_v22, %v175_v21 }
 0x109   :  { %v187_v27 = vsel %vm166_vm3, %v185_v23, 0.0 }
 0x10a   :  { %v178_v28 = vrot.slane %v177_v25, 4  ;;  %v188_v29 = vadd.f32 %v187_v27, %v186_v26 }
 0x10c   :  { %v179_v30 = vadd.f32 %v178_v28, %v177_v25  ;;  %v189_v31 = vrot.slane %v188_v29, 4 }
 0x10e   :  { %v180_v32 = vrot.slane %v179_v30, 2  ;;  %v190_v33 = vadd.f32 %v189_v31, %v188_v29 }
 0x110   :  { %v181_v34 = vadd.f32 %v180_v32, %v179_v30  ;;  %v191_v35 = vrot.slane %v190_v33, 2 }
 0x112   :  { %v182_v36 = vrot.slane %v181_v34, 1  ;;  %v192_v37 = vadd.f32 %v191_v35, %v190_v33 }
 0x114   :  { %v193_v38 = vrot.slane %v192_v37, 1  ;;  %v183_v39 = vadd.f32 %v182_v36, %v181_v34 }
 0x116   :  { %v194_v40 = vadd.f32 %v193_v38, %v192_v37 }
 0x118   :  { %v196_v42 = vsel %vm195_vm4, %v183_v39, %v194_v40 }
 0x119   :  { %v198_v43 = vadd.f32 %v197_v41, %v196_v42 }
 0x11b   :  { %200 = vst.msk [vmem:[%s324_s3] sm:$0x3] %vm173_vm2, %v198_v43 }

// kernel: _lambda_.135
= control target key start
LH: loop header
LB: loop body
LE: loop exit
PB: predicated region body
PF: predicated region fallthrough
CT: control target
= control target key end

     0   :  { %v200_v0 = vmov 0.0   ;;  %vm201_vm0 = vmmov 0   ;;  %vm72_vm1 = vcmask 1044480   ;;  %vm68_vm2 = vcmask 736256   ;;  %s260_s1 = inlined_call_operand.vmem [shape: bf16[90,24], index: 1, kind: input, shape index: {}]   ;;  %s261_s0 = inlined_call_operand.vmem [shape: bf16[16,90], index: 0, kind: input, shape index: {}]   ;;  %s262_s3 = inlined_call_operand.vmem [shape: f32[2,24], index: 3, kind: output, shape index: {1}]   ;;  %s263_s2 = inlined_call_operand.vmem [shape: f32[16,24], index: 2, kind: output, shape index: {0}]  }
   0x1   :  { %175 = vmatprep.subr.bf16.mxu0 %v200_v0  ;;  %v193_v1 = vld [vmem:[%s260_s1] sm:$0xff]   ;;  %187 = vmatprep.mubr.msk.bf16.mxu0 %vm201_vm0, %v200_v0  ;;  %v194_v2 = vld [vmem:[%s260_s1 + $0x8] sm:$0xff]   ;;  %v195_v3 = vld [vmem:[%s260_s1 + $0x10] sm:$0xff]   ;;  %vm124_vm3 = vcmask 189440   ;;  %vm117_vm4 = vcmask 195584   ;;  %vm146_vm5 = vcmask 1040384  }
   0x2   :  { %176 = vmatpush3.bf16.msra.mxu0 %v193_v1  ;;  %v196_v4 = vld [vmem:[%s260_s1 + $0x18] sm:$0xff]   ;;  %v197_v5 = vld [vmem:[%s260_s1 + $0x20] sm:$0xff]   ;;  %v198_v6 = vld [vmem:[%s260_s1 + $0x28] sm:$0x1f]   ;;  %125 = vst.msk [vmem:[%s262_s3] sm:$0x3] %vm124_vm3, %v200_v0 }
   0x3   :  { %177 = vmatprep.subr.bf16.mxu0 %v200_v0  ;;  %v74_v7 = vsel %vm72_vm1, %v198_v6, 0  ;;  %v199_v8 = vld [vmem:[%s261_s0] sm:$0xff]  }
   0x6   :  { %178 = vmatpush3.bf16.msra.mxu0 %v194_v2 }
   0x7   :  { %179 = vmatprep.subr.bf16.mxu0 %v200_v0 }
   0x9   :  { %v148_v33 = vld [vmem:[%s262_s3] sm:$0x3] }
   0xa   :  { %180 = vmatpush3.bf16.msra.mxu0 %v195_v3 }
   0xb   :  { %181 = vmatprep.subr.bf16.mxu0 %v200_v0 }
   0xe   :  { %182 = vmatpush3.bf16.msra.mxu0 %v196_v4 }
   0xf   :  { %183 = vmatprep.subr.bf16.mxu0 %v200_v0 }
  0x12   :  { %184 = vmatpush3.bf16.msra.mxu0 %v197_v5 }
  0x13   :  { %185 = vmatprep.subr.bf16.mxu0 %v200_v0 }
  0x16   :  { %186 = vmatpush3.bf16.msra.mxu0 %v74_v7 }
  0x19   :  { %188 = vmatmul.mubr.msk.bf16.vlgmr.msra.gmra.mrb[0].mxu0 %vm68_vm2, %v199_v8 }
  0xec   :  { %v110_v9 = vpop.f32.mrb[0].mxu0 }
  0xed   :  { %118 = vst.msk [vmem:[%s263_s2] sm:$0xff] %vm117_vm4, %v110_v9  ;;  %v135_v10 = vmul.f32 %v110_v9, %v110_v9  ;;  %v189_v11 = vpop.f32.mrb[1].mxu0  ;;  %v126_v13 = vsel %vm117_vm4, %v110_v9, 0.0 }
  0xee   :  { %v113_v12 = vpop.f32.mrb[2].mxu0 }
  0xef   :  { %119 = vst.msk [vmem:[%s263_s2 + $0x8] sm:$0xff] %vm117_vm4, %v113_v12  ;;  %v127_v14 = vsel %vm117_vm4, %v113_v12, 0.0  ;;  %v136_v15 = vmul.f32 %v113_v12, %v113_v12  ;;  %v190_v16 = vpop.f32.mrb[3].mxu0  ;;  %v137_v18 = vsel %vm117_vm4, %v135_v10, 0.0 }
  0xf0   :  { %v128_v17 = vadd.f32 %v127_v14, %v126_v13 }
  0xf1   :  { %v138_v19 = vsel %vm117_vm4, %v136_v15, 0.0 }
  0xf2   :  { %v129_v20 = vrot.slane %v128_v17, 4  ;;  %v139_v21 = vadd.f32 %v138_v19, %v137_v18 }
  0xf4   :  { %v130_v22 = vadd.f32 %v129_v20, %v128_v17  ;;  %v140_v23 = vrot.slane %v139_v21, 4 }
  0xf6   :  { %v131_v24 = vrot.slane %v130_v22, 2  ;;  %v141_v25 = vadd.f32 %v140_v23, %v139_v21 }
  0xf8   :  { %v132_v26 = vadd.f32 %v131_v24, %v130_v22  ;;  %v142_v27 = vrot.slane %v141_v25, 2 }
  0xfa   :  { %v133_v28 = vrot.slane %v132_v26, 1  ;;  %v143_v29 = vadd.f32 %v142_v27, %v141_v25 }
  0xfc   :  { %v144_v30 = vrot.slane %v143_v29, 1  ;;  %v134_v31 = vadd.f32 %v133_v28, %v132_v26 }
  0xfe   :  { %v145_v32 = vadd.f32 %v144_v30, %v143_v29 }
 0x100   :  { %v147_v34 = vsel %vm146_vm5, %v134_v31, %v145_v32 }
 0x101   :  { %v149_v35 = vadd.f32 %v148_v33, %v147_v34 }
 0x103   :  { %151 = vst.msk [vmem:[%s262_s3] sm:$0x3] %vm124_vm3, %v149_v35 }

// kernel: tile.658
= control target key start
LH: loop header
LB: loop body
LE: loop exit
PB: predicated region body
PF: predicated region fallthrough
CT: control target
= control target key end

     0   :  { %s22_s0 = inlined_call_operand.vmem [shape: f32[3], index: 0, kind: input, shape index: {}]   ;;  %s23_s1 = inlined_call_operand.vmem [shape: f32[4,3], index: 1, kind: output, shape index: {}]  }
   0x1   :  { %v4_v0 = vld [vmem:[%s22_s0] ss:$0 sm:$0xff] }
   0x2   :  { %5 = vst [vmem:[%s23_s1] sm:$0xf] %v4_v0 }

// kernel: tile.659
= control target key start
LH: loop header
LB: loop body
LE: loop exit
PB: predicated region body
PF: predicated region fallthrough
CT: control target
= control target key end

     0   :  { %vm7_vm0 = vcmask 23552   ;;  %s37_s8 = smov 3   ;;  %s38_s9 = smov 6   ;;  %vm13_vm1 = vcmask 97352   ;;  %vm19_vm2 = vcmask 72752   ;;  %vm25_vm3 = vcmask 48152   ;;  %s55_s0 = inlined_call_operand.vmem [shape: f32[4,3], index: 0, kind: input, shape index: {}]   ;;  %s56_s1 = inlined_call_operand.vmem [shape: f32[1,12], index: 1, kind: output, shape index: {}]  }
   0x1   :  { %v4_v0 = vld [vmem:[%s55_s0] sm:$0xf]  ;;  %s36_s0 = smov 9  }
   0x2   :  { %5 = vst [vmem:[#allocation1] sm:$0xf] %v4_v0 }
   0x9   :  { %v10_v1 = vld [vmem:[#allocation1 + $0x3] sm:$0x1]   ;;  %v22_v2 = vld [vmem:[#allocation1 + $0x1] sm:$0x1]   ;;  %v6_v3 = vld [vmem:[#allocation1] sm:$0x1]  }
   0xa   :  { %11 = vrot.lane.b32.xlu0 %v10_v1, %s36_s0  ;;  %23 = vrot.lane.b32.xlu1 %v22_v2, %s37_s8  ;;  %v16_v4 = vld [vmem:[#allocation1 + $0x2] sm:$0x1]   ;;  %8 = vst.msk [vmem:[#allocation0] sm:$0x1] %vm7_vm0, %v6_v3  }
   0xe   :  { %17 = vrot.lane.b32.xlu0 %v16_v4, %s38_s9 }
  0x7c   :  { %v12_v5 = vpop.permute.xlu0 %11   ;;  %v24_v6 = vpop.permute.xlu1 %23  }
  0x7d   :  { %14 = vst.msk [vmem:[#allocation0] sm:$0x1] %vm13_vm1, %v12_v5  }
  0x80   :  { %v18_v7 = vpop.permute.xlu0 %17  }
  0x81   :  { %20 = vst.msk [vmem:[#allocation0] sm:$0x1] %vm19_vm2, %v18_v7  }
  0x82   :  { %26 = vst.msk [vmem:[#allocation0] sm:$0x1] %vm25_vm3, %v24_v6  }
  0x89   :  { %v30_v8 = vld [vmem:[#allocation0] sm:$0x1] }
  0x8a   :  { %32 = vst [vmem:[%s56_s1] sm:$0x1] %v30_v8 }

// kernel: _lambda_.141
= control target key start
LH: loop header
LB: loop body
LE: loop exit
PB: predicated region body
PF: predicated region fallthrough
CT: control target
= control target key end

     0   :  { %s528_s12 = smov 0   ;;  %s563_s0 = inlined_call_operand.vmem [shape: bf16[128,3], index: 0, kind: input, shape index: {}]   ;;  %s564_s1 = inlined_call_operand.vmem [shape: bf16[3,12], index: 1, kind: input, shape index: {}]   ;;  %s565_s2 = inlined_call_operand.vmem [shape: f32[1,12], index: 2, kind: input, shape index: {}]   ;;  %s566_s3 = inlined_call_operand.vmem [shape: f32[128,12], index: 3, kind: output, shape index: {}]  }
   0x1 LB: > { %s409_s13 = sadd.s32 4294967295, %s505_s12   ;;  %p413_p0 = scmp.ge.s32.totalorder %s505_s12, 1  ;;  %s505_s12 = sphi %s528_s12, %s13_s12  }
   0x2   : > { %p138_p1 = scmp.lt.s32.totalorder %s505_s12, 3 }
   0x4   : > { %p139_p2 = pnand %p413_p0, %p138_p1 }
   0x5   : > { %v183_v0 = vld [vmem:[%s564_s1] sm:$0x3] (!%p139_p2)  ;;  %vm224_vm0 = vcmask (!%p139_p2), 1040384   ;;  %vm225_vm1 = vcmask (!%p139_p2), 1041408   ;;  %s414_s16 = sshll.u32 (!%p139_p2), %s409_s13, 3  ;;  %v507_v1 = vmov (!%p139_p2), 65535  }
   0x6   : > { %142 = sbr.rel (%p139_p2) target bundleno = 266 (0x10a), region = 32  ;;  %v226_v2 = vsel (!%p139_p2), %vm224_vm0, 4294967295, %v507_v1  ;;  %p163_p3 = scmp.lt.s32.totalorder (!%p139_p2), %s414_s16, 15  ;;  %vm211_vm2 = vcmask (!%p139_p2), 23552   ;;  %v418_v9 = vld [vmem:[%s565_s2] ss:$0 sm:$0xff] (!%p139_p2) }
   0x7   : > { %v227_v3 = vsel (!%p139_p2), %vm225_vm1, %v226_v2, 0  ;;  %vm344_vm3 = vcmask (!%p139_p2), 97280  }
   0x8   : > { %v229_v4 = vand.u32 (!%p139_p2), %v227_v3, %v183_v0 }
   0xa   : > { %442 = vmatprep.subr.bf16.mxu0 (!%p139_p2), %v229_v4  ;;  %452 = vmatprep.subr.bf16.mxu1 (!%p139_p2), %v229_v4 }
   0xb   : > { %443 = vmatpush3.bf16.msra.mxu0 (!%p139_p2), %v229_v4  ;;  %453 = vmatpush3.bf16.msra.mxu1 (!%p139_p2), %v229_v4 }
   0xd   : > { %s568_s16 = smov (!%p163_p3, %s414_s16), 15 }
   0xe   : > { %s415_s17 = sshll.u32 %s568_s16, 2  ;;  %s417_s23 = sshll.u32 %s568_s16, 3 }
   0xf   : > { %s166_s20 = scalar_lea.vmem %s563_s0, %s415_s17  ;;  %s172_s26 = scalar_lea.vmem %s566_s3, %s417_s23 }
  0x10   : > { %v463_v5 = vld [vmem:[%s166_s20] sm:$0xff]   ;;  %v464_v6 = vld [vmem:[%s166_s20 + $0x10] sm:$0xff]   ;;  %v465_v7 = vld [vmem:[%s166_s20 + $0x8] sm:$0xff]  }
  0x11   : > { %444 = vmatprep.mubr.msk.bf16.mxu0 %vm211_vm2, %v463_v5  ;;  %448 = vmatprep.mubr.msk.bf16.mxu1 %vm211_vm2, %v464_v6  ;;  %v466_v8 = vld [vmem:[%s166_s20 + $0x18] sm:$0xff]  }
  0x12   : > { %445 = vmatmul.mubr.msk.bf16.vlgmr.msra.gmra.mrb[0].mxu0 %vm211_vm2, %v465_v7  ;;  %449 = vmatmul.mubr.msk.bf16.vlgmr.msra.gmra.mrb[0].mxu1 %vm211_vm2, %v466_v8 }
  0xe5   : > { %v446_v10 = vpop.f32.mrb[0].mxu0  ;;  %v450_v12 = vpop.f32.mrb[0].mxu1 }
  0xe6   : > { %v274_v11 = vadd.f32 %v446_v10, %v418_v9  ;;  %v265_v13 = vpop.f32.mrb[1].mxu0  ;;  %v290_v14 = vadd.f32 %v450_v12, %v418_v9  ;;  %v281_v16 = vpop.f32.mrb[1].mxu1 }
  0xe7   : > { %v266_v15 = vadd.f32 %v418_v9, %v265_v13  ;;  %v447_v17 = vpop.f32.mrb[2].mxu0  ;;  %v282_v19 = vadd.f32 %v418_v9, %v281_v16  ;;  %v451_v21 = vpop.f32.mrb[2].mxu1 }
  0xe8   : > { %v429_v18 = vmul.f32 -1.442695, %v274_v11  ;;  %v277_v20 = vadd.f32 %v447_v17, %v418_v9  ;;  %v268_v22 = vpop.f32.mrb[3].mxu0  ;;  %v433_v23 = vmul.f32 -1.442695, %v290_v14  ;;  %v293_v25 = vadd.f32 %v451_v21, %v418_v9  ;;  %v284_v27 = vpop.f32.mrb[3].mxu1 }
  0xe9   : > { %v427_v24 = vmul.f32 -1.442695, %v266_v15  ;;  %v269_v26 = vadd.f32 %v418_v9, %v268_v22  ;;  %v431_v28 = vmul.f32 -1.442695, %v282_v19  ;;  %v285_v30 = vadd.f32 %v418_v9, %v284_v27 }
  0xea   : > { %467 = vpow2.f32 %v429_v18  ;;  %v430_v29 = vmul.f32 -1.442695, %v277_v20  ;;  %v434_v31 = vmul.f32 -1.442695, %v293_v25 }
  0xeb   : > { %469 = vpow2.f32 %v433_v23  ;;  %v428_v32 = vmul.f32 -1.442695, %v269_v26  ;;  %v432_v33 = vmul.f32 -1.442695, %v285_v30 }
  0xec   : > { %471 = vpow2.f32 %v427_v24 }
  0xed   : > { %473 = vpow2.f32 %v431_v28 }
  0xee   : > { %475 = vpow2.f32 %v430_v29 }
  0xef   : > { %477 = vpow2.f32 %v434_v31 }
  0xf0   : > { %479 = vpow2.f32 %v428_v32 }
  0xf1   : > { %481 = vpow2.f32 %v432_v33 }
  0xf4   : > { %v468_v34 = vpop.eup %467 }
  0xf5   : > { %v470_v35 = vpop.eup %469  ;;  %v322_v36 = vadd.f32 1.0, %v468_v34 }
  0xf6   : > { %v472_v37 = vpop.eup %471  ;;  %v326_v38 = vadd.f32 1.0, %v470_v35 }
  0xf7   : > { %v474_v39 = vpop.eup %473  ;;  %483 = vrcp.f32 %v322_v36  ;;  %v320_v40 = vadd.f32 1.0, %v472_v37 }
  0xf8   : > { %v476_v41 = vpop.eup %475  ;;  %485 = vrcp.f32 %v326_v38  ;;  %v324_v42 = vadd.f32 1.0, %v474_v39 }
  0xf9   : > { %v478_v43 = vpop.eup %477  ;;  %487 = vrcp.f32 %v320_v40  ;;  %v323_v44 = vadd.f32 1.0, %v476_v41 }
  0xfa   : > { %v480_v45 = vpop.eup %479  ;;  %489 = vrcp.f32 %v324_v42  ;;  %v327_v46 = vadd.f32 1.0, %v478_v43 }
  0xfb   : > { %v482_v47 = vpop.eup %481  ;;  %491 = vrcp.f32 %v323_v44  ;;  %v321_v48 = vadd.f32 1.0, %v480_v45 }
  0xfc   : > { %493 = vrcp.f32 %v327_v46  ;;  %v325_v49 = vadd.f32 1.0, %v482_v47 }
  0xfd   : > { %495 = vrcp.f32 %v321_v48 }
  0xfe   : > { %497 = vrcp.f32 %v325_v49 }
 0x101   : > { %v484_v50 = vpop.eup %483 }
 0x102   : > { %v486_v51 = vpop.eup %485  ;;  %347 = vst.msk [vmem:[%s172_s26 + $0x10] sm:$0xff] %vm344_vm3, %v484_v50 }
 0x103   : > { %v488_v52 = vpop.eup %487  ;;  %351 = vst.msk [vmem:[%s172_s26 + $0x30] sm:$0xff] %vm344_vm3, %v486_v51 }
 0x104   : > { %v490_v53 = vpop.eup %489  ;;  %345 = vst.msk [vmem:[%s172_s26] sm:$0xff] %vm344_vm3, %v488_v52 }
 0x105   : > { %v492_v54 = vpop.eup %491  ;;  %349 = vst.msk [vmem:[%s172_s26 + $0x20] sm:$0xff] %vm344_vm3, %v490_v53 }
 0x106   : > { %v494_v55 = vpop.eup %493  ;;  %348 = vst.msk [vmem:[%s172_s26 + $0x18] sm:$0xff] %vm344_vm3, %v492_v54 }
 0x107   : > { %v496_v56 = vpop.eup %495  ;;  %352 = vst.msk [vmem:[%s172_s26 + $0x38] sm:$0xff] %vm344_vm3, %v494_v55 }
 0x108   : > { %v498_v57 = vpop.eup %497  ;;  %346 = vst.msk [vmem:[%s172_s26 + $0x8] sm:$0xff] %vm344_vm3, %v496_v56 }
 0x109   : > { %350 = vst.msk [vmem:[%s172_s26 + $0x28] sm:$0xff] %vm344_vm3, %v498_v57 }
 0x10a PF: > { %s13_s12 = sadd.s32 1, %s505_s12  }
 0x10b   : > { %p10_p4 = scmp.ge.s32.totalorder %s13_s12, 4  }
 0x10d   :  { %12 = sbr.rel (!%p10_p4) target bundleno = 1 (0x1), region = 62 }

</bundles_post_ra>
